<compile_context>
chip_gen: v6e
topology: v6e:2x2x1
jax: 0.10.0
libtpu: 0.0.40
codegen_flags: <defaults>
</compile_context>

<pallas_src>
import functools
import math

import jax
import jax.numpy as jnp
from jax.experimental import pallas as pl
from jax.experimental.pallas import tpu as pltpu


# --------------------------------------------------------------------------
# Fused RDB kernel: one grid step == one image.
# --------------------------------------------------------------------------
def _rdb_kernel(x_ref, w_ref, b_ref, o_ref, feat_ref, *, nf, gc, neg_slope):
    # x_ref:    (1, H, W, nf)        f32   input image (NHWC)
    # w_ref:    (5, 9*CP, COUT_PAD)  bf16  stacked, zero-padded conv weights
    # b_ref:    (5, COUT_PAD)        f32   stacked, zero-padded biases
    # o_ref:    (1, H*W, nf)         f32   output (flattened spatial)
    # feat_ref: (H+2, W+2, CP)       f32   VMEM dense-feature buffer (padded)
    h, w = x_ref.shape[1], x_ref.shape[2]
    hw = h * w
    cp = feat_ref.shape[-1]          # channel capacity, multiple of 128

    # Zero the feature buffer: provides (a) the conv zero-padding border and
    # (b) zero content for not-yet-computed dense channels / padding channels.
    feat_ref[...] = jnp.zeros_like(feat_ref)

    x0 = x_ref[0]                                       # (h, w, nf) f32
    feat_ref[1:h + 1, 1:w + 1, 0:nf] = x0               # channels [0:nf] = x

    bias = b_ref[...]                                   # (5, COUT_PAD) f32

    # Statically unrolled over the 5 dense convs. conv k reads channels
    # [0 : nf + k*gc] (plus zero padding -- its weight rows there are zero)
    # and writes channels [nf + k*gc : nf + (k+1)*gc].
    for k in range(5):
        # In-VMEM im2col: 9 shifted (h, w, cp) windows -> (hw, 9*cp) bf16.
        cols = []
        for dy in range(3):
            for dx in range(3):
                tap = feat_ref[dy:dy + h, dx:dx + w, :]          # (h, w, cp)
                cols.append(tap.astype(jnp.bfloat16).reshape(hw, cp))
        lhs = jnp.concatenate(cols, axis=-1)                     # (hw, 9*cp)

        # Single deep-K MXU matmul, f32 accumulation.
        acc = jnp.dot(lhs, w_ref[k],
                      preferred_element_type=jnp.float32)        # (hw, COUT_PAD)
        acc = acc + bias[k:k + 1, :]

        if k < 4:
            y = jnp.where(acc > 0, acc, neg_slope * acc)         # LeakyReLU
            c0 = nf + k * gc
            feat_ref[1:h + 1, 1:w + 1, c0:c0 + gc] = (
                y[:, :gc].reshape(h, w, gc))
        else:
            # x5 * 0.2 + x  (x kept in f32 straight from the input block)
            res = acc[:, :nf] * 0.2 + x0.reshape(hw, nf)
            o_ref[0] = res.astype(o_ref.dtype)


# --------------------------------------------------------------------------
# Wrapper: weight packing + pallas_call. Input/output NCHW like PyTorch.
# --------------------------------------------------------------------------
def _pack_params(params, cp, cout_pad):
    """Zero-pad Cin->cp, Cout->cout_pad, flatten taps, stack the 5 convs."""
    ws, bs = [], []
    for (wt, bt) in params:                 # wt: (3, 3, cin, cout) HWIO
        cin, cout = wt.shape[2], wt.shape[3]
        wp = jnp.zeros((3, 3, cp, cout_pad), jnp.float32)
        wp = wp.at[:, :, :cin, :cout].set(wt)
        ws.append(wp.reshape(9 * cp, cout_pad))     # tap-major, matches concat
        bp = jnp.zeros((cout_pad,), jnp.float32).at[:cout].set(bt)
        bs.append(bp)
    return (jnp.stack(ws).astype(jnp.bfloat16),     # (5, 9*cp, cout_pad) bf16
            jnp.stack(bs))                          # (5, cout_pad)       f32


def rdb_forward(x_nchw, params, *, nf=32, gc=16, neg_slope=0.2):
    n, c, h, w = x_nchw.shape
    assert c == nf
    hw = h * w
    cp = 128 * pl.cdiv(nf + 4 * gc, 128)            # lane-aligned channel pad
    cout_pad = max(nf, gc)

    x_nhwc = jnp.transpose(x_nchw, (0, 2, 3, 1))    # layout glue only
    w_stk, b_stk = _pack_params(params, cp, cout_pad)

    kernel = functools.partial(_rdb_kernel, nf=nf, gc=gc, neg_slope=neg_slope)

    out = pl.pallas_call(
        kernel,
        out_shape=jax.ShapeDtypeStruct((n, hw, nf), jnp.float32),
        grid=(n,),
        in_specs=[
            pl.BlockSpec((1, h, w, nf), lambda i: (i, 0, 0, 0)),
            pl.BlockSpec((5, 9 * cp, cout_pad), lambda i: (0, 0, 0)),
            pl.BlockSpec((5, cout_pad), lambda i: (0, 0)),
        ],
        out_specs=pl.BlockSpec((1, hw, nf), lambda i: (i, 0, 0)),
        scratch_shapes=[pltpu.VMEM((h + 2, w + 2, cp), jnp.float32)],
        compiler_params=pltpu.CompilerParams(
            dimension_semantics=("parallel",),
            vmem_limit_bytes=32 * 1024 * 1024),
    )(x_nhwc, w_stk, b_stk)

    return jnp.transpose(out.reshape(n, h, w, nf), (0, 3, 1, 2))   # -> NCHW


# --------------------------------------------------------------------------
# Deterministic parameter construction (HWIO, PyTorch-like uniform init).
# --------------------------------------------------------------------------
def _init_conv(key, cin, cout):
    kw, kb = jax.random.split(key)
    bound = 1.0 / math.sqrt(cin * 9)
    wt = jax.random.uniform(kw, (3, 3, cin, cout), jnp.float32, -bound, bound)
    bt = jax.random.uniform(kb, (cout,), jnp.float32, -bound, bound)
    return wt, bt


def init_rdb_params(key, nf=32, gc=16):
    cins = [nf, nf + gc, nf + 2 * gc, nf + 3 * gc, nf + 4 * gc]
    couts = [gc, gc, gc, gc, nf]
    keys = jax.random.split(key, 5)
    return [_init_conv(k, ci, co) for k, ci, co in zip(keys, cins, couts)]


# --------------------------------------------------------------------------
# Pure-JAX f32 reference (lax.conv) for correctness checking.
# --------------------------------------------------------------------------
def _ref_conv3x3(x, wt, bt, apply_lrelu):
    y = jax.lax.conv_general_dilated(
        x, wt, window_strides=(1, 1), padding="SAME",
        dimension_numbers=("NHWC", "HWIO", "NHWC"),
        precision=jax.lax.Precision.HIGHEST) + bt
    if apply_lrelu:
        y = jnp.where(y > 0, y, 0.2 * y)
    return y


def _ref_rdb_nchw(x_nchw, params):
    x = jnp.transpose(x_nchw, (0, 2, 3, 1))
    (w1, b1), (w2, b2), (w3, b3), (w4, b4), (w5, b5) = params
    x1 = _ref_conv3x3(x, w1, b1, True)
    x2 = _ref_conv3x3(jnp.concatenate([x, x1], -1), w2, b2, True)
    x3 = _ref_conv3x3(jnp.concatenate([x, x1, x2], -1), w3, b3, True)
    x4 = _ref_conv3x3(jnp.concatenate([x, x1, x2, x3], -1), w4, b4, True)
    x5 = _ref_conv3x3(jnp.concatenate([x, x1, x2, x3, x4], -1), w5, b5, False)
    out = x5 * 0.2 + x
    return jnp.transpose(out, (0, 3, 1, 2))


# --------------------------------------------------------------------------
if __name__ == "__main__":
    nf, gc = 32, 16
    n, h, w = 2, 16, 16

    key = jax.random.PRNGKey(0)
    kx, kp = jax.random.split(key)
    x_nchw = jax.random.normal(kx, (n, nf, h, w), jnp.float32)
    params = init_rdb_params(kp, nf, gc)

    fwd = jax.jit(lambda x: rdb_forward(x, params, nf=nf, gc=gc))
    out = jax.block_until_ready(fwd(x_nchw))

    ref = _ref_rdb_nchw(x_nchw, params)
    assert out.shape == x_nchw.shape
    max_err = float(jnp.max(jnp.abs(out - ref)))
    # bf16 MXU inputs (f32 accumulation); residual path is exact f32.
    assert max_err < 1e-2, max_err
    print("KERNEL_OK")
</pallas_src>

<mosaic_0001>
module attributes {stable_mosaic.version = 11 : i64} {
  func.func @_rdb_kernel(%arg0: i32, %arg1: memref<1x16x16x32xf32, #tpu.memory_space<vmem>>, %arg2: memref<5x1152x32xbf16, #tpu.memory_space<vmem>>, %arg3: memref<5x32xf32, #tpu.memory_space<vmem>>, %arg4: memref<1x256x32xf32, #tpu.memory_space<vmem>>, %arg5: memref<18x18x128xf32, #tpu.memory_space<vmem>>) attributes {dimension_semantics = [#tpu.dimension_semantics<parallel>], iteration_bounds = array<i64: 2>, scalar_prefetch = 0 : i64, scratch_operands = 1 : i64, tpu.core_type = #tpu.core_type<tc>, window_params = [{transform_indices = @transform_0, window_bounds = array<i64: 1, 16, 16, 32>}, {pipeline_mode = #tpu.pipeline_mode<synchronous>, transform_indices = @transform_1, window_bounds = array<i64: 5, 1152, 32>}, {pipeline_mode = #tpu.pipeline_mode<synchronous>, transform_indices = @transform_2, window_bounds = array<i64: 5, 32>}, {transform_indices = @transform_3, window_bounds = array<i64: 1, 256, 32>}]} {
    %cst = arith.constant 0.000000e+00 : f32
    %0 = vector.broadcast %cst : f32 to vector<18x18x128xf32>
    %c0 = arith.constant 0 : index
    %c0_0 = arith.constant 0 : index
    %c0_1 = arith.constant 0 : index
    %1 = vector.load %arg5[%c0, %c0_0, %c0_1] : memref<18x18x128xf32, #tpu.memory_space<vmem>>, vector<18x18x128xf32>
    tpu.vector_store %arg5[%c0, %c0_0, %c0_1], %0 {strides = array<i32>} : memref<18x18x128xf32, #tpu.memory_space<vmem>>, vector<18x18x128xf32>,
    %c0_2 = arith.constant 0 : index
    %c0_3 = arith.constant 0 : index
    %c0_4 = arith.constant 0 : index
    %c0_5 = arith.constant 0 : index
    %2 = vector.load %arg1[%c0_2, %c0_3, %c0_4, %c0_5] : memref<1x16x16x32xf32, #tpu.memory_space<vmem>>, vector<1x16x16x32xf32>
    %3 = vector.shape_cast %2 : vector<1x16x16x32xf32> to vector<16x16x32xf32>
    %c1 = arith.constant 1 : index
    %c1_6 = arith.constant 1 : index
    %c0_7 = arith.constant 0 : index
    %4 = vector.load %arg5[%c1, %c1_6, %c0_7] : memref<18x18x128xf32, #tpu.memory_space<vmem>>, vector<16x16x32xf32>
    tpu.vector_store %arg5[%c1, %c1_6, %c0_7], %3 {strides = array<i32>} : memref<18x18x128xf32, #tpu.memory_space<vmem>>, vector<16x16x32xf32>,
    %c0_8 = arith.constant 0 : index
    %c0_9 = arith.constant 0 : index
    %5 = vector.load %arg3[%c0_8, %c0_9] : memref<5x32xf32, #tpu.memory_space<vmem>>, vector<5x32xf32>
    %c0_10 = arith.constant 0 : index
    %c0_11 = arith.constant 0 : index
    %c0_12 = arith.constant 0 : index
    %6 = vector.load %arg5[%c0_10, %c0_11, %c0_12] : memref<18x18x128xf32, #tpu.memory_space<vmem>>, vector<16x16x128xf32>
    %7 = arith.truncf %6 : vector<16x16x128xf32> to vector<16x16x128xbf16>
    %8 = vector.shape_cast %7 : vector<16x16x128xbf16> to vector<256x128xbf16>
    %c0_13 = arith.constant 0 : index
    %c1_14 = arith.constant 1 : index
    %c0_15 = arith.constant 0 : index
    %9 = vector.load %arg5[%c0_13, %c1_14, %c0_15] : memref<18x18x128xf32, #tpu.memory_space<vmem>>, vector<16x16x128xf32>
    %10 = arith.truncf %9 : vector<16x16x128xf32> to vector<16x16x128xbf16>
    %11 = vector.shape_cast %10 : vector<16x16x128xbf16> to vector<256x128xbf16>
    %c0_16 = arith.constant 0 : index
    %c2 = arith.constant 2 : index
    %c0_17 = arith.constant 0 : index
    %12 = vector.load %arg5[%c0_16, %c2, %c0_17] : memref<18x18x128xf32, #tpu.memory_space<vmem>>, vector<16x16x128xf32>
    %13 = arith.truncf %12 : vector<16x16x128xf32> to vector<16x16x128xbf16>
    %14 = vector.shape_cast %13 : vector<16x16x128xbf16> to vector<256x128xbf16>
    %c1_18 = arith.constant 1 : index
    %c0_19 = arith.constant 0 : index
    %c0_20 = arith.constant 0 : index
    %15 = vector.load %arg5[%c1_18, %c0_19, %c0_20] : memref<18x18x128xf32, #tpu.memory_space<vmem>>, vector<16x16x128xf32>
    %16 = arith.truncf %15 : vector<16x16x128xf32> to vector<16x16x128xbf16>
    %17 = vector.shape_cast %16 : vector<16x16x128xbf16> to vector<256x128xbf16>
    %c1_21 = arith.constant 1 : index
    %c1_22 = arith.constant 1 : index
    %c0_23 = arith.constant 0 : index
    %18 = vector.load %arg5[%c1_21, %c1_22, %c0_23] : memref<18x18x128xf32, #tpu.memory_space<vmem>>, vector<16x16x128xf32>
    %19 = arith.truncf %18 : vector<16x16x128xf32> to vector<16x16x128xbf16>
    %20 = vector.shape_cast %19 : vector<16x16x128xbf16> to vector<256x128xbf16>
    %c1_24 = arith.constant 1 : index
    %c2_25 = arith.constant 2 : index
    %c0_26 = arith.constant 0 : index
    %21 = vector.load %arg5[%c1_24, %c2_25, %c0_26] : memref<18x18x128xf32, #tpu.memory_space<vmem>>, vector<16x16x128xf32>
    %22 = arith.truncf %21 : vector<16x16x128xf32> to vector<16x16x128xbf16>
    %23 = vector.shape_cast %22 : vector<16x16x128xbf16> to vector<256x128xbf16>
    %c2_27 = arith.constant 2 : index
    %c0_28 = arith.constant 0 : index
    %c0_29 = arith.constant 0 : index
    %24 = vector.load %arg5[%c2_27, %c0_28, %c0_29] : memref<18x18x128xf32, #tpu.memory_space<vmem>>, vector<16x16x128xf32>
    %25 = arith.truncf %24 : vector<16x16x128xf32> to vector<16x16x128xbf16>
    %26 = vector.shape_cast %25 : vector<16x16x128xbf16> to vector<256x128xbf16>
    %c2_30 = arith.constant 2 : index
    %c1_31 = arith.constant 1 : index
    %c0_32 = arith.constant 0 : index
    %27 = vector.load %arg5[%c2_30, %c1_31, %c0_32] : memref<18x18x128xf32, #tpu.memory_space<vmem>>, vector<16x16x128xf32>
    %28 = arith.truncf %27 : vector<16x16x128xf32> to vector<16x16x128xbf16>
    %29 = vector.shape_cast %28 : vector<16x16x128xbf16> to vector<256x128xbf16>
    %c2_33 = arith.constant 2 : index
    %c2_34 = arith.constant 2 : index
    %c0_35 = arith.constant 0 : index
    %30 = vector.load %arg5[%c2_33, %c2_34, %c0_35] : memref<18x18x128xf32, #tpu.memory_space<vmem>>, vector<16x16x128xf32>
    %31 = arith.truncf %30 : vector<16x16x128xf32> to vector<16x16x128xbf16>
    %32 = vector.shape_cast %31 : vector<16x16x128xbf16> to vector<256x128xbf16>
    %33 = tpu.concatenate %8, %11, %14, %17, %20, %23, %26, %29, %32 in 1 : vector<256x128xbf16>, vector<256x128xbf16>, vector<256x128xbf16>, vector<256x128xbf16>, vector<256x128xbf16>, vector<256x128xbf16>, vector<256x128xbf16>, vector<256x128xbf16>, vector<256x128xbf16> -> vector<256x1152xbf16>
    %c0_36 = arith.constant 0 : index
    %c0_37 = arith.constant 0 : index
    %c0_38 = arith.constant 0 : index
    %34 = vector.load %arg2[%c0_36, %c0_37, %c0_38] : memref<5x1152x32xbf16, #tpu.memory_space<vmem>>, vector<1x1152x32xbf16>
    %35 = vector.shape_cast %34 : vector<1x1152x32xbf16> to vector<1152x32xbf16>
    %cst_39 = arith.constant dense<0.000000e+00> : vector<256x32xf32>
    %36 = tpu.matmul %33, %35, %cst_39 {dimension_numbers = #tpu.dot_dimension_numbers<[1], [0], [0], [1], [0, 0, 1, 1], [], []>} : vector<256x1152xbf16>, vector<1152x32xbf16>, vector<256x32xf32> -> vector<256x32xf32>
    %37 = vector.extract_strided_slice %5 {offsets = [0, 0], sizes = [1, 32], strides = [1, 1]} : vector<5x32xf32> to vector<1x32xf32>
    %38 = vector.broadcast %37 : vector<1x32xf32> to vector<256x32xf32>
    %39 = arith.addf %36, %38 : vector<256x32xf32>
    %cst_40 = arith.constant 0.000000e+00 : f32
    %40 = vector.broadcast %cst_40 : f32 to vector<256x32xf32>
    %41 = arith.cmpf ogt, %39, %40 : vector<256x32xf32>
    %cst_41 = arith.constant 2.000000e-01 : f32
    %42 = vector.broadcast %cst_41 : f32 to vector<256x32xf32>
    %43 = arith.mulf %42, %39 : vector<256x32xf32>
    %44 = arith.select %41, %39, %43 : vector<256x32xi1>, vector<256x32xf32>
    %45 = vector.extract_strided_slice %44 {offsets = [0, 0], sizes = [256, 16], strides = [1, 1]} : vector<256x32xf32> to vector<256x16xf32>
    %46 = vector.shape_cast %45 : vector<256x16xf32> to vector<16x16x16xf32>
    %c1_42 = arith.constant 1 : index
    %c1_43 = arith.constant 1 : index
    %c32 = arith.constant 32 : index
    %47 = vector.load %arg5[%c1_42, %c1_43, %c32] : memref<18x18x128xf32, #tpu.memory_space<vmem>>, vector<16x16x16xf32>
    tpu.vector_store %arg5[%c1_42, %c1_43, %c32], %46 {strides = array<i32>} : memref<18x18x128xf32, #tpu.memory_space<vmem>>, vector<16x16x16xf32>,
    %c0_44 = arith.constant 0 : index
    %c0_45 = arith.constant 0 : index
    %c0_46 = arith.constant 0 : index
    %48 = vector.load %arg5[%c0_44, %c0_45, %c0_46] : memref<18x18x128xf32, #tpu.memory_space<vmem>>, vector<16x16x128xf32>
    %49 = arith.truncf %48 : vector<16x16x128xf32> to vector<16x16x128xbf16>
    %50 = vector.shape_cast %49 : vector<16x16x128xbf16> to vector<256x128xbf16>
    %c0_47 = arith.constant 0 : index
    %c1_48 = arith.constant 1 : index
    %c0_49 = arith.constant 0 : index
    %51 = vector.load %arg5[%c0_47, %c1_48, %c0_49] : memref<18x18x128xf32, #tpu.memory_space<vmem>>, vector<16x16x128xf32>
    %52 = arith.truncf %51 : vector<16x16x128xf32> to vector<16x16x128xbf16>
    %53 = vector.shape_cast %52 : vector<16x16x128xbf16> to vector<256x128xbf16>
    %c0_50 = arith.constant 0 : index
    %c2_51 = arith.constant 2 : index
    %c0_52 = arith.constant 0 : index
    %54 = vector.load %arg5[%c0_50, %c2_51, %c0_52] : memref<18x18x128xf32, #tpu.memory_space<vmem>>, vector<16x16x128xf32>
    %55 = arith.truncf %54 : vector<16x16x128xf32> to vector<16x16x128xbf16>
    %56 = vector.shape_cast %55 : vector<16x16x128xbf16> to vector<256x128xbf16>
    %c1_53 = arith.constant 1 : index
    %c0_54 = arith.constant 0 : index
    %c0_55 = arith.constant 0 : index
    %57 = vector.load %arg5[%c1_53, %c0_54, %c0_55] : memref<18x18x128xf32, #tpu.memory_space<vmem>>, vector<16x16x128xf32>
    %58 = arith.truncf %57 : vector<16x16x128xf32> to vector<16x16x128xbf16>
    %59 = vector.shape_cast %58 : vector<16x16x128xbf16> to vector<256x128xbf16>
    %c1_56 = arith.constant 1 : index
    %c1_57 = arith.constant 1 : index
    %c0_58 = arith.constant 0 : index
    %60 = vector.load %arg5[%c1_56, %c1_57, %c0_58] : memref<18x18x128xf32, #tpu.memory_space<vmem>>, vector<16x16x128xf32>
    %61 = arith.truncf %60 : vector<16x16x128xf32> to vector<16x16x128xbf16>
    %62 = vector.shape_cast %61 : vector<16x16x128xbf16> to vector<256x128xbf16>
    %c1_59 = arith.constant 1 : index
    %c2_60 = arith.constant 2 : index
    %c0_61 = arith.constant 0 : index
    %63 = vector.load %arg5[%c1_59, %c2_60, %c0_61] : memref<18x18x128xf32, #tpu.memory_space<vmem>>, vector<16x16x128xf32>
    %64 = arith.truncf %63 : vector<16x16x128xf32> to vector<16x16x128xbf16>
    %65 = vector.shape_cast %64 : vector<16x16x128xbf16> to vector<256x128xbf16>
    %c2_62 = arith.constant 2 : index
    %c0_63 = arith.constant 0 : index
    %c0_64 = arith.constant 0 : index
    %66 = vector.load %arg5[%c2_62, %c0_63, %c0_64] : memref<18x18x128xf32, #tpu.memory_space<vmem>>, vector<16x16x128xf32>
    %67 = arith.truncf %66 : vector<16x16x128xf32> to vector<16x16x128xbf16>
    %68 = vector.shape_cast %67 : vector<16x16x128xbf16> to vector<256x128xbf16>
    %c2_65 = arith.constant 2 : index
    %c1_66 = arith.constant 1 : index
    %c0_67 = arith.constant 0 : index
    %69 = vector.load %arg5[%c2_65, %c1_66, %c0_67] : memref<18x18x128xf32, #tpu.memory_space<vmem>>, vector<16x16x128xf32>
    %70 = arith.truncf %69 : vector<16x16x128xf32> to vector<16x16x128xbf16>
    %71 = vector.shape_cast %70 : vector<16x16x128xbf16> to vector<256x128xbf16>
    %c2_68 = arith.constant 2 : index
    %c2_69 = arith.constant 2 : index
    %c0_70 = arith.constant 0 : index
    %72 = vector.load %arg5[%c2_68, %c2_69, %c0_70] : memref<18x18x128xf32, #tpu.memory_space<vmem>>, vector<16x16x128xf32>
    %73 = arith.truncf %72 : vector<16x16x128xf32> to vector<16x16x128xbf16>
    %74 = vector.shape_cast %73 : vector<16x16x128xbf16> to vector<256x128xbf16>
    %75 = tpu.concatenate %50, %53, %56, %59, %62, %65, %68, %71, %74 in 1 : vector<256x128xbf16>, vector<256x128xbf16>, vector<256x128xbf16>, vector<256x128xbf16>, vector<256x128xbf16>, vector<256x128xbf16>, vector<256x128xbf16>, vector<256x128xbf16>, vector<256x128xbf16> -> vector<256x1152xbf16>
    %c1_71 = arith.constant 1 : index
    %c0_72 = arith.constant 0 : index
    %c0_73 = arith.constant 0 : index
    %76 = vector.load %arg2[%c1_71, %c0_72, %c0_73] : memref<5x1152x32xbf16, #tpu.memory_space<vmem>>, vector<1x1152x32xbf16>
    %77 = vector.shape_cast %76 : vector<1x1152x32xbf16> to vector<1152x32xbf16>
    %cst_74 = arith.constant dense<0.000000e+00> : vector<256x32xf32>
    %78 = tpu.matmul %75, %77, %cst_74 {dimension_numbers = #tpu.dot_dimension_numbers<[1], [0], [0], [1], [0, 0, 1, 1], [], []>} : vector<256x1152xbf16>, vector<1152x32xbf16>, vector<256x32xf32> -> vector<256x32xf32>
    %79 = vector.extract_strided_slice %5 {offsets = [1, 0], sizes = [1, 32], strides = [1, 1]} : vector<5x32xf32> to vector<1x32xf32>
    %80 = vector.broadcast %79 : vector<1x32xf32> to vector<256x32xf32>
    %81 = arith.addf %78, %80 : vector<256x32xf32>
    %cst_75 = arith.constant 0.000000e+00 : f32
    %82 = vector.broadcast %cst_75 : f32 to vector<256x32xf32>
    %83 = arith.cmpf ogt, %81, %82 : vector<256x32xf32>
    %cst_76 = arith.constant 2.000000e-01 : f32
    %84 = vector.broadcast %cst_76 : f32 to vector<256x32xf32>
    %85 = arith.mulf %84, %81 : vector<256x32xf32>
    %86 = arith.select %83, %81, %85 : vector<256x32xi1>, vector<256x32xf32>
    %87 = vector.extract_strided_slice %86 {offsets = [0, 0], sizes = [256, 16], strides = [1, 1]} : vector<256x32xf32> to vector<256x16xf32>
    %88 = vector.shape_cast %87 : vector<256x16xf32> to vector<16x16x16xf32>
    %c1_77 = arith.constant 1 : index
    %c1_78 = arith.constant 1 : index
    %c48 = arith.constant 48 : index
    %89 = vector.load %arg5[%c1_77, %c1_78, %c48] : memref<18x18x128xf32, #tpu.memory_space<vmem>>, vector<16x16x16xf32>
    tpu.vector_store %arg5[%c1_77, %c1_78, %c48], %88 {strides = array<i32>} : memref<18x18x128xf32, #tpu.memory_space<vmem>>, vector<16x16x16xf32>,
    %c0_79 = arith.constant 0 : index
    %c0_80 = arith.constant 0 : index
    %c0_81 = arith.constant 0 : index
    %90 = vector.load %arg5[%c0_79, %c0_80, %c0_81] : memref<18x18x128xf32, #tpu.memory_space<vmem>>, vector<16x16x128xf32>
    %91 = arith.truncf %90 : vector<16x16x128xf32> to vector<16x16x128xbf16>
    %92 = vector.shape_cast %91 : vector<16x16x128xbf16> to vector<256x128xbf16>
    %c0_82 = arith.constant 0 : index
    %c1_83 = arith.constant 1 : index
    %c0_84 = arith.constant 0 : index
    %93 = vector.load %arg5[%c0_82, %c1_83, %c0_84] : memref<18x18x128xf32, #tpu.memory_space<vmem>>, vector<16x16x128xf32>
    %94 = arith.truncf %93 : vector<16x16x128xf32> to vector<16x16x128xbf16>
    %95 = vector.shape_cast %94 : vector<16x16x128xbf16> to vector<256x128xbf16>
    %c0_85 = arith.constant 0 : index
    %c2_86 = arith.constant 2 : index
    %c0_87 = arith.constant 0 : index
    %96 = vector.load %arg5[%c0_85, %c2_86, %c0_87] : memref<18x18x128xf32, #tpu.memory_space<vmem>>, vector<16x16x128xf32>
    %97 = arith.truncf %96 : vector<16x16x128xf32> to vector<16x16x128xbf16>
    %98 = vector.shape_cast %97 : vector<16x16x128xbf16> to vector<256x128xbf16>
    %c1_88 = arith.constant 1 : index
    %c0_89 = arith.constant 0 : index
    %c0_90 = arith.constant 0 : index
    %99 = vector.load %arg5[%c1_88, %c0_89, %c0_90] : memref<18x18x128xf32, #tpu.memory_space<vmem>>, vector<16x16x128xf32>
    %100 = arith.truncf %99 : vector<16x16x128xf32> to vector<16x16x128xbf16>
    %101 = vector.shape_cast %100 : vector<16x16x128xbf16> to vector<256x128xbf16>
    %c1_91 = arith.constant 1 : index
    %c1_92 = arith.constant 1 : index
    %c0_93 = arith.constant 0 : index
    %102 = vector.load %arg5[%c1_91, %c1_92, %c0_93] : memref<18x18x128xf32, #tpu.memory_space<vmem>>, vector<16x16x128xf32>
    %103 = arith.truncf %102 : vector<16x16x128xf32> to vector<16x16x128xbf16>
    %104 = vector.shape_cast %103 : vector<16x16x128xbf16> to vector<256x128xbf16>
    %c1_94 = arith.constant 1 : index
    %c2_95 = arith.constant 2 : index
    %c0_96 = arith.constant 0 : index
    %105 = vector.load %arg5[%c1_94, %c2_95, %c0_96] : memref<18x18x128xf32, #tpu.memory_space<vmem>>, vector<16x16x128xf32>
    %106 = arith.truncf %105 : vector<16x16x128xf32> to vector<16x16x128xbf16>
    %107 = vector.shape_cast %106 : vector<16x16x128xbf16> to vector<256x128xbf16>
    %c2_97 = arith.constant 2 : index
    %c0_98 = arith.constant 0 : index
    %c0_99 = arith.constant 0 : index
    %108 = vector.load %arg5[%c2_97, %c0_98, %c0_99] : memref<18x18x128xf32, #tpu.memory_space<vmem>>, vector<16x16x128xf32>
    %109 = arith.truncf %108 : vector<16x16x128xf32> to vector<16x16x128xbf16>
    %110 = vector.shape_cast %109 : vector<16x16x128xbf16> to vector<256x128xbf16>
    %c2_100 = arith.constant 2 : index
    %c1_101 = arith.constant 1 : index
    %c0_102 = arith.constant 0 : index
    %111 = vector.load %arg5[%c2_100, %c1_101, %c0_102] : memref<18x18x128xf32, #tpu.memory_space<vmem>>, vector<16x16x128xf32>
    %112 = arith.truncf %111 : vector<16x16x128xf32> to vector<16x16x128xbf16>
    %113 = vector.shape_cast %112 : vector<16x16x128xbf16> to vector<256x128xbf16>
    %c2_103 = arith.constant 2 : index
    %c2_104 = arith.constant 2 : index
    %c0_105 = arith.constant 0 : index
    %114 = vector.load %arg5[%c2_103, %c2_104, %c0_105] : memref<18x18x128xf32, #tpu.memory_space<vmem>>, vector<16x16x128xf32>
    %115 = arith.truncf %114 : vector<16x16x128xf32> to vector<16x16x128xbf16>
    %116 = vector.shape_cast %115 : vector<16x16x128xbf16> to vector<256x128xbf16>
    %117 = tpu.concatenate %92, %95, %98, %101, %104, %107, %110, %113, %116 in 1 : vector<256x128xbf16>, vector<256x128xbf16>, vector<256x128xbf16>, vector<256x128xbf16>, vector<256x128xbf16>, vector<256x128xbf16>, vector<256x128xbf16>, vector<256x128xbf16>, vector<256x128xbf16> -> vector<256x1152xbf16>
    %c2_106 = arith.constant 2 : index
    %c0_107 = arith.constant 0 : index
    %c0_108 = arith.constant 0 : index
    %118 = vector.load %arg2[%c2_106, %c0_107, %c0_108] : memref<5x1152x32xbf16, #tpu.memory_space<vmem>>, vector<1x1152x32xbf16>
    %119 = vector.shape_cast %118 : vector<1x1152x32xbf16> to vector<1152x32xbf16>
    %cst_109 = arith.constant dense<0.000000e+00> : vector<256x32xf32>
    %120 = tpu.matmul %117, %119, %cst_109 {dimension_numbers = #tpu.dot_dimension_numbers<[1], [0], [0], [1], [0, 0, 1, 1], [], []>} : vector<256x1152xbf16>, vector<1152x32xbf16>, vector<256x32xf32> -> vector<256x32xf32>
    %121 = vector.extract_strided_slice %5 {offsets = [2, 0], sizes = [1, 32], strides = [1, 1]} : vector<5x32xf32> to vector<1x32xf32>
    %122 = vector.broadcast %121 : vector<1x32xf32> to vector<256x32xf32>
    %123 = arith.addf %120, %122 : vector<256x32xf32>
    %cst_110 = arith.constant 0.000000e+00 : f32
    %124 = vector.broadcast %cst_110 : f32 to vector<256x32xf32>
    %125 = arith.cmpf ogt, %123, %124 : vector<256x32xf32>
    %cst_111 = arith.constant 2.000000e-01 : f32
    %126 = vector.broadcast %cst_111 : f32 to vector<256x32xf32>
    %127 = arith.mulf %126, %123 : vector<256x32xf32>
    %128 = arith.select %125, %123, %127 : vector<256x32xi1>, vector<256x32xf32>
    %129 = vector.extract_strided_slice %128 {offsets = [0, 0], sizes = [256, 16], strides = [1, 1]} : vector<256x32xf32> to vector<256x16xf32>
    %130 = vector.shape_cast %129 : vector<256x16xf32> to vector<16x16x16xf32>
    %c1_112 = arith.constant 1 : index
    %c1_113 = arith.constant 1 : index
    %c64 = arith.constant 64 : index
    %131 = vector.load %arg5[%c1_112, %c1_113, %c64] : memref<18x18x128xf32, #tpu.memory_space<vmem>>, vector<16x16x16xf32>
    tpu.vector_store %arg5[%c1_112, %c1_113, %c64], %130 {strides = array<i32>} : memref<18x18x128xf32, #tpu.memory_space<vmem>>, vector<16x16x16xf32>,
    %c0_114 = arith.constant 0 : index
    %c0_115 = arith.constant 0 : index
    %c0_116 = arith.constant 0 : index
    %132 = vector.load %arg5[%c0_114, %c0_115, %c0_116] : memref<18x18x128xf32, #tpu.memory_space<vmem>>, vector<16x16x128xf32>
    %133 = arith.truncf %132 : vector<16x16x128xf32> to vector<16x16x128xbf16>
    %134 = vector.shape_cast %133 : vector<16x16x128xbf16> to vector<256x128xbf16>
    %c0_117 = arith.constant 0 : index
    %c1_118 = arith.constant 1 : index
    %c0_119 = arith.constant 0 : index
    %135 = vector.load %arg5[%c0_117, %c1_118, %c0_119] : memref<18x18x128xf32, #tpu.memory_space<vmem>>, vector<16x16x128xf32>
    %136 = arith.truncf %135 : vector<16x16x128xf32> to vector<16x16x128xbf16>
    %137 = vector.shape_cast %136 : vector<16x16x128xbf16> to vector<256x128xbf16>
    %c0_120 = arith.constant 0 : index
    %c2_121 = arith.constant 2 : index
    %c0_122 = arith.constant 0 : index
    %138 = vector.load %arg5[%c0_120, %c2_121, %c0_122] : memref<18x18x128xf32, #tpu.memory_space<vmem>>, vector<16x16x128xf32>
    %139 = arith.truncf %138 : vector<16x16x128xf32> to vector<16x16x128xbf16>
    %140 = vector.shape_cast %139 : vector<16x16x128xbf16> to vector<256x128xbf16>
    %c1_123 = arith.constant 1 : index
    %c0_124 = arith.constant 0 : index
    %c0_125 = arith.constant 0 : index
    %141 = vector.load %arg5[%c1_123, %c0_124, %c0_125] : memref<18x18x128xf32, #tpu.memory_space<vmem>>, vector<16x16x128xf32>
    %142 = arith.truncf %141 : vector<16x16x128xf32> to vector<16x16x128xbf16>
    %143 = vector.shape_cast %142 : vector<16x16x128xbf16> to vector<256x128xbf16>
    %c1_126 = arith.constant 1 : index
    %c1_127 = arith.constant 1 : index
    %c0_128 = arith.constant 0 : index
    %144 = vector.load %arg5[%c1_126, %c1_127, %c0_128] : memref<18x18x128xf32, #tpu.memory_space<vmem>>, vector<16x16x128xf32>
    %145 = arith.truncf %144 : vector<16x16x128xf32> to vector<16x16x128xbf16>
    %146 = vector.shape_cast %145 : vector<16x16x128xbf16> to vector<256x128xbf16>
    %c1_129 = arith.constant 1 : index
    %c2_130 = arith.constant 2 : index
    %c0_131 = arith.constant 0 : index
    %147 = vector.load %arg5[%c1_129, %c2_130, %c0_131] : memref<18x18x128xf32, #tpu.memory_space<vmem>>, vector<16x16x128xf32>
    %148 = arith.truncf %147 : vector<16x16x128xf32> to vector<16x16x128xbf16>
    %149 = vector.shape_cast %148 : vector<16x16x128xbf16> to vector<256x128xbf16>
    %c2_132 = arith.constant 2 : index
    %c0_133 = arith.constant 0 : index
    %c0_134 = arith.constant 0 : index
    %150 = vector.load %arg5[%c2_132, %c0_133, %c0_134] : memref<18x18x128xf32, #tpu.memory_space<vmem>>, vector<16x16x128xf32>
    %151 = arith.truncf %150 : vector<16x16x128xf32> to vector<16x16x128xbf16>
    %152 = vector.shape_cast %151 : vector<16x16x128xbf16> to vector<256x128xbf16>
    %c2_135 = arith.constant 2 : index
    %c1_136 = arith.constant 1 : index
    %c0_137 = arith.constant 0 : index
    %153 = vector.load %arg5[%c2_135, %c1_136, %c0_137] : memref<18x18x128xf32, #tpu.memory_space<vmem>>, vector<16x16x128xf32>
    %154 = arith.truncf %153 : vector<16x16x128xf32> to vector<16x16x128xbf16>
    %155 = vector.shape_cast %154 : vector<16x16x128xbf16> to vector<256x128xbf16>
    %c2_138 = arith.constant 2 : index
    %c2_139 = arith.constant 2 : index
    %c0_140 = arith.constant 0 : index
    %156 = vector.load %arg5[%c2_138, %c2_139, %c0_140] : memref<18x18x128xf32, #tpu.memory_space<vmem>>, vector<16x16x128xf32>
    %157 = arith.truncf %156 : vector<16x16x128xf32> to vector<16x16x128xbf16>
    %158 = vector.shape_cast %157 : vector<16x16x128xbf16> to vector<256x128xbf16>
    %159 = tpu.concatenate %134, %137, %140, %143, %146, %149, %152, %155, %158 in 1 : vector<256x128xbf16>, vector<256x128xbf16>, vector<256x128xbf16>, vector<256x128xbf16>, vector<256x128xbf16>, vector<256x128xbf16>, vector<256x128xbf16>, vector<256x128xbf16>, vector<256x128xbf16> -> vector<256x1152xbf16>
    %c3 = arith.constant 3 : index
    %c0_141 = arith.constant 0 : index
    %c0_142 = arith.constant 0 : index
    %160 = vector.load %arg2[%c3, %c0_141, %c0_142] : memref<5x1152x32xbf16, #tpu.memory_space<vmem>>, vector<1x1152x32xbf16>
    %161 = vector.shape_cast %160 : vector<1x1152x32xbf16> to vector<1152x32xbf16>
    %cst_143 = arith.constant dense<0.000000e+00> : vector<256x32xf32>
    %162 = tpu.matmul %159, %161, %cst_143 {dimension_numbers = #tpu.dot_dimension_numbers<[1], [0], [0], [1], [0, 0, 1, 1], [], []>} : vector<256x1152xbf16>, vector<1152x32xbf16>, vector<256x32xf32> -> vector<256x32xf32>
    %163 = vector.extract_strided_slice %5 {offsets = [3, 0], sizes = [1, 32], strides = [1, 1]} : vector<5x32xf32> to vector<1x32xf32>
    %164 = vector.broadcast %163 : vector<1x32xf32> to vector<256x32xf32>
    %165 = arith.addf %162, %164 : vector<256x32xf32>
    %cst_144 = arith.constant 0.000000e+00 : f32
    %166 = vector.broadcast %cst_144 : f32 to vector<256x32xf32>
    %167 = arith.cmpf ogt, %165, %166 : vector<256x32xf32>
    %cst_145 = arith.constant 2.000000e-01 : f32
    %168 = vector.broadcast %cst_145 : f32 to vector<256x32xf32>
    %169 = arith.mulf %168, %165 : vector<256x32xf32>
    %170 = arith.select %167, %165, %169 : vector<256x32xi1>, vector<256x32xf32>
    %171 = vector.extract_strided_slice %170 {offsets = [0, 0], sizes = [256, 16], strides = [1, 1]} : vector<256x32xf32> to vector<256x16xf32>
    %172 = vector.shape_cast %171 : vector<256x16xf32> to vector<16x16x16xf32>
    %c1_146 = arith.constant 1 : index
    %c1_147 = arith.constant 1 : index
    %c80 = arith.constant 80 : index
    %173 = vector.load %arg5[%c1_146, %c1_147, %c80] : memref<18x18x128xf32, #tpu.memory_space<vmem>>, vector<16x16x16xf32>
    tpu.vector_store %arg5[%c1_146, %c1_147, %c80], %172 {strides = array<i32>} : memref<18x18x128xf32, #tpu.memory_space<vmem>>, vector<16x16x16xf32>,
    %c0_148 = arith.constant 0 : index
    %c0_149 = arith.constant 0 : index
    %c0_150 = arith.constant 0 : index
    %174 = vector.load %arg5[%c0_148, %c0_149, %c0_150] : memref<18x18x128xf32, #tpu.memory_space<vmem>>, vector<16x16x128xf32>
    %175 = arith.truncf %174 : vector<16x16x128xf32> to vector<16x16x128xbf16>
    %176 = vector.shape_cast %175 : vector<16x16x128xbf16> to vector<256x128xbf16>
    %c0_151 = arith.constant 0 : index
    %c1_152 = arith.constant 1 : index
    %c0_153 = arith.constant 0 : index
    %177 = vector.load %arg5[%c0_151, %c1_152, %c0_153] : memref<18x18x128xf32, #tpu.memory_space<vmem>>, vector<16x16x128xf32>
    %178 = arith.truncf %177 : vector<16x16x128xf32> to vector<16x16x128xbf16>
    %179 = vector.shape_cast %178 : vector<16x16x128xbf16> to vector<256x128xbf16>
    %c0_154 = arith.constant 0 : index
    %c2_155 = arith.constant 2 : index
    %c0_156 = arith.constant 0 : index
    %180 = vector.load %arg5[%c0_154, %c2_155, %c0_156] : memref<18x18x128xf32, #tpu.memory_space<vmem>>, vector<16x16x128xf32>
    %181 = arith.truncf %180 : vector<16x16x128xf32> to vector<16x16x128xbf16>
    %182 = vector.shape_cast %181 : vector<16x16x128xbf16> to vector<256x128xbf16>
    %c1_157 = arith.constant 1 : index
    %c0_158 = arith.constant 0 : index
    %c0_159 = arith.constant 0 : index
    %183 = vector.load %arg5[%c1_157, %c0_158, %c0_159] : memref<18x18x128xf32, #tpu.memory_space<vmem>>, vector<16x16x128xf32>
    %184 = arith.truncf %183 : vector<16x16x128xf32> to vector<16x16x128xbf16>
    %185 = vector.shape_cast %184 : vector<16x16x128xbf16> to vector<256x128xbf16>
    %c1_160 = arith.constant 1 : index
    %c1_161 = arith.constant 1 : index
    %c0_162 = arith.constant 0 : index
    %186 = vector.load %arg5[%c1_160, %c1_161, %c0_162] : memref<18x18x128xf32, #tpu.memory_space<vmem>>, vector<16x16x128xf32>
    %187 = arith.truncf %186 : vector<16x16x128xf32> to vector<16x16x128xbf16>
    %188 = vector.shape_cast %187 : vector<16x16x128xbf16> to vector<256x128xbf16>
    %c1_163 = arith.constant 1 : index
    %c2_164 = arith.constant 2 : index
    %c0_165 = arith.constant 0 : index
    %189 = vector.load %arg5[%c1_163, %c2_164, %c0_165] : memref<18x18x128xf32, #tpu.memory_space<vmem>>, vector<16x16x128xf32>
    %190 = arith.truncf %189 : vector<16x16x128xf32> to vector<16x16x128xbf16>
    %191 = vector.shape_cast %190 : vector<16x16x128xbf16> to vector<256x128xbf16>
    %c2_166 = arith.constant 2 : index
    %c0_167 = arith.constant 0 : index
    %c0_168 = arith.constant 0 : index
    %192 = vector.load %arg5[%c2_166, %c0_167, %c0_168] : memref<18x18x128xf32, #tpu.memory_space<vmem>>, vector<16x16x128xf32>
    %193 = arith.truncf %192 : vector<16x16x128xf32> to vector<16x16x128xbf16>
    %194 = vector.shape_cast %193 : vector<16x16x128xbf16> to vector<256x128xbf16>
    %c2_169 = arith.constant 2 : index
    %c1_170 = arith.constant 1 : index
    %c0_171 = arith.constant 0 : index
    %195 = vector.load %arg5[%c2_169, %c1_170, %c0_171] : memref<18x18x128xf32, #tpu.memory_space<vmem>>, vector<16x16x128xf32>
    %196 = arith.truncf %195 : vector<16x16x128xf32> to vector<16x16x128xbf16>
    %197 = vector.shape_cast %196 : vector<16x16x128xbf16> to vector<256x128xbf16>
    %c2_172 = arith.constant 2 : index
    %c2_173 = arith.constant 2 : index
    %c0_174 = arith.constant 0 : index
    %198 = vector.load %arg5[%c2_172, %c2_173, %c0_174] : memref<18x18x128xf32, #tpu.memory_space<vmem>>, vector<16x16x128xf32>
    %199 = arith.truncf %198 : vector<16x16x128xf32> to vector<16x16x128xbf16>
    %200 = vector.shape_cast %199 : vector<16x16x128xbf16> to vector<256x128xbf16>
    %201 = tpu.concatenate %176, %179, %182, %185, %188, %191, %194, %197, %200 in 1 : vector<256x128xbf16>, vector<256x128xbf16>, vector<256x128xbf16>, vector<256x128xbf16>, vector<256x128xbf16>, vector<256x128xbf16>, vector<256x128xbf16>, vector<256x128xbf16>, vector<256x128xbf16> -> vector<256x1152xbf16>
    %c4 = arith.constant 4 : index
    %c0_175 = arith.constant 0 : index
    %c0_176 = arith.constant 0 : index
    %202 = vector.load %arg2[%c4, %c0_175, %c0_176] : memref<5x1152x32xbf16, #tpu.memory_space<vmem>>, vector<1x1152x32xbf16>
    %203 = vector.shape_cast %202 : vector<1x1152x32xbf16> to vector<1152x32xbf16>
    %cst_177 = arith.constant dense<0.000000e+00> : vector<256x32xf32>
    %204 = tpu.matmul %201, %203, %cst_177 {dimension_numbers = #tpu.dot_dimension_numbers<[1], [0], [0], [1], [0, 0, 1, 1], [], []>} : vector<256x1152xbf16>, vector<1152x32xbf16>, vector<256x32xf32> -> vector<256x32xf32>
    %205 = vector.extract_strided_slice %5 {offsets = [4, 0], sizes = [1, 32], strides = [1, 1]} : vector<5x32xf32> to vector<1x32xf32>
    %206 = vector.broadcast %205 : vector<1x32xf32> to vector<256x32xf32>
    %207 = arith.addf %204, %206 : vector<256x32xf32>
    %cst_178 = arith.constant 2.000000e-01 : f32
    %208 = vector.broadcast %cst_178 : f32 to vector<256x32xf32>
    %209 = arith.mulf %207, %208 : vector<256x32xf32>
    %210 = vector.shape_cast %3 : vector<16x16x32xf32> to vector<256x32xf32>
    %211 = arith.addf %209, %210 : vector<256x32xf32>
    %c0_179 = arith.constant 0 : index
    %c0_180 = arith.constant 0 : index
    %c0_181 = arith.constant 0 : index
    %212 = vector.load %arg4[%c0_179, %c0_180, %c0_181] : memref<1x256x32xf32, #tpu.memory_space<vmem>>, vector<1x256x32xf32>
    %213 = vector.shape_cast %212 : vector<1x256x32xf32> to vector<256x32xf32>
    %214 = vector.shape_cast %211 : vector<256x32xf32> to vector<1x256x32xf32>
    tpu.vector_store %arg4[%c0_179, %c0_180, %c0_181], %214 {strides = array<i32>} : memref<1x256x32xf32, #tpu.memory_space<vmem>>, vector<1x256x32xf32>,
    return
  }
  func.func @transform_0(%arg0: i32) -> (i32, i32, i32, i32) {
    %c0_i32 = arith.constant 0 : i32
    %c0_i32_0 = arith.constant 0 : i32
    %c0_i32_1 = arith.constant 0 : i32
    %c0_i32_2 = arith.constant 0 : i32
    return %arg0, %c0_i32, %c0_i32_0, %c0_i32_1 : i32, i32, i32, i32
  }
  func.func @transform_1(%arg0: i32) -> (i32, i32, i32) {
    %c0_i32 = arith.constant 0 : i32
    %c0_i32_0 = arith.constant 0 : i32
    %c0_i32_1 = arith.constant 0 : i32
    %c0_i32_2 = arith.constant 0 : i32
    return %c0_i32, %c0_i32_0, %c0_i32_1 : i32, i32, i32
  }
  func.func @transform_2(%arg0: i32) -> (i32, i32) {
    %c0_i32 = arith.constant 0 : i32
    %c0_i32_0 = arith.constant 0 : i32
    %c0_i32_1 = arith.constant 0 : i32
    return %c0_i32, %c0_i32_0 : i32, i32
  }
  func.func @transform_3(%arg0: i32) -> (i32, i32, i32) {
    %c0_i32 = arith.constant 0 : i32
    %c0_i32_0 = arith.constant 0 : i32
    %c0_i32_1 = arith.constant 0 : i32
    return %arg0, %c0_i32, %c0_i32_0 : i32, i32, i32
  }
}

</mosaic_0001>

<bundles_post_ra>
// kernel: _lambda_.1
= control target key start
LH: loop header
LB: loop body
LE: loop exit
PB: predicated region body
PF: predicated region fallthrough
CT: control target
= control target key end

     0   :  { %8 = vsyncpa [#allocation4], 0  ;;  %s18217_s0 = inlined_call_operand.hbm [shape: f32[2,16,16,32], index: 0, kind: input, shape index: {}]   ;;  %s18218_s1 = inlined_call_operand.hbm [shape: bf16[5,1152,32], index: 1, kind: input, shape index: {}]   ;;  %s18219_s2 = inlined_call_operand.hbm [shape: f32[5,32], index: 2, kind: input, shape index: {}]   ;;  %s18220_s3 = inlined_call_operand.hbm [shape: f32[2,256,32], index: 3, kind: output, shape index: {}]  }
   0x1   :  { %10 = vsyncpa [#allocation4 + $0x1], 0 }
   0x2   :  { %11 = vsyncpa [#allocation7], 0 }
   0x3   :  { %12 = vsyncpa [#allocation5], 0 }
   0x4   :  { %14 = vsyncpa [#allocation5 + $0x1], 0  ;;  %s14287_s12 = smov 0   ;;  %s14289_s13 = smov 0  }
   0x5   :  { %s14291_s14 = smov 0   ;;  %s14293_s15 = smov 0  }
   0x6 LB: > { %s14308_s16 = sadd.s32 4294967295, %s14249_s15   ;;  %s10658_s17 = sadd.s32 4294967294, %s14249_s15   ;;  %s14249_s15 = sphi %s14293_s15, %s18626_s15   ;;  %s14245_s14 = sphi %s14291_s14, %s18625_s14   ;;  %s14241_s13 = sphi %s14289_s13, %s18624_s13   ;;  %s14237_s12 = sphi %s14287_s12, %s18623_s12  }
   0x7   : > { %p40_p0 = scmp.ne.s32.totalorder %s14241_s13, %s14237_s12  ;;  %p18221_p1 = scmp.eq.s32.totalorder %s14308_s16, 0 }
   0x8   : > { %p112_p3 = scmp.eq.s32.totalorder %s10658_s17, 1  ;;  %p10659_p5 = scmp.ge.s32.totalorder %s14249_s15, 1 }
   0x9   : > { %p14317_p4 = por %p18221_p1, %p40_p0  ;;  %p119_p7 = scmp.lt.s32.totalorder %s14249_s15, 3 }
   0xa   : > { %p14322_p6 = por %p112_p3, %p40_p0  ;;  %s14251_s21 = smov [#allocation6]  }
   0xb   : > { %s18259_s18 = scalar_select %p14317_p4, 1, 0 }
   0xc   : > { %s18260_s19 = scalar_select %p14322_p6, 1, 0 }
   0xd   : > { %p14327_p8 = pnand %p10659_p5, %p119_p7  ;;  %s131_s22 = sshll.u32 %s14251_s21, 4  ;;  %s132_s22 = int_to_ptr.vmem [resolvable:$true] %s131_s22 }
   0xe   : > { %s14252_s24 = smov [#allocation8]   ;;  %s14112_s26 = scalar_lea.vmem %s132_s22, 46080 }
   0xf   : > { %s18261_s20 = scalar_select %p14327_p8, 1, 0 }
  0x10   : > { %p13666_p9 = pneg %p14327_p8  ;;  %s145_s25 = sshll.u32 %s14252_s24, 4  ;;  %s146_s25 = int_to_ptr.vmem [resolvable:$true] %s145_s25 }
  0x11   : > { %p14113_p13 = scmp.ne.s32.totalorder %s132_s22, %s14112_s26  ;;  %p14120_p5 = scmp.lt.s32.totalorder %s132_s22, %s132_s22 }
  0x12   : > { %p14336_p11 = pnand %p13666_p9, %p18221_p1  ;;  %p14121_p7 = scmp.lt.s32.totalorder %s14112_s26, %s14112_s26 }
  0x14   : > { %p14103_p12 = pneg %p14336_p11  ;;  %p14122_p10 = por %p14121_p7, %p14120_p5 }
  0x16   : > { %p14115_p0 = pnand %p14113_p13, %p14103_p12 }
  0x18   : > { %p14116_p3 = pneg %p14115_p0 }
  0x1a   : > { %p14123_p9 = pnand %p14122_p10, %p14116_p3 }
  0x1c   : > { %14126 = shalt.err (!%p14123_p9)
}
  0x1d   : > { %s14253_s27 = smov 64   ;;  %s14254_s28 = smov 4  }
  0x1e   : > { %13669 = dma.hbm_to_vmem [thread:$0]  (!%p14336_p11), %s18218_s1, 46080, %s132_s22, [#allocation7], %s14253_s27, %s14253_s27, %s14254_s28  }
  0x1f   : > { %s14138_s4 = scalar_lea.vmem %s146_s25, 128  ;;  %p14146_p2 = scmp.lt.s32.totalorder %s146_s25, %s146_s25 }
  0x20   : > { %p14139_p1 = scmp.ne.s32.totalorder %s146_s25, %s14138_s4  ;;  %p14147_p6 = scmp.lt.s32.totalorder %s14138_s4, %s14138_s4 }
  0x22   : > { %p14141_p13 = pnand %p14139_p1, %p14103_p12  ;;  %p14148_p5 = por %p14147_p6, %p14146_p2 }
  0x24   : > { %p14142_p0 = pneg %p14141_p13 }
  0x26   : > { %p14149_p10 = pnand %p14148_p5, %p14142_p0 }
  0x28   : > { %14152 = shalt.err (!%p14149_p10)
}
  0x29   : > { %13672 = dma.hbm_to_vmem [thread:$0]  (!%p14336_p11), %s18219_s2, 128, %s146_s25, [#allocation7]  }
  0x2a   : > { %s14359_s7 = sadd.s32 1, %s14249_s15   ;;  %s27_s8 = sadd.s32 1, %s14245_s14 }
  0x2b   : > { %s24_s9 = ssub.s32 %s14249_s15, %s14359_s7  ;;  %p34_p1 = scmp.ne.s32.totalorder %s14245_s14, %s14241_s13 }
  0x2c   : > { %p25_p2 = scmp.eq.s32.totalorder %s24_s9, 0  ;;  %p35_p6 = scmp.eq.s32.totalorder %s14249_s15, 0 }
  0x2d   : > { %p18263_p12 = scmp.eq.s32.totalorder %s14308_s16, 1  ;;  %p13683_p7 = scmp.lt.s32.totalorder %s14249_s15, 2 }
  0x2e   : > { %s14375_s11 = scalar_select %p25_p2, %s14245_s14, %s27_s8  }
  0x2f   : > { %p14369_p3 = por %p18263_p12, %p34_p1  ;;  %p36_p9 = por %p35_p6, %p34_p1 }
  0x30   : > { %s156_s17 = sand.u32 1, %s14245_s14   ;;  %s11036_s22 = sshll.u32 %s14249_s15, 12 }
  0x31   : > { %s18264_s10 = scalar_select %p14369_p3, 1, 0 }
  0x32   : > { %s10663_s21 = sshll.u32 %s156_s17, 8  ;;  %s14382_s25 = scalar_lea.hbm %s18217_s0, %s11036_s22 }
  0x33   : > { %s160_s26 = scalar_lea.vmem [#allocation3], %s10663_s21  ;;  %p14386_p11 = pnand %p13683_p7, %p36_p9 }
  0x34   : > { %s167_s27 = sshll.u32 %s160_s26, 4  ;;  %s14390_s29 = scalar_lea.sflag [#allocation4], %s156_s17  ;;  %s14384_s27 = int_to_ptr.vmem [resolvable:$true] %s167_s27 }
  0x35   : > { %s14153_s30 = scalar_lea.hbm %s14382_s25, 4096  ;;  %p14155_p0 = pneg %p14386_p11 }
  0x36   : > { %p14154_p13 = scmp.ne.s32.totalorder %s14382_s25, %s14153_s30  ;;  %s14158_s6 = scalar_lea.hbm %s18217_s0, 8192 }
  0x37   : > { %p14159_p1 = scmp.lt.s32.totalorder %s14382_s25, %s18217_s0  ;;  %p14160_p2 = scmp.lt.s32.totalorder %s14158_s6, %s14153_s30 }
  0x38   : > { %p14156_p5 = pnand %p14155_p0, %p14154_p13 }
  0x39   : > { %p14161_p6 = por %p14160_p2, %p14159_p1 }
  0x3a   : > { %p14157_p10 = pneg %p14156_p5 }
  0x3c   : > { %p14162_p12 = pnand %p14161_p6, %p14157_p10 }
  0x3e   : > { %14165 = shalt.err (!%p14162_p12)
}
  0x3f   : > { %s14166_s17 = scalar_lea.vmem %s14384_s27, 4096  ;;  %s14255_s21 = smov [#allocation3]  }
  0x40   : > { %p14167_p7 = scmp.ne.s32.totalorder %s14384_s27, %s14166_s17  ;;  %s14171_s22 = sshll.u32 %s14255_s21, 4  ;;  %s14172_s22 = int_to_ptr.vmem [resolvable:$false] %s14171_s22 }
  0x41   : > { %s14173_s23 = scalar_lea.vmem %s14172_s22, 8192  ;;  %p14174_p5 = scmp.lt.s32.totalorder %s14384_s27, %s14172_s22 }
  0x42   : > { %p14169_p9 = pnand %p14167_p7, %p14155_p0  ;;  %p14175_p3 = scmp.lt.s32.totalorder %s14173_s23, %s14166_s17 }
  0x44   : > { %p14170_p13 = pneg %p14169_p9  ;;  %p14176_p4 = por %p14175_p3, %p14174_p5 }
  0x46   : > { %p14177_p8 = pnand %p14176_p4, %p14170_p13 }
  0x48   : > { %14180 = shalt.err (!%p14177_p8)
}
  0x49   : > { %s14256_s24 = smov 128   ;;  %s14257_s26 = smov 8  }
  0x4a   : > { %13676 = dma.hbm_to_vmem [thread:$0]  (!%p14386_p11), %s14382_s25, 4096, %s14384_s27, %s14390_s29, %s14256_s24, %s14256_s24, %s14257_s26  }
  0x4b   : > { %p18266_p0 = scmp.ne.s32.totalorder %s18261_s20, 0 }
  0x4d   : > { %179 = sbr.rel (%p18266_p0) target bundleno = 2937 (0xb79), region = 32 }
  0x52   : > { %s14414_s30 = sand.u32 1, %s14241_s13   ;;  %p18267_p4 = scmp.ne.s32.totalorder %s18259_s18, 0 }
  0x53   : > { %s10667_s4 = sshll.u32 %s14414_s30, 8  ;;  %s182_s5 = scalar_lea.sflag [#allocation4], %s14414_s30 }
  0x54   : > { %s14420_s6 = scalar_lea.vmem [#allocation3], %s10667_s4 }
  0x55   : > { %14224 = dma.done.wait (%p18267_p4), %s182_s5, 4096  }
  0x56   : > { %14226 = vsyncadd (%p18267_p4), %s182_s5, 4294963200  ;;  %p18268_p8 = scmp.eq.s32.totalorder %s14308_s16, 0 }
  0x58   : > { %14228 = dma.done.wait (%p18268_p8), [#allocation7], 46208   ;;  %p18269_p3 = pmov %p18268_p8 }
  0x59   : > { %v14258_v0 = vmov 0.0   ;;  %v13732_v1 = vld [vmem:[#allocation6 + $0x78] sm:$0xff]   ;;  %v13734_v3 = vld [vmem:[#allocation6 + $0x70] sm:$0xff]   ;;  %v13736_v5 = vld [vmem:[#allocation6 + $0x68] sm:$0xff]   ;;  %vm304_vm0 = vcmask 261120   ;;  %v14259_v48 = vmov 0.0|0.0  }
  0x5a   : > { %14230 = vsyncadd (%p18269_p3), [#allocation7], 4294921088  ;;  %217 = vst [vmem:[#allocation2] sm:$0xff] %v14258_v0  ;;  %v13733_v2 = vld [vmem:[#allocation6 + $0x38] sm:$0xff]   ;;  %11038 = vmatprep.subr.bf16.mxu0 %v13732_v1  ;;  %13638 = vmatprep.subr.bf16.mxu1 %v13732_v1  ;;  %v13735_v4 = vld [vmem:[#allocation6 + $0x30] sm:$0xff]   ;;  %s14260_s18 = smov 32  }
  0x5b   : > { %218 = vst [vmem:[#allocation2 + $0x8] sm:$0xff] %v14258_v0  ;;  %219 = vst [vmem:[#allocation2 + $0x10] sm:$0x3] %v14258_v0  ;;  %11039 = vmatpush3.bf16.msra.mxu0 %v13733_v2  ;;  %13646 = vmatpush3.bf16.msra.mxu1 %v13733_v2  ;;  %v13737_v6 = vld [vmem:[#allocation6 + $0x28] sm:$0xff]   ;;  %v13738_v7 = vld [vmem:[#allocation6 + $0x60] sm:$0xff]   ;;  %s14261_s20 = smov 48  }
  0x5c   : > { %220 = vst [vmem:[#allocation2 + $0x18] sm:$0xff] %v14258_v0  ;;  %221 = vst [vmem:[#allocation2 + $0x20] sm:$0xff] %v14258_v0  ;;  %11040 = vmatprep.subr.bf16.mxu0 %v13734_v3  ;;  %13639 = vmatprep.subr.bf16.mxu1 %v13734_v3  ;;  %v13739_v8 = vld [vmem:[#allocation6 + $0x20] sm:$0xff]   ;;  %v13740_v9 = vld [vmem:[#allocation6 + $0x58] sm:$0xff]   ;;  %s14262_s25 = smov 64   ;;  %s14263_s27 = smov 80  }
  0x5d   : > { %222 = vst [vmem:[#allocation2 + $0x28] sm:$0x3] %v14258_v0  ;;  %223 = vst [vmem:[#allocation2 + $0x30] sm:$0xff] %v14258_v0  ;;  %v13741_v10 = vld [vmem:[#allocation6 + $0x18] sm:$0xff]   ;;  %v13742_v11 = vld [vmem:[#allocation6 + $0x50] sm:$0xff]   ;;  %s17976_s28 = scalar_lea.vmem [#allocation9], %s10667_s4 }
  0x5e   : > { %224 = vst [vmem:[#allocation2 + $0x38] sm:$0xff] %v14258_v0  ;;  %225 = vst [vmem:[#allocation2 + $0x40] sm:$0x3] %v14258_v0  ;;  %v14431_v14 = vld [vmem:[%s14420_s6 + $0xb0] sm:$0xff]  ;;  %v14434_v16 = vld [vmem:[%s14420_s6 + $0xb8] sm:$0xff]  ;;  %s11037_s29 = sshll.u32 %s14308_s16, 12 }
  0x5f   : > { %226 = vst [vmem:[#allocation2 + $0x48] sm:$0xff] %v14258_v0  ;;  %227 = vst [vmem:[#allocation2 + $0x50] sm:$0xff] %v14258_v0  ;;  %11041 = vmatpush3.bf16.msra.mxu0 %v13735_v4  ;;  %13647 = vmatpush3.bf16.msra.mxu1 %v13735_v4  ;;  %v13743_v17 = vld [vmem:[#allocation6 + $0x10] sm:$0xff]   ;;  %v13744_v18 = vld [vmem:[#allocation6 + $0x48] sm:$0xff]   ;;  %s10566_s8 = sshll.u32 %s17976_s28, 4  ;;  %s18167_s21 = scalar_lea.hbm %s18220_s3, %s11037_s29  ;;  %s18169_s8 = int_to_ptr.vmem [resolvable:$true] %s10566_s8 }
  0x60   : > { %228 = vst [vmem:[#allocation2 + $0x58] sm:$0x3] %v14258_v0  ;;  %229 = vst [vmem:[#allocation2 + $0x60] sm:$0xff] %v14258_v0  ;;  %11042 = vmatprep.subr.bf16.mxu0 %v13736_v5  ;;  %13640 = vmatprep.subr.bf16.mxu1 %v13736_v5  ;;  %v13745_v19 = vld [vmem:[#allocation6 + $0x8] sm:$0xff]   ;;  %v14441_v20 = vld [vmem:[%s14420_s6] sm:$0xff]  ;;  %s10553_s16 = scalar_lea.sflag [#allocation5], %s14414_s30 }
  0x61   : > { %230 = vst [vmem:[#allocation2 + $0x68] sm:$0xff] %v14258_v0  ;;  %231 = vst [vmem:[#allocation2 + $0x70] sm:$0x3] %v14258_v0  ;;  %v14444_v21 = vld [vmem:[%s14420_s6 + $0x8] sm:$0xff]  ;;  %v13746_v22 = vld [vmem:[#allocation6 + $0x40] sm:$0xff]   ;;  %s14181_s22 = scalar_lea.vmem %s18169_s8, 4096 }
  0x62   : > { %232 = vst [vmem:[#allocation2 + $0x78] sm:$0xff] %v14258_v0  ;;  %233 = vst [vmem:[#allocation2 + $0x80] sm:$0xff] %v14258_v0  ;;  %v386_v12 = vld [vmem:[#allocation2 + $0x1] sm:$0xff]  ;;  %v387_v13 = vld [vmem:[#allocation2 + $0x9] sm:$0xff]  ;;  %p14182_p11 = scmp.ne.s32.totalorder %s18169_s8, %s14181_s22  ;;  %p18620_p10 = scmp.ne.s32.totalorder %s18264_s10, 0 }
  0x63   : > { %234 = vst [vmem:[#allocation2 + $0x88] sm:$0x3] %v14258_v0  ;;  %235 = vst [vmem:[#allocation2 + $0x90] sm:$0xff] %v14258_v0  ;;  %11043 = vmatpush3.bf16.msra.mxu0 %v13737_v6  ;;  %13648 = vmatpush3.bf16.msra.mxu1 %v13737_v6  ;;  %v418_v15 = vpack.c.bf16 %v387_v13, %v386_v12  ;;  %v14451_v24 = vld [vmem:[%s14420_s6 + $0xc0] sm:$0xff]  ;;  %v14454_v27 = vld [vmem:[%s14420_s6 + $0xc8] sm:$0xff]  ;;  %s14264_s23 = smov [#allocation9]  }
  0x64   : > { %236 = vst [vmem:[#allocation2 + $0x98] sm:$0xff] %v14258_v0  ;;  %237 = vst [vmem:[#allocation2 + $0xa0] sm:$0x3] %v14258_v0  ;;  %11044 = vmatprep.subr.bf16.mxu0 %v13738_v7  ;;  %13641 = vmatprep.subr.bf16.mxu1 %v13738_v7  ;;  %v13747_v25 = vld [vmem:[#allocation6] sm:$0xff]   ;;  %v13748_v30 = vld [vmem:[#allocation6 + $0xf8] sm:$0xff]   ;;  %p14183_p1 = pnand %p14182_p11, %p18620_p10  ;;  %s14185_s24 = sshll.u32 %s14264_s23, 4  ;;  %s14186_s24 = int_to_ptr.vmem [resolvable:$false] %s14185_s24 }
  0x65   : > { %238 = vst [vmem:[#allocation2 + $0xa8] sm:$0xff] %v14258_v0  ;;  %239 = vst [vmem:[#allocation2 + $0xb0] sm:$0xff] %v14258_v0  ;;  %1383 = vmatprep.mubr.bf16.mxu0 %v418_v15  ;;  %v13749_v32 = vld [vmem:[#allocation6 + $0x178] sm:$0xff]   ;;  %v13752_v38 = vld [vmem:[#allocation6 + $0xf0] sm:$0xff]   ;;  %s14187_s26 = scalar_lea.vmem %s14186_s24, 8192  ;;  %p14188_p6 = scmp.lt.s32.totalorder %s18169_s8, %s14186_s24 }
  0x66   : > { %240 = vst [vmem:[#allocation2 + $0xb8] sm:$0x3] %v14258_v0  ;;  %241 = vst [vmem:[#allocation2 + $0xc0] sm:$0xff] %v14258_v0  ;;  %v13750_v34 = vld [vmem:[#allocation6 + $0xb8] sm:$0xff]   ;;  %v13757_v41 = vld [vmem:[#allocation6 + $0x170] sm:$0xff]   ;;  %p14184_p2 = pneg %p14183_p1  ;;  %p14189_p12 = scmp.lt.s32.totalorder %s14187_s26, %s14181_s22 }
  0x67   : > { %242 = vst [vmem:[#allocation2 + $0xc8] sm:$0xff] %v14258_v0  ;;  %243 = vst [vmem:[#allocation2 + $0xd0] sm:$0x3] %v14258_v0  ;;  %11045 = vmatpush3.bf16.msra.mxu0 %v13739_v8  ;;  %13649 = vmatpush3.bf16.msra.mxu1 %v13739_v8  ;;  %v13751_v35 = vld [vmem:[#allocation6 + $0x138] sm:$0xff]   ;;  %v13753_v42 = vld [vmem:[#allocation6 + $0xb0] sm:$0xff]  }
  0x68   : > { %244 = vst [vmem:[#allocation2 + $0xd8] sm:$0xff] %v14258_v0  ;;  %245 = vst [vmem:[#allocation2 + $0xe0] sm:$0xff] %v14258_v0  ;;  %11046 = vmatprep.subr.bf16.mxu0 %v13740_v9  ;;  %13642 = vmatprep.subr.bf16.mxu1 %v13740_v9  ;;  %v13759_v50 = vld [vmem:[#allocation6 + $0x130] sm:$0xff]   ;;  %v14469_v52 = vld [vmem:[%s14420_s6 + $0x18] sm:$0xff]  ;;  %p14190_p7 = por %p14189_p12, %p14188_p6 }
  0x69   : > { %246 = vst [vmem:[#allocation2 + $0xe8] sm:$0x3] %v14258_v0  ;;  %247 = vst [vmem:[#allocation2 + $0xf0] sm:$0xff] %v14258_v0  ;;  %v14466_v51 = vld [vmem:[%s14420_s6 + $0x10] sm:$0xff]  ;;  %v14477_v54 = vld [vmem:[%s14420_s6 + $0xd8] sm:$0xff] }
  0x6a   : > { %248 = vst [vmem:[#allocation2 + $0xf8] sm:$0xff] %v14258_v0  ;;  %249 = vst [vmem:[#allocation2 + $0x100] sm:$0x3] %v14258_v0  ;;  %v14474_v53 = vld [vmem:[%s14420_s6 + $0xd0] sm:$0xff]  ;;  %v13754_v55 = vld [vmem:[#allocation6 + $0xe8] sm:$0xff]   ;;  %p14191_p9 = pnand %p14190_p7, %p14184_p2 }
  0x6b   : > { %250 = vst [vmem:[#allocation2 + $0x108] sm:$0xff] %v14258_v0  ;;  %251 = vst [vmem:[#allocation2 + $0x110] sm:$0xff] %v14258_v0  ;;  %11047 = vmatpush3.bf16.msra.mxu0 %v13741_v10  ;;  %13650 = vmatpush3.bf16.msra.mxu1 %v13741_v10  ;;  %v13755_v58 = vld [vmem:[#allocation6 + $0xa8] sm:$0xff]   ;;  %v13756_v59 = vld [vmem:[#allocation6 + $0xe0] sm:$0xff]  }
  0x6c   : > { %252 = vst [vmem:[#allocation2 + $0x118] sm:$0x3] %v14258_v0  ;;  %253 = vst [vmem:[#allocation2 + $0x120] sm:$0xff] %v14258_v0  ;;  %11048 = vmatprep.subr.bf16.mxu0 %v13742_v11  ;;  %13643 = vmatprep.subr.bf16.mxu1 %v13742_v11  ;;  %v14491_v60 = vld [vmem:[%s14420_s6 + $0x20] sm:$0xff]  ;;  %v14494_v61 = vld [vmem:[%s14420_s6 + $0x28] sm:$0xff] }
  0x6d   : > { %254 = vst [vmem:[#allocation2 + $0x128] sm:$0xff] %v14258_v0  ;;  %255 = vst [vmem:[#allocation2 + $0x130] sm:$0x3] %v14258_v0  ;;  %v14497_v62 = vld [vmem:[%s14420_s6 + $0xe0] sm:$0xff]  ;;  %v13760_v3 = vld [vmem:[#allocation6 + $0xd8] sm:$0xff]  }
  0x6e   : > { %256 = vst [vmem:[#allocation2 + $0x138] sm:$0xff] %v14258_v0  ;;  %257 = vst [vmem:[#allocation2 + $0x140] sm:$0xff] %v14258_v0  ;;  %v13758_v63 = vld [vmem:[#allocation6 + $0xa0] sm:$0xff]   ;;  %v13761_v12 = vld [vmem:[#allocation6 + $0x98] sm:$0xff]  }
  0x6f   : > { %258 = vst [vmem:[#allocation2 + $0x148] sm:$0x3] %v14258_v0  ;;  %259 = vst [vmem:[#allocation2 + $0x150] sm:$0xff] %v14258_v0  ;;  %11049 = vmatpush3.bf16.msra.mxu0 %v13743_v17  ;;  %13651 = vmatpush3.bf16.msra.mxu1 %v13743_v17  ;;  %v13765_v13 = vld [vmem:[#allocation6 + $0x168] sm:$0xff]  }
  0x70   : > { %260 = vst [vmem:[#allocation2 + $0x158] sm:$0xff] %v14258_v0  ;;  %261 = vst [vmem:[#allocation2 + $0x160] sm:$0x3] %v14258_v0  ;;  %11050 = vmatprep.subr.bf16.mxu0 %v13744_v18  ;;  %13644 = vmatprep.subr.bf16.mxu1 %v13744_v18  ;;  %v13762_v18 = vld [vmem:[#allocation6 + $0xd0] sm:$0xff]  }
  0x71   : > { %262 = vst [vmem:[#allocation2 + $0x168] sm:$0xff] %v14258_v0  ;;  %263 = vst [vmem:[#allocation2 + $0x170] sm:$0xff] %v14258_v0 }
  0x72   : > { %264 = vst [vmem:[#allocation2 + $0x178] sm:$0x3] %v14258_v0  ;;  %265 = vst [vmem:[#allocation2 + $0x180] sm:$0xff] %v14258_v0 }
  0x73   : > { %266 = vst [vmem:[#allocation2 + $0x188] sm:$0xff] %v14258_v0  ;;  %267 = vst [vmem:[#allocation2 + $0x190] sm:$0x3] %v14258_v0  ;;  %11051 = vmatpush3.bf16.msra.mxu0 %v13745_v19  ;;  %13652 = vmatpush3.bf16.msra.mxu1 %v13745_v19  ;;  %v13767_v19 = vld [vmem:[#allocation6 + $0x128] sm:$0xff]  }
  0x74   : > { %268 = vst [vmem:[#allocation2 + $0x198] sm:$0xff] %v14258_v0  ;;  %269 = vst [vmem:[#allocation2 + $0x1a0] sm:$0xff] %v14258_v0  ;;  %11052 = vmatprep.subr.bf16.mxu0 %v13746_v22  ;;  %13645 = vmatprep.subr.bf16.mxu1 %v13746_v22 }
  0x75   : > { %270 = vst [vmem:[#allocation2 + $0x1a8] sm:$0x3] %v14258_v0  ;;  %18270 = vst [vmem:[#allocation13_spill] sm:$0xff] %v14431_v14  ;;  %v14504_v0 = vld [vmem:[%s14420_s6 + $0xe8] sm:$0xff] }
  0x76   : > { %18271 = vst [vmem:[#allocation14_spill] sm:$0xff] %v14434_v16  ;;  %327 = vst.msk [vmem:[#allocation2 + $0x121] sm:$0xff] %vm304_vm0, %v14431_v14 }
  0x77   : > { %328 = vst.msk [vmem:[#allocation2 + $0x129] sm:$0xff] %vm304_vm0, %v14434_v16  ;;  %18272 = vst [vmem:[#allocation15_spill] sm:$0xff] %v14441_v20  ;;  %11053 = vmatpush3.bf16.msra.mxu0 %v13747_v25  ;;  %13653 = vmatpush3.bf16.msra.mxu1 %v13747_v25 }
  0x78   : > { %18273 = vst [vmem:[#allocation16_spill] sm:$0xff] %v14444_v21  ;;  %305 = vst.msk [vmem:[#allocation2 + $0x19] sm:$0xff] %vm304_vm0, %v14441_v20  ;;  %11150 = vmatprep.subr.bf16.mxu1 %v13748_v30  ;;  %11262 = vmatprep.subr.bf16.mxu0 %v13749_v32 }
  0x79   : > { %306 = vst.msk [vmem:[#allocation2 + $0x21] sm:$0xff] %vm304_vm0, %v14444_v21  ;;  %18274 = vst [vmem:[#allocation17_spill] sm:$0xff] %v14451_v24 }
  0x7a   : > { %18275 = vst [vmem:[#allocation18_spill] sm:$0xff] %v14454_v27  ;;  %329 = vst.msk [vmem:[#allocation2 + $0x139] sm:$0xff] %vm304_vm0, %v14451_v24  ;;  %1384 = vmatmul.mubr.bf16.vlgmr.msra.gmra.mxu0 %v14259_v48  ;;  %v13769_v48 = vld [vmem:[#allocation6 + $0x80] sm:$0xff]  }
  0x7b   : > { %330 = vst.msk [vmem:[#allocation2 + $0x141] sm:$0xff] %vm304_vm0, %v14454_v27  ;;  %18276 = vst [vmem:[#allocation19_spill] sm:$0xff] %v14466_v51  ;;  %11263 = vmatpush3.bf16.msra.mxu0 %v13751_v35  ;;  %v13789_v24 = vld [vmem:[#allocation6 + $0x1e0] sm:$0xff]  }
  0x7c   : > { %18277 = vst [vmem:[#allocation20_spill] sm:$0xff] %v14469_v52  ;;  %307 = vst.msk [vmem:[#allocation2 + $0x31] sm:$0xff] %vm304_vm0, %v14466_v51  ;;  %11264 = vmatprep.subr.bf16.mxu0 %v13757_v41 }
  0x7d   : > { %v410_v23 = vld [vmem:[#allocation2 + $0x121] sm:$0xff]  ;;  %18278 = vst [vmem:[#allocation21_spill] sm:$0xff] %v14474_v53  ;;  %18279 = vst [vmem:[#allocation22_spill] sm:$0xff] %v14477_v54 }
  0x7e   : > { %v411_v26 = vld [vmem:[#allocation2 + $0x129] sm:$0xff]  ;;  %v362_v29 = vld [vmem:[#allocation2 + $0x120] sm:$0xff]  ;;  %308 = vst.msk [vmem:[#allocation2 + $0x39] sm:$0xff] %vm304_vm0, %v14469_v52  ;;  %331 = vst.msk [vmem:[#allocation2 + $0x151] sm:$0xff] %vm304_vm0, %v14474_v53 }
  0x7f   : > { %v430_v28 = vpack.c.bf16 %v411_v26, %v410_v23  ;;  %v363_v31 = vld [vmem:[#allocation2 + $0x128] sm:$0xff]  ;;  %v388_v36 = vld [vmem:[#allocation2 + $0x19] sm:$0xff]  ;;  %332 = vst.msk [vmem:[#allocation2 + $0x159] sm:$0xff] %vm304_vm0, %v14477_v54  ;;  %11265 = vmatpush3.bf16.msra.mxu0 %v13759_v50  ;;  %18280 = vst [vmem:[#allocation23_spill] sm:$0xff] %v14491_v60 }
  0x80   : > { %v14460_v33 = vpack.c.bf16 %v363_v31, %v362_v29  ;;  %v389_v37 = vld [vmem:[#allocation2 + $0x21] sm:$0xff]  ;;  %v340_v44 = vld [vmem:[#allocation2 + $0x18] sm:$0xff]  ;;  %18281 = vst [vmem:[#allocation24_spill] sm:$0xff] %v14494_v61  ;;  %18282 = vst [vmem:[#allocation25_spill] sm:$0xff] %v14497_v62  ;;  %11266 = vmatprep.subr.bf16.mxu0 %v13765_v13 }
  0x81   : > { %1479 = vmatprep.mubr.bf16.mxu1 %v430_v28  ;;  %v14462_v39 = vpack.c.bf16 %v389_v37, %v388_v36  ;;  %v412_v40 = vld [vmem:[#allocation2 + $0x139] sm:$0xff]  ;;  %309 = vst.msk [vmem:[#allocation2 + $0x49] sm:$0xff] %vm304_vm0, %v14491_v60  ;;  %310 = vst.msk [vmem:[#allocation2 + $0x51] sm:$0xff] %vm304_vm0, %v14494_v61  ;;  %v14552_v50 = vld [vmem:[%s14420_s6 + $0x58] sm:$0xff] }
  0x82   : > { %v413_v43 = vld [vmem:[#allocation2 + $0x141] sm:$0xff]  ;;  %v364_v46 = vld [vmem:[#allocation2 + $0x138] sm:$0xff]  ;;  %1480 = vmatmul.mubr.bf16.vlgmr.msra.gmra.mxu1 %v14460_v33  ;;  %18283 = vst [vmem:[#allocation26_spill] sm:$0xff] %v14504_v0  ;;  %333 = vst.msk [vmem:[#allocation2 + $0x169] sm:$0xff] %vm304_vm0, %v14497_v62 }
  0x83   : > { %v341_v45 = vld [vmem:[#allocation2 + $0x20] sm:$0xff]  ;;  %v431_v49 = vpack.c.bf16 %v413_v43, %v412_v40  ;;  %11151 = vmatpush3.bf16.msra.mxu1 %v13750_v34  ;;  %1391 = vmatprep.mubr.bf16.mxu0 %v14462_v39  ;;  %v390_v1 = vld [vmem:[#allocation2 + $0x31] sm:$0xff]  ;;  %334 = vst.msk [vmem:[#allocation2 + $0x171] sm:$0xff] %vm304_vm0, %v14504_v0  ;;  %v14528_v40 = vld [vmem:[%s14420_s6 + $0x38] sm:$0xff] }
  0x84   : > { %v365_v47 = vld [vmem:[#allocation2 + $0x140] sm:$0xff]  ;;  %11152 = vmatprep.subr.bf16.mxu1 %v13752_v38  ;;  %v14486_v56 = vpack.c.bf16 %v341_v45, %v340_v44  ;;  %v342_v2 = vld [vmem:[#allocation2 + $0x30] sm:$0xff]  ;;  %11267 = vmatpush3.bf16.msra.mxu0 %v13767_v19  ;;  %v13764_v36 = vld [vmem:[#allocation6 + $0xc8] sm:$0xff]   ;;  %18285 = vst [vmem:[#allocation28_spill] sm:$0xff] %v14528_v40 }
  0x85   : > { %1487 = vmatprep.mubr.bf16.mxu1 %v431_v49  ;;  %v14488_v57 = vpack.c.bf16 %v365_v47, %v364_v46  ;;  %v391_v4 = vld [vmem:[#allocation2 + $0x39] sm:$0xff]  ;;  %v414_v5 = vld [vmem:[#allocation2 + $0x151] sm:$0xff]  ;;  %312 = vst.msk [vmem:[#allocation2 + $0x69] sm:$0xff] %vm304_vm0, %v14528_v40  ;;  %18289 = vst [vmem:[#allocation32_spill] sm:$0xff] %v14552_v50 }
  0x86   : > { %1392 = vmatmul.mubr.bf16.gmra.mxu0 %v14486_v56  ;;  %v415_v6 = vld [vmem:[#allocation2 + $0x159] sm:$0xff]  ;;  %v14512_v7 = vpack.c.bf16 %v391_v4, %v390_v1  ;;  %v366_v10 = vld [vmem:[#allocation2 + $0x150] sm:$0xff]  ;;  %316 = vst.msk [vmem:[#allocation2 + $0x99] sm:$0xff] %vm304_vm0, %v14552_v50  ;;  %v13773_v4 = vld [vmem:[#allocation6 + $0x118] sm:$0xff]  }
  0x87   : > { %11153 = vmatpush3.bf16.msra.mxu1 %v13753_v42  ;;  %v432_v8 = vpack.c.bf16 %v415_v6, %v414_v5  ;;  %v343_v9 = vld [vmem:[#allocation2 + $0x38] sm:$0xff]  ;;  %v13763_v26 = vld [vmem:[#allocation6 + $0x90] sm:$0xff]   ;;  %v13770_v43 = vld [vmem:[#allocation6 + $0x160] sm:$0xff]  }
  0x88   : > { %11154 = vmatprep.subr.bf16.mxu1 %v13754_v55  ;;  %v367_v11 = vld [vmem:[#allocation2 + $0x158] sm:$0xff]  ;;  %1399 = vmatprep.mubr.bf16.mxu0 %v14512_v7  ;;  %v14515_v15 = vpack.c.bf16 %v343_v9, %v342_v2  ;;  %v392_v22 = vld [vmem:[#allocation2 + $0x49] sm:$0xff]  ;;  %v14525_v37 = vld [vmem:[%s14420_s6 + $0x30] sm:$0xff] }
  0x89   : > { %v14517_v17 = vpack.c.bf16 %v367_v11, %v366_v10  ;;  %v393_v23 = vld [vmem:[#allocation2 + $0x51] sm:$0xff]  ;;  %v416_v25 = vld [vmem:[#allocation2 + $0x169] sm:$0xff]  ;;  %18284 = vst [vmem:[#allocation27_spill] sm:$0xff] %v14525_v37  ;;  %311 = vst.msk [vmem:[#allocation2 + $0x61] sm:$0xff] %vm304_vm0, %v14525_v37  ;;  %11268 = vmatprep.subr.bf16.mxu0 %v13770_v43 }
  0x8a   : > { %1488 = vmatmul.mubr.bf16.gmra.mxu1 %v14488_v57  ;;  %v14519_v28 = vpack.c.bf16 %v393_v23, %v392_v22  ;;  %v417_v29 = vld [vmem:[#allocation2 + $0x171] sm:$0xff]  ;;  %v344_v30 = vld [vmem:[#allocation2 + $0x48] sm:$0xff]  ;;  %v14549_v49 = vld [vmem:[%s14420_s6 + $0x50] sm:$0xff] }
  0x8b   : > { %11155 = vmatpush3.bf16.msra.mxu1 %v13755_v58  ;;  %1495 = vmatprep.mubr.bf16.mxu1 %v432_v8  ;;  %v433_v31 = vpack.c.bf16 %v417_v29, %v416_v25  ;;  %v345_v32 = vld [vmem:[#allocation2 + $0x50] sm:$0xff]  ;;  %v368_v34 = vld [vmem:[#allocation2 + $0x168] sm:$0xff]  ;;  %v13766_v38 = vld [vmem:[#allocation6 + $0x88] sm:$0xff]   ;;  %18288 = vst [vmem:[#allocation31_spill] sm:$0xff] %v14549_v49 }
  0x8c   : > { %11156 = vmatprep.subr.bf16.mxu1 %v13756_v59  ;;  %v369_v35 = vld [vmem:[#allocation2 + $0x170] sm:$0xff]  ;;  %v14532_v41 = vpack.c.bf16 %v345_v32, %v344_v30  ;;  %v14542_v47 = vld [vmem:[%s14420_s6 + $0x48] sm:$0xff]  ;;  %v434_v55 = vld [vmem:[#allocation2 + $0x2] sm:$0xff]  ;;  %315 = vst.msk [vmem:[#allocation2 + $0x91] sm:$0xff] %vm304_vm0, %v14549_v49 }
  0x8d   : > { %v14534_v42 = vpack.c.bf16 %v369_v35, %v368_v34  ;;  %v13771_v44 = vld [vmem:[#allocation6 + $0x120] sm:$0xff]   ;;  %18287 = vst [vmem:[#allocation30_spill] sm:$0xff] %v14542_v47  ;;  %314 = vst.msk [vmem:[#allocation2 + $0x81] sm:$0xff] %vm304_vm0, %v14542_v47  ;;  %v13772_v59 = vld [vmem:[#allocation6 + $0x158] sm:$0xff]  }
  0x8e   : > { %1400 = vmatmul.mubr.bf16.gmra.mxu0 %v14515_v15  ;;  %v13768_v45 = vld [vmem:[#allocation6 + $0xc0] sm:$0xff]   ;;  %v14569_v10 = vld [vmem:[%s14420_s6 + $0x68] sm:$0xff]  ;;  %v437_v19 = vld [vmem:[#allocation2 + $0x22] sm:$0xff] }
  0x8f   : > { %11157 = vmatpush3.bf16.msra.mxu1 %v13758_v63  ;;  %1407 = vmatprep.mubr.bf16.mxu0 %v14519_v28  ;;  %v14539_v46 = vld [vmem:[%s14420_s6 + $0x40] sm:$0xff]  ;;  %18291 = vst [vmem:[#allocation34_spill] sm:$0xff] %v14569_v10  ;;  %318 = vst.msk [vmem:[#allocation2 + $0xb1] sm:$0xff] %vm304_vm0, %v14569_v10  ;;  %v13774_v25 = vld [vmem:[#allocation6 + $0x150] sm:$0xff]  }
  0x90   : > { %11158 = vmatprep.subr.bf16.mxu1 %v13760_v3  ;;  %18286 = vst [vmem:[#allocation29_spill] sm:$0xff] %v14539_v46  ;;  %11269 = vmatpush3.bf16.msra.mxu0 %v13771_v44  ;;  %313 = vst.msk [vmem:[#allocation2 + $0x79] sm:$0xff] %vm304_vm0, %v14539_v46  ;;  %v435_v58 = vld [vmem:[#allocation2 + $0xa] sm:$0xff]  ;;  %v394_v63 = vld [vmem:[#allocation2 + $0x61] sm:$0xff] }
  0x91   : > { %v346_v1 = vld [vmem:[#allocation2 + $0x60] sm:$0xff]  ;;  %v395_v2 = vld [vmem:[#allocation2 + $0x69] sm:$0xff]  ;;  %11270 = vmatprep.subr.bf16.mxu0 %v13772_v59  ;;  %v466_v8 = vpack.c.bf16 %v435_v58, %v434_v55  ;;  %v14595_v34 = vld [vmem:[%s14420_s6 + $0x88] sm:$0xff] }
  0x92   : > { %1496 = vmatmul.mubr.bf16.gmra.mxu1 %v14517_v17  ;;  %v347_v3 = vld [vmem:[#allocation2 + $0x68] sm:$0xff]  ;;  %v14561_v5 = vpack.c.bf16 %v395_v2, %v394_v63  ;;  %v14566_v9 = vld [vmem:[%s14420_s6 + $0x60] sm:$0xff]  ;;  %v399_v29 = vld [vmem:[#allocation2 + $0x99] sm:$0xff]  ;;  %18295 = vst [vmem:[#allocation38_spill] sm:$0xff] %v14595_v34 }
  0x93   : > { %11159 = vmatpush3.bf16.msra.mxu1 %v13761_v12  ;;  %1503 = vmatprep.mubr.bf16.mxu1 %v433_v31  ;;  %v14563_v6 = vpack.c.bf16 %v347_v3, %v346_v1  ;;  %18290 = vst [vmem:[#allocation33_spill] sm:$0xff] %v14566_v9  ;;  %317 = vst.msk [vmem:[#allocation2 + $0xa9] sm:$0xff] %vm304_vm0, %v14566_v9  ;;  %v398_v23 = vld [vmem:[#allocation2 + $0x91] sm:$0xff]  ;;  %v14582_v30 = vld [vmem:[%s14420_s6 + $0x70] sm:$0xff] }
  0x94   : > { %11160 = vmatprep.subr.bf16.mxu1 %v13762_v18  ;;  %11271 = vmatpush3.bf16.msra.mxu0 %v13773_v4  ;;  %v397_v11 = vld [vmem:[#allocation2 + $0x81] sm:$0xff]  ;;  %18292 = vst [vmem:[#allocation35_spill] sm:$0xff] %v14582_v30  ;;  %319 = vst.msk [vmem:[#allocation2 + $0xc1] sm:$0xff] %vm304_vm0, %v14582_v30  ;;  %v14592_v32 = vld [vmem:[%s14420_s6 + $0x80] sm:$0xff] }
  0x95   : > { %v436_v18 = vld [vmem:[#allocation2 + $0x1a] sm:$0xff]  ;;  %11272 = vmatprep.subr.bf16.mxu0 %v13774_v25  ;;  %v14585_v31 = vld [vmem:[%s14420_s6 + $0x78] sm:$0xff]  ;;  %18294 = vst [vmem:[#allocation37_spill] sm:$0xff] %v14592_v32  ;;  %321 = vst.msk [vmem:[#allocation2 + $0xd9] sm:$0xff] %vm304_vm0, %v14592_v32 }
  0x96   : > { %1408 = vmatmul.mubr.bf16.gmra.mxu0 %v14532_v41  ;;  %18293 = vst [vmem:[#allocation36_spill] sm:$0xff] %v14585_v31  ;;  %320 = vst.msk [vmem:[#allocation2 + $0xc9] sm:$0xff] %vm304_vm0, %v14585_v31  ;;  %v13776_v43 = vld [vmem:[#allocation6 + $0x148] sm:$0xff]   ;;  %v350_v55 = vld [vmem:[#allocation2 + $0x90] sm:$0xff] }
  0x97   : > { %11161 = vmatpush3.bf16.msra.mxu1 %v13763_v26  ;;  %1415 = vmatprep.mubr.bf16.mxu0 %v14561_v5  ;;  %v348_v13 = vld [vmem:[#allocation2 + $0x78] sm:$0xff]  ;;  %v349_v22 = vld [vmem:[#allocation2 + $0x80] sm:$0xff]  ;;  %322 = vst.msk [vmem:[#allocation2 + $0xe1] sm:$0xff] %vm304_vm0, %v14595_v34  ;;  %v14613_v59 = vld [vmem:[%s14420_s6 + $0x98] sm:$0xff] }
  0x98   : > { %11162 = vmatprep.subr.bf16.mxu1 %v13764_v36  ;;  %v13775_v26 = vld [vmem:[#allocation6 + $0x110] sm:$0xff]   ;;  %v14597_v35 = vpack.c.bf16 %v349_v22, %v348_v13  ;;  %v14599_v36 = vpack.c.bf16 %v437_v19, %v436_v18  ;;  %v438_v44 = vld [vmem:[#allocation2 + $0x32] sm:$0xff]  ;;  %18297 = vst [vmem:[#allocation40_spill] sm:$0xff] %v14613_v59  ;;  %324 = vst.msk [vmem:[#allocation2 + $0xf9] sm:$0xff] %vm304_vm0, %v14613_v59 }
  0x99   : > { %11273 = vmatpush3.bf16.msra.mxu0 %v13775_v26  ;;  %v14610_v58 = vld [vmem:[%s14420_s6 + $0x90] sm:$0xff]  ;;  %v351_v63 = vld [vmem:[#allocation2 + $0x98] sm:$0xff]  ;;  %v14628_v13 = vld [vmem:[%s14420_s6 + $0xa0] sm:$0xff] }
  0x9a   : > { %1504 = vmatmul.mubr.bf16.gmra.mxu1 %v14534_v42  ;;  %18296 = vst [vmem:[#allocation39_spill] sm:$0xff] %v14610_v58  ;;  %323 = vst.msk [vmem:[#allocation2 + $0xf1] sm:$0xff] %vm304_vm0, %v14610_v58  ;;  %v400_v1 = vld [vmem:[#allocation2 + $0xa9] sm:$0xff]  ;;  %v401_v2 = vld [vmem:[#allocation2 + $0xb1] sm:$0xff]  ;;  %11274 = vmatprep.subr.bf16.mxu0 %v13776_v43  ;;  %v14621_v3 = vpack.c.bf16 %v351_v63, %v350_v55 }
  0x9b   : > { %11163 = vmatpush3.bf16.msra.mxu1 %v13766_v38  ;;  %1544 = vmatprep.mubr.bf16.mxu1 %v14486_v56  ;;  %v396_v56 = vld [vmem:[#allocation2 + $0x79] sm:$0xff]  ;;  %v14605_v38 = vpack.c.bf16 %v399_v29, %v398_v23  ;;  %18298 = vst [vmem:[#allocation41_spill] sm:$0xff] %v14628_v13  ;;  %v440_v19 = vld [vmem:[#allocation2 + $0x4a] sm:$0xff]  ;;  %325 = vst.msk [vmem:[#allocation2 + $0x109] sm:$0xff] %vm304_vm0, %v14628_v13 }
  0x9c   : > { %11164 = vmatprep.subr.bf16.mxu1 %v13768_v45  ;;  %v14576_v12 = vpack.c.bf16 %v397_v11, %v396_v56  ;;  %v439_v45 = vld [vmem:[#allocation2 + $0x3a] sm:$0xff]  ;;  %v14625_v56 = vpack.c.bf16 %v401_v2, %v400_v1  ;;  %v13779_v11 = vld [vmem:[#allocation6 + $0x100] sm:$0xff]   ;;  %v352_v22 = vld [vmem:[#allocation2 + $0xa8] sm:$0xff] }
  0x9d   : > { %v14623_v4 = vpack.c.bf16 %v439_v45, %v438_v44  ;;  %v14631_v18 = vld [vmem:[%s14420_s6 + $0xa8] sm:$0xff]  ;;  %v353_v23 = vld [vmem:[#allocation2 + $0xb0] sm:$0xff]  ;;  %v402_v26 = vld [vmem:[#allocation2 + $0xc1] sm:$0xff] }
  0x9e   : > { %1416 = vmatmul.mubr.bf16.gmra.mxu0 %v14563_v6  ;;  %18299 = vst [vmem:[#allocation42_spill] sm:$0xff] %v14631_v18  ;;  %326 = vst.msk [vmem:[#allocation2 + $0x111] sm:$0xff] %vm304_vm0, %v14631_v18  ;;  %v441_v25 = vld [vmem:[#allocation2 + $0x52] sm:$0xff]  ;;  %v13780_v29 = vld [vmem:[#allocation6 + $0x1f8] sm:$0xff]   ;;  %v14641_v45 = vpack.c.bf16 %v353_v23, %v352_v22 }
  0x9f   : > { %11165 = vmatpush3.bf16.msra.mxu1 %v13769_v48  ;;  %1423 = vmatprep.mubr.bf16.mxu0 %v14576_v12  ;;  %v13777_v48 = vld [vmem:[#allocation6 + $0x108] sm:$0xff]   ;;  %v403_v43 = vld [vmem:[#allocation2 + $0xc9] sm:$0xff]  ;;  %v13783_v1 = vld [vmem:[#allocation6 + $0x1f0] sm:$0xff]  }
  0xa0   : > { %11275 = vmatpush3.bf16.msra.mxu0 %v13777_v48  ;;  %v13781_v44 = vld [vmem:[#allocation6 + $0x1b8] sm:$0xff]   ;;  %11374 = vmatprep.subr.bf16.mxu1 %v13780_v29  ;;  %v14643_v48 = vpack.c.bf16 %v441_v25, %v440_v19  ;;  %v14647_v63 = vpack.c.bf16 %v403_v43, %v402_v26  ;;  %v13784_v22 = vld [vmem:[#allocation6 + $0x1b0] sm:$0xff]   ;;  %v13786_v26 = vld [vmem:[#allocation6 + $0x1e8] sm:$0xff]  }
  0xa1   : > { %v14645_v55 = vld [vmem:[#allocation6 + $0x238] sm:$0xff]   ;;  %v404_v23 = vld [vmem:[#allocation2 + $0xd9] sm:$0xff]  ;;  %v358_v18 = vld [vmem:[#allocation2 + $0xf0] sm:$0xff] }
  0xa2   : > { %1545 = vmatmul.mubr.bf16.vlgmr.msra.gmra.mxu1 %v466_v8  ;;  %v13778_v8 = vld [vmem:[#allocation6 + $0x140] sm:$0xff]   ;;  %v442_v2 = vld [vmem:[#allocation2 + $0x62] sm:$0xff]  ;;  %v356_v0 = vld [vmem:[#allocation2 + $0xd8] sm:$0xff] }
  0xa3   : > { %1552 = vmatprep.mubr.bf16.mxu1 %v14515_v15  ;;  %11276 = vmatprep.subr.bf16.mxu0 %v13778_v8  ;;  %v354_v8 = vld [vmem:[#allocation2 + $0xc0] sm:$0xff]  ;;  %v355_v19 = vld [vmem:[#allocation2 + $0xc8] sm:$0xff]  ;;  %v359_v16 = vld [vmem:[#allocation2 + $0xf8] sm:$0xff] }
  0xa4   : > { %11277 = vmatpush3.bf16.msra.mxu0 %v13779_v11  ;;  %11375 = vmatpush3.bf16.msra.mxu1 %v13781_v44  ;;  %v443_v11 = vld [vmem:[#allocation2 + $0x6a] sm:$0xff]  ;;  %v405_v25 = vld [vmem:[#allocation2 + $0xe1] sm:$0xff]  ;;  %v14654_v29 = vpack.c.bf16 %v355_v19, %v354_v8  ;;  %v13787_v44 = vld [vmem:[#allocation6 + $0x1a8] sm:$0xff]  }
  0xa5   : > { %13398 = vmatprep.subr.bf16.mxu0 %v14645_v55  ;;  %11376 = vmatprep.subr.bf16.mxu1 %v13783_v1  ;;  %v14656_v43 = vpack.c.bf16 %v443_v11, %v442_v2  ;;  %v14658_v1 = vpack.c.bf16 %v405_v25, %v404_v23  ;;  %v357_v62 = vld [vmem:[#allocation2 + $0xe0] sm:$0xff]  ;;  %v406_v2 = vld [vmem:[#allocation2 + $0xf1] sm:$0xff]  ;;  %v13791_v11 = vld [vmem:[#allocation6 + $0x1d8] sm:$0xff]  }
  0xa6   : > { %1424 = vmatmul.mubr.bf16.gmra.mxu0 %v14597_v35  ;;  %v444_v27 = vld [vmem:[#allocation2 + $0x7a] sm:$0xff]  ;;  %v445_v54 = vld [vmem:[#allocation2 + $0x82] sm:$0xff]  ;;  %v14664_v19 = vpack.c.bf16 %v357_v62, %v356_v0  ;;  %v446_v13 = vld [vmem:[#allocation2 + $0x92] sm:$0xff] }
  0xa7   : > { %1431 = vmatprep.mubr.bf16.mxu0 %v14605_v38  ;;  %v407_v8 = vld [vmem:[#allocation2 + $0xf9] sm:$0xff]  ;;  %v14666_v23 = vpack.c.bf16 %v445_v54, %v444_v27  ;;  %v13793_v25 = vld [vmem:[#allocation6 + $0x198] sm:$0xff]   ;;  %v409_v62 = vld [vmem:[#allocation2 + $0x111] sm:$0xff] }
  0xa8   : > { %11377 = vmatpush3.bf16.msra.mxu1 %v13784_v22  ;;  %v13790_v22 = vld [vmem:[#allocation6 + $0x1a0] sm:$0xff]   ;;  %v14671_v53 = vld [vmem:[%s14420_s6 + $0xf0] sm:$0xff]  ;;  %v14674_v34 = vld [vmem:[%s14420_s6 + $0xf8] sm:$0xff] }
  0xa9   : > { %11378 = vmatprep.subr.bf16.mxu1 %v13786_v26  ;;  %v14668_v26 = vpack.c.bf16 %v407_v8, %v406_v2  ;;  %18300 = vst [vmem:[#allocation43_spill] sm:$0xff] %v14671_v53  ;;  %v447_v14 = vld [vmem:[#allocation2 + $0x9a] sm:$0xff]  ;;  %18301 = vst [vmem:[#allocation44_spill] sm:$0xff] %v14674_v34  ;;  %v408_v54 = vld [vmem:[#allocation2 + $0x109] sm:$0xff] }
  0xaa   : > { %1553 = vmatmul.mubr.bf16.gmra.mxu1 %v14599_v36  ;;  %335 = vst.msk [vmem:[#allocation2 + $0x181] sm:$0xff] %vm304_vm0, %v14671_v53  ;;  %336 = vst.msk [vmem:[#allocation2 + $0x189] sm:$0xff] %vm304_vm0, %v14674_v34  ;;  %v13796_v27 = vld [vmem:[#allocation6 + $0x1c8] sm:$0xff]   ;;  %v14686_v2 = vpack.c.bf16 %v447_v14, %v446_v13  ;;  %v14688_v8 = vpack.c.bf16 %v409_v62, %v408_v54  ;;  %v448_v34 = vld [vmem:[#allocation2 + $0xaa] sm:$0xff] }
  0xab   : > { %1560 = vmatprep.mubr.bf16.mxu1 %v14532_v41  ;;  %v13797_v0 = vld [vmem:[#allocation6 + $0x188] sm:$0xff]   ;;  %v13785_v62 = vld [vmem:[#allocation6 + $0x230] sm:$0xff]   ;;  %v725_v32 = vld [vmem:[#allocation2 + $0x4a] sm:$0xff] }
  0xac   : > { %11379 = vmatpush3.bf16.msra.mxu1 %v13787_v44  ;;  %v13794_v44 = vld [vmem:[#allocation6 + $0x1d0] sm:$0xff]   ;;  %v726_v58 = vld [vmem:[#allocation2 + $0x52] sm:$0xff]  ;;  %v648_v49 = vld [vmem:[#allocation2 + $0x128] sm:$0xff] }
  0xad   : > { %11380 = vmatprep.subr.bf16.mxu1 %v13789_v24  ;;  %v13795_v24 = vld [vmem:[#allocation6 + $0x190] sm:$0xff]   ;;  %v649_v40 = vld [vmem:[#allocation2 + $0x138] sm:$0xff] }
  0xae   : > { %1432 = vmatmul.mubr.bf16.gmra.mxu0 %v14621_v3  ;;  %v730_v47 = vld [vmem:[#allocation2 + $0x82] sm:$0xff] }
  0xaf   : > { %1439 = vmatprep.mubr.bf16.mxu0 %v14625_v56  ;;  %v647_v46 = vld [vmem:[#allocation2 + $0x120] sm:$0xff] }
  0xb0   : > { %11381 = vmatpush3.bf16.msra.mxu1 %v13790_v22  ;;  %v14684_v22 = vpack.c.bf16 %v359_v16, %v358_v18  ;;  %v361_v16 = vld [vmem:[#allocation2 + $0x110] sm:$0xff] }
  0xb1   : > { %11382 = vmatprep.subr.bf16.mxu1 %v13791_v11  ;;  %v13798_v11 = vld [vmem:[#allocation6 + $0x1c0] sm:$0xff]  }
  0xb2   : > { %1561 = vmatmul.mubr.bf16.gmra.mxu1 %v14623_v4  ;;  %v449_v18 = vld [vmem:[#allocation2 + $0xb2] sm:$0xff] }
  0xb3   : > { %1568 = vmatprep.mubr.bf16.mxu1 %v14563_v6  ;;  %v14696_v13 = vpack.c.bf16 %v449_v18, %v448_v34  ;;  %v13788_v34 = vld [vmem:[#allocation6 + $0x228] sm:$0xff]   ;;  %v456_v18 = vld [vmem:[#allocation2 + $0x10a] sm:$0xff] }
  0xb4   : > { %11383 = vmatpush3.bf16.msra.mxu1 %v13793_v25  ;;  %v13799_v25 = vld [vmem:[#allocation6 + $0x180] sm:$0xff]  }
  0xb5   : > { %11384 = vmatprep.subr.bf16.mxu1 %v13794_v44  ;;  %v360_v44 = vld [vmem:[#allocation2 + $0x108] sm:$0xff] }
  0xb6   : > { %1440 = vmatmul.mubr.bf16.gmra.mxu0 %v14641_v45  ;;  %v14694_v14 = vpack.c.bf16 %v361_v16, %v360_v44  ;;  %v454_v44 = vld [vmem:[#allocation2 + $0xf2] sm:$0xff]  ;;  %v455_v16 = vld [vmem:[#allocation2 + $0xfa] sm:$0xff] }
  0xb7   : > { %1447 = vmatprep.mubr.bf16.mxu0 %v14647_v63 }
  0xb8   : > { %11385 = vmatpush3.bf16.msra.mxu1 %v13795_v24  ;;  %v450_v24 = vld [vmem:[#allocation2 + $0xc2] sm:$0xff] }
  0xb9   : > { %11386 = vmatprep.subr.bf16.mxu1 %v13796_v27  ;;  %v451_v27 = vld [vmem:[#allocation2 + $0xca] sm:$0xff] }
  0xba   : > { %1569 = vmatmul.mubr.bf16.gmra.mxu1 %v14643_v48  ;;  %v14702_v54 = vpack.c.bf16 %v451_v27, %v450_v24  ;;  %v457_v24 = vld [vmem:[#allocation2 + $0x112] sm:$0xff] }
  0xbb   : > { %1576 = vmatprep.mubr.bf16.mxu1 %v14597_v35  ;;  %v13802_v27 = vld [vmem:[#allocation6 + $0x208] sm:$0xff]  }
  0xbc   : > { %11387 = vmatpush3.bf16.msra.mxu1 %v13797_v0  ;;  %v452_v0 = vld [vmem:[#allocation2 + $0xda] sm:$0xff] }
  0xbd   : > { %11388 = vmatprep.subr.bf16.mxu1 %v13798_v11  ;;  %v453_v11 = vld [vmem:[#allocation2 + $0xe2] sm:$0xff] }
  0xbe   : > { %1448 = vmatmul.mubr.bf16.gmra.mxu0 %v14654_v29 }
  0xbf   : > { %1455 = vmatprep.mubr.bf16.mxu0 %v14658_v1 }
  0xc0   : > { %11389 = vmatpush3.bf16.msra.mxu1 %v13799_v25  ;;  %v14709_v25 = vpack.c.bf16 %v453_v11, %v452_v0  ;;  %v458_v0 = vld [vmem:[#allocation2 + $0x122] sm:$0xff]  ;;  %v459_v11 = vld [vmem:[#allocation2 + $0x12a] sm:$0xff] }
  0xc2   : > { %1577 = vmatmul.mubr.bf16.gmra.mxu1 %v14656_v43 }
  0xc3   : > { %1584 = vmatprep.mubr.bf16.mxu1 %v14621_v3 }
  0xc6   : > { %1456 = vmatmul.mubr.bf16.gmra.mxu0 %v14664_v19 }
  0xc7   : > { %1463 = vmatprep.mubr.bf16.mxu0 %v14668_v26 }
  0xca   : > { %1585 = vmatmul.mubr.bf16.gmra.mxu1 %v14666_v23 }
  0xcb   : > { %1592 = vmatprep.mubr.bf16.mxu1 %v14641_v45 }
  0xce   : > { %1464 = vmatmul.mubr.bf16.gmra.mxu0 %v14684_v22 }
  0xcf   : > { %1471 = vmatprep.mubr.bf16.mxu0 %v14688_v8 }
  0xd2   : > { %1593 = vmatmul.mubr.bf16.gmra.mxu1 %v14686_v2 }
  0xd3   : > { %1600 = vmatprep.mubr.bf16.mxu1 %v14654_v29 }
  0xd6   : > { %1472 = vmatmul.mubr.bf16.gmra.mxu0 %v14694_v14 }
  0xd7   : > { %1705 = vmatprep.mubr.bf16.mxu0 %v14599_v36  ;;  %v13792_v36 = vld [vmem:[#allocation6 + $0x220] sm:$0xff]  }
  0xda   : > { %1601 = vmatmul.mubr.bf16.gmra.mxu1 %v14696_v13 }
  0xdb   : > { %1608 = vmatprep.mubr.bf16.mxu1 %v14664_v19 }
  0xde   : > { %1706 = vmatmul.mubr.bf16.vlgmr.msra.gmra.mxu0 %v14462_v39  ;;  %v13800_v39 = vld [vmem:[#allocation6 + $0x218] sm:$0xff]  }
  0xdf   : > { %13399 = vmatpush3.bf16.msra.mxu0 %v14645_v55  ;;  %1713 = vmatprep.mubr.bf16.mxu0 %v14623_v4  ;;  %v14715_v4 = vpack.c.bf16 %v455_v16, %v454_v44  ;;  %v13801_v55 = vld [vmem:[#allocation6 + $0x210] sm:$0xff]  }
  0xe0   : > { %13400 = vmatprep.subr.bf16.mxu0 %v13785_v62  ;;  %v463_v16 = vld [vmem:[#allocation2 + $0x15a] sm:$0xff] }
  0xe2   : > { %1609 = vmatmul.mubr.bf16.gmra.mxu1 %v14702_v54 }
  0xe3   : > { %1616 = vmatprep.mubr.bf16.mxu1 %v14684_v22  ;;  %13401 = vmatpush3.bf16.msra.mxu0 %v13785_v62  ;;  %v13803_v62 = vld [vmem:[#allocation6 + $0x200] sm:$0xff]  }
  0xe4   : > { %13402 = vmatprep.subr.bf16.mxu0 %v13788_v34 }
  0xe6   : > { %1714 = vmatmul.mubr.bf16.gmra.mxu0 %v14512_v7 }
  0xe7   : > { %1721 = vmatprep.mubr.bf16.mxu0 %v14643_v48  ;;  %13403 = vmatpush3.bf16.msra.mxu0 %v13788_v34  ;;  %v14721_v48 = vpack.c.bf16 %v457_v24, %v456_v18  ;;  %v461_v34 = vld [vmem:[#allocation2 + $0x142] sm:$0xff]  ;;  %v464_v18 = vld [vmem:[#allocation2 + $0x16a] sm:$0xff]  ;;  %v465_v24 = vld [vmem:[#allocation2 + $0x172] sm:$0xff] }
  0xe8   : > { %13404 = vmatprep.subr.bf16.mxu0 %v13792_v36 }
  0xea   : > { %1617 = vmatmul.mubr.bf16.gmra.mxu1 %v14709_v25 }
  0xeb   : > { %1624 = vmatprep.mubr.bf16.mxu1 %v14694_v14  ;;  %13405 = vmatpush3.bf16.msra.mxu0 %v13792_v36  ;;  %v915_v36 = vlaneseq }
  0xec   : > { %13406 = vmatprep.subr.bf16.mxu0 %v13800_v39 }
  0xee   : > { %1722 = vmatmul.mubr.bf16.gmra.mxu0 %v14519_v28 }
  0xef   : > { %1729 = vmatprep.mubr.bf16.mxu0 %v14656_v43  ;;  %13407 = vmatpush3.bf16.msra.mxu0 %v13800_v39  ;;  %v460_v43 = vld [vmem:[#allocation2 + $0x13a] sm:$0xff] }
  0xf0   : > { %13408 = vmatprep.subr.bf16.mxu0 %v13801_v55  ;;  %v14733_v44 = vpack.c.bf16 %v461_v34, %v460_v43  ;;  %v512_v39 = vld [vmem:[#allocation2 + $0x180] sm:$0xff] }
  0xf2   : > { %1625 = vmatmul.mubr.bf16.gmra.mxu1 %v14715_v4 }
  0xf3   : > { %1632 = vmatprep.mubr.bf16.mxu1 %v14460_v33  ;;  %13409 = vmatpush3.bf16.msra.mxu0 %v13801_v55  ;;  %v14727_v33 = vpack.c.bf16 %v459_v11, %v458_v0  ;;  %v513_v55 = vld [vmem:[#allocation2 + $0x188] sm:$0xff] }
  0xf4   : > { %13410 = vmatprep.subr.bf16.mxu0 %v13802_v27 }
  0xf6   : > { %1730 = vmatmul.mubr.bf16.gmra.mxu0 %v14561_v5 }
  0xf7   : > { %1737 = vmatprep.mubr.bf16.mxu0 %v14666_v23  ;;  %13411 = vmatpush3.bf16.msra.mxu0 %v13802_v27  ;;  %v462_v23 = vld [vmem:[#allocation2 + $0x152] sm:$0xff]  ;;  %v14749_v27 = vpack.c.bf16 %v465_v24, %v464_v18 }
  0xf8   : > { %13412 = vmatprep.subr.bf16.mxu0 %v13803_v62  ;;  %v559_v18 = vld [vmem:[#allocation2 + $0x171] sm:$0xff] }
  0xfa   : > { %1633 = vmatmul.mubr.bf16.gmra.mxu1 %v14721_v48 }
  0xfb   : > { %1640 = vmatprep.mubr.bf16.mxu1 %v14488_v57  ;;  %13413 = vmatpush3.bf16.msra.mxu0 %v13803_v62  ;;  %v14735_v57 = vshrl.u32 %v915_v36, 7 }
  0xfd   : > { %18302 = vst [vmem:[#allocation45_spill] sm:$0xff] %v14735_v57 }
  0xfe   : > { %1738 = vmatmul.mubr.bf16.gmra.mxu0 %v14576_v12 }
  0xff   : > { %1745 = vmatprep.mubr.bf16.mxu0 %v14686_v2  ;;  %v14743_v2 = vpack.c.bf16 %v513_v55, %v512_v39 }
 0x102   : > { %1641 = vmatmul.mubr.bf16.gmra.mxu1 %v14727_v33 }
 0x103   : > { %1648 = vmatprep.mubr.bf16.mxu1 %v14517_v17  ;;  %v14741_v17 = vpack.c.bf16 %v463_v16, %v462_v23 }
 0x106   : > { %1746 = vmatmul.mubr.bf16.gmra.mxu0 %v14605_v38 }
 0x107   : > { %1753 = vmatprep.mubr.bf16.mxu0 %v14696_v13  ;;  %v552_v13 = vld [vmem:[#allocation2 + $0x121] sm:$0xff] }
 0x10a   : > { %1649 = vmatmul.mubr.bf16.gmra.mxu1 %v14733_v44 }
 0x10b   : > { %1656 = vmatprep.mubr.bf16.mxu1 %v14534_v42 }
 0x10e   : > { %1754 = vmatmul.mubr.bf16.gmra.mxu0 %v14625_v56 }
 0x10f   : > { %1761 = vmatprep.mubr.bf16.mxu0 %v14702_v54  ;;  %v553_v54 = vld [vmem:[#allocation2 + $0x129] sm:$0xff] }
 0x112   : > { %1657 = vmatmul.mubr.bf16.gmra.mxu1 %v14741_v17 }
 0x113   : > { %1664 = vmatprep.mubr.bf16.mxu1 %v14743_v2 }
 0x116   : > { %1762 = vmatmul.mubr.bf16.gmra.mxu0 %v14647_v63 }
 0x117   : > { %1769 = vmatprep.mubr.bf16.mxu0 %v14709_v25 }
 0x11a   : > { %1665 = vmatmul.mubr.bf16.gmra.mxu1 %v14749_v27 }
 0x11b   : > { %1866 = vmatprep.mubr.bf16.mxu1 %v14512_v7  ;;  %v14768_v7 = vpack.c.bf16 %v553_v54, %v552_v13  ;;  %v608_v13 = vld [vmem:[#allocation2 + $0x182] sm:$0xff]  ;;  %v609_v54 = vld [vmem:[#allocation2 + $0x18a] sm:$0xff] }
 0x11e   : > { %1770 = vmatmul.mubr.bf16.gmra.mxu0 %v14658_v1 }
 0x11f   : > { %1777 = vmatprep.mubr.bf16.mxu0 %v14715_v4 }
 0x122   : > { %1867 = vmatmul.mubr.bf16.vlgmr.msra.gmra.mxu1 %v14515_v15  ;;  %v554_v15 = vld [vmem:[#allocation2 + $0x139] sm:$0xff] }
 0x123   : > { %1874 = vmatprep.mubr.bf16.mxu1 %v14519_v28  ;;  %v555_v28 = vld [vmem:[#allocation2 + $0x141] sm:$0xff] }
 0x126   : > { %1778 = vmatmul.mubr.bf16.gmra.mxu0 %v14668_v26 }
 0x127   : > { %1785 = vmatprep.mubr.bf16.mxu0 %v14721_v48 }
 0x12a   : > { %1875 = vmatmul.mubr.bf16.gmra.mxu1 %v14532_v41  ;;  %v14774_v41 = vpack.c.bf16 %v555_v28, %v554_v15 }
 0x12b   : > { %1882 = vmatprep.mubr.bf16.mxu1 %v14561_v5  ;;  %v556_v5 = vld [vmem:[#allocation2 + $0x151] sm:$0xff] }
 0x12e   : > { %1786 = vmatmul.mubr.bf16.gmra.mxu0 %v14688_v8 }
 0x12f   : > { %1793 = vmatprep.mubr.bf16.mxu0 %v14727_v33 }
 0x132   : > { %1883 = vmatmul.mubr.bf16.gmra.mxu1 %v14563_v6  ;;  %v557_v6 = vld [vmem:[#allocation2 + $0x159] sm:$0xff] }
 0x133   : > { %1890 = vmatprep.mubr.bf16.mxu1 %v14576_v12  ;;  %v14784_v36 = vpack.c.bf16 %v557_v6, %v556_v5 }
 0x136   : > { %1794 = vmatmul.mubr.bf16.gmra.mxu0 %v14768_v7 }
 0x137   : > { %1801 = vmatprep.mubr.bf16.mxu0 %v14733_v44 }
 0x13a   : > { %1891 = vmatmul.mubr.bf16.gmra.mxu1 %v14597_v35  ;;  %v11054_v62 = vpop.f32.mrf.mxu0 }
 0x13b   : > { %1898 = vmatprep.mubr.bf16.mxu1 %v14605_v38 }
 0x13c   : > { %v11055_v12 = vpop.f32.mrf.mxu0 }
 0x13d   : > { %v14780_v11 = vadd.f32 %v11055_v12, %v11054_v62 }
 0x13e   : > { %1802 = vmatmul.mubr.bf16.gmra.mxu0 %v14774_v41  ;;  %v11057_v38 = vpop.f32.mrf.mxu0 }
 0x13f   : > { %1809 = vmatprep.mubr.bf16.mxu0 %v14741_v17 }
 0x140   : > { %v11058_v23 = vpop.f32.mrf.mxu0 }
 0x141   : > { %v14786_v39 = vadd.f32 %v11058_v23, %v11057_v38 }
 0x142   : > { %v11126_v0 = vpop.f32.mrf.mxu1  ;;  %1899 = vmatmul.mubr.bf16.gmra.mxu1 %v14621_v3  ;;  %v558_v3 = vld [vmem:[#allocation2 + $0x169] sm:$0xff] }
 0x143   : > { %1906 = vmatprep.mubr.bf16.mxu1 %v14625_v56  ;;  %v14798_v12 = vpack.c.bf16 %v559_v18, %v558_v3 }
 0x144   : > { %v11127_v35 = vpop.f32.mrf.mxu1 }
 0x145   : > { %v14782_v43 = vadd.f32 %v11127_v35, %v11126_v0  ;;  %v14800_v35 = vpack.c.bf16 %v609_v54, %v608_v13 }
 0x146   : > { %v11129_v34 = vpop.f32.mrf.mxu1  ;;  %v11060_v24 = vpop.f32.mrf.mxu0  ;;  %1810 = vmatmul.mubr.bf16.gmra.mxu0 %v14784_v36 }
 0x147   : > { %1817 = vmatprep.mubr.bf16.mxu0 %v14749_v27 }
 0x148   : > { %v11130_v16 = vpop.f32.mrf.mxu1  ;;  %v11061_v15 = vpop.f32.mrf.mxu0 }
 0x149   : > { %v14788_v55 = vadd.f32 %v11130_v16, %v11129_v34  ;;  %v14794_v5 = vadd.f32 %v11061_v15, %v11060_v24  ;;  %v560_v16 = vld [vmem:[#allocation2 + $0x181] sm:$0xff]  ;;  %v723_v24 = vld [vmem:[#allocation2 + $0x32] sm:$0xff] }
 0x14a   : > { %v11132_v56 = vpop.f32.mrf.mxu1  ;;  %1907 = vmatmul.mubr.bf16.gmra.mxu1 %v14641_v45  ;;  %v11063_v62 = vpop.f32.mrf.mxu0 }
 0x14b   : > { %1914 = vmatprep.mubr.bf16.mxu1 %v14647_v63  ;;  %v561_v63 = vld [vmem:[#allocation2 + $0x189] sm:$0xff] }
 0x14c   : > { %v11133_v28 = vpop.f32.mrf.mxu1  ;;  %v11064_v38 = vpop.f32.mrf.mxu0 }
 0x14d   : > { %v14796_v6 = vadd.f32 %v11133_v28, %v11132_v56  ;;  %v14802_v34 = vadd.f32 %v11064_v38, %v11063_v62  ;;  %v724_v56 = vld [vmem:[#allocation2 + $0x3a] sm:$0xff]  ;;  %v14814_v62 = vpack.c.bf16 %v561_v63, %v560_v16  ;;  %v337_v16 = vld [vmem:[#allocation8] sm:$0x1f] }
 0x14e   : > { %v11135_v0 = vpop.f32.mrf.mxu1  ;;  %v11066_v42 = vpop.f32.mrf.mxu0  ;;  %1818 = vmatmul.mubr.bf16.gmra.mxu0 %v14798_v12 }
 0x14f   : > { %1825 = vmatprep.mubr.bf16.mxu0 %v14800_v35 }
 0x150   : > { %v11136_v45 = vpop.f32.mrf.mxu1  ;;  %v11067_v3 = vpop.f32.mrf.mxu0 }
 0x151   : > { %v14804_v23 = vadd.f32 %v11136_v45, %v11135_v0  ;;  %v14810_v13 = vadd.f32 %v11067_v3, %v11066_v42  ;;  %v755_v0 = vpack.c.bf16 %v724_v56, %v723_v24  ;;  %v728_v42 = vld [vmem:[#allocation2 + $0x6a] sm:$0xff] }
 0x152   : > { %v11138_v53 = vpop.f32.mrf.mxu1  ;;  %1915 = vmatmul.mubr.bf16.gmra.mxu1 %v14654_v29  ;;  %v11069_v15 = vpop.f32.mrf.mxu0 }
 0x153   : > { %1922 = vmatprep.mubr.bf16.mxu1 %v14658_v1 }
 0x154   : > { %v11139_v18 = vpop.f32.mrf.mxu1  ;;  %v11070_v38 = vpop.f32.mrf.mxu0 }
 0x155   : > { %v14812_v54 = vadd.f32 %v11139_v18, %v11138_v53  ;;  %v14816_v29 = vadd.f32 %v11070_v38, %v11069_v15  ;;  %v727_v53 = vld [vmem:[#allocation2 + $0x62] sm:$0xff] }
 0x156   : > { %v11141_v28 = vpop.f32.mrf.mxu1  ;;  %v11072_v1 = vpop.f32.mrf.mxu0  ;;  %1826 = vmatmul.mubr.bf16.gmra.mxu0 %v14814_v62  ;;  %v757_v38 = vpack.c.bf16 %v728_v42, %v727_v53 }
 0x157   : > { %13414 = vmatprep.mubr.bf16.mxu0 %v755_v0  ;;  %v729_v0 = vld [vmem:[#allocation2 + $0x7a] sm:$0xff] }
 0x158   : > { %v11142_v45 = vpop.f32.mrf.mxu1  ;;  %v11073_v63 = vpop.f32.mrf.mxu0 }
 0x159   : > { %v14818_v59 = vadd.f32 %v11142_v45, %v11141_v28  ;;  %v14823_v56 = vadd.f32 %v11073_v63, %v11072_v1  ;;  %v756_v28 = vpack.c.bf16 %v726_v58, %v725_v32  ;;  %v732_v32 = vld [vmem:[#allocation2 + $0x9a] sm:$0xff] }
 0x15a   : > { %v11144_v10 = vpop.f32.mrf.mxu1  ;;  %1923 = vmatmul.mubr.bf16.gmra.mxu1 %v14664_v19  ;;  %v11075_v18 = vpop.f32.mrf.mxu0  ;;  %v18303_v19 = vsub.s32 0, %v14735_v57 }
 0x15b   : > { %1930 = vmatprep.mubr.bf16.mxu1 %v14668_v26 }
 0x15c   : > { %v11145_v24 = vpop.f32.mrf.mxu1  ;;  %v11076_v45 = vpop.f32.mrf.mxu0  ;;  %v14829_v9 = vrot.slane %v337_v16, %v18303_v19 }
 0x15d   : > { %v14825_v3 = vadd.f32 %v11145_v24, %v11144_v10  ;;  %v14831_v30 = vadd.f32 %v11076_v45, %v11075_v18  ;;  %v731_v10 = vld [vmem:[#allocation2 + $0x92] sm:$0xff] }
 0x15e   : > { %v11147_v15 = vpop.f32.mrf.mxu1  ;;  %v11078_v1 = vpop.f32.mrf.mxu0  ;;  %13415 = vmatmul.mubr.bf16.vlgmr.msra.gmra.mxu0 %v756_v28  ;;  %v1386_v42 = vadd.f32 %v14780_v11, %v14829_v9  ;;  %v733_v11 = vld [vmem:[#allocation2 + $0xaa] sm:$0xff] }
 0x15f   : > { %13418 = vmatprep.mubr.bf16.mxu0 %v757_v38 }
 0x160   : > { %v11148_v31 = vpop.f32.mrf.mxu1  ;;  %v11079_v58 = vpop.f32.mrf.mxu0 }
 0x161   : > { %v14833_v26 = vadd.f32 %v11148_v31, %v11147_v15  ;;  %v14839_v16 = vadd.f32 %v11079_v58, %v11078_v1  ;;  %v758_v15 = vpack.c.bf16 %v730_v47, %v729_v0  ;;  %v734_v1 = vld [vmem:[#allocation2 + $0xb2] sm:$0xff]  ;;  %v735_v47 = vld [vmem:[#allocation2 + $0xc2] sm:$0xff]  ;;  %v736_v0 = vld [vmem:[#allocation2 + $0xca] sm:$0xff] }
 0x162   : > { %v11166_v63 = vpop.f32.mrf.mxu1  ;;  %1931 = vmatmul.mubr.bf16.gmra.mxu1 %v14684_v22  ;;  %v11081_v24 = vpop.f32.mrf.mxu0  ;;  %v759_v22 = vpack.c.bf16 %v732_v32, %v731_v10 }
 0x163   : > { %1938 = vmatprep.mubr.bf16.mxu1 %v14688_v8  ;;  %v1389_v8 = vadd.f32 %v14786_v39, %v14829_v9 }
 0x164   : > { %v11167_v53 = vpop.f32.mrf.mxu1  ;;  %v11082_v28 = vpop.f32.mrf.mxu0 }
 0x165   : > { %v11168_v31 = vadd.f32 %v11167_v53, %v11166_v63  ;;  %v14845_v38 = vadd.f32 %v11082_v28, %v11081_v24  ;;  %v1394_v53 = vadd.f32 %v14794_v5, %v14829_v9  ;;  %v669_v28 = vpack.c.bf16 %v648_v49, %v647_v46  ;;  %v650_v5 = vld [vmem:[#allocation2 + $0x140] sm:$0xff] }
 0x166   : > { %v11169_v18 = vpop.f32.mrf.mxu1  ;;  %v11084_v58 = vpop.f32.mrf.mxu0  ;;  %13419 = vmatmul.mubr.bf16.gmra.mxu0 %v758_v15 }
 0x167   : > { %v14841_v45 = vadd.f32 %v11168_v31, %v1386_v42  ;;  %13422 = vmatprep.mubr.bf16.mxu0 %v759_v22 }
 0x168   : > { %v11170_v19 = vpop.f32.mrf.mxu1  ;;  %v11085_v39 = vpop.f32.mrf.mxu0 }
 0x169   : > { %v11171_v50 = vadd.f32 %v11170_v19, %v11169_v18  ;;  %v14853_v42 = vadd.f32 %v11085_v39, %v11084_v58  ;;  %v761_v19 = vpack.c.bf16 %v736_v0, %v735_v47 }
 0x16a   : > { %v11172_v63 = vpop.f32.mrf.mxu1  ;;  %1939 = vmatmul.mubr.bf16.gmra.mxu1 %v14694_v14  ;;  %v11087_v24 = vpop.f32.mrf.mxu0  ;;  %v760_v14 = vpack.c.bf16 %v734_v1, %v733_v11  ;;  %v1402_v11 = vadd.f32 %v14810_v13, %v14829_v9 }
 0x16b   : > { %v14848_v10 = vadd.f32 %v11171_v50, %v1389_v8  ;;  %1946 = vmatprep.mubr.bf16.mxu1 %v14768_v7  ;;  %v1397_v7 = vadd.f32 %v14802_v34, %v14829_v9 }
 0x16c   : > { %v11173_v32 = vpop.f32.mrf.mxu1  ;;  %v11088_v50 = vpop.f32.mrf.mxu0 }
 0x16d   : > { %v11174_v31 = vadd.f32 %v11173_v32, %v11172_v63  ;;  %v14859_v22 = vadd.f32 %v11088_v50, %v11087_v24  ;;  %v670_v32 = vpack.c.bf16 %v650_v5, %v649_v40 }
 0x16e   : > { %v11175_v18 = vpop.f32.mrf.mxu1  ;;  %v11090_v58 = vpop.f32.mrf.mxu0  ;;  %13423 = vmatmul.mubr.bf16.gmra.mxu0 %v760_v14  ;;  %v652_v14 = vld [vmem:[#allocation2 + $0x158] sm:$0xff] }
 0x16f   : > { %v14855_v15 = vadd.f32 %v11174_v31, %v1394_v53  ;;  %13426 = vmatprep.mubr.bf16.mxu0 %v761_v19 }
 0x170   : > { %v11176_v8 = vpop.f32.mrf.mxu1  ;;  %v11091_v46 = vpop.f32.mrf.mxu0 }
 0x171   : > { %v11177_v61 = vadd.f32 %v11176_v8, %v11175_v18  ;;  %v14866_v34 = vadd.f32 %v11091_v46, %v11090_v58 }
 0x172   : > { %v11178_v39 = vpop.f32.mrf.mxu1  ;;  %1947 = vmatmul.mubr.bf16.gmra.mxu1 %v669_v28  ;;  %v11093_v47 = vpop.f32.mrf.mxu0  ;;  %v651_v28 = vld [vmem:[#allocation2 + $0x150] sm:$0xff] }
 0x173   : > { %v14861_v63 = vadd.f32 %v11177_v61, %v1397_v7  ;;  %1954 = vmatprep.mubr.bf16.mxu1 %v14774_v41  ;;  %v1405_v61 = vadd.f32 %v14816_v29, %v14829_v9  ;;  %v1410_v29 = vadd.f32 %v14823_v56, %v14829_v9  ;;  %v671_v46 = vpack.c.bf16 %v652_v14, %v651_v28 }
 0x174   : > { %v11179_v49 = vpop.f32.mrf.mxu1  ;;  %v11094_v31 = vpop.f32.mrf.mxu0 }
 0x175   : > { %v11180_v1 = vadd.f32 %v11179_v49, %v11178_v39  ;;  %v14872_v41 = vadd.f32 %v11094_v31, %v11093_v47  ;;  %v653_v47 = vld [vmem:[#allocation2 + $0x168] sm:$0xff] }
 0x176   : > { %v11181_v0 = vpop.f32.mrf.mxu1  ;;  %v11096_v19 = vpop.f32.mrf.mxu0  ;;  %13427 = vmatmul.mubr.bf16.gmra.mxu0 %v14709_v25 }
 0x177   : > { %v14868_v53 = vadd.f32 %v11180_v1, %v1402_v11  ;;  %13430 = vmatprep.mubr.bf16.mxu0 %v14715_v4 }
 0x178   : > { %v11182_v24 = vpop.f32.mrf.mxu1  ;;  %v11097_v40 = vpop.f32.mrf.mxu0 }
 0x179   : > { %v11183_v18 = vadd.f32 %v11182_v24, %v11181_v0  ;;  %v14881_v7 = vadd.f32 %v11097_v40, %v11096_v19  ;;  %v654_v0 = vld [vmem:[#allocation2 + $0x170] sm:$0xff] }
 0x17a   : > { %v11184_v13 = vpop.f32.mrf.mxu1  ;;  %1955 = vmatmul.mubr.bf16.gmra.mxu1 %v670_v32  ;;  %v11099_v58 = vpop.f32.mrf.mxu0 }
 0x17b   : > { %v14875_v50 = vadd.f32 %v11183_v18, %v1405_v61  ;;  %1962 = vmatprep.mubr.bf16.mxu1 %v14784_v36  ;;  %v1413_v36 = vadd.f32 %v14831_v30, %v14829_v9  ;;  %v1418_v30 = vadd.f32 %v14839_v16, %v14829_v9  ;;  %v705_v16 = vld [vmem:[#allocation2 + $0x199] sm:$0xff] }
 0x17c   : > { %v11185_v8 = vpop.f32.mrf.mxu1  ;;  %v11100_v25 = vpop.f32.mrf.mxu0 }
 0x17d   : > { %v11186_v5 = vadd.f32 %v11185_v8, %v11184_v13  ;;  %v14887_v1 = vadd.f32 %v11100_v25, %v11099_v58  ;;  %v672_v13 = vpack.c.bf16 %v654_v0, %v653_v47  ;;  %v706_v58 = vld [vmem:[#allocation2 + $0x1a1] sm:$0xff] }
 0x17e   : > { %v11187_v39 = vpop.f32.mrf.mxu1  ;;  %v11102_v32 = vpop.f32.mrf.mxu0  ;;  %13431 = vmatmul.mubr.bf16.gmra.mxu0 %v14721_v48  ;;  %v722_v0 = vpack.c.bf16 %v706_v58, %v705_v16 }
 0x17f   : > { %v14883_v49 = vadd.f32 %v11186_v5, %v1410_v29  ;;  %13434 = vmatprep.mubr.bf16.mxu0 %v14727_v33  ;;  %v1421_v33 = vadd.f32 %v14845_v38, %v14829_v9 }
 0x180   : > { %v11188_v11 = vpop.f32.mrf.mxu1  ;;  %v11103_v24 = vpop.f32.mrf.mxu0 }
 0x181   : > { %v11189_v4 = vadd.f32 %v11188_v11, %v11187_v39  ;;  %v14896_v18 = vadd.f32 %v11103_v24, %v11102_v32  ;;  %v1426_v11 = vadd.f32 %v14853_v42, %v14829_v9  ;;  %v753_v24 = vld [vmem:[#allocation2 + $0x19a] sm:$0xff] }
 0x182   : > { %v11190_v56 = vpop.f32.mrf.mxu1  ;;  %1963 = vmatmul.mubr.bf16.gmra.mxu1 %v671_v46  ;;  %v14898_v14 = vpop.f32.mrf.mxu0 }
 0x183   : > { %v14890_v31 = vadd.f32 %v11189_v4, %v1413_v36  ;;  %1970 = vmatprep.mubr.bf16.mxu1 %v14798_v12 }
 0x184   : > { %v11191_v61 = vpop.f32.mrf.mxu1  ;;  %v14902_v48 = vpop.f32.mrf.mxu0 }
 0x185   : > { %v11192_v28 = vadd.f32 %v11191_v61, %v11190_v56  ;;  %v754_v61 = vld [vmem:[#allocation2 + $0x1a2] sm:$0xff] }
 0x186   : > { %v11193_v19 = vpop.f32.mrf.mxu1  ;;  %v11108_v29 = vpop.f32.mrf.mxu0  ;;  %13435 = vmatmul.mubr.bf16.gmra.mxu0 %v14733_v44 }
 0x187   : > { %v14900_v40 = vadd.f32 %v11192_v28, %v1418_v30  ;;  %13438 = vmatprep.mubr.bf16.mxu0 %v14741_v17  ;;  %v1429_v17 = vadd.f32 %v14859_v22, %v14829_v9 }
 0x188   : > { %v11194_v8 = vpop.f32.mrf.mxu1  ;;  %v11109_v46 = vpop.f32.mrf.mxu0 }
 0x189   : > { %v11195_v12 = vadd.f32 %v11194_v8, %v11193_v19  ;;  %v14913_v38 = vadd.f32 %v11109_v46, %v11108_v29  ;;  %v1434_v8 = vadd.f32 %v14866_v34, %v14829_v9  ;;  %v1437_v46 = vadd.f32 %v14872_v41, %v14829_v9 }
 0x18a   : > { %v11196_v5 = vpop.f32.mrf.mxu1  ;;  %1971 = vmatmul.mubr.bf16.gmra.mxu1 %v672_v13  ;;  %v14915_v4 = vpop.f32.mrf.mxu0 }
 0x18b   : > { %v14907_v39 = vadd.f32 %v11195_v12, %v1421_v33  ;;  %1978 = vmatprep.mubr.bf16.mxu1 %v14814_v62 }
 0x18c   : > { %v11197_v25 = vpop.f32.mrf.mxu1  ;;  %v14919_v32 = vpop.f32.mrf.mxu0 }
 0x18d   : > { %v11198_v36 = vadd.f32 %v11197_v25, %v11196_v5  ;;  %v14092_v5 = vld [vmem:[#allocation2] sm:$0xff] }
 0x18e   : > { %v11199_v47 = vpop.f32.mrf.mxu1  ;;  %v11114_v30 = vpop.f32.mrf.mxu0  ;;  %13439 = vmatmul.mubr.bf16.gmra.mxu0 %v14749_v27  ;;  %v770_v27 = vpack.c.bf16 %v754_v61, %v753_v24 }
 0x18f   : > { %v14917_v44 = vadd.f32 %v11198_v36, %v1426_v11  ;;  %13442 = vmatprep.mubr.bf16.mxu0 %v14800_v35 }
 0x190   : > { %v11200_v56 = vpop.f32.mrf.mxu1  ;;  %v11115_v19 = vpop.f32.mrf.mxu0 }
 0x191   : > { %v11201_v62 = vadd.f32 %v11200_v56, %v11199_v47  ;;  %v14930_v22 = vadd.f32 %v11115_v19, %v11114_v30  ;;  %v1442_v56 = vadd.f32 %v14881_v7, %v14829_v9  ;;  %v1445_v19 = vadd.f32 %v14887_v1, %v14829_v9 }
 0x192   : > { %v11202_v42 = vpop.f32.mrf.mxu1  ;;  %1979 = vmatmul.mubr.bf16.gmra.mxu1 %v14743_v2  ;;  %v14932_v12 = vpop.f32.mrf.mxu0  ;;  %v14934_v2 = vpack.c.bf16 %v14092_v5, %v14092_v5 }
 0x193   : > { %v14925_v28 = vadd.f32 %v11201_v62, %v1429_v17  ;;  %1986 = vmatprep.mubr.bf16.mxu1 %v722_v0 }
 0x194   : > { %v11203_v13 = vpop.f32.mrf.mxu1  ;;  %v14938_v58 = vpop.f32.mrf.mxu0 }
 0x195   : > { %v11204_v33 = vadd.f32 %v11203_v13, %v11202_v42 }
 0x196   : > { %v11205_v29 = vpop.f32.mrf.mxu1  ;;  %v11120_v34 = vpop.f32.mrf.mxu0  ;;  %13443 = vmatmul.mubr.bf16.gmra.mxu0 %v770_v27  ;;  %v1450_v27 = vadd.f32 %v14896_v18, %v14829_v9 }
 0x197   : > { %v14936_v16 = vadd.f32 %v11204_v33, %v1434_v8 }
 0x198   : > { %v11206_v35 = vpop.f32.mrf.mxu1  ;;  %v11121_v47 = vpop.f32.mrf.mxu0 }
 0x199   : > { %v11207_v25 = vadd.f32 %v11206_v35, %v11205_v29  ;;  %v14947_v17 = vadd.f32 %v11121_v47, %v11120_v34  ;;  %v11107_v35 = vadd.f32 %v14902_v48, %v14898_v14  ;;  %v13804_v34 = vld [vmem:[#allocation6 + $0x2b8] sm:$0xff]  }
 0x19a   : > { %v11208_v11 = vpop.f32.mrf.mxu1  ;;  %1987 = vmatmul.mubr.bf16.gmra.mxu1 %v14934_v2  ;;  %v14949_v24 = vpop.f32.mrf.mxu0  ;;  %11510 = vmatprep.subr.bf16.mxu1 %v13804_v34 }
 0x19b   : > { %v14943_v36 = vadd.f32 %v11207_v25, %v1437_v46  ;;  %v1453_v18 = vadd.f32 %v11107_v35, %v14829_v9 }
 0x19c   : > { %v11209_v0 = vpop.f32.mrf.mxu1  ;;  %v14953_v30 = vpop.f32.mrf.mxu0 }
 0x19d   : > { %v11210_v62 = vadd.f32 %v11209_v0, %v11208_v11  ;;  %v13805_v11 = vld [vmem:[#allocation6 + $0x278] sm:$0xff]  }
 0x19e   : > { %v11211_v61 = vpop.f32.mrf.mxu1  ;;  %v11278_v33 = vpop.f32.mrf.mxu0  ;;  %11511 = vmatpush3.bf16.msra.mxu1 %v13805_v11 }
 0x19f   : > { %v14951_v41 = vadd.f32 %v11210_v62, %v1442_v56 }
 0x1a0   : > { %v11212_v42 = vpop.f32.mrf.mxu1  ;;  %v11279_v5 = vpop.f32.mrf.mxu0 }
 0x1a1   : > { %v11213_v13 = vadd.f32 %v11212_v42, %v11211_v61  ;;  %v11280_v25 = vadd.f32 %v11279_v5, %v11278_v33  ;;  %v11113_v5 = vadd.f32 %v14919_v32, %v14915_v4 }
 0x1a2   : > { %v11214_v8 = vpop.f32.mrf.mxu1  ;;  %v11281_v0 = vpop.f32.mrf.mxu0 }
 0x1a3   : > { %v14957_v29 = vadd.f32 %v11213_v13, %v1445_v19  ;;  %v14966_v56 = vadd.f32 %v11280_v25, %v14841_v45  ;;  %v1458_v45 = vadd.f32 %v14913_v38, %v14829_v9 }
 0x1a4   : > { %v11215_v7 = vpop.f32.mrf.mxu1  ;;  %v11282_v61 = vpop.f32.mrf.mxu0 }
 0x1a5   : > { %v11216_v46 = vadd.f32 %v11215_v7, %v11214_v8  ;;  %v11283_v19 = vadd.f32 %v11282_v61, %v11281_v0  ;;  %v1461_v0 = vadd.f32 %v11113_v5, %v14829_v9 }
 0x1a6   : > { %v11217_v47 = vpop.f32.mrf.mxu1  ;;  %v11284_v48 = vpop.f32.mrf.mxu0 }
 0x1a7   : > { %v14963_v1 = vadd.f32 %v11216_v46, %v1450_v27  ;;  %v14972_v8 = vadd.f32 %v11283_v19, %v14848_v10 }
 0x1a8   : > { %v11218_v62 = vpop.f32.mrf.mxu1  ;;  %v11285_v7 = vpop.f32.mrf.mxu0 }
 0x1a9   : > { %v11219_v42 = vadd.f32 %v11218_v62, %v11217_v47  ;;  %v11286_v46 = vadd.f32 %v11285_v7, %v11284_v48 }
 0x1aa   : > { %v11220_v14 = vpop.f32.mrf.mxu1  ;;  %v11287_v25 = vpop.f32.mrf.mxu0 }
 0x1ab   : > { %v14969_v13 = vadd.f32 %v11219_v42, %v1453_v18  ;;  %v14981_v11 = vadd.f32 %v11286_v46, %v14855_v15  ;;  %v11119_v15 = vadd.f32 %v14938_v58, %v14932_v12  ;;  %v13806_v46 = vld [vmem:[#allocation6 + $0x2b0] sm:$0xff]  }
 0x1ac   : > { %v11221_v33 = vpop.f32.mrf.mxu1  ;;  %v11288_v10 = vpop.f32.mrf.mxu0  ;;  %11512 = vmatprep.subr.bf16.mxu1 %v13806_v46 }
 0x1ad   : > { %v11222_v27 = vadd.f32 %v11221_v33, %v11220_v14  ;;  %v11289_v61 = vadd.f32 %v11288_v10, %v11287_v25  ;;  %v1466_v14 = vadd.f32 %v14930_v22, %v14829_v9 }
 0x1ae   : > { %v11223_v35 = vpop.f32.mrf.mxu1  ;;  %v11290_v38 = vpop.f32.mrf.mxu0 }
 0x1af   : > { %v14978_v34 = vadd.f32 %v11222_v27, %v1458_v45  ;;  %v14987_v4 = vadd.f32 %v11289_v61, %v14861_v63  ;;  %v13807_v63 = vld [vmem:[#allocation6 + $0x270] sm:$0xff]  }
 0x1b0   : > { %v11224_v47 = vpop.f32.mrf.mxu1  ;;  %v11291_v19 = vpop.f32.mrf.mxu0  ;;  %11513 = vmatpush3.bf16.msra.mxu1 %v13807_v63 }
 0x1b1   : > { %v11225_v62 = vadd.f32 %v11224_v47, %v11223_v35  ;;  %v11292_v33 = vadd.f32 %v11291_v19, %v11290_v38  ;;  %v1469_v47 = vadd.f32 %v11119_v15, %v14829_v9  ;;  %v11125_v38 = vadd.f32 %v14953_v30, %v14949_v24 }
 0x1b2   : > { %v11226_v18 = vpop.f32.mrf.mxu1  ;;  %v11293_v45 = vpop.f32.mrf.mxu0 }
 0x1b3   : > { %v14984_v42 = vadd.f32 %v11225_v62, %v1461_v0  ;;  %v14996_v27 = vadd.f32 %v11292_v33, %v14868_v53 }
 0x1b4   : > { %v11227_v32 = vpop.f32.mrf.mxu1  ;;  %v11294_v25 = vpop.f32.mrf.mxu0 }
 0x1b5   : > { %v11228_v48 = vadd.f32 %v11227_v32, %v11226_v18  ;;  %v11295_v22 = vadd.f32 %v11294_v25, %v11293_v45  ;;  %v1474_v18 = vadd.f32 %v14947_v17, %v14829_v9  ;;  %v1477_v45 = vadd.f32 %v11125_v38, %v14829_v9  ;;  %v13809_v38 = vld [vmem:[#allocation6 + $0x268] sm:$0xff]  }
 0x1b6   : > { %v11229_v7 = vpop.f32.mrf.mxu1  ;;  %v11296_v12 = vpop.f32.mrf.mxu0 }
 0x1b7   : > { %v14993_v5 = vadd.f32 %v11228_v48, %v1466_v14  ;;  %v15002_v62 = vadd.f32 %v11295_v22, %v14875_v50 }
 0x1b8   : > { %v11230_v35 = vpop.f32.mrf.mxu1  ;;  %v11297_v53 = vpop.f32.mrf.mxu0 }
 0x1b9   : > { %v11231_v10 = vadd.f32 %v11230_v35, %v11229_v7  ;;  %v11298_v19 = vadd.f32 %v11297_v53, %v11296_v12 }
 0x1ba   : > { %v11232_v0 = vpop.f32.mrf.mxu1  ;;  %v11299_v15 = vpop.f32.mrf.mxu0 }
 0x1bb   : > { %v14999_v58 = vadd.f32 %v11231_v10, %v1469_v47  ;;  %v15011_v33 = vadd.f32 %v11298_v19, %v14883_v49  ;;  %v1482_v10 = vadd.f32 %v14782_v43, %v14829_v9 }
 0x1bc   : > { %v11233_v61 = vpop.f32.mrf.mxu1  ;;  %v11300_v50 = vpop.f32.mrf.mxu0 }
 0x1bd   : > { %v11234_v32 = vadd.f32 %v11233_v61, %v11232_v0  ;;  %v11301_v63 = vadd.f32 %v11300_v50, %v11299_v15 }
 0x1be   : > { %v11235_v14 = vpop.f32.mrf.mxu1  ;;  %v11302_v17 = vpop.f32.mrf.mxu0 }
 0x1bf   : > { %v15008_v48 = vadd.f32 %v11234_v32, %v1474_v18  ;;  %v15017_v24 = vadd.f32 %v11301_v63, %v14890_v31  ;;  %v13808_v18 = vld [vmem:[#allocation6 + $0x2a8] sm:$0xff]   ;;  %v1485_v31 = vadd.f32 %v14788_v55, %v14829_v9  ;;  %v1490_v63 = vadd.f32 %v14796_v6, %v14829_v9 }
 0x1c0   : > { %v11236_v7 = vpop.f32.mrf.mxu1  ;;  %v11303_v47 = vpop.f32.mrf.mxu0  ;;  %11514 = vmatprep.subr.bf16.mxu1 %v13808_v18 }
 0x1c1   : > { %v11237_v46 = vadd.f32 %v11236_v7, %v11235_v14  ;;  %v11304_v22 = vadd.f32 %v11303_v47, %v11302_v17  ;;  %11515 = vmatpush3.bf16.msra.mxu1 %v13809_v38 }
 0x1c2   : > { %v11238_v35 = vpop.f32.mrf.mxu1  ;;  %v11305_v12 = vpop.f32.mrf.mxu0 }
 0x1c3   : > { %v15014_v25 = vadd.f32 %v11237_v46, %v1477_v45  ;;  %v15024_v53 = vadd.f32 %v11304_v22, %v14900_v40 }
 0x1c4   : > { %v11239_v30 = vpop.f32.mrf.mxu1  ;;  %v11306_v19 = vpop.f32.mrf.mxu0 }
 0x1c5   : > { %v11240_v49 = vadd.f32 %v11239_v30, %v11238_v35  ;;  %v11307_v15 = vadd.f32 %v11306_v19, %v11305_v12 }
 0x1c6   : > { %v11241_v0 = vpop.f32.mrf.mxu1  ;;  %v11308_v7 = vpop.f32.mrf.mxu0 }
 0x1c7   : > { %v15021_v61 = vadd.f32 %v11240_v49, %v1482_v10  ;;  %v15031_v45 = vadd.f32 %v11307_v15, %v14907_v39  ;;  %v1493_v39 = vadd.f32 %v14804_v23, %v14829_v9 }
 0x1c8   : > { %v11242_v32 = vpop.f32.mrf.mxu1  ;;  %v11309_v46 = vpop.f32.mrf.mxu0 }
 0x1c9   : > { %v11243_v14 = vadd.f32 %v11242_v32, %v11241_v0  ;;  %v11310_v17 = vadd.f32 %v11309_v46, %v11308_v7  ;;  %v13810_v46 = vld [vmem:[#allocation6 + $0x2a0] sm:$0xff]  }
 0x1ca   : > { %v11244_v43 = vpop.f32.mrf.mxu1  ;;  %v11311_v55 = vpop.f32.mrf.mxu0  ;;  %11516 = vmatprep.subr.bf16.mxu1 %v13810_v46 }
 0x1cb   : > { %v15028_v50 = vadd.f32 %v11243_v14, %v1485_v31  ;;  %v15038_v10 = vadd.f32 %v11310_v17, %v14917_v44  ;;  %v1498_v44 = vadd.f32 %v14812_v54, %v14829_v9 }
 0x1cc   : > { %v11245_v40 = vpop.f32.mrf.mxu1  ;;  %v11312_v22 = vpop.f32.mrf.mxu0 }
 0x1cd   : > { %v11246_v35 = vadd.f32 %v11245_v40, %v11244_v43  ;;  %v11313_v12 = vadd.f32 %v11312_v22, %v11311_v55 }
 0x1ce   : > { %v11247_v30 = vpop.f32.mrf.mxu1  ;;  %v11314_v38 = vpop.f32.mrf.mxu0 }
 0x1cf   : > { %v15035_v47 = vadd.f32 %v11246_v35, %v1490_v63  ;;  %v15045_v6 = vadd.f32 %v11313_v12, %v14925_v28  ;;  %v13811_v63 = vld [vmem:[#allocation6 + $0x260] sm:$0xff]   ;;  %v1501_v28 = vadd.f32 %v14818_v59, %v14829_v9  ;;  %v1506_v12 = vadd.f32 %v14825_v3, %v14829_v9 }
 0x1d0   : > { %v11248_v49 = vpop.f32.mrf.mxu1  ;;  %v11315_v31 = vpop.f32.mrf.mxu0  ;;  %11517 = vmatpush3.bf16.msra.mxu1 %v13811_v63 }
 0x1d1   : > { %v11249_v0 = vadd.f32 %v11248_v49, %v11247_v30  ;;  %v11316_v15 = vadd.f32 %v11315_v31, %v11314_v38 }
 0x1d2   : > { %v11250_v18 = vpop.f32.mrf.mxu1  ;;  %v11317_v7 = vpop.f32.mrf.mxu0 }
 0x1d3   : > { %v15042_v32 = vadd.f32 %v11249_v0, %v1493_v39  ;;  %v15052_v23 = vadd.f32 %v11316_v15, %v14936_v16 }
 0x1d4   : > { %v11251_v19 = vpop.f32.mrf.mxu1  ;;  %v11318_v17 = vpop.f32.mrf.mxu0 }
 0x1d5   : > { %v11252_v14 = vadd.f32 %v11251_v19, %v11250_v18  ;;  %v11319_v55 = vadd.f32 %v11318_v17, %v11317_v7 }
 0x1d6   : > { %v11253_v43 = vpop.f32.mrf.mxu1  ;;  %v11320_v49 = vpop.f32.mrf.mxu0 }
 0x1d7   : > { %v15049_v40 = vadd.f32 %v11252_v14, %v1498_v44  ;;  %v15059_v39 = vadd.f32 %v11319_v55, %v14943_v36  ;;  %v1509_v36 = vadd.f32 %v14833_v26, %v14829_v9  ;;  %v13813_v55 = vld [vmem:[#allocation6 + $0x258] sm:$0xff]  }
 0x1d8   : > { %v11254_v35 = vpop.f32.mrf.mxu1  ;;  %v11321_v0 = vpop.f32.mrf.mxu0 }
 0x1d9   : > { %v11255_v30 = vadd.f32 %v11254_v35, %v11253_v43  ;;  %v11322_v38 = vadd.f32 %v11321_v0, %v11320_v49 }
 0x1da   : > { %v11256_v54 = vpop.f32.mrf.mxu1  ;;  %v11323_v59 = vpop.f32.mrf.mxu0 }
 0x1db   : > { %v15056_v22 = vadd.f32 %v11255_v30, %v1501_v28  ;;  %v15066_v44 = vadd.f32 %v11322_v38, %v14951_v41  ;;  %v13812_v30 = vld [vmem:[#allocation6 + $0x298] sm:$0xff]   ;;  %v13815_v38 = vld [vmem:[#allocation6 + $0x250] sm:$0xff]  }
 0x1dc   : > { %v11257_v16 = vpop.f32.mrf.mxu1  ;;  %v11324_v15 = vpop.f32.mrf.mxu0  ;;  %11518 = vmatprep.subr.bf16.mxu1 %v13812_v30  ;;  %v13821_v30 = vld [vmem:[#allocation6 + $0x2f0] sm:$0xff]  }
 0x1dd   : > { %v11258_v18 = vadd.f32 %v11257_v16, %v11256_v54  ;;  %v11325_v7 = vadd.f32 %v11324_v15, %v11323_v59  ;;  %11519 = vmatpush3.bf16.msra.mxu1 %v13813_v55  ;;  %v13819_v15 = vld [vmem:[#allocation6 + $0x2f8] sm:$0xff]   ;;  %v13822_v55 = vld [vmem:[#allocation6 + $0x280] sm:$0xff]  }
 0x1de   : > { %v11259_v19 = vpop.f32.mrf.mxu1  ;;  %v11326_v46 = vpop.f32.mrf.mxu0 }
 0x1df   : > { %v15063_v31 = vadd.f32 %v11258_v18, %v1506_v12  ;;  %v15075_v35 = vadd.f32 %v11325_v7, %v14957_v29  ;;  %v13814_v18 = vld [vmem:[#allocation6 + $0x290] sm:$0xff]  }
 0x1e0   : > { %v11260_v14 = vpop.f32.mrf.mxu1  ;;  %v11327_v17 = vpop.f32.mrf.mxu0  ;;  %11520 = vmatprep.subr.bf16.mxu1 %v13814_v18 }
 0x1e1   : > { %v11261_v43 = vadd.f32 %v11260_v14, %v11259_v19  ;;  %v11328_v41 = vadd.f32 %v11327_v17, %v11326_v46  ;;  %v13816_v19 = vld [vmem:[#allocation6 + $0x288] sm:$0xff]   ;;  %v13818_v14 = vld [vmem:[#allocation6 + $0x338] sm:$0xff]   ;;  %11521 = vmatpush3.bf16.msra.mxu1 %v13815_v38 }
 0x1e2   : > { %v15070_v63 = vpop.f32.mrf.mxu1  ;;  %v11329_v54 = vpop.f32.mrf.mxu0  ;;  %v13817_v46 = vld [vmem:[#allocation6 + $0x248] sm:$0xff]   ;;  %11622 = vmatprep.subr.bf16.mxu0 %v13818_v14  ;;  %11522 = vmatprep.subr.bf16.mxu1 %v13816_v19 }
 0x1e3   : > { %v15072_v3 = vadd.f32 %v11261_v43, %v1509_v36  ;;  %v15082_v9 = vadd.f32 %v11328_v41, %v14963_v1  ;;  %v13820_v43 = vld [vmem:[#allocation6 + $0x330] sm:$0xff]   ;;  %11623 = vmatpush3.bf16.msra.mxu0 %v13819_v15  ;;  %v13825_v19 = vld [vmem:[#allocation6 + $0x2e8] sm:$0xff]  }
 0x1e4   : > { %v15077_v28 = vpop.f32.mrf.mxu1  ;;  %v11330_v26 = vpop.f32.mrf.mxu0  ;;  %11624 = vmatprep.subr.bf16.mxu0 %v13820_v43 }
 0x1e5   : > { %18304 = vst [vmem:[#allocation46_spill] sm:$0xff] %v15082_v9  ;;  %v11331_v0 = vadd.f32 %v11330_v26, %v11329_v54  ;;  %v13823_v54 = vld [vmem:[#allocation6 + $0x328] sm:$0xff]   ;;  %11523 = vmatpush3.bf16.msra.mxu1 %v13817_v46  ;;  %v13827_v46 = vld [vmem:[#allocation6 + $0x2e0] sm:$0xff]   ;;  %v13829_v9 = vld [vmem:[#allocation6 + $0x2d8] sm:$0xff]  }
 0x1e6   : > { %v15079_v49 = vpop.f32.mrf.mxu1  ;;  %v11332_v29 = vpop.f32.mrf.mxu0  ;;  %11524 = vmatprep.subr.bf16.mxu1 %v13822_v55 }
 0x1e7   : > { %v15089_v59 = vadd.f32 %v11331_v0, %v14969_v13  ;;  %11625 = vmatpush3.bf16.msra.mxu0 %v13821_v30 }
 0x1e8   : > { %v15084_v16 = vpop.f32.mrf.mxu1  ;;  %v11333_v36 = vpop.f32.mrf.mxu0  ;;  %11626 = vmatprep.subr.bf16.mxu0 %v13823_v54 }
 0x1e9   : > { %18305 = vst [vmem:[#allocation47_spill] sm:$0xff] %v15089_v59  ;;  %v11334_v7 = vadd.f32 %v11333_v36, %v11332_v29  ;;  %v13824_v29 = vld [vmem:[#allocation6 + $0x240] sm:$0xff]  }
 0x1ea   : > { %v15086_v12 = vpop.f32.mrf.mxu1  ;;  %v11335_v17 = vpop.f32.mrf.mxu0  ;;  %11525 = vmatpush3.bf16.msra.mxu1 %v13824_v29 }
 0x1eb   : > { %v15096_v13 = vadd.f32 %v11334_v7, %v14978_v34  ;;  %v13826_v34 = vld [vmem:[#allocation6 + $0x320] sm:$0xff]   ;;  %11627 = vmatpush3.bf16.msra.mxu0 %v13825_v19 }
 0x1ec   : > { %v15091_v1 = vpop.f32.mrf.mxu1  ;;  %v11336_v26 = vpop.f32.mrf.mxu0  ;;  %11628 = vmatprep.subr.bf16.mxu0 %v13826_v34 }
 0x1ed   : > { %v11337_v18 = vadd.f32 %v11336_v26, %v11335_v17 }
 0x1ee   : > { %v15093_v41 = vpop.f32.mrf.mxu1  ;;  %v11338_v38 = vpop.f32.mrf.mxu0 }
 0x1ef   : > { %v15103_v15 = vadd.f32 %v11337_v18, %v14984_v42  ;;  %11629 = vmatpush3.bf16.msra.mxu0 %v13827_v46 }
 0x1f0   : > { %v15098_v0 = vpop.f32.mrf.mxu1  ;;  %v11339_v36 = vpop.f32.mrf.mxu0 }
 0x1f1   : > { %18306 = vst [vmem:[#allocation48_spill] sm:$0xff] %v15103_v15  ;;  %v11340_v7 = vadd.f32 %v11339_v36, %v11338_v38  ;;  %v13828_v15 = vld [vmem:[#allocation6 + $0x318] sm:$0xff]  }
 0x1f2   : > { %v15100_v14 = vpop.f32.mrf.mxu1  ;;  %v11341_v60 = vpop.f32.mrf.mxu0  ;;  %11630 = vmatprep.subr.bf16.mxu0 %v13828_v15  ;;  %v13830_v15 = vld [vmem:[#allocation6 + $0x310] sm:$0xff]  }
 0x1f3   : > { %v15110_v26 = vadd.f32 %v11340_v7, %v14993_v5  ;;  %11631 = vmatpush3.bf16.msra.mxu0 %v13829_v9 }
 0x1f4   : > { %v15105_v43 = vpop.f32.mrf.mxu1  ;;  %v11342_v30 = vpop.f32.mrf.mxu0  ;;  %11632 = vmatprep.subr.bf16.mxu0 %v13830_v15 }
 0x1f5   : > { %18307 = vst [vmem:[#allocation49_spill] sm:$0xff] %v15110_v26  ;;  %v11343_v42 = vadd.f32 %v11342_v30, %v11341_v60 }
 0x1f6   : > { %v15107_v17 = vpop.f32.mrf.mxu1  ;;  %v11344_v54 = vpop.f32.mrf.mxu0 }
 0x1f7   : > { %v15117_v38 = vadd.f32 %v11343_v42, %v14999_v58 }
 0x1f8   : > { %v15112_v55 = vpop.f32.mrf.mxu1  ;;  %v11345_v29 = vpop.f32.mrf.mxu0 }
 0x1f9   : > { %18308 = vst [vmem:[#allocation50_spill] sm:$0xff] %v15117_v38  ;;  %v11346_v19 = vadd.f32 %v11345_v29, %v11344_v54 }
 0x1fa   : > { %v15114_v18 = vpop.f32.mrf.mxu1  ;;  %v11347_v37 = vpop.f32.mrf.mxu0 }
 0x1fb   : > { %v15124_v5 = vadd.f32 %v11346_v19, %v15008_v48 }
 0x1fc   : > { %v15119_v36 = vpop.f32.mrf.mxu1  ;;  %v11348_v34 = vpop.f32.mrf.mxu0 }
 0x1fd   : > { %18309 = vst [vmem:[#allocation51_spill] sm:$0xff] %v15124_v5  ;;  %v11349_v60 = vadd.f32 %v11348_v34, %v11347_v37  ;;  %v11410_v15 = vadd.f32 %v15119_v36, %v15114_v18 }
 0x1fe   : > { %v15121_v21 = vpop.f32.mrf.mxu1  ;;  %v11350_v30 = vpop.f32.mrf.mxu0 }
 0x1ff   : > { %v15131_v58 = vadd.f32 %v11349_v60, %v15014_v25 }
 0x200   : > { %v15126_v7 = vpop.f32.mrf.mxu1  ;;  %v11351_v46 = vpop.f32.mrf.mxu0 }
 0x201   : > { %18310 = vst [vmem:[#allocation52_spill] sm:$0xff] %v15131_v58  ;;  %v11352_v54 = vadd.f32 %v11351_v46, %v11350_v30 }
 0x202   : > { %v15128_v52 = vpop.f32.mrf.mxu1  ;;  %v11353_v29 = vpop.f32.mrf.mxu0 }
 0x203   : > { %v15138_v48 = vadd.f32 %v11352_v54, %v15021_v61 }
 0x204   : > { %v15133_v42 = vpop.f32.mrf.mxu1  ;;  %v11354_v19 = vpop.f32.mrf.mxu0 }
 0x205   : > { %18311 = vst [vmem:[#allocation53_spill] sm:$0xff] %v15138_v48  ;;  %v11355_v37 = vadd.f32 %v11354_v19, %v11353_v29 }
 0x206   : > { %v15135_v20 = vpop.f32.mrf.mxu1  ;;  %v11356_v34 = vpop.f32.mrf.mxu0 }
 0x207   : > { %v15145_v25 = vadd.f32 %v11355_v37, %v15028_v50 }
 0x208   : > { %v15140_v51 = vpop.f32.mrf.mxu1  ;;  %v11357_v60 = vpop.f32.mrf.mxu0 }
 0x209   : > { %18312 = vst [vmem:[#allocation54_spill] sm:$0xff] %v15145_v25  ;;  %v11358_v30 = vadd.f32 %v11357_v60, %v11356_v34 }
 0x20a   : > { %v15142_v57 = vpop.f32.mrf.mxu1  ;;  %v11359_v46 = vpop.f32.mrf.mxu0 }
 0x20b   : > { %v15152_v61 = vadd.f32 %v11358_v30, %v15035_v47 }
 0x20c   : > { %v15147_v58 = vpop.f32.mrf.mxu1  ;;  %v11360_v54 = vpop.f32.mrf.mxu0 }
 0x20d   : > { %18313 = vst [vmem:[#allocation55_spill] sm:$0xff] %v15152_v61  ;;  %v11361_v29 = vadd.f32 %v11360_v54, %v11359_v46 }
 0x20e   : > { %v15149_v38 = vpop.f32.mrf.mxu1  ;;  %v11362_v19 = vpop.f32.mrf.mxu0 }
 0x20f   : > { %v15159_v50 = vadd.f32 %v11361_v29, %v15042_v32  ;;  %v2461_v29 = vld [vmem:[#allocation2 + $0x1] sm:$0xff] }
 0x210   : > { %v15154_v48 = vpop.f32.mrf.mxu1  ;;  %v11363_v37 = vpop.f32.mrf.mxu0 }
 0x211   : > { %18314 = vst [vmem:[#allocation56_spill] sm:$0xff] %v15159_v50  ;;  %v11364_v34 = vadd.f32 %v11363_v37, %v11362_v19  ;;  %v2462_v50 = vld [vmem:[#allocation2 + $0x9] sm:$0xff] }
 0x212   : > { %v15156_v5 = vpop.f32.mrf.mxu1  ;;  %v11365_v60 = vpop.f32.mrf.mxu0 }
 0x213   : > { %v15166_v47 = vadd.f32 %v11364_v34, %v15049_v40  ;;  %v2493_v40 = vpack.c.bf16 %v2462_v50, %v2461_v29  ;;  %v11398_v34 = vadd.f32 %v15091_v1, %v15086_v12  ;;  %v13831_v29 = vld [vmem:[#allocation6 + $0x2d0] sm:$0xff]   ;;  %v11401_v12 = vadd.f32 %v15098_v0, %v15093_v41  ;;  %v13834_v0 = vld [vmem:[#allocation6 + $0x2c8] sm:$0xff]  }
 0x214   : > { %v15161_v25 = vpop.f32.mrf.mxu1  ;;  %v11366_v30 = vpop.f32.mrf.mxu0  ;;  %11633 = vmatpush3.bf16.msra.mxu0 %v13831_v29 }
 0x215   : > { %18315 = vst [vmem:[#allocation57_spill] sm:$0xff] %v15166_v47  ;;  %v11367_v46 = vadd.f32 %v11366_v30, %v11365_v60  ;;  %3458 = vmatprep.mubr.bf16.mxu1 %v2493_v40  ;;  %v1877_v9 = vadd.f32 %v11398_v34, %v14981_v11  ;;  %v1880_v34 = vadd.f32 %v11401_v12, %v14987_v4 }
 0x216   : > { %v15163_v26 = vpop.f32.mrf.mxu1  ;;  %v11368_v54 = vpop.f32.mrf.mxu0  ;;  %3459 = vmatmul.mubr.bf16.vlgmr.msra.gmra.mxu1 %v14934_v2 }
 0x217   : > { %v15173_v32 = vadd.f32 %v11367_v46, %v15056_v22  ;;  %v11392_v22 = vadd.f32 %v15077_v28, %v15070_v63 }
 0x218   : > { %v15168_v61 = vpop.f32.mrf.mxu1  ;;  %v11369_v19 = vpop.f32.mrf.mxu0 }
 0x219   : > { %18316 = vst [vmem:[#allocation58_spill] sm:$0xff] %v15173_v32  ;;  %v11370_v47 = vadd.f32 %v11369_v19, %v11368_v54  ;;  %v13832_v54 = vld [vmem:[#allocation6 + $0x308] sm:$0xff]   ;;  %v13833_v19 = vld [vmem:[#allocation6 + $0x3b8] sm:$0xff]   ;;  %v1869_v40 = vadd.f32 %v11392_v22, %v14966_v56 }
 0x21a   : > { %v15170_v59 = vpop.f32.mrf.mxu1  ;;  %v11371_v60 = vpop.f32.mrf.mxu0  ;;  %11634 = vmatprep.subr.bf16.mxu0 %v13832_v54  ;;  %11734 = vmatprep.subr.bf16.mxu1 %v13833_v19 }
 0x21b   : > { %v15184_v46 = vadd.f32 %v11370_v47, %v15063_v31  ;;  %v11395_v31 = vadd.f32 %v15084_v16, %v15079_v49  ;;  %v13835_v16 = vld [vmem:[#allocation6 + $0x378] sm:$0xff]   ;;  %11635 = vmatpush3.bf16.msra.mxu0 %v13834_v0 }
 0x21c   : > { %v15175_v37 = vpop.f32.mrf.mxu1  ;;  %v11372_v32 = vpop.f32.mrf.mxu0  ;;  %11735 = vmatpush3.bf16.msra.mxu1 %v13835_v16 }
 0x21d   : > { %v11373_v1 = vadd.f32 %v11372_v32, %v11371_v60  ;;  %v13836_v60 = vld [vmem:[#allocation6 + $0x300] sm:$0xff]   ;;  %v1872_v29 = vadd.f32 %v11395_v31, %v14972_v8  ;;  %v11407_v8 = vadd.f32 %v15112_v55, %v15107_v17  ;;  %v1893_v31 = vadd.f32 %v11410_v15, %v15011_v33 }
 0x21e   : > { %v15179_v30 = vpop.f32.mrf.mxu1  ;;  %v13416_v2 = vpop.f32.mrf.mxu0  ;;  %11636 = vmatprep.subr.bf16.mxu0 %v13836_v60 }
 0x21f   : > { %v15197_v28 = vadd.f32 %v11373_v1, %v15072_v3  ;;  %v2038_v47 = vadd.f32 %v13416_v2, %v1877_v9  ;;  %v11404_v3 = vadd.f32 %v15105_v43, %v15100_v14  ;;  %v13837_v14 = vld [vmem:[#allocation6 + $0x2c0] sm:$0xff]  }
 0x220   : > { %v15187_v50 = vpop.f32.mrf.mxu1  ;;  %v2029_v11 = vpop.f32.mrf.mxu0  ;;  %11637 = vmatpush3.bf16.msra.mxu0 %v13837_v14 }
 0x221   : > { %v2030_v32 = vadd.f32 %v2029_v11, %v1869_v40  ;;  %vm2158_vm1 = vcmp.gt.f32.partialorder %v2038_v47, 0.0  ;;  %v2190_v49 = vmul.f32 0.2, %v2038_v47  ;;  %v11413_v40 = vadd.f32 %v15126_v7, %v15121_v21 }
 0x222   : > { %v15194_v63 = vpop.f32.mrf.mxu1  ;;  %v13417_v22 = vpop.f32.mrf.mxu0  ;;  %v1888_v21 = vadd.f32 %v11407_v8, %v15002_v62  ;;  %v11416_v7 = vadd.f32 %v15133_v42, %v15128_v52 }
 0x223   : > { %v2041_v1 = vadd.f32 %v13417_v22, %v1880_v34  ;;  %v2222_v9 = vsel %vm2158_vm1, %v2038_v47, %v2190_v49  ;;  %vm2156_vm2 = vcmp.gt.f32.partialorder %v2030_v32, 0.0  ;;  %v2188_v4 = vmul.f32 0.2, %v2030_v32 }
 0x224   : > { %v15200_v41 = vpop.f32.mrf.mxu1  ;;  %v2032_v54 = vpop.f32.mrf.mxu0  ;;  %2288 = vrot.lane.b32.xlu1 %v2222_v9, %s14260_s18  ;;  %v1885_v47 = vadd.f32 %v11404_v3, %v14996_v27  ;;  %v11422_v49 = vadd.f32 %v15147_v58, %v15142_v57  ;;  %v1896_v3 = vadd.f32 %v11413_v40, %v15017_v24  ;;  %v13838_v9 = vld [vmem:[#allocation6 + $0x3b0] sm:$0xff]   ;;  %v11419_v24 = vadd.f32 %v15140_v51, %v15135_v20 }
 0x225   : > { %v2191_v43 = vmul.f32 0.2, %v2041_v1  ;;  %v2033_v18 = vadd.f32 %v2032_v54, %v1872_v29  ;;  %v2220_v36 = vsel %vm2156_vm2, %v2030_v32, %v2188_v4  ;;  %vm2159_vm3 = vcmp.gt.f32.partialorder %v2041_v1, 0.0  ;;  %11736 = vmatprep.subr.bf16.mxu1 %v13838_v9 }
 0x226   : > { %v15207_v56 = vpop.f32.mrf.mxu1  ;;  %v13420_v2 = vpop.f32.mrf.mxu0  ;;  %2284 = vrot.lane.b32.xlu0 %v2220_v36, %s14260_s18  ;;  %v11425_v4 = vadd.f32 %v15154_v48, %v15149_v38  ;;  %v1909_v62 = vadd.f32 %v11422_v49, %v15038_v10  ;;  %v1901_v42 = vadd.f32 %v11416_v7, %v15024_v53  ;;  %v11434_v53 = vadd.f32 %v15175_v37, %v15170_v59 }
 0x227   : > { %v2223_v11 = vsel %vm2159_vm3, %v2041_v1, %v2191_v43  ;;  %vm2157_vm4 = vcmp.gt.f32.partialorder %v2033_v18, 0.0  ;;  %v2189_v0 = vmul.f32 0.2, %v2033_v18  ;;  %v2054_v55 = vadd.f32 %v13420_v2, %v1893_v31  ;;  %v13839_v31 = vld [vmem:[#allocation6 + $0x370] sm:$0xff]  }
 0x228   : > { %v15210_v12 = vpop.f32.mrf.mxu1  ;;  %v2045_v17 = vpop.f32.mrf.mxu0  ;;  %2290 = vrot.lane.b32.xlu1 %v2223_v11, %s14260_s18  ;;  %v11428_v2 = vadd.f32 %v15161_v25, %v15156_v5  ;;  %v1912_v20 = vadd.f32 %v11425_v4, %v15045_v6  ;;  %v1904_v11 = vadd.f32 %v11419_v24, %v15031_v45  ;;  %11737 = vmatpush3.bf16.msra.mxu1 %v13839_v31 }
 0x229   : > { %v2046_v33 = vadd.f32 %v2045_v17, %v1885_v47  ;;  %v2221_v34 = vsel %vm2157_vm4, %v2033_v18, %v2189_v0  ;;  %v2194_v29 = vmul.f32 0.2, %v2054_v55  ;;  %vm2162_vm6 = vcmp.gt.f32.partialorder %v2054_v55, 0.0 }
 0x22a   : > { %v15215_v19 = vpop.f32.mrf.mxu1  ;;  %v13421_v16 = vpop.f32.mrf.mxu0  ;;  %2286 = vrot.lane.b32.xlu0 %v2221_v34, %s14260_s18  ;;  %v11431_v34 = vadd.f32 %v15168_v61, %v15163_v26  ;;  %v1917_v45 = vadd.f32 %v11428_v2, %v15052_v23  ;;  %v11437_v59 = vadd.f32 %v15187_v50, %v15179_v30  ;;  %v1925_v37 = vadd.f32 %v11434_v53, %v15066_v44  ;;  %v13841_v2 = vld [vmem:[#allocation6 + $0x368] sm:$0xff]   ;;  %v18318_v53 = vld [vmem:[#allocation48_spill] sm:$0xff] }
 0x22b   : > { %v2192_v60 = vmul.f32 0.2, %v2046_v33  ;;  %vm2160_vm5 = vcmp.gt.f32.partialorder %v2046_v33, 0.0  ;;  %v2057_v1 = vadd.f32 %v13421_v16, %v1896_v3  ;;  %v2226_v10 = vsel %vm2162_vm6, %v2054_v55, %v2194_v29 }
 0x22c   : > { %v15222_v32 = vpop.f32.mrf.mxu1  ;;  %v2048_v22 = vpop.f32.mrf.mxu0  ;;  %v1920_v44 = vadd.f32 %v11431_v34, %v15059_v39  ;;  %v11440_v30 = vadd.f32 %v15200_v41, %v15194_v63  ;;  %v18317_v41 = vld [vmem:[#allocation46_spill] sm:$0xff] }
 0x22d   : > { %v2049_v57 = vadd.f32 %v2048_v22, %v1888_v21  ;;  %v2224_v58 = vsel %vm2160_vm5, %v2046_v33, %v2192_v60  ;;  %v2195_v48 = vmul.f32 0.2, %v2057_v1  ;;  %vm2163_vm8 = vcmp.gt.f32.partialorder %v2057_v1, 0.0 }
 0x22e   : > { %v15227_v27 = vpop.f32.mrf.mxu1  ;;  %v13424_v52 = vpop.f32.mrf.mxu0  ;;  %2292 = vrot.lane.b32.xlu0 %v2224_v58, %s14260_s18  ;;  %v1928_v58 = vadd.f32 %v11437_v59, %v15075_v35  ;;  %v11443_v35 = vadd.f32 %v15210_v12, %v15207_v56 }
 0x22f   : > { %vm2161_vm7 = vcmp.gt.f32.partialorder %v2049_v57, 0.0  ;;  %v2193_v14 = vmul.f32 0.2, %v2049_v57  ;;  %v2070_v43 = vadd.f32 %v13424_v52, %v1909_v62  ;;  %v2227_v55 = vsel %vm2163_vm8, %v2057_v1, %v2195_v48 }
 0x230   : > { %v15234_v15 = vpop.f32.mrf.mxu1  ;;  %v2061_v38 = vpop.f32.mrf.mxu0  ;;  %v11446_v1 = vadd.f32 %v15222_v32, %v15215_v19 }
 0x231   : > { %v2062_v36 = vadd.f32 %v2061_v38, %v1901_v42  ;;  %v2225_v8 = vsel %vm2161_vm7, %v2049_v57, %v2193_v14  ;;  %v2198_v0 = vmul.f32 0.2, %v2070_v43  ;;  %vm2166_vm10 = vcmp.gt.f32.partialorder %v2070_v43, 0.0  ;;  %v13840_v42 = vld [vmem:[#allocation6 + $0x3a8] sm:$0xff]  }
 0x232   : > { %v15238_v54 = vpop.f32.mrf.mxu1  ;;  %v13425_v51 = vpop.f32.mrf.mxu0  ;;  %2294 = vrot.lane.b32.xlu1 %v2225_v8, %s14260_s18  ;;  %2296 = vrot.lane.b32.xlu0 %v2226_v10, %s14260_s18  ;;  %v11449_v14 = vadd.f32 %v15234_v15, %v15227_v27  ;;  %v1941_v39 = vadd.f32 %v11446_v1, %v15096_v13  ;;  %v1933_v38 = vadd.f32 %v11440_v30, %v18317_v41 }
 0x233   : > { %v2196_v40 = vmul.f32 0.2, %v2062_v36  ;;  %vm2164_vm9 = vcmp.gt.f32.partialorder %v2062_v36, 0.0  ;;  %v2073_v5 = vadd.f32 %v13425_v51, %v1912_v20  ;;  %v2230_v22 = vsel %vm2166_vm10, %v2070_v43, %v2198_v0  ;;  %11738 = vmatprep.subr.bf16.mxu1 %v13840_v42  ;;  %v18319_v0 = vld [vmem:[#allocation47_spill] sm:$0xff] }
 0x234   : > { %v15245_v18 = vpop.f32.mrf.mxu1  ;;  %v2064_v17 = vpop.f32.mrf.mxu0  ;;  %11739 = vmatpush3.bf16.msra.mxu1 %v13841_v2 }
 0x235   : > { %v2065_v6 = vadd.f32 %v2064_v17, %v1904_v11  ;;  %v2228_v33 = vsel %vm2164_vm9, %v2062_v36, %v2196_v40  ;;  %v2199_v7 = vmul.f32 0.2, %v2073_v5  ;;  %vm2167_vm12 = vcmp.gt.f32.partialorder %v2073_v5, 0.0 }
 0x236   : > { %v15249_v47 = vpop.f32.mrf.mxu1  ;;  %v13428_v16 = vpop.f32.mrf.mxu0  ;;  %2298 = vrot.lane.b32.xlu1 %v2227_v55, %s14260_s18  ;;  %2300 = vrot.lane.b32.xlu0 %v2228_v33, %s14260_s18  ;;  %v11452_v20 = vadd.f32 %v15245_v18, %v15238_v54  ;;  %v1944_v40 = vadd.f32 %v11449_v14, %v18318_v53 }
 0x237   : > { %vm2165_vm11 = vcmp.gt.f32.partialorder %v2065_v6, 0.0  ;;  %v2197_v21 = vmul.f32 0.2, %v2065_v6  ;;  %v2086_v26 = vadd.f32 %v13428_v16, %v1925_v37  ;;  %v2231_v62 = vsel %vm2167_vm12, %v2073_v5, %v2199_v7  ;;  %v18321_v7 = vld [vmem:[#allocation51_spill] sm:$0xff] }
 0x238   : > { %v15257_v25 = vpop.f32.mrf.mxu1  ;;  %v2077_v3 = vpop.f32.mrf.mxu0  ;;  %v1936_v5 = vadd.f32 %v11443_v35, %v18319_v0 }
 0x239   : > { %v2078_v61 = vadd.f32 %v2077_v3, %v1917_v45  ;;  %v2229_v29 = vsel %vm2165_vm11, %v2065_v6, %v2197_v21  ;;  %v2202_v19 = vmul.f32 0.2, %v2086_v26  ;;  %vm2170_vm14 = vcmp.gt.f32.partialorder %v2086_v26, 0.0 }
 0x23a   : > { %v11456_v49 = vpop.f32.mrf.mxu1  ;;  %v13429_v23 = vpop.f32.mrf.mxu0  ;;  %2302 = vrot.lane.b32.xlu1 %v2229_v29, %s14260_s18  ;;  %2304 = vrot.lane.b32.xlu0 %v2230_v22, %s14260_s18  ;;  %v11455_v16 = vadd.f32 %v15257_v25, %v15249_v47 }
 0x23b   : > { %v2200_v50 = vmul.f32 0.2, %v2078_v61  ;;  %vm2168_vm13 = vcmp.gt.f32.partialorder %v2078_v61, 0.0  ;;  %v2089_v32 = vadd.f32 %v13429_v23, %v1928_v58  ;;  %v2234_v31 = vsel %vm2170_vm14, %v2086_v26, %v2202_v19 }
 0x23c   : > { %v11457_v60 = vpop.f32.mrf.mxu1  ;;  %v2080_v4 = vpop.f32.mrf.mxu0 }
 0x23d   : > { %v2081_v52 = vadd.f32 %v2080_v4, %v1920_v44  ;;  %v2232_v24 = vsel %vm2168_vm13, %v2078_v61, %v2200_v50  ;;  %v2203_v8 = vmul.f32 0.2, %v2089_v32  ;;  %vm2171_vm1 = vcmp.gt.f32.partialorder %v2089_v32, 0.0  ;;  %v18323_v4 = vld [vmem:[#allocation52_spill] sm:$0xff] }
 0x23e   : > { %v15269_v57 = vpop.f32.mrf.mxu1  ;;  %v13432_v63 = vpop.f32.mrf.mxu0  ;;  %2306 = vrot.lane.b32.xlu1 %v2231_v62, %s14260_s18  ;;  %2308 = vrot.lane.b32.xlu0 %v2232_v24, %s14260_s18  ;;  %v11458_v12 = vadd.f32 %v11457_v60, %v11456_v49  ;;  %v18320_v49 = vld [vmem:[#allocation49_spill] sm:$0xff] }
 0x23f   : > { %vm2169_vm15 = vcmp.gt.f32.partialorder %v2081_v52, 0.0  ;;  %v2201_v48 = vmul.f32 0.2, %v2081_v52  ;;  %v2102_v36 = vadd.f32 %v13432_v63, %v1941_v39  ;;  %v2235_v18 = vsel %vm2171_vm1, %v2089_v32, %v2203_v8  ;;  %v13842_v63 = vld [vmem:[#allocation6 + $0x3a0] sm:$0xff]  }
 0x240   : > { %v11460_v9 = vpop.f32.mrf.mxu1  ;;  %v2093_v15 = vpop.f32.mrf.mxu0  ;;  %v1949_v37 = vadd.f32 %v11452_v20, %v18320_v49  ;;  %v1957_v60 = vadd.f32 %v11458_v12, %v18321_v7  ;;  %11740 = vmatprep.subr.bf16.mxu1 %v13842_v63  ;;  %v18328_v7 = vld [vmem:[#allocation57_spill] sm:$0xff] }
 0x241   : > { %v2094_v10 = vadd.f32 %v2093_v15, %v1933_v38  ;;  %v2233_v13 = vsel %vm2169_vm15, %v2081_v52, %v2201_v48  ;;  %v2206_v17 = vmul.f32 0.2, %v2102_v36  ;;  %vm2174_vm3 = vcmp.gt.f32.partialorder %v2102_v36, 0.0  ;;  %v18324_v38 = vld [vmem:[#allocation55_spill] sm:$0xff] }
 0x242   : > { %v15279_v43 = vpop.f32.mrf.mxu1  ;;  %v13433_v56 = vpop.f32.mrf.mxu0  ;;  %2310 = vrot.lane.b32.xlu1 %v2233_v13, %s14260_s18  ;;  %2312 = vrot.lane.b32.xlu0 %v2234_v31, %s14260_s18  ;;  %v11461_v21 = vadd.f32 %v11460_v9, %v15269_v57  ;;  %v18322_v57 = vld [vmem:[#allocation50_spill] sm:$0xff] }
 0x243   : > { %v2204_v11 = vmul.f32 0.2, %v2094_v10  ;;  %vm2172_vm2 = vcmp.gt.f32.partialorder %v2094_v10, 0.0  ;;  %v2105_v6 = vadd.f32 %v13433_v56, %v1944_v40  ;;  %v2238_v29 = vsel %vm2174_vm3, %v2102_v36, %v2206_v17  ;;  %v13843_v56 = vld [vmem:[#allocation6 + $0x360] sm:$0xff]  }
 0x244   : > { %v11463_v27 = vpop.f32.mrf.mxu1  ;;  %v2096_v33 = vpop.f32.mrf.mxu0  ;;  %v1952_v50 = vadd.f32 %v11455_v16, %v18322_v57  ;;  %v1960_v62 = vadd.f32 %v11461_v21, %v18323_v4  ;;  %11741 = vmatpush3.bf16.msra.mxu1 %v13843_v56  ;;  %vm2380_vm3 = vcmask 392448   ;;  %v15330_v56 = vld [vmem:[#allocation6 + $0x478] sm:$0xff]  }
 0x245   : > { %v2097_v54 = vadd.f32 %v2096_v33, %v1936_v5  ;;  %v2236_v34 = vsel %vm2172_vm2, %v2094_v10, %v2204_v11  ;;  %v2207_v22 = vmul.f32 0.2, %v2105_v6  ;;  %vm2175_vm5 = vcmp.gt.f32.partialorder %v2105_v6, 0.0  ;;  %v18326_v11 = vld [vmem:[#allocation56_spill] sm:$0xff] }
 0x246   : > { %v11465_v51 = vpop.f32.mrf.mxu1  ;;  %v13436_v59 = vpop.f32.mrf.mxu0  ;;  %2314 = vrot.lane.b32.xlu1 %v2235_v18, %s14260_s18  ;;  %2316 = vrot.lane.b32.xlu0 %v2236_v34, %s14260_s18  ;;  %v11464_v58 = vadd.f32 %v11463_v27, %v15279_v43  ;;  %v18325_v27 = vld [vmem:[#allocation53_spill] sm:$0xff] }
 0x247   : > { %vm2173_vm4 = vcmp.gt.f32.partialorder %v2097_v54, 0.0  ;;  %v2205_v3 = vmul.f32 0.2, %v2097_v54  ;;  %v2118_v1 = vadd.f32 %v13436_v59, %v1957_v60  ;;  %v2239_v52 = vsel %vm2175_vm5, %v2105_v6, %v2207_v22  ;;  %v18327_v6 = vld [vmem:[#allocation54_spill] sm:$0xff] }
 0x248   : > { %v11466_v55 = vpop.f32.mrf.mxu1  ;;  %v2109_v61 = vpop.f32.mrf.mxu0  ;;  %v1965_v15 = vadd.f32 %v11464_v58, %v18325_v27  ;;  %v13848_v27 = vld [vmem:[#allocation6 + $0x388] sm:$0xff]  }
 0x249   : > { %v2110_v47 = vadd.f32 %v2109_v61, %v1949_v37  ;;  %v2237_v25 = vsel %vm2173_vm4, %v2097_v54, %v2205_v3  ;;  %v2210_v24 = vmul.f32 0.2, %v2118_v1  ;;  %vm2178_vm7 = vcmp.gt.f32.partialorder %v2118_v1, 0.0 }
 0x24a   : > { %v11468_v45 = vpop.f32.mrf.mxu1  ;;  %v13437_v30 = vpop.f32.mrf.mxu0  ;;  %2318 = vrot.lane.b32.xlu1 %v2237_v25, %s14260_s18  ;;  %2320 = vrot.lane.b32.xlu0 %v2238_v29, %s14260_s18  ;;  %v11467_v43 = vadd.f32 %v11466_v55, %v11465_v51 }
 0x24b   : > { %v2208_v9 = vmul.f32 0.2, %v2110_v47  ;;  %vm2176_vm6 = vcmp.gt.f32.partialorder %v2110_v47, 0.0  ;;  %v2121_v42 = vadd.f32 %v13437_v30, %v1960_v62  ;;  %v2242_v40 = vsel %vm2178_vm7, %v2118_v1, %v2210_v24 }
 0x24c   : > { %v11469_v26 = vpop.f32.mrf.mxu1  ;;  %v2112_v32 = vpop.f32.mrf.mxu0  ;;  %v1968_v55 = vadd.f32 %v11467_v43, %v18327_v6  ;;  %v13847_v43 = vld [vmem:[#allocation6 + $0x350] sm:$0xff]  }
 0x24d   : > { %v11470_v23 = vadd.f32 %v11469_v26, %v11468_v45  ;;  %v2113_v14 = vadd.f32 %v2112_v32, %v1952_v50  ;;  %v2240_v39 = vsel %vm2176_vm6, %v2110_v47, %v2208_v9  ;;  %v2211_v2 = vmul.f32 0.2, %v2121_v42  ;;  %v18329_v50 = vld [vmem:[#allocation58_spill] sm:$0xff] }
 0x24e   : > { %v11471_v44 = vpop.f32.mrf.mxu1  ;;  %v13440_v36 = vpop.f32.mrf.mxu0  ;;  %2322 = vrot.lane.b32.xlu1 %v2239_v52, %s14260_s18  ;;  %2324 = vrot.lane.b32.xlu0 %v2240_v39, %s14260_s18  ;;  %vm2179_vm9 = vcmp.gt.f32.partialorder %v2121_v42, 0.0  ;;  %v13844_v39 = vld [vmem:[#allocation6 + $0x398] sm:$0xff]  }
 0x24f   : > { %v1973_v48 = vadd.f32 %v11470_v23, %v18324_v38  ;;  %vm2177_vm8 = vcmp.gt.f32.partialorder %v2113_v14, 0.0  ;;  %v2209_v8 = vmul.f32 0.2, %v2113_v14  ;;  %v2243_v45 = vsel %vm2179_vm9, %v2121_v42, %v2211_v2  ;;  %11742 = vmatprep.subr.bf16.mxu1 %v13844_v39 }
 0x250   : > { %v11472_v19 = vpop.f32.mrf.mxu1  ;;  %v2125_v31 = vpop.f32.mrf.mxu0 }
 0x251   : > { %v11473_v35 = vadd.f32 %v11472_v19, %v11471_v44  ;;  %v2134_v10 = vadd.f32 %v13440_v36, %v1973_v48  ;;  %v2126_v20 = vadd.f32 %v2125_v31, %v1965_v15  ;;  %v2241_v53 = vsel %vm2177_vm8, %v2113_v14, %v2209_v8  ;;  %v13849_v15 = vld [vmem:[#allocation6 + $0x348] sm:$0xff]   ;;  %v13850_v8 = vld [vmem:[#allocation6 + $0x438] sm:$0xff]  }
 0x252   : > { %v11474_v41 = vpop.f32.mrf.mxu1  ;;  %v13441_v5 = vpop.f32.mrf.mxu0  ;;  %2326 = vrot.lane.b32.xlu1 %v2241_v53, %s14260_s18  ;;  %2328 = vrot.lane.b32.xlu0 %v2242_v40, %s14260_s18 }
 0x253   : > { %v1976_v0 = vadd.f32 %v11473_v35, %v18326_v11  ;;  %v2212_v17 = vmul.f32 0.2, %v2126_v20  ;;  %vm2180_vm10 = vcmp.gt.f32.partialorder %v2126_v20, 0.0  ;;  %v2214_v33 = vmul.f32 0.2, %v2134_v10  ;;  %11846 = vmatprep.subr.bf16.mxu0 %v13850_v8  ;;  %v2510_v11 = vld [vmem:[#allocation2 + $0xa] sm:$0xff] }
 0x254   : > { %v11475_v13 = vpop.f32.mrf.mxu1  ;;  %v2128_v34 = vpop.f32.mrf.mxu0  ;;  %vm2182_vm11 = vcmp.gt.f32.partialorder %v2134_v10, 0.0  ;;  %v13863_v8 = vld [vmem:[#allocation6 + $0x3d0] sm:$0xff]  }
 0x255   : > { %v11476_v51 = vadd.f32 %v11475_v13, %v11474_v41  ;;  %v2137_v54 = vadd.f32 %v13441_v5, %v1976_v0  ;;  %v2129_v16 = vadd.f32 %v2128_v34, %v1968_v55  ;;  %v2244_v59 = vsel %vm2180_vm10, %v2126_v20, %v2212_v17  ;;  %v13845_v41 = vld [vmem:[#allocation6 + $0x358] sm:$0xff]   ;;  %v13856_v13 = vld [vmem:[#allocation6 + $0x340] sm:$0xff]  }
 0x256   : > { %v11477_v12 = vpop.f32.mrf.mxu1  ;;  %v13444_v37 = vpop.f32.mrf.mxu0  ;;  %2330 = vrot.lane.b32.xlu1 %v2243_v45, %s14260_s18  ;;  %2332 = vrot.lane.b32.xlu0 %v2244_v59, %s14260_s18  ;;  %v2246_v29 = vsel %vm2182_vm11, %v2134_v10, %v2214_v33  ;;  %v13854_v10 = vld [vmem:[#allocation6 + $0x380] sm:$0xff]  }
 0x257   : > { %v1981_v60 = vadd.f32 %v11476_v51, %v18328_v7  ;;  %vm2181_vm12 = vcmp.gt.f32.partialorder %v2129_v16, 0.0  ;;  %v2213_v3 = vmul.f32 0.2, %v2129_v16  ;;  %v2215_v22 = vmul.f32 0.2, %v2137_v54  ;;  %11743 = vmatpush3.bf16.msra.mxu1 %v13845_v41  ;;  %v13852_v7 = vld [vmem:[#allocation6 + $0x430] sm:$0xff]  }
 0x258   : > { %v11478_v18 = vpop.f32.mrf.mxu1  ;;  %v2141_v61 = vpop.f32.mrf.mxu0  ;;  %vm2183_vm13 = vcmp.gt.f32.partialorder %v2137_v54, 0.0 }
 0x259   : > { %v11479_v21 = vadd.f32 %v11478_v18, %v11477_v12  ;;  %v2142_v47 = vadd.f32 %v2141_v61, %v1981_v60  ;;  %v2245_v25 = vsel %vm2181_vm12, %v2129_v16, %v2213_v3  ;;  %v2247_v62 = vsel %vm2183_vm13, %v2137_v54, %v2215_v22  ;;  %v2509_v12 = vld [vmem:[#allocation2 + $0x2] sm:$0xff] }
 0x25a   : > { %v11480_v49 = vpop.f32.mrf.mxu1  ;;  %v13445_v44 = vpop.f32.mrf.mxu0  ;;  %2334 = vrot.lane.b32.xlu1 %v2245_v25, %s14260_s18  ;;  %2336 = vrot.lane.b32.xlu0 %v2246_v29, %s14260_s18  ;;  %v2541_v54 = vpack.c.bf16 %v2510_v11, %v2509_v12  ;;  %v13853_v22 = vld [vmem:[#allocation6 + $0x3f0] sm:$0xff]   ;;  %v13855_v29 = vld [vmem:[#allocation6 + $0x428] sm:$0xff]  }
 0x25b   : > { %v2216_v57 = vmul.f32 0.2, %v2142_v47  ;;  %v1984_v58 = vadd.f32 %v11479_v21, %v18329_v50  ;;  %vm2184_vm14 = vcmp.gt.f32.partialorder %v2142_v47, 0.0  ;;  %v13857_v50 = vld [vmem:[#allocation6 + $0x3e8] sm:$0xff]  }
 0x25c   : > { %v11481_v26 = vpop.f32.mrf.mxu1  ;;  %v2144_v4 = vpop.f32.mrf.mxu0 }
 0x25d   : > { %v11482_v1 = vadd.f32 %v11481_v26, %v11480_v49  ;;  %v2145_v52 = vadd.f32 %v2144_v4, %v1984_v58  ;;  %v2248_v24 = vsel %vm2184_vm14, %v2142_v47, %v2216_v57  ;;  %v13851_v49 = vld [vmem:[#allocation6 + $0x3f8] sm:$0xff]   ;;  %v13858_v4 = vld [vmem:[#allocation6 + $0x420] sm:$0xff]  }
 0x25e   : > { %v11483_v23 = vpop.f32.mrf.mxu1  ;;  %2338 = vrot.lane.b32.xlu1 %v2247_v62, %s14260_s18  ;;  %2340 = vrot.lane.b32.xlu0 %v2248_v24, %s14260_s18 }
 0x25f   : > { %v1989_v30 = vadd.f32 %v11482_v1, %v15184_v46  ;;  %vm2185_vm15 = vcmp.gt.f32.partialorder %v2145_v52, 0.0  ;;  %v2217_v14 = vmul.f32 0.2, %v2145_v52 }
 0x260   : > { %v11484_v9 = vpop.f32.mrf.mxu1 }
 0x261   : > { %v2150_v19 = vadd.f32 %v13444_v37, %v1989_v30  ;;  %v11485_v32 = vadd.f32 %v11484_v9, %v11483_v23  ;;  %v2249_v35 = vsel %vm2185_vm15, %v2145_v52, %v2217_v14 }
 0x262   : > { %2342 = vrot.lane.b32.xlu1 %v2249_v35, %s14260_s18 }
 0x263   : > { %v1992_v42 = vadd.f32 %v11485_v32, %v15197_v28  ;;  %vm2186_vm1 = vcmp.gt.f32.partialorder %v2150_v19, 0.0  ;;  %v2218_v46 = vmul.f32 0.2, %v2150_v19  ;;  %v13846_v28 = vld [vmem:[#allocation6 + $0x390] sm:$0xff]   ;;  %v13859_v32 = vld [vmem:[#allocation6 + $0x3e0] sm:$0xff]  }
 0x264   : > { %11744 = vmatprep.subr.bf16.mxu1 %v13846_v28 }
 0x265   : > { %v2153_v63 = vadd.f32 %v13445_v44, %v1992_v42  ;;  %v2250_v38 = vsel %vm2186_vm1, %v2150_v19, %v2218_v46  ;;  %11745 = vmatpush3.bf16.msra.mxu1 %v13847_v43  ;;  %v13860_v42 = vld [vmem:[#allocation6 + $0x418] sm:$0xff]   ;;  %v13862_v43 = vld [vmem:[#allocation6 + $0x410] sm:$0xff]  }
 0x266   : > { %2344 = vrot.lane.b32.xlu0 %v2250_v38, %s14260_s18  ;;  %11746 = vmatprep.subr.bf16.mxu1 %v13848_v27 }
 0x267   : > { %vm2187_vm2 = vcmp.gt.f32.partialorder %v2153_v63, 0.0  ;;  %v2219_v48 = vmul.f32 0.2, %v2153_v63 }
 0x269   : > { %v2251_v36 = vsel %vm2187_vm2, %v2153_v63, %v2219_v48  ;;  %11747 = vmatpush3.bf16.msra.mxu1 %v13849_v15  ;;  %v13861_v48 = vld [vmem:[#allocation6 + $0x3d8] sm:$0xff]  }
 0x26a   : > { %2346 = vrot.lane.b32.xlu1 %v2251_v36, %s14260_s18  ;;  %11748 = vmatprep.subr.bf16.mxu1 %v13854_v10 }
 0x26d   : > { %11749 = vmatpush3.bf16.msra.mxu1 %v13856_v13 }
 0x26e   : > { %13446 = vmatprep.subr.bf16.mxu1 %v15330_v56 }
 0x296   : > { %v2289_v31 = vpop.permute.xlu1 %2288 }
 0x297   : > { %2383 = vst.msk [vmem:[#allocation2 + $0x31] sm:$0xff] %vm2380_vm3, %v2289_v31  ;;  %v13864_v31 = vld [vmem:[#allocation6 + $0x408] sm:$0xff]  }
 0x298   : > { %v2285_v2 = vpop.permute.xlu0 %2284 }
 0x299   : > { %2381 = vst.msk [vmem:[#allocation2 + $0x19] sm:$0xff] %vm2380_vm3, %v2285_v2 }
 0x29a   : > { %v2291_v20 = vpop.permute.xlu1 %2290 }
 0x29b   : > { %2384 = vst.msk [vmem:[#allocation2 + $0x39] sm:$0xff] %vm2380_vm3, %v2291_v20 }
 0x29c   : > { %v2287_v53 = vpop.permute.xlu0 %2286 }
 0x29d   : > { %2382 = vst.msk [vmem:[#allocation2 + $0x21] sm:$0xff] %vm2380_vm3, %v2287_v53 }
 0x29e   : > { %v2465_v45 = vld [vmem:[#allocation2 + $0x31] sm:$0xff] }
 0x29f   : > { %v2559_v59 = vld [vmem:[#allocation2 + $0x30] sm:$0xff] }
 0x2a0   : > { %v2293_v40 = vpop.permute.xlu0 %2292  ;;  %v2463_v0 = vld [vmem:[#allocation2 + $0x19] sm:$0xff] }
 0x2a1   : > { %2385 = vst.msk [vmem:[#allocation2 + $0x49] sm:$0xff] %vm2380_vm3, %v2293_v40  ;;  %v2557_v5 = vld [vmem:[#allocation2 + $0x18] sm:$0xff] }
 0x2a2   : > { %v2466_v51 = vld [vmem:[#allocation2 + $0x39] sm:$0xff] }
 0x2a3   : > { %v2560_v18 = vld [vmem:[#allocation2 + $0x38] sm:$0xff]  ;;  %v15339_v37 = vpack.c.bf16 %v2466_v51, %v2465_v45 }
 0x2a4   : > { %v2295_v17 = vpop.permute.xlu1 %2294  ;;  %v2297_v6 = vpop.permute.xlu0 %2296  ;;  %v2464_v55 = vld [vmem:[#allocation2 + $0x21] sm:$0xff]  ;;  %v15341_v21 = vpack.c.bf16 %v2560_v18, %v2559_v59  ;;  %v2513_v52 = vld [vmem:[#allocation2 + $0x32] sm:$0xff] }
 0x2a5   : > { %v2558_v33 = vld [vmem:[#allocation2 + $0x20] sm:$0xff]  ;;  %2386 = vst.msk [vmem:[#allocation2 + $0x51] sm:$0xff] %vm2380_vm3, %v2295_v17  ;;  %2387 = vst.msk [vmem:[#allocation2 + $0x61] sm:$0xff] %vm2380_vm3, %v2297_v6  ;;  %v15336_v34 = vpack.c.bf16 %v2464_v55, %v2463_v0  ;;  %v13867_v6 = vld [vmem:[#allocation6 + $0x400] sm:$0xff]  }
 0x2a6   : > { %v2589_v16 = vpack.c.bf16 %v2558_v33, %v2557_v5  ;;  %v2511_v26 = vld [vmem:[#allocation2 + $0x1a] sm:$0xff]  ;;  %v2512_v61 = vld [vmem:[#allocation2 + $0x22] sm:$0xff] }
 0x2a7   : > { %3466 = vmatprep.mubr.bf16.mxu1 %v15336_v34  ;;  %v15349_v44 = vpack.c.bf16 %v2512_v61, %v2511_v26  ;;  %v2514_v24 = vld [vmem:[#allocation2 + $0x3a] sm:$0xff] }
 0x2a8   : > { %3619 = vmatprep.mubr.bf16.mxu0 %v2589_v16  ;;  %v2299_v60 = vpop.permute.xlu1 %2298  ;;  %3467 = vmatmul.mubr.bf16.gmra.mxu1 %v2589_v16  ;;  %v2301_v3 = vpop.permute.xlu0 %2300  ;;  %v2467_v30 = vld [vmem:[#allocation2 + $0x49] sm:$0xff]  ;;  %v15363_v35 = vpack.c.bf16 %v2514_v24, %v2513_v52  ;;  %v13866_v5 = vld [vmem:[#allocation6 + $0x3c8] sm:$0xff]  }
 0x2a9   : > { %3620 = vmatmul.mubr.bf16.vlgmr.msra.gmra.mxu0 %v2541_v54  ;;  %2388 = vst.msk [vmem:[#allocation2 + $0x69] sm:$0xff] %vm2380_vm3, %v2299_v60  ;;  %2389 = vst.msk [vmem:[#allocation2 + $0x79] sm:$0xff] %vm2380_vm3, %v2301_v3  ;;  %3474 = vmatprep.mubr.bf16.mxu1 %v15339_v37  ;;  %v2561_v57 = vld [vmem:[#allocation2 + $0x48] sm:$0xff]  ;;  %v13868_v54 = vld [vmem:[#allocation6 + $0x3c0] sm:$0xff]  }
 0x2aa   : > { %3627 = vmatprep.mubr.bf16.mxu0 %v15341_v21  ;;  %11847 = vmatpush3.bf16.msra.mxu0 %v13851_v49 }
 0x2ab   : > { %11848 = vmatprep.subr.bf16.mxu0 %v13852_v7 }
 0x2ac   : > { %v2303_v1 = vpop.permute.xlu1 %2302  ;;  %v2305_v47 = vpop.permute.xlu0 %2304  ;;  %v2468_v25 = vld [vmem:[#allocation2 + $0x51] sm:$0xff]  ;;  %v2469_v41 = vld [vmem:[#allocation2 + $0x61] sm:$0xff] }
 0x2ad   : > { %v2562_v23 = vld [vmem:[#allocation2 + $0x50] sm:$0xff]  ;;  %2390 = vst.msk [vmem:[#allocation2 + $0x81] sm:$0xff] %vm2380_vm3, %v2303_v1  ;;  %2391 = vst.msk [vmem:[#allocation2 + $0x91] sm:$0xff] %vm2380_vm3, %v2305_v47  ;;  %v15351_v58 = vpack.c.bf16 %v2468_v25, %v2467_v30  ;;  %v2563_v38 = vld [vmem:[#allocation2 + $0x60] sm:$0xff] }
 0x2ae   : > { %11849 = vmatpush3.bf16.msra.mxu0 %v13853_v22  ;;  %v15353_v9 = vpack.c.bf16 %v2562_v23, %v2561_v57  ;;  %v2515_v10 = vld [vmem:[#allocation2 + $0x4a] sm:$0xff]  ;;  %v2516_v13 = vld [vmem:[#allocation2 + $0x52] sm:$0xff] }
 0x2af   : > { %11850 = vmatprep.subr.bf16.mxu0 %v13855_v29  ;;  %v15377_v12 = vpack.c.bf16 %v2516_v13, %v2515_v10 }
 0x2b0   : > { %v2307_v62 = vpop.permute.xlu1 %2306  ;;  %3475 = vmatmul.mubr.bf16.gmra.mxu1 %v15341_v21  ;;  %v2309_v19 = vpop.permute.xlu0 %2308  ;;  %v2470_v39 = vld [vmem:[#allocation2 + $0x69] sm:$0xff]  ;;  %v2471_v11 = vld [vmem:[#allocation2 + $0x79] sm:$0xff] }
 0x2b1   : > { %3628 = vmatmul.mubr.bf16.gmra.mxu0 %v15349_v44  ;;  %2392 = vst.msk [vmem:[#allocation2 + $0x99] sm:$0xff] %vm2380_vm3, %v2307_v62  ;;  %2393 = vst.msk [vmem:[#allocation2 + $0xa9] sm:$0xff] %vm2380_vm3, %v2309_v19  ;;  %3482 = vmatprep.mubr.bf16.mxu1 %v15351_v58  ;;  %v2564_v63 = vld [vmem:[#allocation2 + $0x68] sm:$0xff]  ;;  %v15365_v36 = vpack.c.bf16 %v2470_v39, %v2469_v41  ;;  %v2565_v0 = vld [vmem:[#allocation2 + $0x78] sm:$0xff] }
 0x2b2   : > { %3635 = vmatprep.mubr.bf16.mxu0 %v15353_v9  ;;  %11851 = vmatpush3.bf16.msra.mxu0 %v13857_v50  ;;  %v15367_v28 = vpack.c.bf16 %v2564_v63, %v2563_v38  ;;  %v2517_v18 = vld [vmem:[#allocation2 + $0x62] sm:$0xff]  ;;  %v2518_v16 = vld [vmem:[#allocation2 + $0x6a] sm:$0xff] }
 0x2b3   : > { %11852 = vmatprep.subr.bf16.mxu0 %v13858_v4  ;;  %v15391_v60 = vpack.c.bf16 %v2518_v16, %v2517_v18 }
 0x2b4   : > { %v2311_v14 = vpop.permute.xlu1 %2310  ;;  %v2313_v46 = vpop.permute.xlu0 %2312  ;;  %v2472_v53 = vld [vmem:[#allocation2 + $0x81] sm:$0xff]  ;;  %v2473_v3 = vld [vmem:[#allocation2 + $0x91] sm:$0xff] }
 0x2b5   : > { %2394 = vst.msk [vmem:[#allocation2 + $0xb1] sm:$0xff] %vm2380_vm3, %v2311_v14  ;;  %2395 = vst.msk [vmem:[#allocation2 + $0xc1] sm:$0xff] %vm2380_vm3, %v2313_v46  ;;  %v2566_v40 = vld [vmem:[#allocation2 + $0x80] sm:$0xff]  ;;  %v15379_v51 = vpack.c.bf16 %v2472_v53, %v2471_v11  ;;  %v2567_v22 = vld [vmem:[#allocation2 + $0x90] sm:$0xff] }
 0x2b6   : > { %11853 = vmatpush3.bf16.msra.mxu0 %v13859_v32  ;;  %v15381_v17 = vpack.c.bf16 %v2566_v40, %v2565_v0  ;;  %v2519_v47 = vld [vmem:[#allocation2 + $0x7a] sm:$0xff]  ;;  %v2520_v25 = vld [vmem:[#allocation2 + $0x82] sm:$0xff] }
 0x2b7   : > { %11854 = vmatprep.subr.bf16.mxu0 %v13860_v42  ;;  %v15405_v4 = vpack.c.bf16 %v2520_v25, %v2519_v47 }
 0x2b8   : > { %v2315_v27 = vpop.permute.xlu1 %2314  ;;  %3483 = vmatmul.mubr.bf16.gmra.mxu1 %v15353_v9  ;;  %v2317_v15 = vpop.permute.xlu0 %2316  ;;  %v2474_v49 = vld [vmem:[#allocation2 + $0x99] sm:$0xff]  ;;  %v2475_v62 = vld [vmem:[#allocation2 + $0xa9] sm:$0xff] }
 0x2b9   : > { %3636 = vmatmul.mubr.bf16.gmra.mxu0 %v15363_v35  ;;  %2396 = vst.msk [vmem:[#allocation2 + $0xc9] sm:$0xff] %vm2380_vm3, %v2315_v27  ;;  %2397 = vst.msk [vmem:[#allocation2 + $0xd9] sm:$0xff] %vm2380_vm3, %v2317_v15  ;;  %3490 = vmatprep.mubr.bf16.mxu1 %v15365_v36  ;;  %v2568_v7 = vld [vmem:[#allocation2 + $0x98] sm:$0xff]  ;;  %v15393_v26 = vpack.c.bf16 %v2474_v49, %v2473_v3  ;;  %v2569_v19 = vld [vmem:[#allocation2 + $0xa8] sm:$0xff] }
 0x2ba   : > { %3643 = vmatprep.mubr.bf16.mxu0 %v15367_v28  ;;  %11855 = vmatpush3.bf16.msra.mxu0 %v13861_v48  ;;  %v15395_v61 = vpack.c.bf16 %v2568_v7, %v2567_v22  ;;  %v2521_v14 = vld [vmem:[#allocation2 + $0x92] sm:$0xff]  ;;  %v2522_v46 = vld [vmem:[#allocation2 + $0x9a] sm:$0xff] }
 0x2bb   : > { %11856 = vmatprep.subr.bf16.mxu0 %v13862_v43  ;;  %v15419_v48 = vpack.c.bf16 %v2522_v46, %v2521_v14 }
 0x2bc   : > { %v2319_v2 = vpop.permute.xlu1 %2318  ;;  %v2321_v20 = vpop.permute.xlu0 %2320  ;;  %v2476_v57 = vld [vmem:[#allocation2 + $0xb1] sm:$0xff]  ;;  %v2477_v43 = vld [vmem:[#allocation2 + $0xc1] sm:$0xff] }
 0x2bd   : > { %2398 = vst.msk [vmem:[#allocation2 + $0xe1] sm:$0xff] %vm2380_vm3, %v2319_v2  ;;  %2399 = vst.msk [vmem:[#allocation2 + $0xf1] sm:$0xff] %vm2380_vm3, %v2321_v20  ;;  %v2570_v50 = vld [vmem:[#allocation2 + $0xb0] sm:$0xff]  ;;  %v15407_v32 = vpack.c.bf16 %v2476_v57, %v2475_v62  ;;  %v2571_v27 = vld [vmem:[#allocation2 + $0xc0] sm:$0xff] }
 0x2be   : > { %11857 = vmatpush3.bf16.msra.mxu0 %v13863_v8  ;;  %v15409_v52 = vpack.c.bf16 %v2570_v50, %v2569_v19  ;;  %v2523_v13 = vld [vmem:[#allocation2 + $0xaa] sm:$0xff] }
 0x2bf   : > { %11858 = vmatprep.subr.bf16.mxu0 %v13864_v31  ;;  %v2524_v31 = vld [vmem:[#allocation2 + $0xb2] sm:$0xff] }
 0x2c0   : > { %v2323_v55 = vpop.permute.xlu1 %2322  ;;  %3491 = vmatmul.mubr.bf16.gmra.mxu1 %v15367_v28  ;;  %v2325_v33 = vpop.permute.xlu0 %2324  ;;  %v2478_v63 = vld [vmem:[#allocation2 + $0xc9] sm:$0xff]  ;;  %v15430_v11 = vpack.c.bf16 %v2524_v31, %v2523_v13  ;;  %v2479_v0 = vld [vmem:[#allocation2 + $0xd9] sm:$0xff] }
 0x2c1   : > { %3644 = vmatmul.mubr.bf16.gmra.mxu0 %v15377_v12  ;;  %2400 = vst.msk [vmem:[#allocation2 + $0xf9] sm:$0xff] %vm2380_vm3, %v2323_v55  ;;  %2401 = vst.msk [vmem:[#allocation2 + $0x109] sm:$0xff] %vm2380_vm3, %v2325_v33  ;;  %3498 = vmatprep.mubr.bf16.mxu1 %v15379_v51  ;;  %v2572_v41 = vld [vmem:[#allocation2 + $0xc8] sm:$0xff]  ;;  %v15421_v15 = vpack.c.bf16 %v2478_v63, %v2477_v43 }
 0x2c2   : > { %3651 = vmatprep.mubr.bf16.mxu0 %v15381_v17  ;;  %11859 = vmatpush3.bf16.msra.mxu0 %v13866_v5  ;;  %v15423_v8 = vpack.c.bf16 %v2572_v41, %v2571_v27  ;;  %v2573_v5 = vld [vmem:[#allocation2 + $0xd8] sm:$0xff]  ;;  %v2526_v18 = vld [vmem:[#allocation2 + $0xca] sm:$0xff] }
 0x2c3   : > { %11860 = vmatprep.subr.bf16.mxu0 %v13867_v6 }
 0x2c4   : > { %v2327_v45 = vpop.permute.xlu1 %2326  ;;  %v2329_v59 = vpop.permute.xlu0 %2328  ;;  %v2480_v20 = vld [vmem:[#allocation2 + $0xe1] sm:$0xff]  ;;  %v2481_v49 = vld [vmem:[#allocation2 + $0xf1] sm:$0xff] }
 0x2c5   : > { %2402 = vst.msk [vmem:[#allocation2 + $0x111] sm:$0xff] %vm2380_vm3, %v2327_v45  ;;  %2403 = vst.msk [vmem:[#allocation2 + $0x121] sm:$0xff] %vm2380_vm3, %v2329_v59  ;;  %v2574_v53 = vld [vmem:[#allocation2 + $0xe0] sm:$0xff]  ;;  %v15434_v55 = vpack.c.bf16 %v2480_v20, %v2479_v0  ;;  %v2575_v7 = vld [vmem:[#allocation2 + $0xf0] sm:$0xff] }
 0x2c6   : > { %11861 = vmatpush3.bf16.msra.mxu0 %v13868_v54  ;;  %v15436_v33 = vpack.c.bf16 %v2574_v53, %v2573_v5  ;;  %v2525_v54 = vld [vmem:[#allocation2 + $0xc2] sm:$0xff] }
 0x2c7   : > { %v15442_v59 = vpack.c.bf16 %v2526_v18, %v2525_v54 }
 0x2c8   : > { %v2331_v29 = vpop.permute.xlu1 %2330  ;;  %3499 = vmatmul.mubr.bf16.gmra.mxu1 %v15381_v17  ;;  %v2333_v1 = vpop.permute.xlu0 %2332  ;;  %v2482_v16 = vld [vmem:[#allocation2 + $0xf9] sm:$0xff]  ;;  %v2577_v57 = vld [vmem:[#allocation2 + $0x108] sm:$0xff] }
 0x2c9   : > { %3652 = vmatmul.mubr.bf16.gmra.mxu0 %v15391_v60  ;;  %2404 = vst.msk [vmem:[#allocation2 + $0x129] sm:$0xff] %vm2380_vm3, %v2331_v29  ;;  %2405 = vst.msk [vmem:[#allocation2 + $0x139] sm:$0xff] %vm2380_vm3, %v2333_v1  ;;  %3506 = vmatprep.mubr.bf16.mxu1 %v15393_v26  ;;  %v2576_v45 = vld [vmem:[#allocation2 + $0xf8] sm:$0xff]  ;;  %v15444_v3 = vpack.c.bf16 %v2482_v16, %v2481_v49  ;;  %v2528_v1 = vld [vmem:[#allocation2 + $0xe2] sm:$0xff] }
 0x2ca   : > { %3659 = vmatprep.mubr.bf16.mxu0 %v15395_v61  ;;  %v15446_v22 = vpack.c.bf16 %v2576_v45, %v2575_v7  ;;  %v2527_v29 = vld [vmem:[#allocation2 + $0xda] sm:$0xff]  ;;  %v2529_v19 = vld [vmem:[#allocation2 + $0xf2] sm:$0xff] }
 0x2cc   : > { %v2335_v23 = vpop.permute.xlu1 %2334  ;;  %v2337_v30 = vpop.permute.xlu0 %2336  ;;  %v2484_v47 = vld [vmem:[#allocation2 + $0x111] sm:$0xff]  ;;  %v2579_v63 = vld [vmem:[#allocation2 + $0x120] sm:$0xff] }
 0x2cd   : > { %2406 = vst.msk [vmem:[#allocation2 + $0x141] sm:$0xff] %vm2380_vm3, %v2335_v23  ;;  %2407 = vst.msk [vmem:[#allocation2 + $0x151] sm:$0xff] %vm2380_vm3, %v2337_v30  ;;  %v2578_v25 = vld [vmem:[#allocation2 + $0x110] sm:$0xff]  ;;  %v15452_v23 = vpack.c.bf16 %v2528_v1, %v2527_v29 }
 0x2ce   : > { %v2483_v30 = vld [vmem:[#allocation2 + $0x109] sm:$0xff]  ;;  %v15456_v62 = vpack.c.bf16 %v2578_v25, %v2577_v57  ;;  %v2532_v27 = vld [vmem:[#allocation2 + $0x112] sm:$0xff] }
 0x2cf   : > { %v15454_v50 = vpack.c.bf16 %v2484_v47, %v2483_v30  ;;  %v2531_v43 = vld [vmem:[#allocation2 + $0x10a] sm:$0xff] }
 0x2d0   : > { %v2339_v24 = vpop.permute.xlu1 %2338  ;;  %3507 = vmatmul.mubr.bf16.gmra.mxu1 %v15395_v61  ;;  %v2341_v42 = vpop.permute.xlu0 %2340  ;;  %v2580_v14 = vld [vmem:[#allocation2 + $0x128] sm:$0xff]  ;;  %v15472_v31 = vpack.c.bf16 %v2532_v27, %v2531_v43  ;;  %v2581_v20 = vld [vmem:[#allocation2 + $0x138] sm:$0xff] }
 0x2d1   : > { %3660 = vmatmul.mubr.bf16.gmra.mxu0 %v15405_v4  ;;  %2408 = vst.msk [vmem:[#allocation2 + $0x159] sm:$0xff] %vm2380_vm3, %v2339_v24  ;;  %2409 = vst.msk [vmem:[#allocation2 + $0x169] sm:$0xff] %vm2380_vm3, %v2341_v42  ;;  %3514 = vmatprep.mubr.bf16.mxu1 %v15407_v32  ;;  %v2530_v24 = vld [vmem:[#allocation2 + $0xfa] sm:$0xff]  ;;  %v2486_v42 = vld [vmem:[#allocation2 + $0x129] sm:$0xff] }
 0x2d2   : > { %3667 = vmatprep.mubr.bf16.mxu0 %v15409_v52  ;;  %v15462_v46 = vpack.c.bf16 %v2530_v24, %v2529_v19  ;;  %v2533_v0 = vld [vmem:[#allocation2 + $0x122] sm:$0xff]  ;;  %v2534_v5 = vld [vmem:[#allocation2 + $0x12a] sm:$0xff] }
 0x2d3   : > { %v15482_v16 = vpack.c.bf16 %v2534_v5, %v2533_v0  ;;  %v13869_v5 = vld [vmem:[#allocation6 + $0x470] sm:$0xff]  }
 0x2d4   : > { %v2343_v39 = vpop.permute.xlu1 %2342  ;;  %v2582_v13 = vld [vmem:[#allocation2 + $0x140] sm:$0xff]  ;;  %v2489_v45 = vld [vmem:[#allocation2 + $0x151] sm:$0xff] }
 0x2d5   : > { %2410 = vst.msk [vmem:[#allocation2 + $0x171] sm:$0xff] %vm2380_vm3, %v2343_v39  ;;  %v2485_v39 = vld [vmem:[#allocation2 + $0x121] sm:$0xff]  ;;  %v2583_v49 = vld [vmem:[#allocation2 + $0x150] sm:$0xff] }
 0x2d6   : > { %v11526_v2 = vpop.f32.mrf.mxu1  ;;  %v15464_v41 = vpack.c.bf16 %v2486_v42, %v2485_v39  ;;  %v2535_v1 = vld [vmem:[#allocation2 + $0x13a] sm:$0xff]  ;;  %v2536_v47 = vld [vmem:[#allocation2 + $0x142] sm:$0xff] }
 0x2d7   : > { %v15492_v57 = vpack.c.bf16 %v2536_v47, %v2535_v1 }
 0x2d8   : > { %v2345_v38 = vpop.permute.xlu0 %2344  ;;  %3515 = vmatmul.mubr.bf16.gmra.mxu1 %v15409_v52  ;;  %v11527_v40 = vpop.f32.mrf.mxu1  ;;  %v2490_v54 = vld [vmem:[#allocation2 + $0x159] sm:$0xff]  ;;  %v2491_v19 = vld [vmem:[#allocation2 + $0x169] sm:$0xff] }
 0x2d9   : > { %2411 = vst.msk [vmem:[#allocation2 + $0x181] sm:$0xff] %vm2380_vm3, %v2345_v38  ;;  %3668 = vmatmul.mubr.bf16.gmra.mxu0 %v15419_v48  ;;  %3522 = vmatprep.mubr.bf16.mxu1 %v15421_v15  ;;  %v15432_v6 = vadd.f32 %v11527_v40, %v11526_v2  ;;  %v15466_v38 = vpack.c.bf16 %v2580_v14, %v2579_v63  ;;  %v2487_v2 = vld [vmem:[#allocation2 + $0x139] sm:$0xff]  ;;  %v2585_v24 = vld [vmem:[#allocation2 + $0x168] sm:$0xff] }
 0x2da   : > { %3675 = vmatprep.mubr.bf16.mxu0 %v15423_v8  ;;  %v15476_v40 = vpack.c.bf16 %v2582_v13, %v2581_v20  ;;  %v2584_v18 = vld [vmem:[#allocation2 + $0x158] sm:$0xff]  ;;  %v15484_v7 = vpack.c.bf16 %v2490_v54, %v2489_v45 }
 0x2db   : > { %v15486_v29 = vpack.c.bf16 %v2584_v18, %v2583_v49  ;;  %v2537_v39 = vld [vmem:[#allocation2 + $0x152] sm:$0xff]  ;;  %v2538_v63 = vld [vmem:[#allocation2 + $0x15a] sm:$0xff] }
 0x2dc   : > { %v2347_v10 = vpop.permute.xlu1 %2346  ;;  %v2492_v25 = vld [vmem:[#allocation2 + $0x171] sm:$0xff]  ;;  %v15502_v27 = vpack.c.bf16 %v2538_v63, %v2537_v39 }
 0x2dd   : > { %2412 = vst.msk [vmem:[#allocation2 + $0x189] sm:$0xff] %vm2380_vm3, %v2347_v10  ;;  %v2488_v10 = vld [vmem:[#allocation2 + $0x141] sm:$0xff]  ;;  %v2586_v30 = vld [vmem:[#allocation2 + $0x170] sm:$0xff]  ;;  %v15494_v42 = vpack.c.bf16 %v2492_v25, %v2491_v19  ;;  %v13870_v54 = vld [vmem:[#allocation6 + $0x468] sm:$0xff]  }
 0x2de   : > { %v15474_v53 = vpack.c.bf16 %v2488_v10, %v2487_v2  ;;  %v15496_v14 = vpack.c.bf16 %v2586_v30, %v2585_v24  ;;  %v2539_v2 = vld [vmem:[#allocation2 + $0x16a] sm:$0xff]  ;;  %v2540_v20 = vld [vmem:[#allocation2 + $0x172] sm:$0xff] }
 0x2df   : > { %v15510_v0 = vpack.c.bf16 %v2540_v20, %v2539_v2 }
 0x2e0   : > { %3523 = vmatmul.mubr.bf16.gmra.mxu1 %v15423_v8  ;;  %v2587_v10 = vld [vmem:[#allocation2 + $0x180] sm:$0xff] }
 0x2e1   : > { %3676 = vmatmul.mubr.bf16.gmra.mxu0 %v15430_v11  ;;  %3530 = vmatprep.mubr.bf16.mxu1 %v15434_v55 }
 0x2e2   : > { %3683 = vmatprep.mubr.bf16.mxu0 %v15436_v33 }
 0x2e4   : > { %v2588_v43 = vld [vmem:[#allocation2 + $0x188] sm:$0xff] }
 0x2e5   : > { %v15504_v13 = vpack.c.bf16 %v2588_v43, %v2587_v10 }
 0x2e8   : > { %3531 = vmatmul.mubr.bf16.gmra.mxu1 %v15436_v33 }
 0x2e9   : > { %3684 = vmatmul.mubr.bf16.gmra.mxu0 %v15442_v59  ;;  %3538 = vmatprep.mubr.bf16.mxu1 %v15444_v3 }
 0x2ea   : > { %3691 = vmatprep.mubr.bf16.mxu0 %v15446_v22 }
 0x2f0   : > { %3539 = vmatmul.mubr.bf16.gmra.mxu1 %v15446_v22 }
 0x2f1   : > { %3692 = vmatmul.mubr.bf16.gmra.mxu0 %v15452_v23  ;;  %3546 = vmatprep.mubr.bf16.mxu1 %v15454_v50 }
 0x2f2   : > { %3699 = vmatprep.mubr.bf16.mxu0 %v15456_v62 }
 0x2f8   : > { %3547 = vmatmul.mubr.bf16.gmra.mxu1 %v15456_v62 }
 0x2f9   : > { %3700 = vmatmul.mubr.bf16.gmra.mxu0 %v15462_v46  ;;  %3554 = vmatprep.mubr.bf16.mxu1 %v15464_v41 }
 0x2fa   : > { %3707 = vmatprep.mubr.bf16.mxu0 %v15466_v38 }
 0x300   : > { %3555 = vmatmul.mubr.bf16.gmra.mxu1 %v15466_v38 }
 0x301   : > { %3708 = vmatmul.mubr.bf16.gmra.mxu0 %v15472_v31  ;;  %3562 = vmatprep.mubr.bf16.mxu1 %v15474_v53 }
 0x302   : > { %3715 = vmatprep.mubr.bf16.mxu0 %v15476_v40 }
 0x308   : > { %3563 = vmatmul.mubr.bf16.gmra.mxu1 %v15476_v40 }
 0x309   : > { %3716 = vmatmul.mubr.bf16.gmra.mxu0 %v15482_v16  ;;  %3570 = vmatprep.mubr.bf16.mxu1 %v15484_v7 }
 0x30a   : > { %3723 = vmatprep.mubr.bf16.mxu0 %v15486_v29 }
 0x310   : > { %3571 = vmatmul.mubr.bf16.gmra.mxu1 %v15486_v29 }
 0x311   : > { %3724 = vmatmul.mubr.bf16.gmra.mxu0 %v15492_v57  ;;  %3578 = vmatprep.mubr.bf16.mxu1 %v15494_v42 }
 0x312   : > { %3731 = vmatprep.mubr.bf16.mxu0 %v15496_v14 }
 0x318   : > { %3579 = vmatmul.mubr.bf16.gmra.mxu1 %v15496_v14 }
 0x319   : > { %3732 = vmatmul.mubr.bf16.gmra.mxu0 %v15502_v27  ;;  %3780 = vmatprep.mubr.bf16.mxu1 %v15349_v44  ;;  %v13871_v44 = vld [vmem:[#allocation6 + $0x460] sm:$0xff]  }
 0x31a   : > { %3739 = vmatprep.mubr.bf16.mxu0 %v15504_v13 }
 0x320   : > { %3781 = vmatmul.mubr.bf16.vlgmr.msra.gmra.mxu1 %v15336_v34  ;;  %v13872_v34 = vld [vmem:[#allocation6 + $0x458] sm:$0xff]  }
 0x321   : > { %3740 = vmatmul.mubr.bf16.gmra.mxu0 %v15510_v0  ;;  %3788 = vmatprep.mubr.bf16.mxu1 %v15363_v35  ;;  %v13873_v35 = vld [vmem:[#allocation6 + $0x450] sm:$0xff]  }
 0x322   : > { %3941 = vmatprep.mubr.bf16.mxu0 %v15339_v37  ;;  %13447 = vmatpush3.bf16.msra.mxu1 %v15330_v56  ;;  %v13874_v56 = vld [vmem:[#allocation6 + $0x448] sm:$0xff]  }
 0x323   : > { %13448 = vmatprep.subr.bf16.mxu1 %v13869_v5 }
 0x326   : > { %13449 = vmatpush3.bf16.msra.mxu1 %v13869_v5 }
 0x327   : > { %13450 = vmatprep.subr.bf16.mxu1 %v13870_v54 }
 0x328   : > { %3789 = vmatmul.mubr.bf16.gmra.mxu1 %v15339_v37  ;;  %v13875_v37 = vld [vmem:[#allocation6 + $0x440] sm:$0xff]  }
 0x329   : > { %3942 = vmatmul.mubr.bf16.vlgmr.msra.gmra.mxu0 %v15341_v21  ;;  %3796 = vmatprep.mubr.bf16.mxu1 %v15377_v12  ;;  %v11529_v21 = vpop.f32.mrf.mxu1 }
 0x32a   : > { %3949 = vmatprep.mubr.bf16.mxu0 %v15351_v58  ;;  %13451 = vmatpush3.bf16.msra.mxu1 %v13870_v54 }
 0x32b   : > { %13452 = vmatprep.subr.bf16.mxu1 %v13871_v44 }
 0x32e   : > { %13453 = vmatpush3.bf16.msra.mxu1 %v13871_v44 }
 0x32f   : > { %13454 = vmatprep.subr.bf16.mxu1 %v13872_v34 }
 0x330   : > { %3797 = vmatmul.mubr.bf16.gmra.mxu1 %v15351_v58  ;;  %v18330_v58 = vld [vmem:[#allocation45_spill] sm:$0xff] }
 0x331   : > { %3950 = vmatmul.mubr.bf16.gmra.mxu0 %v15353_v9  ;;  %3804 = vmatprep.mubr.bf16.mxu1 %v15391_v60  ;;  %v2992_v9 = vsub.s32 1, %v18330_v58 }
 0x332   : > { %3957 = vmatprep.mubr.bf16.mxu0 %v15365_v36  ;;  %13455 = vmatpush3.bf16.msra.mxu1 %v13872_v34 }
 0x333   : > { %13456 = vmatprep.subr.bf16.mxu1 %v13873_v35 }
 0x336   : > { %13457 = vmatpush3.bf16.msra.mxu1 %v13873_v35 }
 0x337   : > { %13458 = vmatprep.subr.bf16.mxu1 %v13874_v56 }
 0x338   : > { %3805 = vmatmul.mubr.bf16.gmra.mxu1 %v15365_v36  ;;  %v11530_v36 = vpop.f32.mrf.mxu1 }
 0x339   : > { %3958 = vmatmul.mubr.bf16.gmra.mxu0 %v15367_v28  ;;  %3812 = vmatprep.mubr.bf16.mxu1 %v15405_v4  ;;  %v14093_v28 = vld [vmem:[#allocation8] sm:$0x1f]  ;;  %v11531_v4 = vadd.f32 %v11530_v36, %v11529_v21 }
 0x33a   : > { %3965 = vmatprep.mubr.bf16.mxu0 %v15379_v51  ;;  %13459 = vmatpush3.bf16.msra.mxu1 %v13874_v56  ;;  %v15550_v12 = vrot.slane %v14093_v28, %v2992_v9 }
 0x33b   : > { %13460 = vmatprep.subr.bf16.mxu1 %v13875_v37 }
 0x33e   : > { %13461 = vmatpush3.bf16.msra.mxu1 %v13875_v37 }
 0x340   : > { %3813 = vmatmul.mubr.bf16.gmra.mxu1 %v15379_v51 }
 0x341   : > { %3966 = vmatmul.mubr.bf16.gmra.mxu0 %v15381_v17  ;;  %3820 = vmatprep.mubr.bf16.mxu1 %v15419_v48 }
 0x342   : > { %3973 = vmatprep.mubr.bf16.mxu0 %v15393_v26 }
 0x348   : > { %3821 = vmatmul.mubr.bf16.gmra.mxu1 %v15393_v26 }
 0x349   : > { %3974 = vmatmul.mubr.bf16.gmra.mxu0 %v15395_v61  ;;  %3828 = vmatprep.mubr.bf16.mxu1 %v15430_v11  ;;  %v3461_v61 = vadd.f32 %v15432_v6, %v15550_v12 }
 0x34a   : > { %3981 = vmatprep.mubr.bf16.mxu0 %v15407_v32 }
 0x350   : > { %3829 = vmatmul.mubr.bf16.gmra.mxu1 %v15407_v32 }
 0x351   : > { %3982 = vmatmul.mubr.bf16.gmra.mxu0 %v15409_v52  ;;  %3836 = vmatprep.mubr.bf16.mxu1 %v15442_v59 }
 0x352   : > { %3989 = vmatprep.mubr.bf16.mxu0 %v15421_v15 }
 0x358   : > { %3837 = vmatmul.mubr.bf16.gmra.mxu1 %v15421_v15 }
 0x359   : > { %3990 = vmatmul.mubr.bf16.gmra.mxu0 %v15423_v8  ;;  %3844 = vmatprep.mubr.bf16.mxu1 %v15452_v23 }
 0x35a   : > { %3997 = vmatprep.mubr.bf16.mxu0 %v15434_v55 }
 0x360   : > { %3845 = vmatmul.mubr.bf16.gmra.mxu1 %v15434_v55 }
 0x361   : > { %3998 = vmatmul.mubr.bf16.gmra.mxu0 %v15436_v33  ;;  %3852 = vmatprep.mubr.bf16.mxu1 %v15462_v46  ;;  %v3464_v33 = vadd.f32 %v11531_v4, %v15550_v12 }
 0x362   : > { %4005 = vmatprep.mubr.bf16.mxu0 %v15444_v3 }
 0x368   : > { %v11532_v51 = vpop.f32.mrf.mxu1  ;;  %3853 = vmatmul.mubr.bf16.gmra.mxu1 %v15444_v3 }
 0x369   : > { %v11638_v17 = vpop.f32.mrf.mxu0  ;;  %4006 = vmatmul.mubr.bf16.gmra.mxu0 %v15446_v22  ;;  %3860 = vmatprep.mubr.bf16.mxu1 %v15472_v31 }
 0x36a   : > { %4013 = vmatprep.mubr.bf16.mxu0 %v15454_v50  ;;  %v11533_v60 = vpop.f32.mrf.mxu1 }
 0x36b   : > { %v11639_v26 = vpop.f32.mrf.mxu0  ;;  %v11534_v32 = vadd.f32 %v11533_v60, %v11532_v51 }
 0x36c   : > { %v11640_v52 = vadd.f32 %v11639_v26, %v11638_v17  ;;  %v11535_v48 = vpop.f32.mrf.mxu1 }
 0x36d   : > { %v11641_v15 = vpop.f32.mrf.mxu0  ;;  %v3469_v18 = vadd.f32 %v11534_v32, %v15550_v12 }
 0x36e   : > { %v15558_v8 = vadd.f32 %v11640_v52, %v3461_v61  ;;  %v11536_v11 = vpop.f32.mrf.mxu1 }
 0x36f   : > { %v11642_v55 = vpop.f32.mrf.mxu0  ;;  %v11537_v59 = vadd.f32 %v11536_v11, %v11535_v48 }
 0x370   : > { %v11643_v3 = vadd.f32 %v11642_v55, %v11641_v15  ;;  %v11538_v22 = vpop.f32.mrf.mxu1  ;;  %3861 = vmatmul.mubr.bf16.gmra.mxu1 %v15454_v50 }
 0x371   : > { %v11644_v23 = vpop.f32.mrf.mxu0  ;;  %4014 = vmatmul.mubr.bf16.gmra.mxu0 %v15456_v62  ;;  %3868 = vmatprep.mubr.bf16.mxu1 %v15482_v16  ;;  %v3472_v62 = vadd.f32 %v11537_v59, %v15550_v12 }
 0x372   : > { %v15563_v6 = vadd.f32 %v11643_v3, %v3464_v33  ;;  %4021 = vmatprep.mubr.bf16.mxu0 %v15464_v41  ;;  %v11539_v46 = vpop.f32.mrf.mxu1 }
 0x373   : > { %v11645_v31 = vpop.f32.mrf.mxu0  ;;  %v11540_v45 = vadd.f32 %v11539_v46, %v11538_v22  ;;  %v2684_v46 = vld [vmem:[#allocation2 + $0x18a] sm:$0xff] }
 0x374   : > { %v11646_v49 = vadd.f32 %v11645_v31, %v11644_v23  ;;  %v11541_v1 = vpop.f32.mrf.mxu1  ;;  %v2683_v23 = vld [vmem:[#allocation2 + $0x182] sm:$0xff] }
 0x375   : > { %v11647_v47 = vpop.f32.mrf.mxu0  ;;  %v3477_v2 = vadd.f32 %v11540_v45, %v15550_v12  ;;  %v2778_v45 = vld [vmem:[#allocation2 + $0x189] sm:$0xff] }
 0x376   : > { %v15568_v25 = vadd.f32 %v11646_v49, %v3469_v18  ;;  %v11542_v30 = vpop.f32.mrf.mxu1 }
 0x377   : > { %v11648_v50 = vpop.f32.mrf.mxu0  ;;  %v11543_v19 = vadd.f32 %v11542_v30, %v11541_v1  ;;  %v15600_v1 = vpack.c.bf16 %v2684_v46, %v2683_v23 }
 0x378   : > { %v11649_v24 = vadd.f32 %v11648_v50, %v11647_v47  ;;  %v11544_v39 = vpop.f32.mrf.mxu1  ;;  %3869 = vmatmul.mubr.bf16.gmra.mxu1 %v15464_v41 }
 0x379   : > { %v11650_v16 = vpop.f32.mrf.mxu0  ;;  %4022 = vmatmul.mubr.bf16.gmra.mxu0 %v15466_v38  ;;  %3876 = vmatprep.mubr.bf16.mxu1 %v15492_v57  ;;  %v3480_v38 = vadd.f32 %v11543_v19, %v15550_v12 }
 0x37a   : > { %v15573_v63 = vadd.f32 %v11649_v24, %v3472_v62  ;;  %4029 = vmatprep.mubr.bf16.mxu0 %v15474_v53  ;;  %v11545_v43 = vpop.f32.mrf.mxu1 }
 0x37b   : > { %v11651_v10 = vpop.f32.mrf.mxu0  ;;  %v11546_v20 = vadd.f32 %v11545_v43, %v11544_v39 }
 0x37c   : > { %v11652_v5 = vadd.f32 %v11651_v10, %v11650_v16  ;;  %v11547_v54 = vpop.f32.mrf.mxu1  ;;  %v2779_v10 = vld [vmem:[#allocation2 + $0x199] sm:$0xff] }
 0x37d   : > { %v11653_v44 = vpop.f32.mrf.mxu0  ;;  %v3485_v51 = vadd.f32 %v11546_v20, %v15550_v12 }
 0x37e   : > { %v15578_v34 = vadd.f32 %v11652_v5, %v3477_v2  ;;  %v11548_v35 = vpop.f32.mrf.mxu1  ;;  %v2780_v2 = vld [vmem:[#allocation2 + $0x1a1] sm:$0xff] }
 0x37f   : > { %v11654_v41 = vpop.f32.mrf.mxu0  ;;  %v11549_v56 = vadd.f32 %v11548_v35, %v11547_v54 }
 0x380   : > { %v11655_v37 = vadd.f32 %v11654_v41, %v11653_v44  ;;  %v11550_v21 = vpop.f32.mrf.mxu1  ;;  %3877 = vmatmul.mubr.bf16.gmra.mxu1 %v15474_v53  ;;  %v2797_v41 = vld [vmem:[#allocation2 + $0x32] sm:$0xff] }
 0x381   : > { %v11656_v57 = vpop.f32.mrf.mxu0  ;;  %4030 = vmatmul.mubr.bf16.gmra.mxu0 %v15476_v40  ;;  %3884 = vmatprep.mubr.bf16.mxu1 %v15502_v27  ;;  %v3488_v40 = vadd.f32 %v11549_v56, %v15550_v12 }
 0x382   : > { %v15583_v9 = vadd.f32 %v11655_v37, %v3480_v38  ;;  %4037 = vmatprep.mubr.bf16.mxu0 %v15484_v7  ;;  %v11551_v36 = vpop.f32.mrf.mxu1  ;;  %v2798_v38 = vld [vmem:[#allocation2 + $0x3a] sm:$0xff] }
 0x383   : > { %v11657_v28 = vpop.f32.mrf.mxu0  ;;  %v11552_v17 = vadd.f32 %v11551_v36, %v11550_v21 }
 0x384   : > { %v11658_v60 = vadd.f32 %v11657_v28, %v11656_v57  ;;  %v11553_v26 = vpop.f32.mrf.mxu1  ;;  %v2829_v28 = vpack.c.bf16 %v2798_v38, %v2797_v41 }
 0x385   : > { %v11659_v61 = vpop.f32.mrf.mxu0  ;;  %v3493_v59 = vadd.f32 %v11552_v17, %v15550_v12 }
 0x386   : > { %v15588_v4 = vadd.f32 %v11658_v60, %v3485_v51  ;;  %v11554_v32 = vpop.f32.mrf.mxu1 }
 0x387   : > { %v11660_v53 = vpop.f32.mrf.mxu0  ;;  %v11555_v52 = vadd.f32 %v11554_v32, %v11553_v26 }
 0x388   : > { %v11661_v48 = vadd.f32 %v11660_v53, %v11659_v61  ;;  %v11556_v15 = vpop.f32.mrf.mxu1  ;;  %3885 = vmatmul.mubr.bf16.gmra.mxu1 %v15484_v7 }
 0x389   : > { %v11662_v27 = vpop.f32.mrf.mxu0  ;;  %4038 = vmatmul.mubr.bf16.gmra.mxu0 %v15486_v29  ;;  %3892 = vmatprep.mubr.bf16.mxu1 %v15510_v0  ;;  %v2777_v0 = vld [vmem:[#allocation2 + $0x181] sm:$0xff]  ;;  %v3496_v47 = vadd.f32 %v11555_v52, %v15550_v12  ;;  %v2799_v52 = vld [vmem:[#allocation2 + $0x4a] sm:$0xff] }
 0x38a   : > { %v15593_v11 = vadd.f32 %v11661_v48, %v3488_v40  ;;  %4045 = vmatprep.mubr.bf16.mxu0 %v15494_v42  ;;  %v11557_v55 = vpop.f32.mrf.mxu1  ;;  %v2795_v62 = vpack.c.bf16 %v2778_v45, %v2777_v0  ;;  %v2800_v48 = vld [vmem:[#allocation2 + $0x52] sm:$0xff] }
 0x38b   : > { %v11663_v33 = vpop.f32.mrf.mxu0  ;;  %v11558_v3 = vadd.f32 %v11557_v55, %v11556_v15  ;;  %v14094_v55 = vld [vmem:[#allocation2] sm:$0xff]  ;;  %v2830_v46 = vpack.c.bf16 %v2800_v48, %v2799_v52 }
 0x38c   : > { %v11664_v22 = vadd.f32 %v11663_v33, %v11662_v27  ;;  %v11559_v31 = vpop.f32.mrf.mxu1  ;;  %v15616_v33 = vpack.c.bf16 %v14094_v55, %v14094_v55  ;;  %v2809_v48 = vld [vmem:[#allocation2 + $0xc2] sm:$0xff] }
 0x38d   : > { %v11665_v18 = vpop.f32.mrf.mxu0  ;;  %v3501_v20 = vadd.f32 %v11558_v3, %v15550_v12  ;;  %v2802_v3 = vld [vmem:[#allocation2 + $0x6a] sm:$0xff] }
 0x38e   : > { %v15598_v7 = vadd.f32 %v11664_v22, %v3493_v59  ;;  %v11560_v29 = vpop.f32.mrf.mxu1  ;;  %v2801_v59 = vld [vmem:[#allocation2 + $0x62] sm:$0xff] }
 0x38f   : > { %v11666_v49 = vpop.f32.mrf.mxu0  ;;  %v11561_v30 = vadd.f32 %v11560_v29, %v11559_v31  ;;  %v2831_v29 = vpack.c.bf16 %v2802_v3, %v2801_v59 }
 0x390   : > { %v11667_v50 = vadd.f32 %v11666_v49, %v11665_v18  ;;  %v11562_v19 = vpop.f32.mrf.mxu1  ;;  %3893 = vmatmul.mubr.bf16.gmra.mxu1 %v15494_v42 }
 0x391   : > { %v11668_v24 = vpop.f32.mrf.mxu0  ;;  %4046 = vmatmul.mubr.bf16.gmra.mxu0 %v15496_v14  ;;  %3900 = vmatprep.mubr.bf16.mxu1 %v15600_v1  ;;  %v2796_v14 = vpack.c.bf16 %v2780_v2, %v2779_v10  ;;  %v3504_v21 = vadd.f32 %v11561_v30, %v15550_v12 }
 0x392   : > { %v15605_v39 = vadd.f32 %v11667_v50, %v3496_v47  ;;  %4053 = vmatprep.mubr.bf16.mxu0 %v2795_v62  ;;  %v11563_v16 = vpop.f32.mrf.mxu1 }
 0x393   : > { %v11669_v43 = vpop.f32.mrf.mxu0  ;;  %v11564_v5 = vadd.f32 %v11563_v16, %v11562_v19  ;;  %v2803_v16 = vld [vmem:[#allocation2 + $0x7a] sm:$0xff] }
 0x394   : > { %v11670_v54 = vadd.f32 %v11669_v43, %v11668_v24  ;;  %v11565_v44 = vpop.f32.mrf.mxu1  ;;  %v2804_v43 = vld [vmem:[#allocation2 + $0x82] sm:$0xff] }
 0x395   : > { %v11671_v35 = vpop.f32.mrf.mxu0  ;;  %v3509_v32 = vadd.f32 %v11564_v5, %v15550_v12  ;;  %v2806_v5 = vld [vmem:[#allocation2 + $0x9a] sm:$0xff]  ;;  %v2832_v41 = vpack.c.bf16 %v2804_v43, %v2803_v16 }
 0x396   : > { %v15609_v42 = vadd.f32 %v11670_v54, %v3501_v20  ;;  %v11566_v56 = vpop.f32.mrf.mxu1  ;;  %v2805_v20 = vld [vmem:[#allocation2 + $0x92] sm:$0xff] }
 0x397   : > { %v11672_v37 = vpop.f32.mrf.mxu0  ;;  %v11567_v57 = vadd.f32 %v11566_v56, %v11565_v44 }
 0x398   : > { %v11673_v36 = vadd.f32 %v11672_v37, %v11671_v35  ;;  %v11568_v51 = vpop.f32.mrf.mxu1  ;;  %3901 = vmatmul.mubr.bf16.gmra.mxu1 %v2795_v62  ;;  %v2833_v37 = vpack.c.bf16 %v2806_v5, %v2805_v20 }
 0x399   : > { %v11674_v17 = vpop.f32.mrf.mxu0  ;;  %4054 = vmatmul.mubr.bf16.gmra.mxu0 %v15504_v13  ;;  %13462 = vmatprep.mubr.bf16.mxu1 %v2829_v28  ;;  %v3512_v31 = vadd.f32 %v11567_v57, %v15550_v12 }
 0x39a   : > { %v15613_v60 = vadd.f32 %v11673_v36, %v3504_v21  ;;  %4061 = vmatprep.mubr.bf16.mxu0 %v2796_v14  ;;  %v11569_v26 = vpop.f32.mrf.mxu1 }
 0x39b   : > { %v11675_v61 = vpop.f32.mrf.mxu0  ;;  %v11570_v53 = vadd.f32 %v11569_v26, %v11568_v51 }
 0x39c   : > { %v11676_v40 = vadd.f32 %v11675_v61, %v11674_v17  ;;  %v11571_v15 = vpop.f32.mrf.mxu1 }
 0x39d   : > { %v11677_v27 = vpop.f32.mrf.mxu0  ;;  %v3517_v62 = vadd.f32 %v11570_v53, %v15550_v12  ;;  %v2808_v53 = vld [vmem:[#allocation2 + $0xb2] sm:$0xff] }
 0x39e   : > { %v15618_v13 = vadd.f32 %v11676_v40, %v3509_v32  ;;  %v11572_v22 = vpop.f32.mrf.mxu1  ;;  %v2807_v32 = vld [vmem:[#allocation2 + $0xaa] sm:$0xff] }
 0x39f   : > { %v11678_v23 = vpop.f32.mrf.mxu0  ;;  %v11573_v18 = vadd.f32 %v11572_v22, %v11571_v15  ;;  %v2810_v15 = vld [vmem:[#allocation2 + $0xca] sm:$0xff]  ;;  %v2834_v3 = vpack.c.bf16 %v2808_v53, %v2807_v32  ;;  %v2816_v53 = vld [vmem:[#allocation2 + $0x112] sm:$0xff] }
 0x3a0   : > { %v11679_v45 = vadd.f32 %v11678_v23, %v11677_v27  ;;  %v11574_v49 = vpop.f32.mrf.mxu1  ;;  %13463 = vmatmul.mubr.bf16.vlgmr.msra.gmra.mxu1 %v2830_v46  ;;  %v2815_v32 = vld [vmem:[#allocation2 + $0x10a] sm:$0xff] }
 0x3a1   : > { %v11680_v0 = vpop.f32.mrf.mxu0  ;;  %4062 = vmatmul.mubr.bf16.gmra.mxu0 %v15616_v33  ;;  %13466 = vmatprep.mubr.bf16.mxu1 %v2831_v29  ;;  %v3520_v38 = vadd.f32 %v11573_v18, %v15550_v12 }
 0x3a2   : > { %v15622_v47 = vadd.f32 %v11679_v45, %v3512_v31  ;;  %v11575_v30 = vpop.f32.mrf.mxu1  ;;  %v2835_v31 = vpack.c.bf16 %v2810_v15, %v2809_v48  ;;  %v2817_v48 = vld [vmem:[#allocation2 + $0x122] sm:$0xff]  ;;  %v2818_v15 = vld [vmem:[#allocation2 + $0x12a] sm:$0xff] }
 0x3a3   : > { %v11681_v50 = vpop.f32.mrf.mxu0  ;;  %v11576_v19 = vadd.f32 %v11575_v30, %v11574_v49 }
 0x3a4   : > { %v11682_v24 = vadd.f32 %v11681_v50, %v11680_v0  ;;  %v11577_v10 = vpop.f32.mrf.mxu1 }
 0x3a5   : > { %v11683_v2 = vpop.f32.mrf.mxu0  ;;  %v3525_v17 = vadd.f32 %v11576_v19, %v15550_v12  ;;  %v2811_v19 = vld [vmem:[#allocation2 + $0xda] sm:$0xff] }
 0x3a6   : > { %v15625_v54 = vadd.f32 %v11682_v24, %v3517_v62  ;;  %v11578_v44 = vpop.f32.mrf.mxu1  ;;  %v2812_v24 = vld [vmem:[#allocation2 + $0xe2] sm:$0xff] }
 0x3a7   : > { %v11684_v35 = vpop.f32.mrf.mxu0  ;;  %v11579_v14 = vadd.f32 %v11578_v44, %v11577_v10  ;;  %v2813_v10 = vld [vmem:[#allocation2 + $0xf2] sm:$0xff] }
 0x3a8   : > { %v11685_v56 = vadd.f32 %v11684_v35, %v11683_v2  ;;  %v11580_v21 = vpop.f32.mrf.mxu1  ;;  %13467 = vmatmul.mubr.bf16.gmra.mxu1 %v2832_v41  ;;  %v2814_v2 = vld [vmem:[#allocation2 + $0xfa] sm:$0xff]  ;;  %v2836_v35 = vpack.c.bf16 %v2812_v24, %v2811_v19 }
 0x3a9   : > { %v11686_v57 = vpop.f32.mrf.mxu0  ;;  %13470 = vmatprep.mubr.bf16.mxu1 %v2833_v37  ;;  %v3528_v22 = vadd.f32 %v11579_v14, %v15550_v12 }
 0x3aa   : > { %v15628_v36 = vadd.f32 %v11685_v56, %v3520_v38  ;;  %v11581_v28 = vpop.f32.mrf.mxu1  ;;  %v2837_v56 = vpack.c.bf16 %v2814_v2, %v2813_v10 }
 0x3ab   : > { %v11687_v51 = vpop.f32.mrf.mxu0  ;;  %v11582_v26 = vadd.f32 %v11581_v28, %v11580_v21 }
 0x3ac   : > { %v11688_v61 = vadd.f32 %v11687_v51, %v11686_v57  ;;  %v11583_v40 = vpop.f32.mrf.mxu1 }
 0x3ad   : > { %v11689_v52 = vpop.f32.mrf.mxu0  ;;  %v3533_v30 = vadd.f32 %v11582_v26, %v15550_v12 }
 0x3ae   : > { %v15631_v27 = vadd.f32 %v11688_v61, %v3525_v17  ;;  %v11584_v55 = vpop.f32.mrf.mxu1 }
 0x3af   : > { %v11690_v59 = vpop.f32.mrf.mxu0  ;;  %v11585_v23 = vadd.f32 %v11584_v55, %v11583_v40 }
 0x3b0   : > { %v11691_v46 = vadd.f32 %v11690_v59, %v11689_v52  ;;  %v11586_v18 = vpop.f32.mrf.mxu1  ;;  %13471 = vmatmul.mubr.bf16.gmra.mxu1 %v2834_v3 }
 0x3b1   : > { %v11692_v45 = vpop.f32.mrf.mxu0  ;;  %13474 = vmatprep.mubr.bf16.mxu1 %v2835_v31  ;;  %v3536_v41 = vadd.f32 %v11585_v23, %v15550_v12 }
 0x3b2   : > { %v15634_v29 = vadd.f32 %v11691_v46, %v3528_v22  ;;  %v11587_v49 = vpop.f32.mrf.mxu1  ;;  %v2838_v22 = vpack.c.bf16 %v2816_v53, %v2815_v32 }
 0x3b3   : > { %v11693_v0 = vpop.f32.mrf.mxu0  ;;  %v11588_v50 = vadd.f32 %v11587_v49, %v11586_v18  ;;  %v2839_v18 = vpack.c.bf16 %v2818_v15, %v2817_v48  ;;  %v2823_v48 = vld [vmem:[#allocation2 + $0x16a] sm:$0xff]  ;;  %v2824_v15 = vld [vmem:[#allocation2 + $0x172] sm:$0xff] }
 0x3b4   : > { %v11694_v62 = vadd.f32 %v11693_v0, %v11692_v45  ;;  %v11589_v16 = vpop.f32.mrf.mxu1 }
 0x3b5   : > { %v11695_v43 = vpop.f32.mrf.mxu0  ;;  %v3541_v17 = vadd.f32 %v11588_v50, %v15550_v12 }
 0x3b6   : > { %v15637_v20 = vadd.f32 %v11694_v62, %v3533_v30  ;;  %v11590_v5 = vpop.f32.mrf.mxu1 }
 0x3b7   : > { %v11696_v44 = vpop.f32.mrf.mxu0  ;;  %v11591_v38 = vadd.f32 %v11590_v5, %v11589_v16  ;;  %v2819_v16 = vld [vmem:[#allocation2 + $0x13a] sm:$0xff]  ;;  %v2821_v5 = vld [vmem:[#allocation2 + $0x152] sm:$0xff] }
 0x3b8   : > { %v11697_v14 = vadd.f32 %v11696_v44, %v11695_v43  ;;  %v11592_v37 = vpop.f32.mrf.mxu1  ;;  %13475 = vmatmul.mubr.bf16.gmra.mxu1 %v2836_v35  ;;  %v2820_v43 = vld [vmem:[#allocation2 + $0x142] sm:$0xff]  ;;  %v2822_v44 = vld [vmem:[#allocation2 + $0x15a] sm:$0xff] }
 0x3b9   : > { %v11698_v21 = vpop.f32.mrf.mxu0  ;;  %13478 = vmatprep.mubr.bf16.mxu1 %v2837_v56  ;;  %v3544_v23 = vadd.f32 %v11591_v38, %v15550_v12 }
 0x3ba   : > { %v15640_v57 = vadd.f32 %v11697_v14, %v3536_v41  ;;  %v11593_v28 = vpop.f32.mrf.mxu1  ;;  %v2840_v14 = vpack.c.bf16 %v2820_v43, %v2819_v16 }
 0x3bb   : > { %v11699_v51 = vpop.f32.mrf.mxu0  ;;  %v11594_v26 = vadd.f32 %v11593_v28, %v11592_v37 }
 0x3bc   : > { %v11700_v61 = vadd.f32 %v11699_v51, %v11698_v21  ;;  %v11595_v40 = vpop.f32.mrf.mxu1  ;;  %v2841_v21 = vpack.c.bf16 %v2822_v44, %v2821_v5 }
 0x3bd   : > { %v11701_v52 = vpop.f32.mrf.mxu0  ;;  %v3549_v62 = vadd.f32 %v11594_v26, %v15550_v12 }
 0x3be   : > { %v15643_v55 = vadd.f32 %v11700_v61, %v3541_v17  ;;  %v11596_v59 = vpop.f32.mrf.mxu1 }
 0x3bf   : > { %v11702_v3 = vpop.f32.mrf.mxu0  ;;  %v11597_v46 = vadd.f32 %v11596_v59, %v11595_v40 }
 0x3c0   : > { %v11703_v31 = vadd.f32 %v11702_v3, %v11701_v52  ;;  %v11598_v45 = vpop.f32.mrf.mxu1  ;;  %13479 = vmatmul.mubr.bf16.gmra.mxu1 %v2838_v22 }
 0x3c1   : > { %v11704_v49 = vpop.f32.mrf.mxu0  ;;  %13482 = vmatprep.mubr.bf16.mxu1 %v2839_v18  ;;  %v3552_v56 = vadd.f32 %v11597_v46, %v15550_v12 }
 0x3c2   : > { %v15646_v0 = vadd.f32 %v11703_v31, %v3544_v23  ;;  %v11599_v30 = vpop.f32.mrf.mxu1  ;;  %v2842_v31 = vpack.c.bf16 %v2824_v15, %v2823_v48 }
 0x3c3   : > { %v11705_v50 = vpop.f32.mrf.mxu0  ;;  %v11600_v19 = vadd.f32 %v11599_v30, %v11598_v45 }
 0x3c4   : > { %v11706_v24 = vadd.f32 %v11705_v50, %v11704_v49  ;;  %v11601_v10 = vpop.f32.mrf.mxu1 }
 0x3c5   : > { %v11707_v2 = vpop.f32.mrf.mxu0  ;;  %v3557_v32 = vadd.f32 %v11600_v19, %v15550_v12  ;;  %v2828_v19 = vld [vmem:[#allocation2 + $0x1a2] sm:$0xff] }
 0x3c6   : > { %v15649_v35 = vadd.f32 %v11706_v24, %v3549_v62  ;;  %v11602_v41 = vpop.f32.mrf.mxu1  ;;  %v2827_v62 = vld [vmem:[#allocation2 + $0x19a] sm:$0xff] }
 0x3c7   : > { %v11708_v38 = vpop.f32.mrf.mxu0  ;;  %v11603_v53 = vadd.f32 %v11602_v41, %v11601_v10 }
 0x3c8   : > { %v11709_v37 = vadd.f32 %v11708_v38, %v11707_v2  ;;  %v11604_v28 = vpop.f32.mrf.mxu1  ;;  %13483 = vmatmul.mubr.bf16.gmra.mxu1 %v2840_v14  ;;  %v2844_v38 = vpack.c.bf16 %v2828_v19, %v2827_v62 }
 0x3c9   : > { %v11710_v51 = vpop.f32.mrf.mxu0  ;;  %13486 = vmatprep.mubr.bf16.mxu1 %v2841_v21  ;;  %v3560_v18 = vadd.f32 %v11603_v53, %v15550_v12 }
 0x3ca   : > { %v15652_v17 = vadd.f32 %v11709_v37, %v3552_v56  ;;  %v11605_v26 = vpop.f32.mrf.mxu1 }
 0x3cb   : > { %v11711_v61 = vpop.f32.mrf.mxu0  ;;  %v11606_v40 = vadd.f32 %v11605_v26, %v11604_v28 }
 0x3cc   : > { %v11712_v52 = vadd.f32 %v11711_v61, %v11710_v51  ;;  %v11607_v59 = vpop.f32.mrf.mxu1 }
 0x3cd   : > { %v11713_v3 = vpop.f32.mrf.mxu0  ;;  %v3565_v43 = vadd.f32 %v11606_v40, %v15550_v12 }
 0x3ce   : > { %v15655_v22 = vadd.f32 %v11712_v52, %v3557_v32  ;;  %v11608_v23 = vpop.f32.mrf.mxu1 }
 0x3cf   : > { %v11714_v46 = vpop.f32.mrf.mxu0  ;;  %v11609_v10 = vadd.f32 %v11608_v23, %v11607_v59 }
 0x3d0   : > { %v11715_v45 = vadd.f32 %v11714_v46, %v11713_v3  ;;  %v11610_v49 = vpop.f32.mrf.mxu1  ;;  %13487 = vmatmul.mubr.bf16.gmra.mxu1 %v2842_v31 }
 0x3d1   : > { %v11716_v30 = vpop.f32.mrf.mxu0  ;;  %13490 = vmatprep.mubr.bf16.mxu1 %v15600_v1  ;;  %v3568_v21 = vadd.f32 %v11609_v10, %v15550_v12 }
 0x3d2   : > { %v15658_v50 = vadd.f32 %v11715_v45, %v3560_v18  ;;  %v11611_v24 = vpop.f32.mrf.mxu1 }
 0x3d3   : > { %v11717_v16 = vpop.f32.mrf.mxu0  ;;  %v11612_v2 = vadd.f32 %v11611_v24, %v11610_v49 }
 0x3d4   : > { %v11718_v5 = vadd.f32 %v11717_v16, %v11716_v30  ;;  %v11613_v44 = vpop.f32.mrf.mxu1 }
 0x3d5   : > { %v11719_v41 = vpop.f32.mrf.mxu0  ;;  %v3573_v53 = vadd.f32 %v11612_v2, %v15550_v12 }
 0x3d6   : > { %v15662_v14 = vadd.f32 %v11718_v5, %v3565_v43  ;;  %v11614_v56 = vpop.f32.mrf.mxu1 }
 0x3d7   : > { %v11720_v37 = vpop.f32.mrf.mxu0  ;;  %v11615_v40 = vadd.f32 %v11614_v56, %v11613_v44  ;;  %v13876_v56 = vld [vmem:[#allocation6 + $0x4f8] sm:$0xff]  }
 0x3d8   : > { %v11721_v28 = vadd.f32 %v11720_v37, %v11719_v41  ;;  %v11616_v1 = vpop.f32.mrf.mxu1  ;;  %13491 = vmatmul.mubr.bf16.gmra.mxu1 %v2844_v38  ;;  %v13877_v37 = vld [vmem:[#allocation6 + $0x4b8] sm:$0xff]   ;;  %11982 = vmatprep.subr.bf16.mxu0 %v13876_v56 }
 0x3d9   : > { %v11722_v51 = vpop.f32.mrf.mxu0  ;;  %v3576_v31 = vadd.f32 %v11615_v40, %v15550_v12  ;;  %11983 = vmatpush3.bf16.msra.mxu0 %v13877_v37 }
 0x3da   : > { %v15665_v26 = vadd.f32 %v11721_v28, %v3568_v21  ;;  %v11617_v61 = vpop.f32.mrf.mxu1 }
 0x3db   : > { %v11723_v32 = vpop.f32.mrf.mxu0  ;;  %v11618_v52 = vadd.f32 %v11617_v61, %v11616_v1 }
 0x3dc   : > { %v11724_v48 = vadd.f32 %v11723_v32, %v11722_v51  ;;  %v11619_v15 = vpop.f32.mrf.mxu1 }
 0x3dd   : > { %v11725_v59 = vpop.f32.mrf.mxu0  ;;  %v3581_v43 = vadd.f32 %v11618_v52, %v15550_v12 }
 0x3de   : > { %v15668_v3 = vadd.f32 %v11724_v48, %v3573_v53  ;;  %v11620_v23 = vpop.f32.mrf.mxu1 }
 0x3df   : > { %v11726_v46 = vpop.f32.mrf.mxu0  ;;  %v11621_v18 = vadd.f32 %v11620_v23, %v11619_v15 }
 0x3e0   : > { %v11727_v45 = vadd.f32 %v11726_v46, %v11725_v59  ;;  %v11750_v30 = vpop.f32.mrf.mxu1 }
 0x3e1   : > { %v11728_v49 = vpop.f32.mrf.mxu0  ;;  %v3584_v62 = vadd.f32 %v11621_v18, %v15550_v12 }
 0x3e2   : > { %v15672_v19 = vadd.f32 %v11727_v45, %v3576_v31  ;;  %v11751_v16 = vpop.f32.mrf.mxu1 }
 0x3e3   : > { %v11729_v24 = vpop.f32.mrf.mxu0  ;;  %v11752_v2 = vadd.f32 %v11751_v16, %v11750_v30 }
 0x3e4   : > { %v11730_v10 = vadd.f32 %v11729_v24, %v11728_v49  ;;  %v11753_v44 = vpop.f32.mrf.mxu1 }
 0x3e5   : > { %v11731_v5 = vpop.f32.mrf.mxu0  ;;  %v15678_v38 = vadd.f32 %v11752_v2, %v15558_v8 }
 0x3e6   : > { %v15675_v41 = vadd.f32 %v11730_v10, %v3581_v43  ;;  %v11754_v28 = vpop.f32.mrf.mxu1  ;;  %v13878_v43 = vld [vmem:[#allocation6 + $0x4f0] sm:$0xff]  }
 0x3e7   : > { %v11732_v21 = vpop.f32.mrf.mxu0  ;;  %v11755_v51 = vadd.f32 %v11754_v28, %v11753_v44  ;;  %v13879_v10 = vld [vmem:[#allocation6 + $0x4b0] sm:$0xff]   ;;  %11984 = vmatprep.subr.bf16.mxu0 %v13878_v43 }
 0x3e8   : > { %v11733_v1 = vadd.f32 %v11732_v21, %v11731_v5  ;;  %v11756_v61 = vpop.f32.mrf.mxu1  ;;  %11985 = vmatpush3.bf16.msra.mxu0 %v13879_v10  ;;  %v13880_v10 = vld [vmem:[#allocation6 + $0x4e8] sm:$0xff]  }
 0x3e9   : > { %v15680_v32 = vpop.f32.mrf.mxu0  ;;  %v15685_v53 = vadd.f32 %v11755_v51, %v15563_v6  ;;  %11986 = vmatprep.subr.bf16.mxu0 %v13880_v10 }
 0x3ea   : > { %v15682_v12 = vadd.f32 %v11733_v1, %v3584_v62  ;;  %v11757_v40 = vpop.f32.mrf.mxu1 }
 0x3eb   : > { %v15687_v52 = vpop.f32.mrf.mxu0  ;;  %v11758_v8 = vadd.f32 %v11757_v40, %v11756_v61 }
 0x3ec   : > { %v11759_v48 = vpop.f32.mrf.mxu1 }
 0x3ed   : > { %v15689_v15 = vpop.f32.mrf.mxu0  ;;  %v15692_v59 = vadd.f32 %v11758_v8, %v15568_v25 }
 0x3ee   : > { %v11760_v23 = vpop.f32.mrf.mxu1 }
 0x3ef   : > { %v15694_v46 = vpop.f32.mrf.mxu0  ;;  %v11761_v31 = vadd.f32 %v11760_v23, %v11759_v48 }
 0x3f0   : > { %v11762_v18 = vpop.f32.mrf.mxu1 }
 0x3f1   : > { %v15696_v45 = vpop.f32.mrf.mxu0  ;;  %v15699_v6 = vadd.f32 %v11761_v31, %v15573_v63 }
 0x3f2   : > { %v11763_v49 = vpop.f32.mrf.mxu1 }
 0x3f3   : > { %v15701_v30 = vpop.f32.mrf.mxu0  ;;  %v11764_v62 = vadd.f32 %v11763_v49, %v11762_v18 }
 0x3f4   : > { %v11765_v24 = vpop.f32.mrf.mxu1 }
 0x3f5   : > { %v15703_v16 = vpop.f32.mrf.mxu0  ;;  %v15706_v25 = vadd.f32 %v11764_v62, %v15578_v34 }
 0x3f6   : > { %v11766_v2 = vpop.f32.mrf.mxu1 }
 0x3f7   : > { %v15708_v5 = vpop.f32.mrf.mxu0  ;;  %v11767_v44 = vadd.f32 %v11766_v2, %v11765_v24  ;;  %v13881_v2 = vld [vmem:[#allocation6 + $0x4a8] sm:$0xff]  }
 0x3f8   : > { %v11768_v56 = vpop.f32.mrf.mxu1  ;;  %11987 = vmatpush3.bf16.msra.mxu0 %v13881_v2 }
 0x3f9   : > { %v15710_v63 = vpop.f32.mrf.mxu0  ;;  %v15713_v37 = vadd.f32 %v11767_v44, %v15583_v9 }
 0x3fa   : > { %v11769_v21 = vpop.f32.mrf.mxu1 }
 0x3fb   : > { %v15715_v28 = vpop.f32.mrf.mxu0  ;;  %v11770_v1 = vadd.f32 %v11769_v21, %v11768_v56 }
 0x3fc   : > { %v11771_v34 = vpop.f32.mrf.mxu1 }
 0x3fd   : > { %v15717_v51 = vpop.f32.mrf.mxu0  ;;  %v15720_v61 = vadd.f32 %v11770_v1, %v15588_v4 }
 0x3fe   : > { %v11772_v40 = vpop.f32.mrf.mxu1 }
 0x3ff   : > { %v15722_v8 = vpop.f32.mrf.mxu0  ;;  %v11773_v48 = vadd.f32 %v11772_v40, %v11771_v34 }
 0x400   : > { %v11774_v23 = vpop.f32.mrf.mxu1 }
 0x401   : > { %v15724_v31 = vpop.f32.mrf.mxu0  ;;  %v15727_v9 = vadd.f32 %v11773_v48, %v15593_v11 }
 0x402   : > { %v11775_v18 = vpop.f32.mrf.mxu1 }
 0x403   : > { %v15729_v49 = vpop.f32.mrf.mxu0  ;;  %v11776_v62 = vadd.f32 %v11775_v18, %v11774_v23 }
 0x404   : > { %v11777_v24 = vpop.f32.mrf.mxu1 }
 0x405   : > { %v15731_v43 = vpop.f32.mrf.mxu0  ;;  %v15734_v4 = vadd.f32 %v11776_v62, %v15598_v7 }
 0x406   : > { %v11778_v44 = vpop.f32.mrf.mxu1 }
 0x407   : > { %18331 = vst [vmem:[#allocation46_spill] sm:$0xff] %v15734_v4  ;;  %v15736_v56 = vpop.f32.mrf.mxu0  ;;  %v11779_v21 = vadd.f32 %v11778_v44, %v11777_v24 }
 0x408   : > { %v11780_v1 = vpop.f32.mrf.mxu1 }
 0x409   : > { %v15738_v11 = vpop.f32.mrf.mxu0  ;;  %v15741_v34 = vadd.f32 %v11779_v21, %v15605_v39 }
 0x40a   : > { %v11781_v40 = vpop.f32.mrf.mxu1 }
 0x40b   : > { %18332 = vst [vmem:[#allocation48_spill] sm:$0xff] %v15741_v34  ;;  %v15743_v48 = vpop.f32.mrf.mxu0  ;;  %v11782_v23 = vadd.f32 %v11781_v40, %v11780_v1 }
 0x40c   : > { %v11783_v7 = vpop.f32.mrf.mxu1 }
 0x40d   : > { %v15745_v18 = vpop.f32.mrf.mxu0  ;;  %v15748_v62 = vadd.f32 %v11782_v23, %v15609_v42  ;;  %v13882_v23 = vld [vmem:[#allocation6 + $0x4e0] sm:$0xff]  }
 0x40e   : > { %18333 = vst [vmem:[#allocation47_spill] sm:$0xff] %v15745_v18  ;;  %v11784_v58 = vpop.f32.mrf.mxu1  ;;  %v13883_v18 = vld [vmem:[#allocation6 + $0x4a0] sm:$0xff]   ;;  %11988 = vmatprep.subr.bf16.mxu0 %v13882_v23 }
 0x40f   : > { %18334 = vst [vmem:[#allocation49_spill] sm:$0xff] %v15748_v62  ;;  %v15750_v24 = vpop.f32.mrf.mxu0  ;;  %v11785_v10 = vadd.f32 %v11784_v58, %v11783_v7  ;;  %11989 = vmatpush3.bf16.msra.mxu0 %v13883_v18  ;;  %v13884_v18 = vld [vmem:[#allocation6 + $0x4d8] sm:$0xff]  }
 0x410   : > { %18335 = vst [vmem:[#allocation51_spill] sm:$0xff] %v15750_v24  ;;  %v11786_v44 = vpop.f32.mrf.mxu1  ;;  %11990 = vmatprep.subr.bf16.mxu0 %v13884_v18 }
 0x411   : > { %v15752_v4 = vpop.f32.mrf.mxu0  ;;  %v15755_v39 = vadd.f32 %v11785_v10, %v15613_v60 }
 0x412   : > { %v11787_v2 = vpop.f32.mrf.mxu1 }
 0x413   : > { %18336 = vst [vmem:[#allocation50_spill] sm:$0xff] %v15755_v39  ;;  %v15757_v21 = vpop.f32.mrf.mxu0  ;;  %v11788_v1 = vadd.f32 %v11787_v2, %v11786_v44 }
 0x414   : > { %v11789_v40 = vpop.f32.mrf.mxu1 }
 0x415   : > { %v15759_v34 = vpop.f32.mrf.mxu0  ;;  %v15762_v42 = vadd.f32 %v11788_v1, %v15618_v13 }
 0x416   : > { %v11790_v24 = vpop.f32.mrf.mxu1 }
 0x417   : > { %18337 = vst [vmem:[#allocation52_spill] sm:$0xff] %v15762_v42  ;;  %v15764_v58 = vpop.f32.mrf.mxu0  ;;  %v11791_v7 = vadd.f32 %v11790_v24, %v11789_v40 }
 0x418   : > { %18338 = vst [vmem:[#allocation55_spill] sm:$0xff] %v15764_v58  ;;  %v11792_v62 = vpop.f32.mrf.mxu1 }
 0x419   : > { %v15766_v60 = vpop.f32.mrf.mxu0  ;;  %v15769_v10 = vadd.f32 %v11791_v7, %v15622_v47  ;;  %v13885_v47 = vld [vmem:[#allocation6 + $0x498] sm:$0xff]  }
 0x41a   : > { %18339 = vst [vmem:[#allocation53_spill] sm:$0xff] %v15766_v60  ;;  %v11793_v44 = vpop.f32.mrf.mxu1  ;;  %11991 = vmatpush3.bf16.msra.mxu0 %v13885_v47 }
 0x41b   : > { %18340 = vst [vmem:[#allocation56_spill] sm:$0xff] %v15769_v10  ;;  %v15771_v2 = vpop.f32.mrf.mxu0  ;;  %v11794_v39 = vadd.f32 %v11793_v44, %v11792_v62 }
 0x41c   : > { %v11795_v13 = vpop.f32.mrf.mxu1 }
 0x41d   : > { %v15773_v1 = vpop.f32.mrf.mxu0  ;;  %v15776_v42 = vadd.f32 %v11794_v39, %v15625_v54 }
 0x41e   : > { %18341 = vst [vmem:[#allocation54_spill] sm:$0xff] %v15773_v1  ;;  %v11796_v58 = vpop.f32.mrf.mxu1 }
 0x41f   : > { %18342 = vst [vmem:[#allocation57_spill] sm:$0xff] %v15776_v42  ;;  %v15778_v24 = vpop.f32.mrf.mxu0  ;;  %v11797_v40 = vadd.f32 %v11796_v58, %v11795_v13 }
 0x420   : > { %18343 = vst [vmem:[#allocation58_spill] sm:$0xff] %v15778_v24  ;;  %v11798_v23 = vpop.f32.mrf.mxu1 }
 0x421   : > { %v15780_v60 = vpop.f32.mrf.mxu0  ;;  %v15783_v7 = vadd.f32 %v11797_v40, %v15628_v36  ;;  %v13886_v36 = vld [vmem:[#allocation6 + $0x4d0] sm:$0xff]  }
 0x422   : > { %18344 = vst [vmem:[#allocation59_spill] sm:$0xff] %v15780_v60  ;;  %v11799_v10 = vpop.f32.mrf.mxu1  ;;  %v13887_v40 = vld [vmem:[#allocation6 + $0x490] sm:$0xff]   ;;  %11992 = vmatprep.subr.bf16.mxu0 %v13886_v36 }
 0x423   : > { %18345 = vst [vmem:[#allocation60_spill] sm:$0xff] %v15783_v7  ;;  %v15785_v62 = vpop.f32.mrf.mxu0  ;;  %v11800_v44 = vadd.f32 %v11799_v10, %v11798_v23  ;;  %v13888_v7 = vld [vmem:[#allocation6 + $0x4c8] sm:$0xff]   ;;  %v13890_v10 = vld [vmem:[#allocation6 + $0x578] sm:$0xff]   ;;  %11993 = vmatpush3.bf16.msra.mxu0 %v13887_v40 }
 0x424   : > { %v11801_v54 = vpop.f32.mrf.mxu1  ;;  %v13891_v23 = vld [vmem:[#allocation6 + $0x538] sm:$0xff]   ;;  %12094 = vmatprep.subr.bf16.mxu1 %v13890_v10  ;;  %11994 = vmatprep.subr.bf16.mxu0 %v13888_v7  ;;  %v13897_v7 = vld [vmem:[#allocation6 + $0x528] sm:$0xff]  }
 0x425   : > { %v15787_v39 = vpop.f32.mrf.mxu0  ;;  %v15790_v42 = vadd.f32 %v11800_v44, %v15631_v27  ;;  %v13892_v27 = vld [vmem:[#allocation6 + $0x570] sm:$0xff]   ;;  %12095 = vmatpush3.bf16.msra.mxu1 %v13891_v23 }
 0x426   : > { %18346 = vst [vmem:[#allocation61_spill] sm:$0xff] %v15787_v39  ;;  %v11802_v58 = vpop.f32.mrf.mxu1  ;;  %12096 = vmatprep.subr.bf16.mxu1 %v13892_v27 }
 0x427   : > { %18347 = vst [vmem:[#allocation62_spill] sm:$0xff] %v15790_v42  ;;  %v15792_v13 = vpop.f32.mrf.mxu0  ;;  %v11803_v24 = vadd.f32 %v11802_v58, %v11801_v54  ;;  %v13889_v42 = vld [vmem:[#allocation6 + $0x488] sm:$0xff]  }
 0x428   : > { %18348 = vst [vmem:[#allocation63_spill] sm:$0xff] %v15792_v13  ;;  %v11804_v1 = vpop.f32.mrf.mxu1  ;;  %v13894_v13 = vld [vmem:[#allocation6 + $0x4c0] sm:$0xff]   ;;  %11995 = vmatpush3.bf16.msra.mxu0 %v13889_v42 }
 0x429   : > { %v15794_v60 = vpop.f32.mrf.mxu0  ;;  %v15797_v18 = vadd.f32 %v11803_v24, %v15634_v29  ;;  %v13895_v24 = vld [vmem:[#allocation6 + $0x568] sm:$0xff]   ;;  %11996 = vmatprep.subr.bf16.mxu0 %v13894_v13  ;;  %v13899_v42 = vld [vmem:[#allocation6 + $0x520] sm:$0xff]  }
 0x42a   : > { %18349 = vst [vmem:[#allocation64_spill] sm:$0xff] %v15794_v60  ;;  %v11805_v47 = vpop.f32.mrf.mxu1  ;;  %v13893_v60 = vld [vmem:[#allocation6 + $0x530] sm:$0xff]  }
 0x42b   : > { %18350 = vst [vmem:[#allocation65_spill] sm:$0xff] %v15797_v18  ;;  %v15799_v39 = vpop.f32.mrf.mxu0  ;;  %v11806_v44 = vadd.f32 %v11805_v47, %v11804_v1  ;;  %v13896_v1 = vld [vmem:[#allocation6 + $0x480] sm:$0xff]   ;;  %12097 = vmatpush3.bf16.msra.mxu1 %v13893_v60  ;;  %v13900_v60 = vld [vmem:[#allocation6 + $0x558] sm:$0xff]  }
 0x42c   : > { %18351 = vst [vmem:[#allocation66_spill] sm:$0xff] %v15799_v39  ;;  %v11807_v54 = vpop.f32.mrf.mxu1  ;;  %12098 = vmatprep.subr.bf16.mxu1 %v13895_v24  ;;  %11997 = vmatpush3.bf16.msra.mxu0 %v13896_v1 }
 0x42d   : > { %v15801_v58 = vpop.f32.mrf.mxu0  ;;  %v15804_v29 = vadd.f32 %v11806_v44, %v15637_v20  ;;  %v13898_v20 = vld [vmem:[#allocation6 + $0x560] sm:$0xff]  }
 0x42e   : > { %18352 = vst [vmem:[#allocation67_spill] sm:$0xff] %v15801_v58  ;;  %v11808_v18 = vpop.f32.mrf.mxu1 }
 0x42f   : > { %v15806_v39 = vpop.f32.mrf.mxu0  ;;  %v11809_v36 = vadd.f32 %v11808_v18, %v11807_v54  ;;  %12099 = vmatpush3.bf16.msra.mxu1 %v13897_v7 }
 0x430   : > { %18353 = vst [vmem:[#allocation68_spill] sm:$0xff] %v15806_v39  ;;  %v11810_v40 = vpop.f32.mrf.mxu1  ;;  %12100 = vmatprep.subr.bf16.mxu1 %v13898_v20 }
 0x431   : > { %v15808_v10 = vpop.f32.mrf.mxu0  ;;  %v15811_v23 = vadd.f32 %v11809_v36, %v15640_v57 }
 0x432   : > { %v11811_v47 = vpop.f32.mrf.mxu1 }
 0x433   : > { %18354 = vst [vmem:[#allocation69_spill] sm:$0xff] %v15811_v23  ;;  %v15813_v27 = vpop.f32.mrf.mxu0  ;;  %v11812_v44 = vadd.f32 %v11811_v47, %v11810_v40  ;;  %12101 = vmatpush3.bf16.msra.mxu1 %v13899_v42 }
 0x434   : > { %v11813_v39 = vpop.f32.mrf.mxu1  ;;  %12102 = vmatprep.subr.bf16.mxu1 %v13900_v60 }
 0x435   : > { %v15815_v18 = vpop.f32.mrf.mxu0  ;;  %v15818_v54 = vadd.f32 %v11812_v44, %v15643_v55 }
 0x436   : > { %v11814_v13 = vpop.f32.mrf.mxu1 }
 0x437   : > { %18355 = vst [vmem:[#allocation70_spill] sm:$0xff] %v15818_v54  ;;  %v15820_v57 = vpop.f32.mrf.mxu0  ;;  %v11815_v24 = vadd.f32 %v11814_v13, %v11813_v39 }
 0x438   : > { %v11816_v36 = vpop.f32.mrf.mxu1 }
 0x439   : > { %v15823_v23 = vadd.f32 %v11815_v24, %v15646_v0  ;;  %v15825_v1 = vpop.f32.mrf.mxu0 }
 0x43a   : > { %v11817_v40 = vpop.f32.mrf.mxu1 }
 0x43b   : > { %18356 = vst [vmem:[#allocation71_spill] sm:$0xff] %v15823_v23  ;;  %v11818_v7 = vadd.f32 %v11817_v40, %v11816_v36  ;;  %v15830_v20 = vpop.f32.mrf.mxu0 }
 0x43c   : > { %v11819_v47 = vpop.f32.mrf.mxu1 }
 0x43d   : > { %v15828_v55 = vadd.f32 %v11818_v7, %v15649_v35  ;;  %v15835_v42 = vpop.f32.mrf.mxu0 }
 0x43e   : > { %v11820_v44 = vpop.f32.mrf.mxu1 }
 0x43f   : > { %18357 = vst [vmem:[#allocation72_spill] sm:$0xff] %v15828_v55  ;;  %v11821_v54 = vadd.f32 %v11820_v44, %v11819_v47  ;;  %v15840_v36 = vpop.f32.mrf.mxu0 }
 0x440   : > { %v11822_v58 = vpop.f32.mrf.mxu1 }
 0x441   : > { %v15833_v39 = vadd.f32 %v11821_v54, %v15652_v17  ;;  %v15845_v47 = vpop.f32.mrf.mxu0 }
 0x442   : > { %v11823_v0 = vpop.f32.mrf.mxu1 }
 0x443   : > { %18358 = vst [vmem:[#allocation73_spill] sm:$0xff] %v15833_v39  ;;  %v11824_v60 = vadd.f32 %v11823_v0, %v11822_v58  ;;  %v15850_v58 = vpop.f32.mrf.mxu0 }
 0x444   : > { %v11825_v13 = vpop.f32.mrf.mxu1 }
 0x445   : > { %v15838_v24 = vadd.f32 %v11824_v60, %v15655_v22 }
 0x446   : > { %v11826_v35 = vpop.f32.mrf.mxu1 }
 0x447   : > { %18359 = vst [vmem:[#allocation74_spill] sm:$0xff] %v15838_v24  ;;  %v11827_v40 = vadd.f32 %v11826_v35, %v11825_v13  ;;  %v15855_v13 = vpop.f32.mrf.mxu0 }
 0x448   : > { %v11828_v7 = vpop.f32.mrf.mxu1 }
 0x449   : > { %v15843_v23 = vadd.f32 %v11827_v40, %v15658_v50 }
 0x44a   : > { %v11829_v17 = vpop.f32.mrf.mxu1 }
 0x44b   : > { %18360 = vst [vmem:[#allocation75_spill] sm:$0xff] %v15843_v23  ;;  %v11830_v54 = vadd.f32 %v11829_v17, %v11828_v7  ;;  %v15860_v7 = vpop.f32.mrf.mxu0 }
 0x44c   : > { %v11831_v44 = vpop.f32.mrf.mxu1 }
 0x44d   : > { %v15848_v39 = vadd.f32 %v11830_v54, %v15662_v14 }
 0x44e   : > { %v11832_v22 = vpop.f32.mrf.mxu1 }
 0x44f   : > { %18361 = vst [vmem:[#allocation76_spill] sm:$0xff] %v15848_v39  ;;  %v11833_v0 = vadd.f32 %v11832_v22, %v11831_v44  ;;  %v15865_v44 = vpop.f32.mrf.mxu0  ;;  %v13901_v22 = vld [vmem:[#allocation6 + $0x518] sm:$0xff]  }
 0x450   : > { %v11834_v60 = vpop.f32.mrf.mxu1  ;;  %12103 = vmatpush3.bf16.msra.mxu1 %v13901_v22 }
 0x451   : > { %v15853_v24 = vadd.f32 %v11833_v0, %v15665_v26  ;;  %v4536_v0 = vld [vmem:[#allocation2 + $0x1] sm:$0xff] }
 0x452   : > { %v11835_v50 = vpop.f32.mrf.mxu1 }
 0x453   : > { %18362 = vst [vmem:[#allocation77_spill] sm:$0xff] %v15853_v24  ;;  %v11836_v35 = vadd.f32 %v11835_v50, %v11834_v60  ;;  %v4537_v24 = vld [vmem:[#allocation2 + $0x9] sm:$0xff]  ;;  %v13902_v50 = vld [vmem:[#allocation6 + $0x550] sm:$0xff]  }
 0x454   : > { %v11837_v40 = vpop.f32.mrf.mxu1  ;;  %v4568_v60 = vpack.c.bf16 %v4537_v24, %v4536_v0  ;;  %12104 = vmatprep.subr.bf16.mxu1 %v13902_v50  ;;  %v13903_v24 = vld [vmem:[#allocation6 + $0x510] sm:$0xff]   ;;  %v13906_v50 = vld [vmem:[#allocation6 + $0x508] sm:$0xff]  }
 0x455   : > { %v15858_v23 = vadd.f32 %v11836_v35, %v15668_v3  ;;  %v11870_v3 = vadd.f32 %v15701_v30, %v15696_v45  ;;  %v11873_v45 = vadd.f32 %v15708_v5, %v15703_v16  ;;  %12105 = vmatpush3.bf16.msra.mxu1 %v13903_v24  ;;  %v13907_v16 = vld [vmem:[#allocation6 + $0x5b8] sm:$0xff]   ;;  %v13908_v5 = vld [vmem:[#allocation6 + $0x540] sm:$0xff]  }
 0x456   : > { %v11838_v14 = vpop.f32.mrf.mxu1  ;;  %5533 = vmatprep.mubr.bf16.mxu0 %v4568_v60 }
 0x457   : > { %v11839_v17 = vadd.f32 %v11838_v14, %v11837_v40  ;;  %v11864_v40 = vadd.f32 %v15687_v52, %v15680_v32  ;;  %v15874_v14 = vpop.f32.mrf.mxu0  ;;  %5534 = vmatmul.mubr.bf16.vlgmr.msra.gmra.mxu0 %v15616_v33  ;;  %v3952_v30 = vadd.f32 %v11870_v3, %v15692_v59  ;;  %v11876_v3 = vadd.f32 %v15715_v28, %v15710_v63 }
 0x458   : > { %v11840_v54 = vpop.f32.mrf.mxu1 }
 0x459   : > { %v15863_v39 = vadd.f32 %v11839_v17, %v15672_v19  ;;  %v3944_v33 = vadd.f32 %v11864_v40, %v15678_v38  ;;  %v11882_v38 = vadd.f32 %v15729_v49, %v15724_v31  ;;  %v11885_v31 = vadd.f32 %v15736_v56, %v15731_v43 }
 0x45a   : > { %v11841_v26 = vpop.f32.mrf.mxu1  ;;  %v11888_v43 = vadd.f32 %v15743_v48, %v15738_v11  ;;  %v18366_v11 = vld [vmem:[#allocation51_spill] sm:$0xff] }
 0x45b   : > { %v11842_v55 = vadd.f32 %v11841_v26, %v11840_v54  ;;  %v13904_v54 = vld [vmem:[#allocation6 + $0x548] sm:$0xff]   ;;  %v13905_v26 = vld [vmem:[#allocation6 + $0x5f8] sm:$0xff]   ;;  %v3968_v49 = vadd.f32 %v11882_v38, %v15720_v61 }
 0x45c   : > { %v11843_v35 = vpop.f32.mrf.mxu1  ;;  %12206 = vmatprep.subr.bf16.mxu0 %v13905_v26  ;;  %12106 = vmatprep.subr.bf16.mxu1 %v13904_v54  ;;  %v13909_v26 = vld [vmem:[#allocation6 + $0x500] sm:$0xff]   ;;  %v18363_v38 = vld [vmem:[#allocation55_spill] sm:$0xff] }
 0x45d   : > { %v15872_v19 = vadd.f32 %v11842_v55, %v15675_v41  ;;  %v11867_v41 = vadd.f32 %v15694_v46, %v15689_v15  ;;  %v15886_v55 = vpop.f32.mrf.mxu0  ;;  %12107 = vmatpush3.bf16.msra.mxu1 %v13906_v50  ;;  %12207 = vmatpush3.bf16.msra.mxu0 %v13907_v16 }
 0x45e   : > { %v11844_v17 = vpop.f32.mrf.mxu1  ;;  %12108 = vmatprep.subr.bf16.mxu1 %v13908_v5 }
 0x45f   : > { %v11845_v0 = vadd.f32 %v11844_v17, %v11843_v35  ;;  %v3955_v35 = vadd.f32 %v11873_v45, %v15699_v6  ;;  %v3947_v46 = vadd.f32 %v11867_v41, %v15685_v53  ;;  %v15894_v40 = vpop.f32.mrf.mxu0  ;;  %v11879_v6 = vadd.f32 %v15722_v8, %v15717_v51 }
 0x460   : > { %v13464_v32 = vpop.f32.mrf.mxu1  ;;  %v3960_v53 = vadd.f32 %v11876_v3, %v15706_v25  ;;  %v11894_v25 = vadd.f32 %v15757_v21, %v15752_v4 }
 0x461   : > { %v15883_v52 = vadd.f32 %v11845_v0, %v15682_v12  ;;  %v4113_v22 = vadd.f32 %v13464_v32, %v3952_v30  ;;  %12109 = vmatpush3.bf16.msra.mxu1 %v13909_v26  ;;  %v15903_v30 = vpop.f32.mrf.mxu0  ;;  %v3963_v61 = vadd.f32 %v11879_v6, %v15713_v37  ;;  %v18364_v37 = vld [vmem:[#allocation49_spill] sm:$0xff] }
 0x462   : > { %v4104_v60 = vpop.f32.mrf.mxu1 }
 0x463   : > { %v4105_v59 = vadd.f32 %v4104_v60, %v3944_v33  ;;  %v4265_v17 = vmul.f32 0.2, %v4113_v22  ;;  %vm4233_vm5 = vcmp.gt.f32.partialorder %v4113_v22, 0.0  ;;  %v15913_v16 = vpop.f32.mrf.mxu0 }
 0x464   : > { %v13465_v15 = vpop.f32.mrf.mxu1 }
 0x465   : > { %v4263_v12 = vmul.f32 0.2, %v4105_v59  ;;  %vm4231_vm4 = vcmp.gt.f32.partialorder %v4105_v59, 0.0  ;;  %v4116_v24 = vadd.f32 %v13465_v15, %v3955_v35  ;;  %v4297_v33 = vsel %vm4233_vm5, %v4113_v22, %v4265_v17  ;;  %v13910_v15 = vld [vmem:[#allocation6 + $0x5f0] sm:$0xff]  }
 0x466   : > { %v4107_v54 = vpop.f32.mrf.mxu1  ;;  %v3971_v22 = vadd.f32 %v11885_v31, %v15727_v9  ;;  %v18365_v9 = vld [vmem:[#allocation47_spill] sm:$0xff]  ;;  %12208 = vmatprep.subr.bf16.mxu0 %v13910_v15 }
 0x467   : > { %v4108_v63 = vadd.f32 %v4107_v54, %v3947_v46  ;;  %v4295_v28 = vsel %vm4231_vm4, %v4105_v59, %v4263_v12  ;;  %v4266_v32 = vmul.f32 0.2, %v4116_v24  ;;  %vm4234_vm7 = vcmp.gt.f32.partialorder %v4116_v24, 0.0 }
 0x468   : > { %v13468_v0 = vpop.f32.mrf.mxu1  ;;  %4359 = vrot.lane.b32.xlu0 %v4295_v28, %s14261_s20  ;;  %v11897_v12 = vadd.f32 %v18363_v38, %v15759_v34  ;;  %v3984_v46 = vadd.f32 %v11894_v25, %v18364_v37  ;;  %v11891_v48 = vadd.f32 %v18366_v11, %v18365_v9  ;;  %v18375_v37 = vld [vmem:[#allocation61_spill] sm:$0xff] }
 0x469   : > { %vm4232_vm6 = vcmp.gt.f32.partialorder %v4108_v63, 0.0  ;;  %v4264_v45 = vmul.f32 0.2, %v4108_v63  ;;  %v4129_v51 = vadd.f32 %v13468_v0, %v3968_v49  ;;  %v4298_v59 = vsel %vm4234_vm7, %v4116_v24, %v4266_v32  ;;  %v18367_v24 = vld [vmem:[#allocation46_spill] sm:$0xff]  ;;  %v18377_v9 = vld [vmem:[#allocation57_spill] sm:$0xff] }
 0x46a   : > { %v4120_v41 = vpop.f32.mrf.mxu1  ;;  %v3976_v54 = vadd.f32 %v11888_v43, %v18367_v24  ;;  %v13911_v49 = vld [vmem:[#allocation6 + $0x5b0] sm:$0xff]  }
 0x46b   : > { %v4121_v8 = vadd.f32 %v4120_v41, %v3960_v53  ;;  %v4296_v60 = vsel %vm4232_vm6, %v4108_v63, %v4264_v45  ;;  %v4269_v3 = vmul.f32 0.2, %v4129_v51  ;;  %vm4237_vm9 = vcmp.gt.f32.partialorder %v4129_v51, 0.0  ;;  %v15923_v63 = vpop.f32.mrf.mxu0  ;;  %v18368_v45 = vld [vmem:[#allocation53_spill] sm:$0xff]  ;;  %v18369_v41 = vld [vmem:[#allocation50_spill] sm:$0xff]  ;;  %12209 = vmatpush3.bf16.msra.mxu0 %v13911_v49  ;;  %v18378_v49 = vld [vmem:[#allocation56_spill] sm:$0xff] }
 0x46c   : > { %v13469_v50 = vpop.f32.mrf.mxu1  ;;  %4361 = vrot.lane.b32.xlu1 %v4296_v60, %s14261_s20  ;;  %4363 = vrot.lane.b32.xlu0 %v4297_v33, %s14261_s20  ;;  %v11900_v32 = vadd.f32 %v15771_v2, %v18368_v45  ;;  %v3987_v33 = vadd.f32 %v11897_v12, %v18369_v41  ;;  %v18370_v60 = vld [vmem:[#allocation59_spill] sm:$0xff]  ;;  %v18380_v41 = vld [vmem:[#allocation66_spill] sm:$0xff] }
 0x46d   : > { %v4267_v56 = vmul.f32 0.2, %v4121_v8  ;;  %vm4235_vm8 = vcmp.gt.f32.partialorder %v4121_v8, 0.0  ;;  %v4132_v4 = vadd.f32 %v13469_v50, %v3971_v22  ;;  %v4301_v31 = vsel %vm4237_vm9, %v4129_v51, %v4269_v3  ;;  %v15933_v51 = vpop.f32.mrf.mxu0 }
 0x46e   : > { %v4123_v5 = vpop.f32.mrf.mxu1  ;;  %v11906_v25 = vadd.f32 %v15785_v62, %v18370_v60  ;;  %v18374_v62 = vld [vmem:[#allocation52_spill] sm:$0xff] }
 0x46f   : > { %v4124_v21 = vadd.f32 %v4123_v5, %v3963_v61  ;;  %v4299_v35 = vsel %vm4235_vm8, %v4121_v8, %v4267_v56  ;;  %v4270_v6 = vmul.f32 0.2, %v4132_v4  ;;  %vm4238_vm11 = vcmp.gt.f32.partialorder %v4132_v4, 0.0  ;;  %v18371_v61 = vld [vmem:[#allocation48_spill] sm:$0xff] }
 0x470   : > { %v13472_v17 = vpop.f32.mrf.mxu1  ;;  %4365 = vrot.lane.b32.xlu1 %v4298_v59, %s14261_s20  ;;  %4367 = vrot.lane.b32.xlu0 %v4299_v35, %s14261_s20  ;;  %v3979_v43 = vadd.f32 %v11891_v48, %v18371_v61  ;;  %v18373_v35 = vld [vmem:[#allocation58_spill] sm:$0xff]  ;;  %v3992_v12 = vadd.f32 %v11900_v32, %v18374_v62  ;;  %v4000_v11 = vadd.f32 %v11906_v25, %v18377_v9  ;;  %v18379_v32 = vld [vmem:[#allocation64_spill] sm:$0xff]  ;;  %v13913_v9 = vld [vmem:[#allocation6 + $0x5a8] sm:$0xff]  }
 0x471   : > { %vm4236_vm10 = vcmp.gt.f32.partialorder %v4124_v21, 0.0  ;;  %v4268_v26 = vmul.f32 0.2, %v4124_v21  ;;  %v4145_v28 = vadd.f32 %v13472_v17, %v3984_v46  ;;  %v4302_v59 = vsel %vm4238_vm11, %v4132_v4, %v4270_v6  ;;  %v18376_v46 = vld [vmem:[#allocation63_spill] sm:$0xff]  ;;  %v15943_v4 = vpop.f32.mrf.mxu0  ;;  %v18381_v60 = vld [vmem:[#allocation60_spill] sm:$0xff] }
 0x472   : > { %v4136_v34 = vpop.f32.mrf.mxu1  ;;  %v11909_v17 = vadd.f32 %v18376_v46, %v18375_v37 }
 0x473   : > { %v4137_v0 = vadd.f32 %v4136_v34, %v3976_v54  ;;  %v4300_v53 = vsel %vm4236_vm10, %v4124_v21, %v4268_v26  ;;  %v4273_v56 = vmul.f32 0.2, %v4145_v28  ;;  %vm4241_vm13 = vcmp.gt.f32.partialorder %v4145_v28, 0.0  ;;  %v18372_v21 = vld [vmem:[#allocation54_spill] sm:$0xff]  ;;  %v15953_v25 = vpop.f32.mrf.mxu0 }
 0x474   : > { %v13473_v8 = vpop.f32.mrf.mxu1  ;;  %4369 = vrot.lane.b32.xlu1 %v4300_v53, %s14261_s20  ;;  %4371 = vrot.lane.b32.xlu0 %v4301_v31, %s14261_s20  ;;  %v11903_v15 = vadd.f32 %v18373_v35, %v18372_v21  ;;  %v11918_v53 = vadd.f32 %v15813_v27, %v15808_v10  ;;  %v18382_v21 = vld [vmem:[#allocation67_spill] sm:$0xff]  ;;  %v18383_v35 = vld [vmem:[#allocation68_spill] sm:$0xff] }
 0x475   : > { %v4271_v50 = vmul.f32 0.2, %v4137_v0  ;;  %vm4239_vm12 = vcmp.gt.f32.partialorder %v4137_v0, 0.0  ;;  %v4148_v2 = vadd.f32 %v13473_v8, %v3987_v33  ;;  %v4305_v26 = vsel %vm4241_vm13, %v4145_v28, %v4273_v56 }
 0x476   : > { %v4139_v22 = vpop.f32.mrf.mxu1  ;;  %v3995_v45 = vadd.f32 %v11903_v15, %v18378_v49  ;;  %v11912_v33 = vadd.f32 %v18380_v41, %v18379_v32  ;;  %v4003_v28 = vadd.f32 %v11909_v17, %v18381_v60  ;;  %v11915_v15 = vadd.f32 %v18383_v35, %v18382_v21  ;;  %v18388_v60 = vld [vmem:[#allocation72_spill] sm:$0xff]  ;;  %v18390_v21 = vld [vmem:[#allocation73_spill] sm:$0xff] }
 0x477   : > { %v4140_v5 = vadd.f32 %v4139_v22, %v3979_v43  ;;  %v4303_v3 = vsel %vm4239_vm12, %v4137_v0, %v4271_v50  ;;  %v4274_v24 = vmul.f32 0.2, %v4148_v2  ;;  %vm4242_vm15 = vcmp.gt.f32.partialorder %v4148_v2, 0.0  ;;  %v13912_v22 = vld [vmem:[#allocation6 + $0x5e8] sm:$0xff]  }
 0x478   : > { %v13476_v38 = vpop.f32.mrf.mxu1  ;;  %4373 = vrot.lane.b32.xlu1 %v4302_v59, %s14261_s20  ;;  %4375 = vrot.lane.b32.xlu0 %v4303_v3, %s14261_s20  ;;  %v4016_v59 = vadd.f32 %v11918_v53, %v15804_v29  ;;  %v11927_v41 = vadd.f32 %v15840_v36, %v15835_v42 }
 0x479   : > { %vm4240_vm14 = vcmp.gt.f32.partialorder %v4140_v5, 0.0  ;;  %v4272_v48 = vmul.f32 0.2, %v4140_v5  ;;  %v4161_v34 = vadd.f32 %v13476_v38, %v4000_v11  ;;  %v4306_v61 = vsel %vm4242_vm15, %v4148_v2, %v4274_v24  ;;  %v18384_v2 = vld [vmem:[#allocation62_spill] sm:$0xff]  ;;  %12210 = vmatprep.subr.bf16.mxu0 %v13912_v22 }
 0x47a   : > { %v4152_v54 = vpop.f32.mrf.mxu1  ;;  %v4008_v38 = vadd.f32 %v11912_v33, %v18384_v2  ;;  %v11924_v11 = vadd.f32 %v15830_v20, %v15825_v1  ;;  %12211 = vmatpush3.bf16.msra.mxu0 %v13913_v9  ;;  %v11942_v22 = vadd.f32 %v15913_v16, %v15903_v30 }
 0x47b   : > { %v4153_v6 = vadd.f32 %v4152_v54, %v3992_v12  ;;  %v4304_v0 = vsel %vm4240_vm14, %v4140_v5, %v4272_v48  ;;  %v4277_v43 = vmul.f32 0.2, %v4161_v34  ;;  %v11921_v5 = vadd.f32 %v15820_v57, %v15815_v18  ;;  %v15963_v12 = vpop.f32.mrf.mxu0  ;;  %v18385_v48 = vld [vmem:[#allocation69_spill] sm:$0xff] }
 0x47c   : > { %v13477_v31 = vpop.f32.mrf.mxu1  ;;  %4377 = vrot.lane.b32.xlu1 %v4304_v0, %s14261_s20  ;;  %4379 = vrot.lane.b32.xlu0 %v4305_v26, %s14261_s20  ;;  %vm4245_vm2 = vcmp.gt.f32.partialorder %v4161_v34, 0.0  ;;  %v11930_v26 = vadd.f32 %v15850_v58, %v15845_v47  ;;  %v18386_v0 = vld [vmem:[#allocation65_spill] sm:$0xff]  ;;  %v18387_v47 = vld [vmem:[#allocation70_spill] sm:$0xff] }
 0x47d   : > { %v4275_v8 = vmul.f32 0.2, %v4153_v6  ;;  %vm4243_vm1 = vcmp.gt.f32.partialorder %v4153_v6, 0.0  ;;  %v4164_v10 = vadd.f32 %v13477_v31, %v4003_v28  ;;  %v4309_v17 = vsel %vm4245_vm2, %v4161_v34, %v4277_v43  ;;  %v15973_v34 = vpop.f32.mrf.mxu0 }
 0x47e   : > { %v4155_v50 = vpop.f32.mrf.mxu1  ;;  %v4019_v24 = vadd.f32 %v11921_v5, %v18385_v48  ;;  %v4011_v53 = vadd.f32 %v11915_v15, %v18386_v0  ;;  %v4024_v58 = vadd.f32 %v11924_v11, %v18387_v47  ;;  %v4032_v28 = vadd.f32 %v11930_v26, %v18388_v60  ;;  %v13915_v0 = vld [vmem:[#allocation6 + $0x5a0] sm:$0xff]  }
 0x47f   : > { %v4156_v27 = vadd.f32 %v4155_v50, %v3995_v45  ;;  %v4307_v56 = vsel %vm4243_vm1, %v4153_v6, %v4275_v8  ;;  %v4278_v57 = vmul.f32 0.2, %v4164_v10  ;;  %vm4246_vm4 = vcmp.gt.f32.partialorder %v4164_v10, 0.0 }
 0x480   : > { %v13480_v3 = vpop.f32.mrf.mxu1  ;;  %4381 = vrot.lane.b32.xlu1 %v4306_v61, %s14261_s20  ;;  %4383 = vrot.lane.b32.xlu0 %v4307_v56, %s14261_s20  ;;  %v11933_v8 = vadd.f32 %v15860_v7, %v15855_v13  ;;  %v11952_v61 = vpop.f32.mrf.mxu0  ;;  %v18389_v13 = vld [vmem:[#allocation71_spill] sm:$0xff] }
 0x481   : > { %vm4244_vm3 = vcmp.gt.f32.partialorder %v4156_v27, 0.0  ;;  %v4276_v62 = vmul.f32 0.2, %v4156_v27  ;;  %v4177_v37 = vadd.f32 %v13480_v3, %v4016_v59  ;;  %v4310_v45 = vsel %vm4246_vm4, %v4164_v10, %v4278_v57 }
 0x482   : > { %v4168_v18 = vpop.f32.mrf.mxu1  ;;  %v4027_v7 = vadd.f32 %v11927_v41, %v18389_v13  ;;  %v11936_v59 = vadd.f32 %v15874_v14, %v15865_v44  ;;  %v4035_v35 = vadd.f32 %v11933_v8, %v18390_v21  ;;  %v11953_v15 = vpop.f32.mrf.mxu0  ;;  %v11945_v57 = vadd.f32 %v15933_v51, %v15923_v63  ;;  %v18392_v14 = vld [vmem:[#allocation74_spill] sm:$0xff] }
 0x483   : > { %v4169_v29 = vadd.f32 %v4168_v18, %v4008_v38  ;;  %v4308_v46 = vsel %vm4244_vm3, %v4156_v27, %v4276_v62  ;;  %v4281_v31 = vmul.f32 0.2, %v4177_v37  ;;  %vm4249_vm6 = vcmp.gt.f32.partialorder %v4177_v37, 0.0  ;;  %v13914_v18 = vld [vmem:[#allocation6 + $0x5e0] sm:$0xff]  }
 0x484   : > { %v13481_v54 = vpop.f32.mrf.mxu1  ;;  %4385 = vrot.lane.b32.xlu1 %v4308_v46, %s14261_s20  ;;  %4387 = vrot.lane.b32.xlu0 %v4309_v17, %s14261_s20  ;;  %v11939_v44 = vadd.f32 %v15894_v40, %v15886_v55  ;;  %v4040_v9 = vadd.f32 %v11936_v59, %v18392_v14  ;;  %v11955_v48 = vpop.f32.mrf.mxu0  ;;  %v11954_v55 = vadd.f32 %v11953_v15, %v11952_v61  ;;  %v13916_v15 = vld [vmem:[#allocation6 + $0x5d8] sm:$0xff]  }
 0x485   : > { %v4279_v6 = vmul.f32 0.2, %v4169_v29  ;;  %vm4247_vm5 = vcmp.gt.f32.partialorder %v4169_v29, 0.0  ;;  %v4180_v1 = vadd.f32 %v13481_v54, %v4019_v24  ;;  %v4313_v27 = vsel %vm4249_vm6, %v4177_v37, %v4281_v31  ;;  %12212 = vmatprep.subr.bf16.mxu0 %v13914_v18  ;;  %v18393_v31 = vld [vmem:[#allocation77_spill] sm:$0xff] }
 0x486   : > { %v4171_v20 = vpop.f32.mrf.mxu1  ;;  %12213 = vmatpush3.bf16.msra.mxu0 %v13915_v0  ;;  %v11951_v8 = vadd.f32 %v15973_v34, %v15963_v12  ;;  %v4064_v61 = vadd.f32 %v11954_v55, %v15872_v19  ;;  %v13921_v18 = vld [vmem:[#allocation6 + $0x588] sm:$0xff]   ;;  %vm4455_vm6 = vcmask 523648   ;;  %v13923_v55 = vld [vmem:[#allocation6 + $0x638] sm:$0xff]  }
 0x487   : > { %v4172_v49 = vadd.f32 %v4171_v20, %v4011_v53  ;;  %v4311_v32 = vsel %vm4247_vm5, %v4169_v29, %v4279_v6  ;;  %v4282_v43 = vmul.f32 0.2, %v4180_v1  ;;  %vm4250_vm8 = vcmp.gt.f32.partialorder %v4180_v1, 0.0  ;;  %v18391_v29 = vld [vmem:[#allocation76_spill] sm:$0xff]  ;;  %12214 = vmatprep.subr.bf16.mxu0 %v13916_v15 }
 0x488   : > { %v13484_v33 = vpop.f32.mrf.mxu1  ;;  %4389 = vrot.lane.b32.xlu1 %v4310_v45, %s14261_s20  ;;  %4391 = vrot.lane.b32.xlu0 %v4311_v32, %s14261_s20  ;;  %v4048_v46 = vadd.f32 %v11942_v22, %v18391_v29  ;;  %v11948_v53 = vadd.f32 %v15953_v25, %v15943_v4  ;;  %v11956_v32 = vpop.f32.mrf.mxu0  ;;  %v13926_v29 = vld [vmem:[#allocation6 + $0x5c0] sm:$0xff]  }
 0x489   : > { %vm4248_vm7 = vcmp.gt.f32.partialorder %v4172_v49, 0.0  ;;  %v4280_v50 = vmul.f32 0.2, %v4172_v49  ;;  %v4193_v56 = vadd.f32 %v13484_v33, %v4032_v28  ;;  %v4314_v38 = vsel %vm4250_vm8, %v4180_v1, %v4282_v43 }
 0x48a   : > { %v4184_v10 = vpop.f32.mrf.mxu1  ;;  %v4051_v1 = vadd.f32 %v11945_v57, %v18393_v31  ;;  %v4056_v28 = vadd.f32 %v11948_v53, %v15858_v23  ;;  %v13922_v57 = vld [vmem:[#allocation6 + $0x678] sm:$0xff]  }
 0x48b   : > { %v4185_v42 = vadd.f32 %v4184_v10, %v4024_v58  ;;  %v4312_v36 = vsel %vm4248_vm7, %v4172_v49, %v4280_v50  ;;  %v4285_v62 = vmul.f32 0.2, %v4193_v56  ;;  %vm4253_vm10 = vcmp.gt.f32.partialorder %v4193_v56, 0.0  ;;  %v18394_v49 = vld [vmem:[#allocation75_spill] sm:$0xff]  ;;  %12318 = vmatprep.subr.bf16.mxu1 %v13922_v57  ;;  %v13935_v57 = vld [vmem:[#allocation6 + $0x610] sm:$0xff]  }
 0x48c   : > { %v13485_v5 = vpop.f32.mrf.mxu1  ;;  %4393 = vrot.lane.b32.xlu1 %v4312_v36, %s14261_s20  ;;  %4395 = vrot.lane.b32.xlu0 %v4313_v27, %s14261_s20  ;;  %v4043_v45 = vadd.f32 %v11939_v44, %v18394_v49  ;;  %v11957_v50 = vadd.f32 %v11956_v32, %v11955_v48  ;;  %v4584_v48 = vld [vmem:[#allocation2 + $0x2] sm:$0xff] }
 0x48d   : > { %v4283_v3 = vmul.f32 0.2, %v4185_v42  ;;  %vm4251_vm9 = vcmp.gt.f32.partialorder %v4185_v42, 0.0  ;;  %v4196_v37 = vadd.f32 %v13485_v5, %v4035_v35  ;;  %v4317_v6 = vsel %vm4253_vm10, %v4193_v56, %v4285_v62  ;;  %v13917_v62 = vld [vmem:[#allocation6 + $0x598] sm:$0xff]  }
 0x48e   : > { %v4187_v2 = vpop.f32.mrf.mxu1  ;;  %v4067_v23 = vadd.f32 %v11957_v50, %v15883_v52  ;;  %v4059_v5 = vadd.f32 %v11951_v8, %v15863_v39  ;;  %12215 = vmatpush3.bf16.msra.mxu0 %v13917_v62  ;;  %v13927_v8 = vld [vmem:[#allocation6 + $0x668] sm:$0xff]   ;;  %v13933_v62 = vld [vmem:[#allocation6 + $0x618] sm:$0xff]  }
 0x48f   : > { %v4188_v30 = vadd.f32 %v4187_v2, %v4027_v7  ;;  %v4315_v16 = vsel %vm4251_vm9, %v4185_v42, %v4283_v3  ;;  %v4286_v63 = vmul.f32 0.2, %v4196_v37  ;;  %vm4254_vm12 = vcmp.gt.f32.partialorder %v4196_v37, 0.0 }
 0x490   : > { %v13488_v17 = vpop.f32.mrf.mxu1  ;;  %4397 = vrot.lane.b32.xlu1 %v4314_v38, %s14261_s20  ;;  %4399 = vrot.lane.b32.xlu0 %v4315_v16, %s14261_s20  ;;  %v13920_v16 = vld [vmem:[#allocation6 + $0x5c8] sm:$0xff]  }
 0x491   : > { %vm4252_vm11 = vcmp.gt.f32.partialorder %v4188_v30, 0.0  ;;  %v4284_v11 = vmul.f32 0.2, %v4188_v30  ;;  %v4209_v24 = vadd.f32 %v13488_v17, %v4048_v46  ;;  %v4318_v4 = vsel %vm4254_vm12, %v4196_v37, %v4286_v63  ;;  %v13918_v37 = vld [vmem:[#allocation6 + $0x5d0] sm:$0xff]   ;;  %v13928_v46 = vld [vmem:[#allocation6 + $0x580] sm:$0xff]  }
 0x492   : > { %v4200_v54 = vpop.f32.mrf.mxu1  ;;  %12216 = vmatprep.subr.bf16.mxu0 %v13918_v37 }
 0x493   : > { %v4201_v51 = vadd.f32 %v4200_v54, %v4040_v9  ;;  %v4316_v26 = vsel %vm4252_vm11, %v4188_v30, %v4284_v11  ;;  %v4289_v41 = vmul.f32 0.2, %v4209_v24  ;;  %vm4257_vm14 = vcmp.gt.f32.partialorder %v4209_v24, 0.0  ;;  %v13919_v30 = vld [vmem:[#allocation6 + $0x590] sm:$0xff]   ;;  %v16025_v54 = vld [vmem:[#allocation6 + $0x6b8] sm:$0xff]  }
 0x494   : > { %v13489_v20 = vpop.f32.mrf.mxu1  ;;  %4401 = vrot.lane.b32.xlu1 %v4316_v26, %s14261_s20  ;;  %4403 = vrot.lane.b32.xlu0 %v4317_v6, %s14261_s20 }
 0x495   : > { %v4287_v40 = vmul.f32 0.2, %v4201_v51  ;;  %vm4255_vm13 = vcmp.gt.f32.partialorder %v4201_v51, 0.0  ;;  %v4212_v33 = vadd.f32 %v13489_v20, %v4051_v1  ;;  %v4321_v56 = vsel %vm4257_vm14, %v4209_v24, %v4289_v41  ;;  %12217 = vmatpush3.bf16.msra.mxu0 %v13919_v30  ;;  %v4585_v24 = vld [vmem:[#allocation2 + $0xa] sm:$0xff]  ;;  %v13934_v30 = vld [vmem:[#allocation6 + $0x650] sm:$0xff]  }
 0x496   : > { %v4203_v47 = vpop.f32.mrf.mxu1  ;;  %12218 = vmatprep.subr.bf16.mxu0 %v13920_v16  ;;  %v4616_v31 = vpack.c.bf16 %v4585_v24, %v4584_v48 }
 0x497   : > { %v4204_v58 = vadd.f32 %v4203_v47, %v4043_v45  ;;  %v4319_v25 = vsel %vm4255_vm13, %v4201_v51, %v4287_v40  ;;  %v4290_v10 = vmul.f32 0.2, %v4212_v33  ;;  %vm4258_vm1 = vcmp.gt.f32.partialorder %v4212_v33, 0.0  ;;  %v13924_v40 = vld [vmem:[#allocation6 + $0x670] sm:$0xff]  }
 0x498   : > { %v13492_v60 = vpop.f32.mrf.mxu1  ;;  %4405 = vrot.lane.b32.xlu1 %v4318_v4, %s14261_s20  ;;  %4407 = vrot.lane.b32.xlu0 %v4319_v25, %s14261_s20  ;;  %v13925_v25 = vld [vmem:[#allocation6 + $0x630] sm:$0xff]  }
 0x499   : > { %vm4256_vm15 = vcmp.gt.f32.partialorder %v4204_v58, 0.0  ;;  %v4288_v43 = vmul.f32 0.2, %v4204_v58  ;;  %v4225_v42 = vadd.f32 %v13492_v60, %v4064_v61  ;;  %v4322_v13 = vsel %vm4258_vm1, %v4212_v33, %v4290_v10  ;;  %12219 = vmatpush3.bf16.msra.mxu0 %v13921_v18 }
 0x49a   : > { %v4216_v27 = vpop.f32.mrf.mxu1  ;;  %12220 = vmatprep.subr.bf16.mxu0 %v13926_v29 }
 0x49b   : > { %v4217_v36 = vadd.f32 %v4216_v27, %v4056_v28  ;;  %v4320_v22 = vsel %vm4256_vm15, %v4204_v58, %v4288_v43  ;;  %v4293_v7 = vmul.f32 0.2, %v4225_v42  ;;  %vm4261_vm3 = vcmp.gt.f32.partialorder %v4225_v42, 0.0 }
 0x49c   : > { %v13493_v12 = vpop.f32.mrf.mxu1  ;;  %4409 = vrot.lane.b32.xlu1 %v4320_v22, %s14261_s20  ;;  %4411 = vrot.lane.b32.xlu0 %v4321_v56, %s14261_s20 }
 0x49d   : > { %v4291_v34 = vmul.f32 0.2, %v4217_v36  ;;  %vm4259_vm2 = vcmp.gt.f32.partialorder %v4217_v36, 0.0  ;;  %v4228_v59 = vadd.f32 %v13493_v12, %v4067_v23  ;;  %v4325_v52 = vsel %vm4261_vm3, %v4225_v42, %v4293_v7  ;;  %12221 = vmatpush3.bf16.msra.mxu0 %v13928_v46 }
 0x49e   : > { %v4219_v19 = vpop.f32.mrf.mxu1  ;;  %13494 = vmatprep.subr.bf16.mxu0 %v16025_v54 }
 0x49f   : > { %v4220_v3 = vadd.f32 %v4219_v19, %v4059_v5  ;;  %v4323_v21 = vsel %vm4259_vm2, %v4217_v36, %v4291_v34  ;;  %v4294_v2 = vmul.f32 0.2, %v4228_v59  ;;  %vm4262_vm5 = vcmp.gt.f32.partialorder %v4228_v59, 0.0  ;;  %v13929_v36 = vld [vmem:[#allocation6 + $0x628] sm:$0xff]   ;;  %v13930_v34 = vld [vmem:[#allocation6 + $0x660] sm:$0xff]  }
 0x4a0   : > { %4413 = vrot.lane.b32.xlu1 %v4322_v13, %s14261_s20  ;;  %4415 = vrot.lane.b32.xlu0 %v4323_v21, %s14261_s20  ;;  %v13931_v19 = vld [vmem:[#allocation6 + $0x620] sm:$0xff]  }
 0x4a1   : > { %vm4260_vm4 = vcmp.gt.f32.partialorder %v4220_v3, 0.0  ;;  %v4292_v35 = vmul.f32 0.2, %v4220_v3  ;;  %v4326_v39 = vsel %vm4262_vm5, %v4228_v59, %v4294_v2  ;;  %v13932_v59 = vld [vmem:[#allocation6 + $0x658] sm:$0xff]  }
 0x4a3   : > { %v4324_v38 = vsel %vm4260_vm4, %v4220_v3, %v4292_v35 }
 0x4a4   : > { %4417 = vrot.lane.b32.xlu1 %v4324_v38, %s14261_s20  ;;  %4419 = vrot.lane.b32.xlu0 %v4325_v52, %s14261_s20 }
 0x4a8   : > { %4421 = vrot.lane.b32.xlu1 %v4326_v39, %s14261_s20 }
 0x4da   : > { %v4360_v17 = vpop.permute.xlu0 %4359 }
 0x4db   : > { %4456 = vst.msk [vmem:[#allocation2 + $0x19] sm:$0xff] %vm4455_vm6, %v4360_v17  ;;  %v13936_v17 = vld [vmem:[#allocation6 + $0x648] sm:$0xff]  }
 0x4de   : > { %v4362_v44 = vpop.permute.xlu1 %4361  ;;  %v4364_v14 = vpop.permute.xlu0 %4363 }
 0x4df   : > { %4457 = vst.msk [vmem:[#allocation2 + $0x21] sm:$0xff] %vm4455_vm6, %v4362_v44  ;;  %4458 = vst.msk [vmem:[#allocation2 + $0x31] sm:$0xff] %vm4455_vm6, %v4364_v14 }
 0x4e2   : > { %v4366_v9 = vpop.permute.xlu1 %4365  ;;  %v4368_v11 = vpop.permute.xlu0 %4367  ;;  %v4538_v63 = vld [vmem:[#allocation2 + $0x19] sm:$0xff] }
 0x4e3   : > { %4459 = vst.msk [vmem:[#allocation2 + $0x39] sm:$0xff] %vm4455_vm6, %v4366_v9  ;;  %4460 = vst.msk [vmem:[#allocation2 + $0x49] sm:$0xff] %vm4455_vm6, %v4368_v11  ;;  %v4632_v0 = vld [vmem:[#allocation2 + $0x18] sm:$0xff] }
 0x4e6   : > { %v4370_v51 = vpop.permute.xlu1 %4369  ;;  %v4372_v26 = vpop.permute.xlu0 %4371  ;;  %v4539_v6 = vld [vmem:[#allocation2 + $0x21] sm:$0xff]  ;;  %v4540_v49 = vld [vmem:[#allocation2 + $0x31] sm:$0xff] }
 0x4e7   : > { %v4633_v53 = vld [vmem:[#allocation2 + $0x20] sm:$0xff]  ;;  %v16028_v1 = vpack.c.bf16 %v4539_v6, %v4538_v63  ;;  %4461 = vst.msk [vmem:[#allocation2 + $0x51] sm:$0xff] %vm4455_vm6, %v4370_v51  ;;  %4462 = vst.msk [vmem:[#allocation2 + $0x61] sm:$0xff] %vm4455_vm6, %v4372_v26  ;;  %v4634_v33 = vld [vmem:[#allocation2 + $0x30] sm:$0xff] }
 0x4e8   : > { %v4664_v20 = vpack.c.bf16 %v4633_v53, %v4632_v0  ;;  %v4586_v60 = vld [vmem:[#allocation2 + $0x1a] sm:$0xff]  ;;  %v4587_v28 = vld [vmem:[#allocation2 + $0x22] sm:$0xff]  ;;  %v13939_v0 = vld [vmem:[#allocation6 + $0x640] sm:$0xff]  }
 0x4e9   : > { %5541 = vmatprep.mubr.bf16.mxu0 %v16028_v1  ;;  %v16043_v27 = vpack.c.bf16 %v4587_v28, %v4586_v60  ;;  %v13938_v51 = vld [vmem:[#allocation6 + $0x608] sm:$0xff]  }
 0x4ea   : > { %5694 = vmatprep.mubr.bf16.mxu1 %v4664_v20  ;;  %v4374_v45 = vpop.permute.xlu1 %4373  ;;  %5542 = vmatmul.mubr.bf16.gmra.mxu0 %v4664_v20  ;;  %v4376_v32 = vpop.permute.xlu0 %4375  ;;  %v4541_v41 = vld [vmem:[#allocation2 + $0x39] sm:$0xff]  ;;  %v4542_v56 = vld [vmem:[#allocation2 + $0x49] sm:$0xff] }
 0x4eb   : > { %5695 = vmatmul.mubr.bf16.vlgmr.msra.gmra.mxu1 %v4616_v31  ;;  %v4635_v47 = vld [vmem:[#allocation2 + $0x38] sm:$0xff]  ;;  %4463 = vst.msk [vmem:[#allocation2 + $0x69] sm:$0xff] %vm4455_vm6, %v4374_v45  ;;  %4464 = vst.msk [vmem:[#allocation2 + $0x79] sm:$0xff] %vm4455_vm6, %v4376_v32  ;;  %v16035_v58 = vpack.c.bf16 %v4541_v41, %v4540_v49  ;;  %v4636_v42 = vld [vmem:[#allocation2 + $0x48] sm:$0xff] }
 0x4ec   : > { %v16037_v4 = vpack.c.bf16 %v4635_v47, %v4634_v33  ;;  %12319 = vmatpush3.bf16.msra.mxu1 %v13923_v55  ;;  %v4588_v13 = vld [vmem:[#allocation2 + $0x32] sm:$0xff]  ;;  %v4589_v7 = vld [vmem:[#allocation2 + $0x3a] sm:$0xff] }
 0x4ed   : > { %12320 = vmatprep.subr.bf16.mxu1 %v13924_v40  ;;  %5549 = vmatprep.mubr.bf16.mxu0 %v16035_v58  ;;  %v16057_v2 = vpack.c.bf16 %v4589_v7, %v4588_v13  ;;  %v13940_v20 = vld [vmem:[#allocation6 + $0x600] sm:$0xff]  }
 0x4ee   : > { %5702 = vmatprep.mubr.bf16.mxu1 %v16037_v4  ;;  %v4378_v50 = vpop.permute.xlu1 %4377  ;;  %v4380_v61 = vpop.permute.xlu0 %4379  ;;  %v4543_v43 = vld [vmem:[#allocation2 + $0x51] sm:$0xff]  ;;  %v4544_v38 = vld [vmem:[#allocation2 + $0x61] sm:$0xff] }
 0x4ef   : > { %v4637_v10 = vld [vmem:[#allocation2 + $0x50] sm:$0xff]  ;;  %4465 = vst.msk [vmem:[#allocation2 + $0x81] sm:$0xff] %vm4455_vm6, %v4378_v50  ;;  %4466 = vst.msk [vmem:[#allocation2 + $0x91] sm:$0xff] %vm4455_vm6, %v4380_v61  ;;  %v16045_v22 = vpack.c.bf16 %v4543_v43, %v4542_v56  ;;  %v4638_v52 = vld [vmem:[#allocation2 + $0x60] sm:$0xff] }
 0x4f0   : > { %12321 = vmatpush3.bf16.msra.mxu1 %v13925_v25  ;;  %v16047_v12 = vpack.c.bf16 %v4637_v10, %v4636_v42  ;;  %v4590_v29 = vld [vmem:[#allocation2 + $0x4a] sm:$0xff]  ;;  %v4591_v46 = vld [vmem:[#allocation2 + $0x52] sm:$0xff] }
 0x4f1   : > { %12322 = vmatprep.subr.bf16.mxu1 %v13927_v8  ;;  %v16071_v48 = vpack.c.bf16 %v4591_v46, %v4590_v29 }
 0x4f2   : > { %v4382_v23 = vpop.permute.xlu1 %4381  ;;  %5550 = vmatmul.mubr.bf16.gmra.mxu0 %v16037_v4  ;;  %v4384_v5 = vpop.permute.xlu0 %4383  ;;  %v4545_v35 = vld [vmem:[#allocation2 + $0x69] sm:$0xff]  ;;  %v4546_v24 = vld [vmem:[#allocation2 + $0x79] sm:$0xff] }
 0x4f3   : > { %5703 = vmatmul.mubr.bf16.gmra.mxu1 %v16043_v27  ;;  %4467 = vst.msk [vmem:[#allocation2 + $0x99] sm:$0xff] %vm4455_vm6, %v4382_v23  ;;  %4468 = vst.msk [vmem:[#allocation2 + $0xa9] sm:$0xff] %vm4455_vm6, %v4384_v5  ;;  %5557 = vmatprep.mubr.bf16.mxu0 %v16045_v22  ;;  %v4639_v15 = vld [vmem:[#allocation2 + $0x68] sm:$0xff]  ;;  %v16059_v39 = vpack.c.bf16 %v4545_v35, %v4544_v38  ;;  %v4640_v63 = vld [vmem:[#allocation2 + $0x78] sm:$0xff] }
 0x4f4   : > { %5710 = vmatprep.mubr.bf16.mxu1 %v16047_v12  ;;  %12323 = vmatpush3.bf16.msra.mxu1 %v13929_v36  ;;  %v16061_v37 = vpack.c.bf16 %v4639_v15, %v4638_v52  ;;  %v4592_v55 = vld [vmem:[#allocation2 + $0x62] sm:$0xff]  ;;  %v4593_v40 = vld [vmem:[#allocation2 + $0x6a] sm:$0xff] }
 0x4f5   : > { %12324 = vmatprep.subr.bf16.mxu1 %v13930_v34  ;;  %v16085_v33 = vpack.c.bf16 %v4593_v40, %v4592_v55 }
 0x4f6   : > { %v4386_v3 = vpop.permute.xlu1 %4385  ;;  %v4388_v21 = vpop.permute.xlu0 %4387  ;;  %v4547_v9 = vld [vmem:[#allocation2 + $0x81] sm:$0xff]  ;;  %v4548_v47 = vld [vmem:[#allocation2 + $0x91] sm:$0xff] }
 0x4f7   : > { %4469 = vst.msk [vmem:[#allocation2 + $0xb1] sm:$0xff] %vm4455_vm6, %v4386_v3  ;;  %4470 = vst.msk [vmem:[#allocation2 + $0xc1] sm:$0xff] %vm4455_vm6, %v4388_v21  ;;  %v4641_v11 = vld [vmem:[#allocation2 + $0x80] sm:$0xff]  ;;  %v16073_v26 = vpack.c.bf16 %v4547_v9, %v4546_v24  ;;  %v4642_v25 = vld [vmem:[#allocation2 + $0x90] sm:$0xff] }
 0x4f8   : > { %12325 = vmatpush3.bf16.msra.mxu1 %v13931_v19  ;;  %v16075_v6 = vpack.c.bf16 %v4641_v11, %v4640_v63  ;;  %v4594_v61 = vld [vmem:[#allocation2 + $0x7a] sm:$0xff]  ;;  %v4595_v43 = vld [vmem:[#allocation2 + $0x82] sm:$0xff] }
 0x4f9   : > { %12326 = vmatprep.subr.bf16.mxu1 %v13932_v59  ;;  %v16099_v34 = vpack.c.bf16 %v4595_v43, %v4594_v61 }
 0x4fa   : > { %v4390_v16 = vpop.permute.xlu1 %4389  ;;  %5558 = vmatmul.mubr.bf16.gmra.mxu0 %v16047_v12  ;;  %v4392_v18 = vpop.permute.xlu0 %4391  ;;  %v4549_v32 = vld [vmem:[#allocation2 + $0x99] sm:$0xff]  ;;  %v4550_v23 = vld [vmem:[#allocation2 + $0xa9] sm:$0xff] }
 0x4fb   : > { %5711 = vmatmul.mubr.bf16.gmra.mxu1 %v16057_v2  ;;  %4471 = vst.msk [vmem:[#allocation2 + $0xc9] sm:$0xff] %vm4455_vm6, %v4390_v16  ;;  %4472 = vst.msk [vmem:[#allocation2 + $0xd9] sm:$0xff] %vm4455_vm6, %v4392_v18  ;;  %5565 = vmatprep.mubr.bf16.mxu0 %v16059_v39  ;;  %v4643_v41 = vld [vmem:[#allocation2 + $0x98] sm:$0xff]  ;;  %v16087_v8 = vpack.c.bf16 %v4549_v32, %v4548_v47  ;;  %v4644_v5 = vld [vmem:[#allocation2 + $0xa8] sm:$0xff] }
 0x4fc   : > { %5718 = vmatprep.mubr.bf16.mxu1 %v16061_v37  ;;  %12327 = vmatpush3.bf16.msra.mxu1 %v13933_v62  ;;  %v16089_v60 = vpack.c.bf16 %v4643_v41, %v4642_v25  ;;  %v4596_v3 = vld [vmem:[#allocation2 + $0x92] sm:$0xff]  ;;  %v4597_v21 = vld [vmem:[#allocation2 + $0x9a] sm:$0xff] }
 0x4fd   : > { %12328 = vmatprep.subr.bf16.mxu1 %v13934_v30  ;;  %v16113_v62 = vpack.c.bf16 %v4597_v21, %v4596_v3 }
 0x4fe   : > { %v4394_v44 = vpop.permute.xlu1 %4393  ;;  %v4396_v14 = vpop.permute.xlu0 %4395  ;;  %v4551_v42 = vld [vmem:[#allocation2 + $0xb1] sm:$0xff]  ;;  %v4552_v30 = vld [vmem:[#allocation2 + $0xc1] sm:$0xff] }
 0x4ff   : > { %4473 = vst.msk [vmem:[#allocation2 + $0xe1] sm:$0xff] %vm4455_vm6, %v4394_v44  ;;  %4474 = vst.msk [vmem:[#allocation2 + $0xf1] sm:$0xff] %vm4455_vm6, %v4396_v14  ;;  %v4645_v36 = vld [vmem:[#allocation2 + $0xb0] sm:$0xff]  ;;  %v16101_v19 = vpack.c.bf16 %v4551_v42, %v4550_v23  ;;  %v4646_v16 = vld [vmem:[#allocation2 + $0xc0] sm:$0xff] }
 0x500   : > { %12329 = vmatpush3.bf16.msra.mxu1 %v13935_v57  ;;  %v16103_v13 = vpack.c.bf16 %v4645_v36, %v4644_v5  ;;  %v4598_v46 = vld [vmem:[#allocation2 + $0xaa] sm:$0xff] }
 0x501   : > { %12330 = vmatprep.subr.bf16.mxu1 %v13936_v17  ;;  %v4599_v17 = vld [vmem:[#allocation2 + $0xb2] sm:$0xff] }
 0x502   : > { %v4398_v53 = vpop.permute.xlu1 %4397  ;;  %5566 = vmatmul.mubr.bf16.gmra.mxu0 %v16061_v37  ;;  %v4400_v31 = vpop.permute.xlu0 %4399  ;;  %v4553_v38 = vld [vmem:[#allocation2 + $0xc9] sm:$0xff]  ;;  %v16124_v11 = vpack.c.bf16 %v4599_v17, %v4598_v46  ;;  %v4554_v24 = vld [vmem:[#allocation2 + $0xd9] sm:$0xff] }
 0x503   : > { %5719 = vmatmul.mubr.bf16.gmra.mxu1 %v16071_v48  ;;  %4475 = vst.msk [vmem:[#allocation2 + $0xf9] sm:$0xff] %vm4455_vm6, %v4398_v53  ;;  %4476 = vst.msk [vmem:[#allocation2 + $0x109] sm:$0xff] %vm4455_vm6, %v4400_v31  ;;  %5573 = vmatprep.mubr.bf16.mxu0 %v16073_v26  ;;  %v4647_v52 = vld [vmem:[#allocation2 + $0xc8] sm:$0xff]  ;;  %v16115_v18 = vpack.c.bf16 %v4553_v38, %v4552_v30  ;;  %v4648_v63 = vld [vmem:[#allocation2 + $0xd8] sm:$0xff] }
 0x504   : > { %5726 = vmatprep.mubr.bf16.mxu1 %v16075_v6  ;;  %12331 = vmatpush3.bf16.msra.mxu1 %v13938_v51  ;;  %v16117_v57 = vpack.c.bf16 %v4647_v52, %v4646_v16  ;;  %v4601_v55 = vld [vmem:[#allocation2 + $0xca] sm:$0xff] }
 0x505   : > { %12332 = vmatprep.subr.bf16.mxu1 %v13939_v0 }
 0x506   : > { %v4402_v49 = vpop.permute.xlu1 %4401  ;;  %v4404_v45 = vpop.permute.xlu0 %4403  ;;  %v4555_v44 = vld [vmem:[#allocation2 + $0xe1] sm:$0xff]  ;;  %v4556_v32 = vld [vmem:[#allocation2 + $0xf1] sm:$0xff] }
 0x507   : > { %4477 = vst.msk [vmem:[#allocation2 + $0x111] sm:$0xff] %vm4455_vm6, %v4402_v49  ;;  %4478 = vst.msk [vmem:[#allocation2 + $0x121] sm:$0xff] %vm4455_vm6, %v4404_v45  ;;  %v4649_v14 = vld [vmem:[#allocation2 + $0xe0] sm:$0xff]  ;;  %v16126_v0 = vpack.c.bf16 %v4555_v44, %v4554_v24  ;;  %v4650_v41 = vld [vmem:[#allocation2 + $0xf0] sm:$0xff] }
 0x508   : > { %12333 = vmatpush3.bf16.msra.mxu1 %v13940_v20  ;;  %v16128_v53 = vpack.c.bf16 %v4649_v14, %v4648_v63  ;;  %v4600_v20 = vld [vmem:[#allocation2 + $0xc2] sm:$0xff] }
 0x509   : > { %v16136_v45 = vpack.c.bf16 %v4601_v55, %v4600_v20 }
 0x50a   : > { %v4406_v28 = vpop.permute.xlu1 %4405  ;;  %5574 = vmatmul.mubr.bf16.gmra.mxu0 %v16075_v6  ;;  %v4408_v50 = vpop.permute.xlu0 %4407  ;;  %v4557_v40 = vld [vmem:[#allocation2 + $0xf9] sm:$0xff]  ;;  %v4652_v42 = vld [vmem:[#allocation2 + $0x108] sm:$0xff] }
 0x50b   : > { %5727 = vmatmul.mubr.bf16.gmra.mxu1 %v16085_v33  ;;  %4479 = vst.msk [vmem:[#allocation2 + $0x129] sm:$0xff] %vm4455_vm6, %v4406_v28  ;;  %4480 = vst.msk [vmem:[#allocation2 + $0x139] sm:$0xff] %vm4455_vm6, %v4408_v50  ;;  %5581 = vmatprep.mubr.bf16.mxu0 %v16087_v8  ;;  %v4651_v49 = vld [vmem:[#allocation2 + $0xf8] sm:$0xff]  ;;  %v16138_v47 = vpack.c.bf16 %v4557_v40, %v4556_v32  ;;  %v4603_v50 = vld [vmem:[#allocation2 + $0xe2] sm:$0xff] }
 0x50c   : > { %5734 = vmatprep.mubr.bf16.mxu1 %v16089_v60  ;;  %v16140_v25 = vpack.c.bf16 %v4651_v49, %v4650_v41  ;;  %v4602_v28 = vld [vmem:[#allocation2 + $0xda] sm:$0xff]  ;;  %v4604_v5 = vld [vmem:[#allocation2 + $0xf2] sm:$0xff] }
 0x50e   : > { %v4410_v10 = vpop.permute.xlu1 %4409  ;;  %v4412_v56 = vpop.permute.xlu0 %4411  ;;  %v4559_v61 = vld [vmem:[#allocation2 + $0x111] sm:$0xff] }
 0x50f   : > { %4481 = vst.msk [vmem:[#allocation2 + $0x141] sm:$0xff] %vm4455_vm6, %v4410_v10  ;;  %4482 = vst.msk [vmem:[#allocation2 + $0x151] sm:$0xff] %vm4455_vm6, %v4412_v56  ;;  %v4653_v43 = vld [vmem:[#allocation2 + $0x110] sm:$0xff]  ;;  %v16146_v10 = vpack.c.bf16 %v4603_v50, %v4602_v28 }
 0x510   : > { %v4558_v56 = vld [vmem:[#allocation2 + $0x109] sm:$0xff]  ;;  %v16150_v23 = vpack.c.bf16 %v4653_v43, %v4652_v42  ;;  %v4607_v16 = vld [vmem:[#allocation2 + $0x112] sm:$0xff] }
 0x511   : > { %v16148_v36 = vpack.c.bf16 %v4559_v61, %v4558_v56  ;;  %v4606_v30 = vld [vmem:[#allocation2 + $0x10a] sm:$0xff] }
 0x512   : > { %v4414_v7 = vpop.permute.xlu1 %4413  ;;  %5582 = vmatmul.mubr.bf16.gmra.mxu0 %v16089_v60  ;;  %v4416_v59 = vpop.permute.xlu0 %4415  ;;  %v4655_v3 = vld [vmem:[#allocation2 + $0x128] sm:$0xff]  ;;  %v16166_v17 = vpack.c.bf16 %v4607_v16, %v4606_v30  ;;  %v4562_v44 = vld [vmem:[#allocation2 + $0x139] sm:$0xff] }
 0x513   : > { %5735 = vmatmul.mubr.bf16.gmra.mxu1 %v16099_v34  ;;  %4483 = vst.msk [vmem:[#allocation2 + $0x159] sm:$0xff] %vm4455_vm6, %v4414_v7  ;;  %4484 = vst.msk [vmem:[#allocation2 + $0x169] sm:$0xff] %vm4455_vm6, %v4416_v59  ;;  %5589 = vmatprep.mubr.bf16.mxu0 %v16101_v19  ;;  %v4605_v7 = vld [vmem:[#allocation2 + $0xfa] sm:$0xff]  ;;  %v4561_v59 = vld [vmem:[#allocation2 + $0x129] sm:$0xff] }
 0x514   : > { %5742 = vmatprep.mubr.bf16.mxu1 %v16103_v13  ;;  %v16156_v21 = vpack.c.bf16 %v4605_v7, %v4604_v5  ;;  %v4656_v14 = vld [vmem:[#allocation2 + $0x138] sm:$0xff]  ;;  %v4608_v63 = vld [vmem:[#allocation2 + $0x122] sm:$0xff] }
 0x516   : > { %v4418_v35 = vpop.permute.xlu1 %4417  ;;  %v4420_v15 = vpop.permute.xlu0 %4419  ;;  %v4657_v46 = vld [vmem:[#allocation2 + $0x140] sm:$0xff]  ;;  %v4564_v49 = vld [vmem:[#allocation2 + $0x151] sm:$0xff] }
 0x517   : > { %4485 = vst.msk [vmem:[#allocation2 + $0x171] sm:$0xff] %vm4455_vm6, %v4418_v35  ;;  %4486 = vst.msk [vmem:[#allocation2 + $0x181] sm:$0xff] %vm4455_vm6, %v4420_v15  ;;  %v11998_v9 = vpop.f32.mrf.mxu0  ;;  %v4560_v35 = vld [vmem:[#allocation2 + $0x121] sm:$0xff]  ;;  %v16170_v24 = vpack.c.bf16 %v4657_v46, %v4656_v14  ;;  %v4658_v32 = vld [vmem:[#allocation2 + $0x150] sm:$0xff] }
 0x518   : > { %v4654_v15 = vld [vmem:[#allocation2 + $0x120] sm:$0xff]  ;;  %v16158_v38 = vpack.c.bf16 %v4561_v59, %v4560_v35 }
 0x519   : > { %v11999_v51 = vpop.f32.mrf.mxu0  ;;  %v16160_v52 = vpack.c.bf16 %v4655_v3, %v4654_v15  ;;  %v4610_v50 = vld [vmem:[#allocation2 + $0x13a] sm:$0xff]  ;;  %v4611_v61 = vld [vmem:[#allocation2 + $0x142] sm:$0xff] }
 0x51a   : > { %5590 = vmatmul.mubr.bf16.gmra.mxu0 %v16103_v13  ;;  %v4422_v29 = vpop.permute.xlu1 %4421  ;;  %v16130_v31 = vadd.f32 %v11999_v51, %v11998_v9  ;;  %v4609_v51 = vld [vmem:[#allocation2 + $0x12a] sm:$0xff]  ;;  %v4565_v20 = vld [vmem:[#allocation2 + $0x159] sm:$0xff]  ;;  %v16186_v42 = vpack.c.bf16 %v4611_v61, %v4610_v50 }
 0x51b   : > { %5743 = vmatmul.mubr.bf16.gmra.mxu1 %v16113_v62  ;;  %4487 = vst.msk [vmem:[#allocation2 + $0x189] sm:$0xff] %vm4455_vm6, %v4422_v29  ;;  %5597 = vmatprep.mubr.bf16.mxu0 %v16115_v18  ;;  %v4563_v29 = vld [vmem:[#allocation2 + $0x141] sm:$0xff]  ;;  %v4659_v55 = vld [vmem:[#allocation2 + $0x158] sm:$0xff]  ;;  %v16176_v40 = vpack.c.bf16 %v4609_v51, %v4608_v63  ;;  %v16178_v41 = vpack.c.bf16 %v4565_v20, %v4564_v49  ;;  %v4566_v5 = vld [vmem:[#allocation2 + $0x169] sm:$0xff] }
 0x51c   : > { %5750 = vmatprep.mubr.bf16.mxu1 %v16117_v57  ;;  %v16168_v9 = vpack.c.bf16 %v4563_v29, %v4562_v44  ;;  %v16180_v28 = vpack.c.bf16 %v4659_v55, %v4658_v32  ;;  %v4660_v7 = vld [vmem:[#allocation2 + $0x168] sm:$0xff]  ;;  %v4612_v35 = vld [vmem:[#allocation2 + $0x152] sm:$0xff]  ;;  %v4613_v15 = vld [vmem:[#allocation2 + $0x15a] sm:$0xff] }
 0x51d   : > { %v16196_v16 = vpack.c.bf16 %v4613_v15, %v4612_v35  ;;  %v13941_v51 = vld [vmem:[#allocation6 + $0x6b0] sm:$0xff]   ;;  %v13942_v20 = vld [vmem:[#allocation6 + $0x6a8] sm:$0xff]  }
 0x51e   : > { %v4567_v43 = vld [vmem:[#allocation2 + $0x171] sm:$0xff]  ;;  %v4662_v29 = vld [vmem:[#allocation2 + $0x180] sm:$0xff] }
 0x51f   : > { %v4661_v56 = vld [vmem:[#allocation2 + $0x170] sm:$0xff]  ;;  %v16188_v59 = vpack.c.bf16 %v4567_v43, %v4566_v5 }
 0x520   : > { %v16190_v3 = vpack.c.bf16 %v4661_v56, %v4660_v7  ;;  %v4614_v44 = vld [vmem:[#allocation2 + $0x16a] sm:$0xff]  ;;  %v4615_v14 = vld [vmem:[#allocation2 + $0x172] sm:$0xff] }
 0x521   : > { %v16204_v63 = vpack.c.bf16 %v4615_v14, %v4614_v44 }
 0x522   : > { %5598 = vmatmul.mubr.bf16.gmra.mxu0 %v16117_v57  ;;  %v4663_v30 = vld [vmem:[#allocation2 + $0x188] sm:$0xff] }
 0x523   : > { %5751 = vmatmul.mubr.bf16.gmra.mxu1 %v16124_v11  ;;  %5605 = vmatprep.mubr.bf16.mxu0 %v16126_v0  ;;  %v16198_v46 = vpack.c.bf16 %v4663_v30, %v4662_v29 }
 0x524   : > { %5758 = vmatprep.mubr.bf16.mxu1 %v16128_v53 }
 0x52a   : > { %5606 = vmatmul.mubr.bf16.gmra.mxu0 %v16128_v53 }
 0x52b   : > { %5759 = vmatmul.mubr.bf16.gmra.mxu1 %v16136_v45  ;;  %5613 = vmatprep.mubr.bf16.mxu0 %v16138_v47 }
 0x52c   : > { %5766 = vmatprep.mubr.bf16.mxu1 %v16140_v25 }
 0x532   : > { %5614 = vmatmul.mubr.bf16.gmra.mxu0 %v16140_v25 }
 0x533   : > { %5767 = vmatmul.mubr.bf16.gmra.mxu1 %v16146_v10  ;;  %5621 = vmatprep.mubr.bf16.mxu0 %v16148_v36 }
 0x534   : > { %5774 = vmatprep.mubr.bf16.mxu1 %v16150_v23 }
 0x53a   : > { %5622 = vmatmul.mubr.bf16.gmra.mxu0 %v16150_v23 }
 0x53b   : > { %5775 = vmatmul.mubr.bf16.gmra.mxu1 %v16156_v21  ;;  %5629 = vmatprep.mubr.bf16.mxu0 %v16158_v38 }
 0x53c   : > { %5782 = vmatprep.mubr.bf16.mxu1 %v16160_v52 }
 0x542   : > { %5630 = vmatmul.mubr.bf16.gmra.mxu0 %v16160_v52 }
 0x543   : > { %5783 = vmatmul.mubr.bf16.gmra.mxu1 %v16166_v17  ;;  %5637 = vmatprep.mubr.bf16.mxu0 %v16168_v9 }
 0x544   : > { %5790 = vmatprep.mubr.bf16.mxu1 %v16170_v24 }
 0x54a   : > { %5638 = vmatmul.mubr.bf16.gmra.mxu0 %v16170_v24 }
 0x54b   : > { %5791 = vmatmul.mubr.bf16.gmra.mxu1 %v16176_v40  ;;  %5645 = vmatprep.mubr.bf16.mxu0 %v16178_v41 }
 0x54c   : > { %5798 = vmatprep.mubr.bf16.mxu1 %v16180_v28 }
 0x552   : > { %5646 = vmatmul.mubr.bf16.gmra.mxu0 %v16180_v28 }
 0x553   : > { %5799 = vmatmul.mubr.bf16.gmra.mxu1 %v16186_v42  ;;  %5653 = vmatprep.mubr.bf16.mxu0 %v16188_v59 }
 0x554   : > { %5806 = vmatprep.mubr.bf16.mxu1 %v16190_v3 }
 0x55a   : > { %5654 = vmatmul.mubr.bf16.gmra.mxu0 %v16190_v3 }
 0x55b   : > { %5807 = vmatmul.mubr.bf16.gmra.mxu1 %v16196_v16  ;;  %5855 = vmatprep.mubr.bf16.mxu0 %v16043_v27  ;;  %v13943_v27 = vld [vmem:[#allocation6 + $0x6a0] sm:$0xff]  }
 0x55c   : > { %5814 = vmatprep.mubr.bf16.mxu1 %v16198_v46 }
 0x562   : > { %5856 = vmatmul.mubr.bf16.vlgmr.msra.gmra.mxu0 %v16028_v1  ;;  %v13944_v1 = vld [vmem:[#allocation6 + $0x698] sm:$0xff]  }
 0x563   : > { %5815 = vmatmul.mubr.bf16.gmra.mxu1 %v16204_v63  ;;  %5863 = vmatprep.mubr.bf16.mxu0 %v16057_v2  ;;  %v13945_v2 = vld [vmem:[#allocation6 + $0x690] sm:$0xff]  }
 0x564   : > { %6016 = vmatprep.mubr.bf16.mxu1 %v16035_v58  ;;  %13495 = vmatpush3.bf16.msra.mxu0 %v16025_v54  ;;  %v13946_v54 = vld [vmem:[#allocation6 + $0x688] sm:$0xff]  }
 0x565   : > { %13496 = vmatprep.subr.bf16.mxu0 %v13941_v51 }
 0x568   : > { %13497 = vmatpush3.bf16.msra.mxu0 %v13941_v51 }
 0x569   : > { %13498 = vmatprep.subr.bf16.mxu0 %v13942_v20 }
 0x56a   : > { %5864 = vmatmul.mubr.bf16.gmra.mxu0 %v16035_v58  ;;  %v13947_v58 = vld [vmem:[#allocation6 + $0x680] sm:$0xff]  }
 0x56b   : > { %6017 = vmatmul.mubr.bf16.vlgmr.msra.gmra.mxu1 %v16037_v4  ;;  %5871 = vmatprep.mubr.bf16.mxu0 %v16071_v48  ;;  %v12001_v4 = vpop.f32.mrf.mxu0 }
 0x56c   : > { %6024 = vmatprep.mubr.bf16.mxu1 %v16045_v22  ;;  %13499 = vmatpush3.bf16.msra.mxu0 %v13942_v20 }
 0x56d   : > { %13500 = vmatprep.subr.bf16.mxu0 %v13943_v27 }
 0x570   : > { %13501 = vmatpush3.bf16.msra.mxu0 %v13943_v27 }
 0x571   : > { %13502 = vmatprep.subr.bf16.mxu0 %v13944_v1 }
 0x572   : > { %5872 = vmatmul.mubr.bf16.gmra.mxu0 %v16045_v22  ;;  %v18395_v22 = vld [vmem:[#allocation45_spill] sm:$0xff] }
 0x573   : > { %6025 = vmatmul.mubr.bf16.gmra.mxu1 %v16047_v12  ;;  %5879 = vmatprep.mubr.bf16.mxu0 %v16085_v33  ;;  %v5067_v12 = vsub.s32 2, %v18395_v22 }
 0x574   : > { %6032 = vmatprep.mubr.bf16.mxu1 %v16059_v39  ;;  %13503 = vmatpush3.bf16.msra.mxu0 %v13944_v1 }
 0x575   : > { %13504 = vmatprep.subr.bf16.mxu0 %v13945_v2 }
 0x578   : > { %13505 = vmatpush3.bf16.msra.mxu0 %v13945_v2 }
 0x579   : > { %13506 = vmatprep.subr.bf16.mxu0 %v13946_v54 }
 0x57a   : > { %5880 = vmatmul.mubr.bf16.gmra.mxu0 %v16059_v39  ;;  %v12002_v39 = vpop.f32.mrf.mxu0 }
 0x57b   : > { %6033 = vmatmul.mubr.bf16.gmra.mxu1 %v16061_v37  ;;  %5887 = vmatprep.mubr.bf16.mxu0 %v16099_v34  ;;  %v14095_v37 = vld [vmem:[#allocation8] sm:$0x1f]  ;;  %v12003_v34 = vadd.f32 %v12002_v39, %v12001_v4 }
 0x57c   : > { %6040 = vmatprep.mubr.bf16.mxu1 %v16073_v26  ;;  %13507 = vmatpush3.bf16.msra.mxu0 %v13946_v54  ;;  %v16244_v48 = vrot.slane %v14095_v37, %v5067_v12 }
 0x57d   : > { %13508 = vmatprep.subr.bf16.mxu0 %v13947_v58 }
 0x580   : > { %13509 = vmatpush3.bf16.msra.mxu0 %v13947_v58 }
 0x582   : > { %5888 = vmatmul.mubr.bf16.gmra.mxu0 %v16073_v26 }
 0x583   : > { %6041 = vmatmul.mubr.bf16.gmra.mxu1 %v16075_v6  ;;  %5895 = vmatprep.mubr.bf16.mxu0 %v16113_v62 }
 0x584   : > { %6048 = vmatprep.mubr.bf16.mxu1 %v16087_v8 }
 0x58a   : > { %5896 = vmatmul.mubr.bf16.gmra.mxu0 %v16087_v8 }
 0x58b   : > { %6049 = vmatmul.mubr.bf16.gmra.mxu1 %v16089_v60  ;;  %5903 = vmatprep.mubr.bf16.mxu0 %v16124_v11  ;;  %v5536_v60 = vadd.f32 %v16130_v31, %v16244_v48 }
 0x58c   : > { %6056 = vmatprep.mubr.bf16.mxu1 %v16101_v19 }
 0x592   : > { %5904 = vmatmul.mubr.bf16.gmra.mxu0 %v16101_v19 }
 0x593   : > { %6057 = vmatmul.mubr.bf16.gmra.mxu1 %v16103_v13  ;;  %5911 = vmatprep.mubr.bf16.mxu0 %v16136_v45 }
 0x594   : > { %6064 = vmatprep.mubr.bf16.mxu1 %v16115_v18 }
 0x59a   : > { %5912 = vmatmul.mubr.bf16.gmra.mxu0 %v16115_v18 }
 0x59b   : > { %6065 = vmatmul.mubr.bf16.gmra.mxu1 %v16117_v57  ;;  %5919 = vmatprep.mubr.bf16.mxu0 %v16146_v10 }
 0x59c   : > { %6072 = vmatprep.mubr.bf16.mxu1 %v16126_v0 }
 0x5a2   : > { %5920 = vmatmul.mubr.bf16.gmra.mxu0 %v16126_v0 }
 0x5a3   : > { %6073 = vmatmul.mubr.bf16.gmra.mxu1 %v16128_v53  ;;  %5927 = vmatprep.mubr.bf16.mxu0 %v16156_v21  ;;  %v5539_v53 = vadd.f32 %v12003_v34, %v16244_v48 }
 0x5a4   : > { %6080 = vmatprep.mubr.bf16.mxu1 %v16138_v47 }
 0x5aa   : > { %v12004_v26 = vpop.f32.mrf.mxu0  ;;  %5928 = vmatmul.mubr.bf16.gmra.mxu0 %v16138_v47 }
 0x5ab   : > { %v12110_v6 = vpop.f32.mrf.mxu1  ;;  %6081 = vmatmul.mubr.bf16.gmra.mxu1 %v16140_v25  ;;  %5935 = vmatprep.mubr.bf16.mxu0 %v16166_v17 }
 0x5ac   : > { %6088 = vmatprep.mubr.bf16.mxu1 %v16148_v36  ;;  %v12005_v33 = vpop.f32.mrf.mxu0 }
 0x5ad   : > { %v12111_v8 = vpop.f32.mrf.mxu1  ;;  %v12006_v19 = vadd.f32 %v12005_v33, %v12004_v26 }
 0x5ae   : > { %v12112_v13 = vadd.f32 %v12111_v8, %v12110_v6  ;;  %v12007_v62 = vpop.f32.mrf.mxu0 }
 0x5af   : > { %v12113_v18 = vpop.f32.mrf.mxu1  ;;  %v5544_v55 = vadd.f32 %v12006_v19, %v16244_v48 }
 0x5b0   : > { %v16252_v57 = vadd.f32 %v12112_v13, %v5536_v60  ;;  %v12008_v11 = vpop.f32.mrf.mxu0 }
 0x5b1   : > { %v12114_v0 = vpop.f32.mrf.mxu1  ;;  %v12009_v45 = vadd.f32 %v12008_v11, %v12007_v62 }
 0x5b2   : > { %v12115_v47 = vadd.f32 %v12114_v0, %v12113_v18  ;;  %v12010_v25 = vpop.f32.mrf.mxu0  ;;  %5936 = vmatmul.mubr.bf16.gmra.mxu0 %v16148_v36 }
 0x5b3   : > { %v12116_v10 = vpop.f32.mrf.mxu1  ;;  %6089 = vmatmul.mubr.bf16.gmra.mxu1 %v16150_v23  ;;  %5943 = vmatprep.mubr.bf16.mxu0 %v16176_v40  ;;  %v5547_v23 = vadd.f32 %v12009_v45, %v16244_v48 }
 0x5b4   : > { %v16257_v31 = vadd.f32 %v12115_v47, %v5539_v53  ;;  %6096 = vmatprep.mubr.bf16.mxu1 %v16158_v38  ;;  %v12011_v21 = vpop.f32.mrf.mxu0 }
 0x5b5   : > { %v12117_v17 = vpop.f32.mrf.mxu1  ;;  %v12012_v49 = vadd.f32 %v12011_v21, %v12010_v25  ;;  %v4759_v21 = vld [vmem:[#allocation2 + $0x18a] sm:$0xff] }
 0x5b6   : > { %v12118_v32 = vadd.f32 %v12117_v17, %v12116_v10  ;;  %v12013_v50 = vpop.f32.mrf.mxu0  ;;  %v4758_v10 = vld [vmem:[#allocation2 + $0x182] sm:$0xff] }
 0x5b7   : > { %v12119_v61 = vpop.f32.mrf.mxu1  ;;  %v5552_v44 = vadd.f32 %v12012_v49, %v16244_v48  ;;  %v4853_v49 = vld [vmem:[#allocation2 + $0x189] sm:$0xff] }
 0x5b8   : > { %v16262_v43 = vadd.f32 %v12118_v32, %v5544_v55  ;;  %v12014_v56 = vpop.f32.mrf.mxu0 }
 0x5b9   : > { %v12120_v36 = vpop.f32.mrf.mxu1  ;;  %v12015_v5 = vadd.f32 %v12014_v56, %v12013_v50  ;;  %v16294_v50 = vpack.c.bf16 %v4759_v21, %v4758_v10 }
 0x5ba   : > { %v12121_v7 = vadd.f32 %v12120_v36, %v12119_v61  ;;  %v12016_v35 = vpop.f32.mrf.mxu0  ;;  %5944 = vmatmul.mubr.bf16.gmra.mxu0 %v16158_v38 }
 0x5bb   : > { %v12122_v40 = vpop.f32.mrf.mxu1  ;;  %6097 = vmatmul.mubr.bf16.gmra.mxu1 %v16160_v52  ;;  %5951 = vmatprep.mubr.bf16.mxu0 %v16186_v42  ;;  %v5555_v52 = vadd.f32 %v12015_v5, %v16244_v48 }
 0x5bc   : > { %v16267_v15 = vadd.f32 %v12121_v7, %v5547_v23  ;;  %6104 = vmatprep.mubr.bf16.mxu1 %v16168_v9  ;;  %v12017_v30 = vpop.f32.mrf.mxu0 }
 0x5bd   : > { %v12123_v29 = vpop.f32.mrf.mxu1  ;;  %v12018_v14 = vadd.f32 %v12017_v30, %v12016_v35 }
 0x5be   : > { %v12124_v51 = vadd.f32 %v12123_v29, %v12122_v40  ;;  %v12019_v20 = vpop.f32.mrf.mxu0  ;;  %v4854_v29 = vld [vmem:[#allocation2 + $0x199] sm:$0xff] }
 0x5bf   : > { %v12125_v27 = vpop.f32.mrf.mxu1  ;;  %v5560_v26 = vadd.f32 %v12018_v14, %v16244_v48 }
 0x5c0   : > { %v16272_v1 = vadd.f32 %v12124_v51, %v5552_v44  ;;  %v12020_v2 = vpop.f32.mrf.mxu0  ;;  %v4855_v44 = vld [vmem:[#allocation2 + $0x1a1] sm:$0xff] }
 0x5c1   : > { %v12126_v38 = vpop.f32.mrf.mxu1  ;;  %v12021_v54 = vadd.f32 %v12020_v2, %v12019_v20 }
 0x5c2   : > { %v12127_v58 = vadd.f32 %v12126_v38, %v12125_v27  ;;  %v12022_v4 = vpop.f32.mrf.mxu0  ;;  %5952 = vmatmul.mubr.bf16.gmra.mxu0 %v16168_v9  ;;  %v4872_v38 = vld [vmem:[#allocation2 + $0x32] sm:$0xff] }
 0x5c3   : > { %v12128_v42 = vpop.f32.mrf.mxu1  ;;  %6105 = vmatmul.mubr.bf16.gmra.mxu1 %v16170_v24  ;;  %5959 = vmatprep.mubr.bf16.mxu0 %v16196_v16  ;;  %v5563_v24 = vadd.f32 %v12021_v54, %v16244_v48 }
 0x5c4   : > { %v16277_v12 = vadd.f32 %v12127_v58, %v5555_v52  ;;  %6112 = vmatprep.mubr.bf16.mxu1 %v16178_v41  ;;  %v12023_v39 = vpop.f32.mrf.mxu0  ;;  %v4873_v52 = vld [vmem:[#allocation2 + $0x3a] sm:$0xff] }
 0x5c5   : > { %v12129_v37 = vpop.f32.mrf.mxu1  ;;  %v12024_v6 = vadd.f32 %v12023_v39, %v12022_v4 }
 0x5c6   : > { %v12130_v33 = vadd.f32 %v12129_v37, %v12128_v42  ;;  %v12025_v8 = vpop.f32.mrf.mxu0  ;;  %v4904_v37 = vpack.c.bf16 %v4873_v52, %v4872_v38 }
 0x5c7   : > { %v12131_v60 = vpop.f32.mrf.mxu1  ;;  %v5568_v45 = vadd.f32 %v12024_v6, %v16244_v48 }
 0x5c8   : > { %v16282_v34 = vadd.f32 %v12130_v33, %v5560_v26  ;;  %v12026_v19 = vpop.f32.mrf.mxu0 }
 0x5c9   : > { %v12132_v9 = vpop.f32.mrf.mxu1  ;;  %v12027_v13 = vadd.f32 %v12026_v19, %v12025_v8 }
 0x5ca   : > { %v12133_v62 = vadd.f32 %v12132_v9, %v12131_v60  ;;  %v12028_v18 = vpop.f32.mrf.mxu0  ;;  %5960 = vmatmul.mubr.bf16.gmra.mxu0 %v16178_v41 }
 0x5cb   : > { %v12134_v16 = vpop.f32.mrf.mxu1  ;;  %6113 = vmatmul.mubr.bf16.gmra.mxu1 %v16180_v28  ;;  %5967 = vmatprep.mubr.bf16.mxu0 %v16204_v63  ;;  %v4852_v63 = vld [vmem:[#allocation2 + $0x181] sm:$0xff]  ;;  %v5571_v61 = vadd.f32 %v12027_v13, %v16244_v48  ;;  %v4874_v13 = vld [vmem:[#allocation2 + $0x4a] sm:$0xff] }
 0x5cc   : > { %v16287_v11 = vadd.f32 %v12133_v62, %v5563_v24  ;;  %6120 = vmatprep.mubr.bf16.mxu1 %v16188_v59  ;;  %v12029_v0 = vpop.f32.mrf.mxu0  ;;  %v4870_v23 = vpack.c.bf16 %v4853_v49, %v4852_v63  ;;  %v4875_v62 = vld [vmem:[#allocation2 + $0x52] sm:$0xff] }
 0x5cd   : > { %v12135_v53 = vpop.f32.mrf.mxu1  ;;  %v12030_v47 = vadd.f32 %v12029_v0, %v12028_v18  ;;  %v14096_v0 = vld [vmem:[#allocation2] sm:$0xff]  ;;  %v4905_v21 = vpack.c.bf16 %v4875_v62, %v4874_v13 }
 0x5ce   : > { %v12136_v25 = vadd.f32 %v12135_v53, %v12134_v16  ;;  %v12031_v17 = vpop.f32.mrf.mxu0  ;;  %v16310_v53 = vpack.c.bf16 %v14096_v0, %v14096_v0  ;;  %v4884_v62 = vld [vmem:[#allocation2 + $0xc2] sm:$0xff] }
 0x5cf   : > { %v12137_v55 = vpop.f32.mrf.mxu1  ;;  %v5576_v14 = vadd.f32 %v12030_v47, %v16244_v48  ;;  %v4877_v47 = vld [vmem:[#allocation2 + $0x6a] sm:$0xff] }
 0x5d0   : > { %v16292_v41 = vadd.f32 %v12136_v25, %v5568_v45  ;;  %v12032_v28 = vpop.f32.mrf.mxu0  ;;  %v4876_v45 = vld [vmem:[#allocation2 + $0x62] sm:$0xff] }
 0x5d1   : > { %v12138_v32 = vpop.f32.mrf.mxu1  ;;  %v12033_v56 = vadd.f32 %v12032_v28, %v12031_v17  ;;  %v4906_v28 = vpack.c.bf16 %v4877_v47, %v4876_v45 }
 0x5d2   : > { %v12139_v36 = vadd.f32 %v12138_v32, %v12137_v55  ;;  %v12034_v5 = vpop.f32.mrf.mxu0  ;;  %5968 = vmatmul.mubr.bf16.gmra.mxu0 %v16188_v59 }
 0x5d3   : > { %v12140_v7 = vpop.f32.mrf.mxu1  ;;  %6121 = vmatmul.mubr.bf16.gmra.mxu1 %v16190_v3  ;;  %5975 = vmatprep.mubr.bf16.mxu0 %v16294_v50  ;;  %v4871_v3 = vpack.c.bf16 %v4855_v44, %v4854_v29  ;;  %v5579_v4 = vadd.f32 %v12033_v56, %v16244_v48 }
 0x5d4   : > { %v16299_v35 = vadd.f32 %v12139_v36, %v5571_v61  ;;  %6128 = vmatprep.mubr.bf16.mxu1 %v4870_v23  ;;  %v12035_v40 = vpop.f32.mrf.mxu0 }
 0x5d5   : > { %v12141_v30 = vpop.f32.mrf.mxu1  ;;  %v12036_v51 = vadd.f32 %v12035_v40, %v12034_v5  ;;  %v4878_v40 = vld [vmem:[#allocation2 + $0x7a] sm:$0xff] }
 0x5d6   : > { %v12142_v20 = vadd.f32 %v12141_v30, %v12140_v7  ;;  %v12037_v27 = vpop.f32.mrf.mxu0  ;;  %v4879_v30 = vld [vmem:[#allocation2 + $0x82] sm:$0xff] }
 0x5d7   : > { %v12143_v2 = vpop.f32.mrf.mxu1  ;;  %v5584_v19 = vadd.f32 %v12036_v51, %v16244_v48  ;;  %v4881_v51 = vld [vmem:[#allocation2 + $0x9a] sm:$0xff]  ;;  %v4907_v38 = vpack.c.bf16 %v4879_v30, %v4878_v40 }
 0x5d8   : > { %v16303_v59 = vadd.f32 %v12142_v20, %v5576_v14  ;;  %v12038_v54 = vpop.f32.mrf.mxu0  ;;  %v4880_v14 = vld [vmem:[#allocation2 + $0x92] sm:$0xff] }
 0x5d9   : > { %v12144_v58 = vpop.f32.mrf.mxu1  ;;  %v12039_v42 = vadd.f32 %v12038_v54, %v12037_v27 }
 0x5da   : > { %v12145_v39 = vadd.f32 %v12144_v58, %v12143_v2  ;;  %v12040_v26 = vpop.f32.mrf.mxu0  ;;  %5976 = vmatmul.mubr.bf16.gmra.mxu0 %v4870_v23  ;;  %v4908_v58 = vpack.c.bf16 %v4881_v51, %v4880_v14 }
 0x5db   : > { %v12146_v6 = vpop.f32.mrf.mxu1  ;;  %6129 = vmatmul.mubr.bf16.gmra.mxu1 %v16198_v46  ;;  %13510 = vmatprep.mubr.bf16.mxu0 %v4904_v37  ;;  %v5587_v17 = vadd.f32 %v12039_v42, %v16244_v48 }
 0x5dc   : > { %v16307_v33 = vadd.f32 %v12145_v39, %v5579_v4  ;;  %6136 = vmatprep.mubr.bf16.mxu1 %v4871_v3  ;;  %v12041_v8 = vpop.f32.mrf.mxu0 }
 0x5dd   : > { %v12147_v60 = vpop.f32.mrf.mxu1  ;;  %v12042_v9 = vadd.f32 %v12041_v8, %v12040_v26 }
 0x5de   : > { %v12148_v24 = vadd.f32 %v12147_v60, %v12146_v6  ;;  %v12043_v18 = vpop.f32.mrf.mxu0 }
 0x5df   : > { %v12149_v16 = vpop.f32.mrf.mxu1  ;;  %v5592_v23 = vadd.f32 %v12042_v9, %v16244_v48  ;;  %v4883_v9 = vld [vmem:[#allocation2 + $0xb2] sm:$0xff] }
 0x5e0   : > { %v16312_v46 = vadd.f32 %v12148_v24, %v5584_v19  ;;  %v12044_v25 = vpop.f32.mrf.mxu0  ;;  %v4882_v19 = vld [vmem:[#allocation2 + $0xaa] sm:$0xff] }
 0x5e1   : > { %v12150_v10 = vpop.f32.mrf.mxu1  ;;  %v12045_v55 = vadd.f32 %v12044_v25, %v12043_v18  ;;  %v4885_v18 = vld [vmem:[#allocation2 + $0xca] sm:$0xff]  ;;  %v4909_v47 = vpack.c.bf16 %v4883_v9, %v4882_v19  ;;  %v4891_v9 = vld [vmem:[#allocation2 + $0x112] sm:$0xff] }
 0x5e2   : > { %v12151_v49 = vadd.f32 %v12150_v10, %v12149_v16  ;;  %v12046_v32 = vpop.f32.mrf.mxu0  ;;  %13511 = vmatmul.mubr.bf16.vlgmr.msra.gmra.mxu0 %v4905_v21  ;;  %v4890_v19 = vld [vmem:[#allocation2 + $0x10a] sm:$0xff] }
 0x5e3   : > { %v12152_v63 = vpop.f32.mrf.mxu1  ;;  %6137 = vmatmul.mubr.bf16.gmra.mxu1 %v16310_v53  ;;  %13514 = vmatprep.mubr.bf16.mxu0 %v4906_v28  ;;  %v5595_v52 = vadd.f32 %v12045_v55, %v16244_v48 }
 0x5e4   : > { %v16316_v61 = vadd.f32 %v12151_v49, %v5587_v17  ;;  %v12047_v56 = vpop.f32.mrf.mxu0  ;;  %v4910_v17 = vpack.c.bf16 %v4885_v18, %v4884_v62  ;;  %v4892_v62 = vld [vmem:[#allocation2 + $0x122] sm:$0xff]  ;;  %v4893_v18 = vld [vmem:[#allocation2 + $0x12a] sm:$0xff] }
 0x5e5   : > { %v12153_v36 = vpop.f32.mrf.mxu1  ;;  %v12048_v5 = vadd.f32 %v12047_v56, %v12046_v32 }
 0x5e6   : > { %v12154_v7 = vadd.f32 %v12153_v36, %v12152_v63  ;;  %v12049_v29 = vpop.f32.mrf.mxu0 }
 0x5e7   : > { %v12155_v44 = vpop.f32.mrf.mxu1  ;;  %v5600_v6 = vadd.f32 %v12048_v5, %v16244_v48  ;;  %v4886_v5 = vld [vmem:[#allocation2 + $0xda] sm:$0xff] }
 0x5e8   : > { %v16319_v20 = vadd.f32 %v12154_v7, %v5592_v23  ;;  %v12050_v27 = vpop.f32.mrf.mxu0  ;;  %v4887_v7 = vld [vmem:[#allocation2 + $0xe2] sm:$0xff] }
 0x5e9   : > { %v12156_v2 = vpop.f32.mrf.mxu1  ;;  %v12051_v3 = vadd.f32 %v12050_v27, %v12049_v29  ;;  %v4888_v29 = vld [vmem:[#allocation2 + $0xf2] sm:$0xff] }
 0x5ea   : > { %v12157_v54 = vadd.f32 %v12156_v2, %v12155_v44  ;;  %v12052_v4 = vpop.f32.mrf.mxu0  ;;  %13515 = vmatmul.mubr.bf16.gmra.mxu0 %v4907_v38  ;;  %v4889_v44 = vld [vmem:[#allocation2 + $0xfa] sm:$0xff]  ;;  %v4911_v2 = vpack.c.bf16 %v4887_v7, %v4886_v5 }
 0x5eb   : > { %v12158_v42 = vpop.f32.mrf.mxu1  ;;  %13518 = vmatprep.mubr.bf16.mxu0 %v4908_v58  ;;  %v5603_v25 = vadd.f32 %v12051_v3, %v16244_v48 }
 0x5ec   : > { %v16322_v39 = vadd.f32 %v12157_v54, %v5595_v52  ;;  %v12053_v37 = vpop.f32.mrf.mxu0  ;;  %v4912_v54 = vpack.c.bf16 %v4889_v44, %v4888_v29 }
 0x5ed   : > { %v12159_v26 = vpop.f32.mrf.mxu1  ;;  %v12054_v8 = vadd.f32 %v12053_v37, %v12052_v4 }
 0x5ee   : > { %v12160_v60 = vadd.f32 %v12159_v26, %v12158_v42  ;;  %v12055_v24 = vpop.f32.mrf.mxu0 }
 0x5ef   : > { %v12161_v13 = vpop.f32.mrf.mxu1  ;;  %v5608_v56 = vadd.f32 %v12054_v8, %v16244_v48 }
 0x5f0   : > { %v16325_v16 = vadd.f32 %v12160_v60, %v5600_v6  ;;  %v12056_v0 = vpop.f32.mrf.mxu0 }
 0x5f1   : > { %v12162_v45 = vpop.f32.mrf.mxu1  ;;  %v12057_v10 = vadd.f32 %v12056_v0, %v12055_v24 }
 0x5f2   : > { %v12163_v21 = vadd.f32 %v12162_v45, %v12161_v13  ;;  %v12058_v55 = vpop.f32.mrf.mxu0  ;;  %13519 = vmatmul.mubr.bf16.gmra.mxu0 %v4909_v47 }
 0x5f3   : > { %v12164_v49 = vpop.f32.mrf.mxu1  ;;  %13522 = vmatprep.mubr.bf16.mxu0 %v4910_v17  ;;  %v5611_v38 = vadd.f32 %v12057_v10, %v16244_v48 }
 0x5f4   : > { %v16328_v28 = vadd.f32 %v12163_v21, %v5603_v25  ;;  %v12059_v32 = vpop.f32.mrf.mxu0  ;;  %v4913_v25 = vpack.c.bf16 %v4891_v9, %v4890_v19 }
 0x5f5   : > { %v12165_v63 = vpop.f32.mrf.mxu1  ;;  %v12060_v36 = vadd.f32 %v12059_v32, %v12058_v55  ;;  %v4914_v55 = vpack.c.bf16 %v4893_v18, %v4892_v62  ;;  %v4898_v62 = vld [vmem:[#allocation2 + $0x16a] sm:$0xff]  ;;  %v4899_v18 = vld [vmem:[#allocation2 + $0x172] sm:$0xff] }
 0x5f6   : > { %v12166_v23 = vadd.f32 %v12165_v63, %v12164_v49  ;;  %v12061_v40 = vpop.f32.mrf.mxu0 }
 0x5f7   : > { %v12167_v30 = vpop.f32.mrf.mxu1  ;;  %v5616_v6 = vadd.f32 %v12060_v36, %v16244_v48 }
 0x5f8   : > { %v16331_v14 = vadd.f32 %v12166_v23, %v5608_v56  ;;  %v12062_v51 = vpop.f32.mrf.mxu0 }
 0x5f9   : > { %v12168_v27 = vpop.f32.mrf.mxu1  ;;  %v12063_v52 = vadd.f32 %v12062_v51, %v12061_v40  ;;  %v4894_v40 = vld [vmem:[#allocation2 + $0x13a] sm:$0xff]  ;;  %v4896_v51 = vld [vmem:[#allocation2 + $0x152] sm:$0xff] }
 0x5fa   : > { %v12169_v3 = vadd.f32 %v12168_v27, %v12167_v30  ;;  %v12064_v58 = vpop.f32.mrf.mxu0  ;;  %13523 = vmatmul.mubr.bf16.gmra.mxu0 %v4911_v2  ;;  %v4895_v30 = vld [vmem:[#allocation2 + $0x142] sm:$0xff]  ;;  %v4897_v27 = vld [vmem:[#allocation2 + $0x15a] sm:$0xff] }
 0x5fb   : > { %v12170_v4 = vpop.f32.mrf.mxu1  ;;  %13526 = vmatprep.mubr.bf16.mxu0 %v4912_v54  ;;  %v5619_v10 = vadd.f32 %v12063_v52, %v16244_v48 }
 0x5fc   : > { %v16334_v42 = vadd.f32 %v12169_v3, %v5611_v38  ;;  %v12065_v37 = vpop.f32.mrf.mxu0  ;;  %v4915_v3 = vpack.c.bf16 %v4895_v30, %v4894_v40 }
 0x5fd   : > { %v12171_v26 = vpop.f32.mrf.mxu1  ;;  %v12066_v8 = vadd.f32 %v12065_v37, %v12064_v58 }
 0x5fe   : > { %v12172_v60 = vadd.f32 %v12171_v26, %v12170_v4  ;;  %v12067_v24 = vpop.f32.mrf.mxu0  ;;  %v4916_v4 = vpack.c.bf16 %v4897_v27, %v4896_v51 }
 0x5ff   : > { %v12173_v13 = vpop.f32.mrf.mxu1  ;;  %v5624_v23 = vadd.f32 %v12066_v8, %v16244_v48 }
 0x600   : > { %v16337_v0 = vadd.f32 %v12172_v60, %v5616_v6  ;;  %v12068_v45 = vpop.f32.mrf.mxu0 }
 0x601   : > { %v12174_v47 = vpop.f32.mrf.mxu1  ;;  %v12069_v21 = vadd.f32 %v12068_v45, %v12067_v24 }
 0x602   : > { %v12175_v17 = vadd.f32 %v12174_v47, %v12173_v13  ;;  %v12070_v49 = vpop.f32.mrf.mxu0  ;;  %13527 = vmatmul.mubr.bf16.gmra.mxu0 %v4913_v25 }
 0x603   : > { %v12176_v32 = vpop.f32.mrf.mxu1  ;;  %13530 = vmatprep.mubr.bf16.mxu0 %v4914_v55  ;;  %v5627_v54 = vadd.f32 %v12069_v21, %v16244_v48 }
 0x604   : > { %v16340_v63 = vadd.f32 %v12175_v17, %v5619_v10  ;;  %v12071_v56 = vpop.f32.mrf.mxu0  ;;  %v4917_v17 = vpack.c.bf16 %v4899_v18, %v4898_v62 }
 0x605   : > { %v12177_v36 = vpop.f32.mrf.mxu1  ;;  %v12072_v5 = vadd.f32 %v12071_v56, %v12070_v49 }
 0x606   : > { %v12178_v7 = vadd.f32 %v12177_v36, %v12176_v32  ;;  %v12073_v29 = vpop.f32.mrf.mxu0 }
 0x607   : > { %v12179_v44 = vpop.f32.mrf.mxu1  ;;  %v5632_v19 = vadd.f32 %v12072_v5, %v16244_v48  ;;  %v4903_v5 = vld [vmem:[#allocation2 + $0x1a2] sm:$0xff] }
 0x608   : > { %v16343_v2 = vadd.f32 %v12178_v7, %v5624_v23  ;;  %v12074_v38 = vpop.f32.mrf.mxu0  ;;  %v4902_v23 = vld [vmem:[#allocation2 + $0x19a] sm:$0xff] }
 0x609   : > { %v12180_v52 = vpop.f32.mrf.mxu1  ;;  %v12075_v9 = vadd.f32 %v12074_v38, %v12073_v29 }
 0x60a   : > { %v12181_v58 = vadd.f32 %v12180_v52, %v12179_v44  ;;  %v12076_v37 = vpop.f32.mrf.mxu0  ;;  %13531 = vmatmul.mubr.bf16.gmra.mxu0 %v4915_v3  ;;  %v4919_v52 = vpack.c.bf16 %v4903_v5, %v4902_v23 }
 0x60b   : > { %v12182_v26 = vpop.f32.mrf.mxu1  ;;  %13534 = vmatprep.mubr.bf16.mxu0 %v4916_v4  ;;  %v5635_v55 = vadd.f32 %v12075_v9, %v16244_v48 }
 0x60c   : > { %v16346_v6 = vadd.f32 %v12181_v58, %v5627_v54  ;;  %v12077_v8 = vpop.f32.mrf.mxu0 }
 0x60d   : > { %v12183_v60 = vpop.f32.mrf.mxu1  ;;  %v12078_v24 = vadd.f32 %v12077_v8, %v12076_v37 }
 0x60e   : > { %v12184_v13 = vadd.f32 %v12183_v60, %v12182_v26  ;;  %v12079_v45 = vpop.f32.mrf.mxu0 }
 0x60f   : > { %v12185_v47 = vpop.f32.mrf.mxu1  ;;  %v5640_v30 = vadd.f32 %v12078_v24, %v16244_v48 }
 0x610   : > { %v16349_v25 = vadd.f32 %v12184_v13, %v5632_v19  ;;  %v12080_v10 = vpop.f32.mrf.mxu0 }
 0x611   : > { %v12186_v21 = vpop.f32.mrf.mxu1  ;;  %v12081_v29 = vadd.f32 %v12080_v10, %v12079_v45 }
 0x612   : > { %v12187_v49 = vadd.f32 %v12186_v21, %v12185_v47  ;;  %v12082_v32 = vpop.f32.mrf.mxu0  ;;  %13535 = vmatmul.mubr.bf16.gmra.mxu0 %v4917_v17 }
 0x613   : > { %v12188_v56 = vpop.f32.mrf.mxu1  ;;  %13538 = vmatprep.mubr.bf16.mxu0 %v16294_v50  ;;  %v5643_v4 = vadd.f32 %v12081_v29, %v16244_v48 }
 0x614   : > { %v16352_v36 = vadd.f32 %v12187_v49, %v5635_v55  ;;  %v12083_v7 = vpop.f32.mrf.mxu0 }
 0x615   : > { %v12189_v40 = vpop.f32.mrf.mxu1  ;;  %v12084_v44 = vadd.f32 %v12083_v7, %v12082_v32 }
 0x616   : > { %v12190_v51 = vadd.f32 %v12189_v40, %v12188_v56  ;;  %v12085_v27 = vpop.f32.mrf.mxu0 }
 0x617   : > { %v12191_v38 = vpop.f32.mrf.mxu1  ;;  %v5648_v9 = vadd.f32 %v12084_v44, %v16244_v48 }
 0x618   : > { %v16356_v3 = vadd.f32 %v12190_v51, %v5640_v30  ;;  %v12086_v54 = vpop.f32.mrf.mxu0 }
 0x619   : > { %v12192_v58 = vpop.f32.mrf.mxu1  ;;  %v12087_v24 = vadd.f32 %v12086_v54, %v12085_v27  ;;  %v13948_v54 = vld [vmem:[#allocation6 + $0x738] sm:$0xff]  }
 0x61a   : > { %v12193_v37 = vadd.f32 %v12192_v58, %v12191_v38  ;;  %v12088_v50 = vpop.f32.mrf.mxu0  ;;  %13539 = vmatmul.mubr.bf16.gmra.mxu0 %v4919_v52  ;;  %v13949_v58 = vld [vmem:[#allocation6 + $0x6f8] sm:$0xff]   ;;  %12454 = vmatprep.subr.bf16.mxu1 %v13948_v54 }
 0x61b   : > { %v12194_v26 = vpop.f32.mrf.mxu1  ;;  %v5651_v17 = vadd.f32 %v12087_v24, %v16244_v48  ;;  %12455 = vmatpush3.bf16.msra.mxu1 %v13949_v58 }
 0x61c   : > { %v16359_v8 = vadd.f32 %v12193_v37, %v5643_v4  ;;  %v12089_v60 = vpop.f32.mrf.mxu0 }
 0x61d   : > { %v12195_v19 = vpop.f32.mrf.mxu1  ;;  %v12090_v13 = vadd.f32 %v12089_v60, %v12088_v50 }
 0x61e   : > { %v12196_v62 = vadd.f32 %v12195_v19, %v12194_v26  ;;  %v12091_v18 = vpop.f32.mrf.mxu0 }
 0x61f   : > { %v12197_v45 = vpop.f32.mrf.mxu1  ;;  %v5656_v30 = vadd.f32 %v12090_v13, %v16244_v48 }
 0x620   : > { %v16362_v47 = vadd.f32 %v12196_v62, %v5648_v9  ;;  %v12092_v10 = vpop.f32.mrf.mxu0 }
 0x621   : > { %v12198_v21 = vpop.f32.mrf.mxu1  ;;  %v12093_v55 = vadd.f32 %v12092_v10, %v12091_v18 }
 0x622   : > { %v12199_v49 = vadd.f32 %v12198_v21, %v12197_v45  ;;  %v12222_v56 = vpop.f32.mrf.mxu0 }
 0x623   : > { %v12200_v32 = vpop.f32.mrf.mxu1  ;;  %v5659_v23 = vadd.f32 %v12093_v55, %v16244_v48 }
 0x624   : > { %v16366_v5 = vadd.f32 %v12199_v49, %v5651_v17  ;;  %v12223_v40 = vpop.f32.mrf.mxu0 }
 0x625   : > { %v12201_v7 = vpop.f32.mrf.mxu1  ;;  %v12224_v44 = vadd.f32 %v12223_v40, %v12222_v56 }
 0x626   : > { %v12202_v29 = vadd.f32 %v12201_v7, %v12200_v32  ;;  %v12225_v27 = vpop.f32.mrf.mxu0 }
 0x627   : > { %v12203_v51 = vpop.f32.mrf.mxu1  ;;  %v16372_v52 = vadd.f32 %v12224_v44, %v16252_v57 }
 0x628   : > { %v16369_v38 = vadd.f32 %v12202_v29, %v5656_v30  ;;  %v12226_v37 = vpop.f32.mrf.mxu0  ;;  %v13950_v30 = vld [vmem:[#allocation6 + $0x730] sm:$0xff]  }
 0x629   : > { %v12204_v4 = vpop.f32.mrf.mxu1  ;;  %v12227_v26 = vadd.f32 %v12226_v37, %v12225_v27  ;;  %v13951_v29 = vld [vmem:[#allocation6 + $0x6f0] sm:$0xff]   ;;  %12456 = vmatprep.subr.bf16.mxu1 %v13950_v30 }
 0x62a   : > { %v12205_v50 = vadd.f32 %v12204_v4, %v12203_v51  ;;  %v12228_v60 = vpop.f32.mrf.mxu0  ;;  %12457 = vmatpush3.bf16.msra.mxu1 %v13951_v29  ;;  %v13952_v29 = vld [vmem:[#allocation6 + $0x728] sm:$0xff]  }
 0x62b   : > { %v16374_v19 = vpop.f32.mrf.mxu1  ;;  %v16379_v9 = vadd.f32 %v12227_v26, %v16257_v31  ;;  %12458 = vmatprep.subr.bf16.mxu1 %v13952_v29 }
 0x62c   : > { %v16376_v48 = vadd.f32 %v12205_v50, %v5659_v23  ;;  %v12229_v24 = vpop.f32.mrf.mxu0 }
 0x62d   : > { %v16381_v13 = vpop.f32.mrf.mxu1  ;;  %v12230_v57 = vadd.f32 %v12229_v24, %v12228_v60 }
 0x62e   : > { %v12231_v62 = vpop.f32.mrf.mxu0 }
 0x62f   : > { %v16383_v18 = vpop.f32.mrf.mxu1  ;;  %v16386_v45 = vadd.f32 %v12230_v57, %v16262_v43 }
 0x630   : > { %v12232_v10 = vpop.f32.mrf.mxu0 }
 0x631   : > { %v16388_v21 = vpop.f32.mrf.mxu1  ;;  %v12233_v17 = vadd.f32 %v12232_v10, %v12231_v62 }
 0x632   : > { %v12234_v55 = vpop.f32.mrf.mxu0 }
 0x633   : > { %v16390_v49 = vpop.f32.mrf.mxu1  ;;  %v16393_v31 = vadd.f32 %v12233_v17, %v16267_v15 }
 0x634   : > { %v12235_v32 = vpop.f32.mrf.mxu0 }
 0x635   : > { %v16395_v56 = vpop.f32.mrf.mxu1  ;;  %v12236_v23 = vadd.f32 %v12235_v32, %v12234_v55 }
 0x636   : > { %v12237_v7 = vpop.f32.mrf.mxu0 }
 0x637   : > { %v16397_v40 = vpop.f32.mrf.mxu1  ;;  %v16400_v43 = vadd.f32 %v12236_v23, %v16272_v1 }
 0x638   : > { %v12238_v44 = vpop.f32.mrf.mxu0 }
 0x639   : > { %v16402_v51 = vpop.f32.mrf.mxu1  ;;  %v12239_v27 = vadd.f32 %v12238_v44, %v12237_v7  ;;  %v13953_v44 = vld [vmem:[#allocation6 + $0x6e8] sm:$0xff]  }
 0x63a   : > { %v12240_v54 = vpop.f32.mrf.mxu0  ;;  %12459 = vmatpush3.bf16.msra.mxu1 %v13953_v44 }
 0x63b   : > { %v16404_v15 = vpop.f32.mrf.mxu1  ;;  %v16407_v58 = vadd.f32 %v12239_v27, %v16277_v12 }
 0x63c   : > { %v12241_v4 = vpop.f32.mrf.mxu0 }
 0x63d   : > { %v16409_v37 = vpop.f32.mrf.mxu1  ;;  %v12242_v50 = vadd.f32 %v12241_v4, %v12240_v54 }
 0x63e   : > { %v12243_v1 = vpop.f32.mrf.mxu0 }
 0x63f   : > { %v16411_v26 = vpop.f32.mrf.mxu1  ;;  %v16414_v60 = vadd.f32 %v12242_v50, %v16282_v34 }
 0x640   : > { %v12244_v24 = vpop.f32.mrf.mxu0 }
 0x641   : > { %v16416_v57 = vpop.f32.mrf.mxu1  ;;  %v12245_v62 = vadd.f32 %v12244_v24, %v12243_v1 }
 0x642   : > { %v12246_v10 = vpop.f32.mrf.mxu0 }
 0x643   : > { %v16418_v17 = vpop.f32.mrf.mxu1  ;;  %v16421_v12 = vadd.f32 %v12245_v62, %v16287_v11 }
 0x644   : > { %v12247_v55 = vpop.f32.mrf.mxu0 }
 0x645   : > { %v16423_v32 = vpop.f32.mrf.mxu1  ;;  %v12248_v23 = vadd.f32 %v12247_v55, %v12246_v10 }
 0x646   : > { %v12249_v7 = vpop.f32.mrf.mxu0 }
 0x647   : > { %v16425_v30 = vpop.f32.mrf.mxu1  ;;  %v16428_v34 = vadd.f32 %v12248_v23, %v16292_v41 }
 0x648   : > { %v12250_v27 = vpop.f32.mrf.mxu0 }
 0x649   : > { %18396 = vst [vmem:[#allocation55_spill] sm:$0xff] %v16428_v34  ;;  %v16430_v54 = vpop.f32.mrf.mxu1  ;;  %v12251_v4 = vadd.f32 %v12250_v27, %v12249_v7 }
 0x64a   : > { %v12252_v50 = vpop.f32.mrf.mxu0 }
 0x64b   : > { %v16432_v11 = vpop.f32.mrf.mxu1  ;;  %v16435_v1 = vadd.f32 %v12251_v4, %v16299_v35 }
 0x64c   : > { %v12253_v24 = vpop.f32.mrf.mxu0 }
 0x64d   : > { %18397 = vst [vmem:[#allocation49_spill] sm:$0xff] %v16435_v1  ;;  %v16437_v62 = vpop.f32.mrf.mxu1  ;;  %v12254_v10 = vadd.f32 %v12253_v24, %v12252_v50 }
 0x64e   : > { %v12255_v41 = vpop.f32.mrf.mxu0 }
 0x64f   : > { %v16439_v55 = vpop.f32.mrf.mxu1  ;;  %v16442_v23 = vadd.f32 %v12254_v10, %v16303_v59  ;;  %v13954_v10 = vld [vmem:[#allocation6 + $0x720] sm:$0xff]  }
 0x650   : > { %18398 = vst [vmem:[#allocation47_spill] sm:$0xff] %v16439_v55  ;;  %v12256_v22 = vpop.f32.mrf.mxu0  ;;  %v13955_v55 = vld [vmem:[#allocation6 + $0x6e0] sm:$0xff]   ;;  %12460 = vmatprep.subr.bf16.mxu1 %v13954_v10 }
 0x651   : > { %18399 = vst [vmem:[#allocation51_spill] sm:$0xff] %v16442_v23  ;;  %v16444_v7 = vpop.f32.mrf.mxu1  ;;  %v12257_v29 = vadd.f32 %v12256_v22, %v12255_v41  ;;  %12461 = vmatpush3.bf16.msra.mxu1 %v13955_v55  ;;  %v13956_v55 = vld [vmem:[#allocation6 + $0x718] sm:$0xff]  }
 0x652   : > { %18400 = vst [vmem:[#allocation46_spill] sm:$0xff] %v16444_v7  ;;  %v12258_v27 = vpop.f32.mrf.mxu0  ;;  %12462 = vmatprep.subr.bf16.mxu1 %v13956_v55 }
 0x653   : > { %v16446_v34 = vpop.f32.mrf.mxu1  ;;  %v16449_v35 = vadd.f32 %v12257_v29, %v16307_v33 }
 0x654   : > { %v12259_v44 = vpop.f32.mrf.mxu0 }
 0x655   : > { %18401 = vst [vmem:[#allocation53_spill] sm:$0xff] %v16449_v35  ;;  %v16451_v4 = vpop.f32.mrf.mxu1  ;;  %v12260_v50 = vadd.f32 %v12259_v44, %v12258_v27 }
 0x656   : > { %v12261_v24 = vpop.f32.mrf.mxu0 }
 0x657   : > { %v16453_v1 = vpop.f32.mrf.mxu1  ;;  %v16456_v59 = vadd.f32 %v12260_v50, %v16312_v46 }
 0x658   : > { %v12262_v7 = vpop.f32.mrf.mxu0 }
 0x659   : > { %18402 = vst [vmem:[#allocation50_spill] sm:$0xff] %v16456_v59  ;;  %v16458_v22 = vpop.f32.mrf.mxu1  ;;  %v12263_v41 = vadd.f32 %v12262_v7, %v12261_v24 }
 0x65a   : > { %18403 = vst [vmem:[#allocation59_spill] sm:$0xff] %v16458_v22  ;;  %v12264_v23 = vpop.f32.mrf.mxu0 }
 0x65b   : > { %v16460_v33 = vpop.f32.mrf.mxu1  ;;  %v16463_v29 = vadd.f32 %v12263_v41, %v16316_v61  ;;  %v13957_v61 = vld [vmem:[#allocation6 + $0x6d8] sm:$0xff]  }
 0x65c   : > { %18404 = vst [vmem:[#allocation48_spill] sm:$0xff] %v16460_v33  ;;  %v12265_v27 = vpop.f32.mrf.mxu0  ;;  %12463 = vmatpush3.bf16.msra.mxu1 %v13957_v61 }
 0x65d   : > { %18405 = vst [vmem:[#allocation54_spill] sm:$0xff] %v16463_v29  ;;  %v16465_v44 = vpop.f32.mrf.mxu1  ;;  %v12266_v35 = vadd.f32 %v12265_v27, %v12264_v23 }
 0x65e   : > { %v12267_v46 = vpop.f32.mrf.mxu0 }
 0x65f   : > { %v16467_v50 = vpop.f32.mrf.mxu1  ;;  %v16470_v59 = vadd.f32 %v12266_v35, %v16319_v20 }
 0x660   : > { %18406 = vst [vmem:[#allocation58_spill] sm:$0xff] %v16467_v50  ;;  %v12268_v22 = vpop.f32.mrf.mxu0 }
 0x661   : > { %18407 = vst [vmem:[#allocation52_spill] sm:$0xff] %v16470_v59  ;;  %v16472_v7 = vpop.f32.mrf.mxu1  ;;  %v12269_v24 = vadd.f32 %v12268_v22, %v12267_v46 }
 0x662   : > { %18408 = vst [vmem:[#allocation61_spill] sm:$0xff] %v16472_v7  ;;  %v12270_v10 = vpop.f32.mrf.mxu0 }
 0x663   : > { %v16474_v33 = vpop.f32.mrf.mxu1  ;;  %v16477_v41 = vadd.f32 %v12269_v24, %v16322_v39  ;;  %v13958_v39 = vld [vmem:[#allocation6 + $0x710] sm:$0xff]  }
 0x664   : > { %18409 = vst [vmem:[#allocation63_spill] sm:$0xff] %v16474_v33  ;;  %v12271_v29 = vpop.f32.mrf.mxu0  ;;  %v13959_v24 = vld [vmem:[#allocation6 + $0x6d0] sm:$0xff]   ;;  %12464 = vmatprep.subr.bf16.mxu1 %v13958_v39 }
 0x665   : > { %18410 = vst [vmem:[#allocation57_spill] sm:$0xff] %v16477_v41  ;;  %v16479_v23 = vpop.f32.mrf.mxu1  ;;  %v12272_v27 = vadd.f32 %v12271_v29, %v12270_v10  ;;  %v13960_v41 = vld [vmem:[#allocation6 + $0x708] sm:$0xff]   ;;  %v13962_v29 = vld [vmem:[#allocation6 + $0x7b8] sm:$0xff]   ;;  %12465 = vmatpush3.bf16.msra.mxu1 %v13959_v24 }
 0x666   : > { %v12273_v20 = vpop.f32.mrf.mxu0  ;;  %v13963_v10 = vld [vmem:[#allocation6 + $0x778] sm:$0xff]   ;;  %12566 = vmatprep.subr.bf16.mxu0 %v13962_v29  ;;  %12466 = vmatprep.subr.bf16.mxu1 %v13960_v41  ;;  %v13969_v41 = vld [vmem:[#allocation6 + $0x768] sm:$0xff]  }
 0x667   : > { %v16481_v35 = vpop.f32.mrf.mxu1  ;;  %v16484_v59 = vadd.f32 %v12272_v27, %v16325_v16  ;;  %v13964_v16 = vld [vmem:[#allocation6 + $0x7b0] sm:$0xff]   ;;  %12567 = vmatpush3.bf16.msra.mxu0 %v13963_v10 }
 0x668   : > { %18411 = vst [vmem:[#allocation56_spill] sm:$0xff] %v16481_v35  ;;  %v12274_v22 = vpop.f32.mrf.mxu0  ;;  %12568 = vmatprep.subr.bf16.mxu0 %v13964_v16 }
 0x669   : > { %18412 = vst [vmem:[#allocation64_spill] sm:$0xff] %v16484_v59  ;;  %v16486_v46 = vpop.f32.mrf.mxu1  ;;  %v12275_v7 = vadd.f32 %v12274_v22, %v12273_v20  ;;  %v13961_v59 = vld [vmem:[#allocation6 + $0x6c8] sm:$0xff]  }
 0x66a   : > { %18413 = vst [vmem:[#allocation66_spill] sm:$0xff] %v16486_v46  ;;  %v12276_v50 = vpop.f32.mrf.mxu0  ;;  %v13966_v46 = vld [vmem:[#allocation6 + $0x700] sm:$0xff]   ;;  %12467 = vmatpush3.bf16.msra.mxu1 %v13961_v59 }
 0x66b   : > { %v16488_v33 = vpop.f32.mrf.mxu1  ;;  %v16491_v55 = vadd.f32 %v12275_v7, %v16328_v28  ;;  %v13967_v7 = vld [vmem:[#allocation6 + $0x7a8] sm:$0xff]   ;;  %12468 = vmatprep.subr.bf16.mxu1 %v13966_v46  ;;  %v13971_v59 = vld [vmem:[#allocation6 + $0x760] sm:$0xff]  }
 0x66c   : > { %18414 = vst [vmem:[#allocation60_spill] sm:$0xff] %v16488_v33  ;;  %v12277_v61 = vpop.f32.mrf.mxu0  ;;  %v13965_v33 = vld [vmem:[#allocation6 + $0x770] sm:$0xff]  }
 0x66d   : > { %18415 = vst [vmem:[#allocation67_spill] sm:$0xff] %v16491_v55  ;;  %v16493_v35 = vpop.f32.mrf.mxu1  ;;  %v12278_v27 = vadd.f32 %v12277_v61, %v12276_v50  ;;  %v13968_v50 = vld [vmem:[#allocation6 + $0x6c0] sm:$0xff]   ;;  %12569 = vmatpush3.bf16.msra.mxu0 %v13965_v33  ;;  %v13972_v33 = vld [vmem:[#allocation6 + $0x798] sm:$0xff]  }
 0x66e   : > { %18416 = vst [vmem:[#allocation68_spill] sm:$0xff] %v16493_v35  ;;  %v12279_v20 = vpop.f32.mrf.mxu0  ;;  %12570 = vmatprep.subr.bf16.mxu0 %v13967_v7  ;;  %12469 = vmatpush3.bf16.msra.mxu1 %v13968_v50 }
 0x66f   : > { %v16495_v22 = vpop.f32.mrf.mxu1  ;;  %v16498_v28 = vadd.f32 %v12278_v27, %v16331_v14  ;;  %v13970_v14 = vld [vmem:[#allocation6 + $0x7a0] sm:$0xff]  }
 0x670   : > { %18417 = vst [vmem:[#allocation62_spill] sm:$0xff] %v16495_v22  ;;  %v12280_v55 = vpop.f32.mrf.mxu0 }
 0x671   : > { %v16500_v35 = vpop.f32.mrf.mxu1  ;;  %v12281_v39 = vadd.f32 %v12280_v55, %v12279_v20  ;;  %12571 = vmatpush3.bf16.msra.mxu0 %v13969_v41 }
 0x672   : > { %18418 = vst [vmem:[#allocation69_spill] sm:$0xff] %v16500_v35  ;;  %v12282_v24 = vpop.f32.mrf.mxu0  ;;  %12572 = vmatprep.subr.bf16.mxu0 %v13970_v14 }
 0x673   : > { %v16502_v29 = vpop.f32.mrf.mxu1  ;;  %v16505_v10 = vadd.f32 %v12281_v39, %v16334_v42 }
 0x674   : > { %v12283_v61 = vpop.f32.mrf.mxu0 }
 0x675   : > { %18419 = vst [vmem:[#allocation65_spill] sm:$0xff] %v16505_v10  ;;  %v16507_v16 = vpop.f32.mrf.mxu1  ;;  %v12284_v27 = vadd.f32 %v12283_v61, %v12282_v24  ;;  %12573 = vmatpush3.bf16.msra.mxu0 %v13971_v59 }
 0x676   : > { %v12285_v35 = vpop.f32.mrf.mxu0  ;;  %12574 = vmatprep.subr.bf16.mxu0 %v13972_v33 }
 0x677   : > { %v16509_v55 = vpop.f32.mrf.mxu1  ;;  %v16512_v20 = vadd.f32 %v12284_v27, %v16337_v0 }
 0x678   : > { %v12286_v46 = vpop.f32.mrf.mxu0 }
 0x679   : > { %18420 = vst [vmem:[#allocation70_spill] sm:$0xff] %v16512_v20  ;;  %v16514_v42 = vpop.f32.mrf.mxu1  ;;  %v12287_v7 = vadd.f32 %v12286_v46, %v12285_v35 }
 0x67a   : > { %v12288_v39 = vpop.f32.mrf.mxu0 }
 0x67b   : > { %v16517_v10 = vadd.f32 %v12287_v7, %v16340_v63  ;;  %v16519_v50 = vpop.f32.mrf.mxu1 }
 0x67c   : > { %v12289_v24 = vpop.f32.mrf.mxu0 }
 0x67d   : > { %18421 = vst [vmem:[#allocation72_spill] sm:$0xff] %v16517_v10  ;;  %v12290_v41 = vadd.f32 %v12289_v24, %v12288_v39  ;;  %v16524_v14 = vpop.f32.mrf.mxu1 }
 0x67e   : > { %v12291_v61 = vpop.f32.mrf.mxu0 }
 0x67f   : > { %v16522_v0 = vadd.f32 %v12290_v41, %v16343_v2  ;;  %v16529_v59 = vpop.f32.mrf.mxu1 }
 0x680   : > { %v12292_v27 = vpop.f32.mrf.mxu0 }
 0x681   : > { %18422 = vst [vmem:[#allocation71_spill] sm:$0xff] %v16522_v0  ;;  %v12293_v20 = vadd.f32 %v12292_v27, %v12291_v61  ;;  %v16534_v39 = vpop.f32.mrf.mxu1 }
 0x682   : > { %v12294_v22 = vpop.f32.mrf.mxu0 }
 0x683   : > { %v16527_v35 = vadd.f32 %v12293_v20, %v16346_v6  ;;  %v16539_v61 = vpop.f32.mrf.mxu1 }
 0x684   : > { %v12295_v63 = vpop.f32.mrf.mxu0 }
 0x685   : > { %18423 = vst [vmem:[#allocation73_spill] sm:$0xff] %v16527_v35  ;;  %v12296_v33 = vadd.f32 %v12295_v63, %v12294_v22  ;;  %v16544_v22 = vpop.f32.mrf.mxu1 }
 0x686   : > { %v12297_v46 = vpop.f32.mrf.mxu0 }
 0x687   : > { %v16532_v7 = vadd.f32 %v12296_v33, %v16349_v25 }
 0x688   : > { %v12298_v2 = vpop.f32.mrf.mxu0 }
 0x689   : > { %18424 = vst [vmem:[#allocation76_spill] sm:$0xff] %v16532_v7  ;;  %v12299_v24 = vadd.f32 %v12298_v2, %v12297_v46  ;;  %v16549_v46 = vpop.f32.mrf.mxu1 }
 0x68a   : > { %v12300_v41 = vpop.f32.mrf.mxu0 }
 0x68b   : > { %v16537_v10 = vadd.f32 %v12299_v24, %v16352_v36 }
 0x68c   : > { %v12301_v6 = vpop.f32.mrf.mxu0 }
 0x68d   : > { %18425 = vst [vmem:[#allocation74_spill] sm:$0xff] %v16537_v10  ;;  %v12302_v20 = vadd.f32 %v12301_v6, %v12300_v41  ;;  %v16554_v41 = vpop.f32.mrf.mxu1 }
 0x68e   : > { %v12303_v27 = vpop.f32.mrf.mxu0 }
 0x68f   : > { %v16542_v35 = vadd.f32 %v12302_v20, %v16356_v3 }
 0x690   : > { %v12304_v25 = vpop.f32.mrf.mxu0 }
 0x691   : > { %18426 = vst [vmem:[#allocation77_spill] sm:$0xff] %v16542_v35  ;;  %v12305_v63 = vadd.f32 %v12304_v25, %v12303_v27  ;;  %v16559_v27 = vpop.f32.mrf.mxu1  ;;  %v13973_v25 = vld [vmem:[#allocation6 + $0x758] sm:$0xff]  }
 0x692   : > { %v12306_v33 = vpop.f32.mrf.mxu0  ;;  %12575 = vmatpush3.bf16.msra.mxu0 %v13973_v25 }
 0x693   : > { %v16547_v7 = vadd.f32 %v12305_v63, %v16359_v8  ;;  %v6611_v63 = vld [vmem:[#allocation2 + $0x1] sm:$0xff] }
 0x694   : > { %v12307_v36 = vpop.f32.mrf.mxu0 }
 0x695   : > { %18427 = vst [vmem:[#allocation75_spill] sm:$0xff] %v16547_v7  ;;  %v12308_v2 = vadd.f32 %v12307_v36, %v12306_v33  ;;  %v6612_v7 = vld [vmem:[#allocation2 + $0x9] sm:$0xff]  ;;  %v13974_v36 = vld [vmem:[#allocation6 + $0x790] sm:$0xff]  }
 0x696   : > { %v12309_v24 = vpop.f32.mrf.mxu0  ;;  %v6643_v33 = vpack.c.bf16 %v6612_v7, %v6611_v63  ;;  %12576 = vmatprep.subr.bf16.mxu0 %v13974_v36  ;;  %v13975_v7 = vld [vmem:[#allocation6 + $0x750] sm:$0xff]   ;;  %v13978_v36 = vld [vmem:[#allocation6 + $0x748] sm:$0xff]  }
 0x697   : > { %v16552_v10 = vadd.f32 %v12308_v2, %v16362_v47  ;;  %v12342_v47 = vadd.f32 %v16395_v56, %v16390_v49  ;;  %v12345_v49 = vadd.f32 %v16402_v51, %v16397_v40  ;;  %12577 = vmatpush3.bf16.msra.mxu0 %v13975_v7  ;;  %v13979_v40 = vld [vmem:[#allocation6 + $0x7f8] sm:$0xff]   ;;  %v13980_v51 = vld [vmem:[#allocation6 + $0x780] sm:$0xff]  }
 0x698   : > { %v12310_v3 = vpop.f32.mrf.mxu0  ;;  %7608 = vmatprep.mubr.bf16.mxu1 %v6643_v33 }
 0x699   : > { %v12311_v6 = vadd.f32 %v12310_v3, %v12309_v24  ;;  %v12336_v24 = vadd.f32 %v16381_v13, %v16374_v19  ;;  %v16568_v3 = vpop.f32.mrf.mxu1  ;;  %7609 = vmatmul.mubr.bf16.vlgmr.msra.gmra.mxu1 %v16310_v53  ;;  %v6027_v56 = vadd.f32 %v12342_v47, %v16386_v45  ;;  %v12348_v47 = vadd.f32 %v16409_v37, %v16404_v15 }
 0x69a   : > { %v12312_v20 = vpop.f32.mrf.mxu0 }
 0x69b   : > { %v16557_v35 = vadd.f32 %v12311_v6, %v16366_v5  ;;  %v6019_v53 = vadd.f32 %v12336_v24, %v16372_v52  ;;  %v12354_v52 = vadd.f32 %v16423_v32, %v16418_v17  ;;  %v12357_v17 = vadd.f32 %v16430_v54, %v16425_v30 }
 0x69c   : > { %v12313_v8 = vpop.f32.mrf.mxu0  ;;  %v12360_v30 = vadd.f32 %v16437_v62, %v16432_v11  ;;  %v18431_v11 = vld [vmem:[#allocation46_spill] sm:$0xff] }
 0x69d   : > { %v12314_v0 = vadd.f32 %v12313_v8, %v12312_v20  ;;  %v13976_v20 = vld [vmem:[#allocation6 + $0x788] sm:$0xff]   ;;  %v13977_v8 = vld [vmem:[#allocation6 + $0x838] sm:$0xff]   ;;  %v6043_v32 = vadd.f32 %v12354_v52, %v16414_v60 }
 0x69e   : > { %v12315_v2 = vpop.f32.mrf.mxu0  ;;  %12678 = vmatprep.subr.bf16.mxu1 %v13977_v8  ;;  %12578 = vmatprep.subr.bf16.mxu0 %v13976_v20  ;;  %v13981_v8 = vld [vmem:[#allocation6 + $0x740] sm:$0xff]   ;;  %v18428_v52 = vld [vmem:[#allocation59_spill] sm:$0xff] }
 0x69f   : > { %v16566_v5 = vadd.f32 %v12314_v0, %v16369_v38  ;;  %v12339_v38 = vadd.f32 %v16388_v21, %v16383_v18  ;;  %v16580_v0 = vpop.f32.mrf.mxu1  ;;  %12579 = vmatpush3.bf16.msra.mxu0 %v13978_v36  ;;  %12679 = vmatpush3.bf16.msra.mxu1 %v13979_v40 }
 0x6a0   : > { %v12316_v6 = vpop.f32.mrf.mxu0  ;;  %12580 = vmatprep.subr.bf16.mxu0 %v13980_v51 }
 0x6a1   : > { %v12317_v63 = vadd.f32 %v12316_v6, %v12315_v2  ;;  %v6030_v2 = vadd.f32 %v12345_v49, %v16393_v31  ;;  %v6022_v21 = vadd.f32 %v12339_v38, %v16379_v9  ;;  %v16588_v24 = vpop.f32.mrf.mxu1  ;;  %v12351_v31 = vadd.f32 %v16416_v57, %v16411_v26 }
 0x6a2   : > { %v13512_v19 = vpop.f32.mrf.mxu0  ;;  %v6035_v9 = vadd.f32 %v12348_v47, %v16400_v43  ;;  %v12366_v43 = vadd.f32 %v16451_v4, %v16446_v34 }
 0x6a3   : > { %v16577_v13 = vadd.f32 %v12317_v63, %v16376_v48  ;;  %v6188_v25 = vadd.f32 %v13512_v19, %v6027_v56  ;;  %12581 = vmatpush3.bf16.msra.mxu0 %v13981_v8  ;;  %v16597_v56 = vpop.f32.mrf.mxu1  ;;  %v6038_v60 = vadd.f32 %v12351_v31, %v16407_v58  ;;  %v18429_v58 = vld [vmem:[#allocation51_spill] sm:$0xff] }
 0x6a4   : > { %v6179_v33 = vpop.f32.mrf.mxu0 }
 0x6a5   : > { %v6180_v45 = vadd.f32 %v6179_v33, %v6019_v53  ;;  %v6340_v6 = vmul.f32 0.2, %v6188_v25  ;;  %vm6308_vm8 = vcmp.gt.f32.partialorder %v6188_v25, 0.0  ;;  %v16607_v40 = vpop.f32.mrf.mxu1 }
 0x6a6   : > { %v13513_v18 = vpop.f32.mrf.mxu0 }
 0x6a7   : > { %v6338_v48 = vmul.f32 0.2, %v6180_v45  ;;  %vm6306_vm7 = vcmp.gt.f32.partialorder %v6180_v45, 0.0  ;;  %v6191_v7 = vadd.f32 %v13513_v18, %v6030_v2  ;;  %v6372_v53 = vsel %vm6308_vm8, %v6188_v25, %v6340_v6  ;;  %v13982_v18 = vld [vmem:[#allocation6 + $0x830] sm:$0xff]  }
 0x6a8   : > { %v6182_v20 = vpop.f32.mrf.mxu0  ;;  %v6046_v25 = vadd.f32 %v12357_v17, %v16421_v12  ;;  %v18430_v12 = vld [vmem:[#allocation47_spill] sm:$0xff]  ;;  %12680 = vmatprep.subr.bf16.mxu1 %v13982_v18 }
 0x6a9   : > { %v6183_v15 = vadd.f32 %v6182_v20, %v6022_v21  ;;  %v6370_v37 = vsel %vm6306_vm7, %v6180_v45, %v6338_v48  ;;  %v6341_v19 = vmul.f32 0.2, %v6191_v7  ;;  %vm6309_vm10 = vcmp.gt.f32.partialorder %v6191_v7, 0.0 }
 0x6aa   : > { %v13516_v63 = vpop.f32.mrf.mxu0  ;;  %6434 = vrot.lane.b32.xlu0 %v6370_v37, %s14262_s25  ;;  %v12369_v48 = vadd.f32 %v18428_v52, %v16453_v1  ;;  %v6059_v21 = vadd.f32 %v12366_v43, %v18429_v58  ;;  %v12363_v62 = vadd.f32 %v18431_v11, %v18430_v12  ;;  %v18440_v58 = vld [vmem:[#allocation56_spill] sm:$0xff] }
 0x6ab   : > { %vm6307_vm9 = vcmp.gt.f32.partialorder %v6183_v15, 0.0  ;;  %v6339_v49 = vmul.f32 0.2, %v6183_v15  ;;  %v6204_v26 = vadd.f32 %v13516_v63, %v6043_v32  ;;  %v6373_v45 = vsel %vm6309_vm10, %v6191_v7, %v6341_v19  ;;  %v18432_v7 = vld [vmem:[#allocation55_spill] sm:$0xff]  ;;  %v13983_v32 = vld [vmem:[#allocation6 + $0x7f0] sm:$0xff]   ;;  %v18442_v12 = vld [vmem:[#allocation52_spill] sm:$0xff] }
 0x6ac   : > { %v6195_v38 = vpop.f32.mrf.mxu0  ;;  %v6051_v20 = vadd.f32 %v12360_v30, %v18432_v7  ;;  %12681 = vmatpush3.bf16.msra.mxu1 %v13983_v32  ;;  %v18443_v32 = vld [vmem:[#allocation54_spill] sm:$0xff] }
 0x6ad   : > { %v6196_v57 = vadd.f32 %v6195_v38, %v6035_v9  ;;  %v6371_v33 = vsel %vm6307_vm9, %v6183_v15, %v6339_v49  ;;  %v6344_v47 = vmul.f32 0.2, %v6204_v26  ;;  %vm6312_vm12 = vcmp.gt.f32.partialorder %v6204_v26, 0.0  ;;  %v16617_v15 = vpop.f32.mrf.mxu1  ;;  %v18433_v49 = vld [vmem:[#allocation48_spill] sm:$0xff]  ;;  %v18434_v38 = vld [vmem:[#allocation53_spill] sm:$0xff] }
 0x6ae   : > { %v13517_v36 = vpop.f32.mrf.mxu0  ;;  %6436 = vrot.lane.b32.xlu1 %v6371_v33, %s14262_s25  ;;  %6438 = vrot.lane.b32.xlu0 %v6372_v53, %s14262_s25  ;;  %v12372_v19 = vadd.f32 %v16465_v44, %v18433_v49  ;;  %v6062_v53 = vadd.f32 %v12369_v48, %v18434_v38  ;;  %v18435_v33 = vld [vmem:[#allocation63_spill] sm:$0xff]  ;;  %v18445_v38 = vld [vmem:[#allocation68_spill] sm:$0xff] }
 0x6af   : > { %v6342_v54 = vmul.f32 0.2, %v6196_v57  ;;  %vm6310_vm11 = vcmp.gt.f32.partialorder %v6196_v57, 0.0  ;;  %v6207_v34 = vadd.f32 %v13517_v36, %v6046_v25  ;;  %v6376_v17 = vsel %vm6312_vm12, %v6204_v26, %v6344_v47  ;;  %v16627_v26 = vpop.f32.mrf.mxu1 }
 0x6b0   : > { %v6198_v51 = vpop.f32.mrf.mxu0  ;;  %v12378_v43 = vadd.f32 %v16479_v23, %v18435_v33  ;;  %v18439_v23 = vld [vmem:[#allocation50_spill] sm:$0xff]  ;;  %v18446_v33 = vld [vmem:[#allocation57_spill] sm:$0xff] }
 0x6b1   : > { %v6199_v4 = vadd.f32 %v6198_v51, %v6038_v60  ;;  %v6374_v2 = vsel %vm6310_vm11, %v6196_v57, %v6342_v54  ;;  %v6345_v31 = vmul.f32 0.2, %v6207_v34  ;;  %vm6313_vm14 = vcmp.gt.f32.partialorder %v6207_v34, 0.0  ;;  %v18436_v60 = vld [vmem:[#allocation49_spill] sm:$0xff] }
 0x6b2   : > { %v13520_v6 = vpop.f32.mrf.mxu0  ;;  %6440 = vrot.lane.b32.xlu1 %v6373_v45, %s14262_s25  ;;  %6442 = vrot.lane.b32.xlu0 %v6374_v2, %s14262_s25  ;;  %v6054_v30 = vadd.f32 %v12363_v62, %v18436_v60  ;;  %v18438_v2 = vld [vmem:[#allocation61_spill] sm:$0xff]  ;;  %v6067_v48 = vadd.f32 %v12372_v19, %v18439_v23  ;;  %v6075_v11 = vadd.f32 %v12378_v43, %v18442_v12  ;;  %v18444_v19 = vld [vmem:[#allocation60_spill] sm:$0xff] }
 0x6b3   : > { %vm6311_vm13 = vcmp.gt.f32.partialorder %v6199_v4, 0.0  ;;  %v6343_v8 = vmul.f32 0.2, %v6199_v4  ;;  %v6220_v37 = vadd.f32 %v13520_v6, %v6059_v21  ;;  %v6377_v45 = vsel %vm6313_vm14, %v6207_v34, %v6345_v31  ;;  %v18441_v21 = vld [vmem:[#allocation66_spill] sm:$0xff]  ;;  %v16637_v34 = vpop.f32.mrf.mxu1  ;;  %v13985_v12 = vld [vmem:[#allocation6 + $0x7e8] sm:$0xff]  }
 0x6b4   : > { %v6211_v1 = vpop.f32.mrf.mxu0  ;;  %v12381_v6 = vadd.f32 %v18441_v21, %v18440_v58 }
 0x6b5   : > { %v6212_v63 = vadd.f32 %v6211_v1, %v6051_v20  ;;  %v6375_v9 = vsel %vm6311_vm13, %v6199_v4, %v6343_v8  ;;  %v6348_v54 = vmul.f32 0.2, %v6220_v37  ;;  %vm6316_vm1 = vcmp.gt.f32.partialorder %v6220_v37, 0.0  ;;  %v18437_v4 = vld [vmem:[#allocation58_spill] sm:$0xff]  ;;  %v16647_v43 = vpop.f32.mrf.mxu1 }
 0x6b6   : > { %v13521_v57 = vpop.f32.mrf.mxu0  ;;  %6444 = vrot.lane.b32.xlu1 %v6375_v9, %s14262_s25  ;;  %6446 = vrot.lane.b32.xlu0 %v6376_v17, %s14262_s25  ;;  %v12375_v18 = vadd.f32 %v18438_v2, %v18437_v4  ;;  %v12390_v9 = vadd.f32 %v16507_v16, %v16502_v29  ;;  %v18447_v4 = vld [vmem:[#allocation62_spill] sm:$0xff]  ;;  %v18448_v2 = vld [vmem:[#allocation69_spill] sm:$0xff] }
 0x6b7   : > { %v6346_v36 = vmul.f32 0.2, %v6212_v63  ;;  %vm6314_vm15 = vcmp.gt.f32.partialorder %v6212_v63, 0.0  ;;  %v6223_v44 = vadd.f32 %v13521_v57, %v6062_v53  ;;  %v6380_v8 = vsel %vm6316_vm1, %v6220_v37, %v6348_v54 }
 0x6b8   : > { %v6214_v25 = vpop.f32.mrf.mxu0  ;;  %v6070_v49 = vadd.f32 %v12375_v18, %v18443_v32  ;;  %v12384_v53 = vadd.f32 %v18445_v38, %v18444_v19  ;;  %v6078_v37 = vadd.f32 %v12381_v6, %v18446_v33  ;;  %v12387_v18 = vadd.f32 %v18448_v2, %v18447_v4  ;;  %v18453_v33 = vld [vmem:[#allocation71_spill] sm:$0xff]  ;;  %v18455_v4 = vld [vmem:[#allocation73_spill] sm:$0xff] }
 0x6b9   : > { %v6215_v51 = vadd.f32 %v6214_v25, %v6054_v30  ;;  %v6378_v47 = vsel %vm6314_vm15, %v6212_v63, %v6346_v36  ;;  %v6349_v7 = vmul.f32 0.2, %v6223_v44  ;;  %vm6317_vm3 = vcmp.gt.f32.partialorder %v6223_v44, 0.0  ;;  %v13984_v25 = vld [vmem:[#allocation6 + $0x828] sm:$0xff]  }
 0x6ba   : > { %v13524_v52 = vpop.f32.mrf.mxu0  ;;  %6448 = vrot.lane.b32.xlu1 %v6377_v45, %s14262_s25  ;;  %6450 = vrot.lane.b32.xlu0 %v6378_v47, %s14262_s25  ;;  %v6091_v45 = vadd.f32 %v12390_v9, %v16498_v28  ;;  %v12399_v38 = vadd.f32 %v16534_v39, %v16529_v59 }
 0x6bb   : > { %vm6315_vm2 = vcmp.gt.f32.partialorder %v6215_v51, 0.0  ;;  %v6347_v62 = vmul.f32 0.2, %v6215_v51  ;;  %v6236_v1 = vadd.f32 %v13524_v52, %v6075_v11  ;;  %v6381_v60 = vsel %vm6317_vm3, %v6223_v44, %v6349_v7  ;;  %v18449_v44 = vld [vmem:[#allocation64_spill] sm:$0xff]  ;;  %12682 = vmatprep.subr.bf16.mxu1 %v13984_v25 }
 0x6bc   : > { %v6227_v20 = vpop.f32.mrf.mxu0  ;;  %v6083_v52 = vadd.f32 %v12384_v53, %v18449_v44  ;;  %v12396_v11 = vadd.f32 %v16524_v14, %v16519_v50  ;;  %12683 = vmatpush3.bf16.msra.mxu1 %v13985_v12  ;;  %v12414_v25 = vadd.f32 %v16607_v40, %v16597_v56 }
 0x6bd   : > { %v6228_v31 = vadd.f32 %v6227_v20, %v6067_v48  ;;  %v6379_v63 = vsel %vm6315_vm2, %v6215_v51, %v6347_v62  ;;  %v6352_v30 = vmul.f32 0.2, %v6236_v1  ;;  %v12393_v51 = vadd.f32 %v16514_v42, %v16509_v55  ;;  %v16657_v48 = vpop.f32.mrf.mxu1  ;;  %v18450_v62 = vld [vmem:[#allocation65_spill] sm:$0xff] }
 0x6be   : > { %v13525_v17 = vpop.f32.mrf.mxu0  ;;  %6452 = vrot.lane.b32.xlu1 %v6379_v63, %s14262_s25  ;;  %6454 = vrot.lane.b32.xlu0 %v6380_v8, %s14262_s25  ;;  %vm6320_vm5 = vcmp.gt.f32.partialorder %v6236_v1, 0.0  ;;  %v12402_v8 = vadd.f32 %v16544_v22, %v16539_v61  ;;  %v18451_v63 = vld [vmem:[#allocation67_spill] sm:$0xff]  ;;  %v18452_v61 = vld [vmem:[#allocation70_spill] sm:$0xff] }
 0x6bf   : > { %v6350_v57 = vmul.f32 0.2, %v6228_v31  ;;  %vm6318_vm4 = vcmp.gt.f32.partialorder %v6228_v31, 0.0  ;;  %v6239_v29 = vadd.f32 %v13525_v17, %v6078_v37  ;;  %v6384_v6 = vsel %vm6320_vm5, %v6236_v1, %v6352_v30  ;;  %v16667_v1 = vpop.f32.mrf.mxu1 }
 0x6c0   : > { %v6230_v36 = vpop.f32.mrf.mxu0  ;;  %v6094_v7 = vadd.f32 %v12393_v51, %v18450_v62  ;;  %v6086_v9 = vadd.f32 %v12387_v18, %v18451_v63  ;;  %v6099_v22 = vadd.f32 %v12396_v11, %v18452_v61  ;;  %v6107_v37 = vadd.f32 %v12402_v8, %v18453_v33  ;;  %v13987_v63 = vld [vmem:[#allocation6 + $0x7e0] sm:$0xff]  }
 0x6c1   : > { %v6231_v16 = vadd.f32 %v6230_v36, %v6070_v49  ;;  %v6382_v54 = vsel %vm6318_vm4, %v6228_v31, %v6350_v57  ;;  %v6353_v42 = vmul.f32 0.2, %v6239_v29  ;;  %vm6321_vm7 = vcmp.gt.f32.partialorder %v6239_v29, 0.0 }
 0x6c2   : > { %v13528_v47 = vpop.f32.mrf.mxu0  ;;  %6456 = vrot.lane.b32.xlu1 %v6381_v60, %s14262_s25  ;;  %6458 = vrot.lane.b32.xlu0 %v6382_v54, %s14262_s25  ;;  %v12405_v57 = vadd.f32 %v16554_v41, %v16549_v46  ;;  %v12424_v60 = vpop.f32.mrf.mxu1  ;;  %v18454_v46 = vld [vmem:[#allocation72_spill] sm:$0xff] }
 0x6c3   : > { %vm6319_vm6 = vcmp.gt.f32.partialorder %v6231_v16, 0.0  ;;  %v6351_v23 = vmul.f32 0.2, %v6231_v16  ;;  %v6252_v58 = vadd.f32 %v13528_v47, %v6091_v45  ;;  %v6385_v49 = vsel %vm6321_vm7, %v6239_v29, %v6353_v42 }
 0x6c4   : > { %v6243_v55 = vpop.f32.mrf.mxu0  ;;  %v6102_v41 = vadd.f32 %v12399_v38, %v18454_v46  ;;  %v12408_v45 = vadd.f32 %v16568_v3, %v16559_v27  ;;  %v6110_v2 = vadd.f32 %v12405_v57, %v18455_v4  ;;  %v12425_v18 = vpop.f32.mrf.mxu1  ;;  %v12417_v42 = vadd.f32 %v16627_v26, %v16617_v15  ;;  %v18457_v3 = vld [vmem:[#allocation76_spill] sm:$0xff] }
 0x6c5   : > { %v6244_v28 = vadd.f32 %v6243_v55, %v6083_v52  ;;  %v6383_v21 = vsel %vm6319_vm6, %v6231_v16, %v6351_v23  ;;  %v6356_v17 = vmul.f32 0.2, %v6252_v58  ;;  %vm6324_vm9 = vcmp.gt.f32.partialorder %v6252_v58, 0.0  ;;  %v13986_v55 = vld [vmem:[#allocation6 + $0x820] sm:$0xff]  }
 0x6c6   : > { %v13529_v20 = vpop.f32.mrf.mxu0  ;;  %6460 = vrot.lane.b32.xlu1 %v6383_v21, %s14262_s25  ;;  %6462 = vrot.lane.b32.xlu0 %v6384_v6, %s14262_s25  ;;  %v12411_v27 = vadd.f32 %v16588_v24, %v16580_v0  ;;  %v6115_v12 = vadd.f32 %v12408_v45, %v18457_v3  ;;  %v12427_v62 = vpop.f32.mrf.mxu1  ;;  %v12426_v0 = vadd.f32 %v12425_v18, %v12424_v60  ;;  %v13988_v18 = vld [vmem:[#allocation6 + $0x818] sm:$0xff]  }
 0x6c7   : > { %v6354_v31 = vmul.f32 0.2, %v6244_v28  ;;  %vm6322_vm8 = vcmp.gt.f32.partialorder %v6244_v28, 0.0  ;;  %v6255_v50 = vadd.f32 %v13529_v20, %v6094_v7  ;;  %v6388_v16 = vsel %vm6324_vm9, %v6252_v58, %v6356_v17  ;;  %12684 = vmatprep.subr.bf16.mxu1 %v13986_v55  ;;  %v18458_v17 = vld [vmem:[#allocation75_spill] sm:$0xff]  ;;  %v13993_v55 = vld [vmem:[#allocation6 + $0x7c8] sm:$0xff]  }
 0x6c8   : > { %v6246_v14 = vpop.f32.mrf.mxu0  ;;  %12685 = vmatpush3.bf16.msra.mxu1 %v13987_v63  ;;  %v12423_v57 = vadd.f32 %v16667_v1, %v16657_v48  ;;  %v6139_v60 = vadd.f32 %v12426_v0, %v16566_v5  ;;  %vm6530_vm9 = vcmask 654848   ;;  %v13995_v0 = vld [vmem:[#allocation6 + $0x878] sm:$0xff]  }
 0x6c9   : > { %v6247_v32 = vadd.f32 %v6246_v14, %v6086_v9  ;;  %v6386_v19 = vsel %vm6322_vm8, %v6244_v28, %v6354_v31  ;;  %v6357_v30 = vmul.f32 0.2, %v6255_v50  ;;  %vm6325_vm11 = vcmp.gt.f32.partialorder %v6255_v50, 0.0  ;;  %v18456_v28 = vld [vmem:[#allocation77_spill] sm:$0xff]  ;;  %12686 = vmatprep.subr.bf16.mxu1 %v13988_v18 }
 0x6ca   : > { %v13532_v53 = vpop.f32.mrf.mxu0  ;;  %6464 = vrot.lane.b32.xlu1 %v6385_v49, %s14262_s25  ;;  %6466 = vrot.lane.b32.xlu0 %v6386_v19, %s14262_s25  ;;  %v6123_v21 = vadd.f32 %v12414_v25, %v18456_v28  ;;  %v12420_v9 = vadd.f32 %v16647_v43, %v16637_v34  ;;  %v12428_v19 = vpop.f32.mrf.mxu1  ;;  %v13998_v28 = vld [vmem:[#allocation6 + $0x800] sm:$0xff]  }
 0x6cb   : > { %vm6323_vm10 = vcmp.gt.f32.partialorder %v6247_v32, 0.0  ;;  %v6355_v36 = vmul.f32 0.2, %v6247_v32  ;;  %v6268_v54 = vadd.f32 %v13532_v53, %v6107_v37  ;;  %v6389_v52 = vsel %vm6325_vm11, %v6255_v50, %v6357_v30 }
 0x6cc   : > { %v6259_v29 = vpop.f32.mrf.mxu0  ;;  %v6126_v50 = vadd.f32 %v12417_v42, %v18458_v17  ;;  %v6131_v37 = vadd.f32 %v12420_v9, %v16552_v10  ;;  %v13994_v42 = vld [vmem:[#allocation6 + $0x8b8] sm:$0xff]  }
 0x6cd   : > { %v6260_v59 = vadd.f32 %v6259_v29, %v6099_v22  ;;  %v6387_v39 = vsel %vm6323_vm10, %v6247_v32, %v6355_v36  ;;  %v6360_v23 = vmul.f32 0.2, %v6268_v54  ;;  %vm6328_vm13 = vcmp.gt.f32.partialorder %v6268_v54, 0.0  ;;  %v18459_v32 = vld [vmem:[#allocation74_spill] sm:$0xff]  ;;  %12790 = vmatprep.subr.bf16.mxu0 %v13994_v42 }
 0x6ce   : > { %v13533_v51 = vpop.f32.mrf.mxu0  ;;  %6468 = vrot.lane.b32.xlu1 %v6387_v39, %s14262_s25  ;;  %6470 = vrot.lane.b32.xlu0 %v6388_v16, %s14262_s25  ;;  %v6118_v49 = vadd.f32 %v12411_v27, %v18459_v32  ;;  %v12429_v36 = vadd.f32 %v12428_v19, %v12427_v62  ;;  %v6659_v62 = vld [vmem:[#allocation2 + $0x2] sm:$0xff] }
 0x6cf   : > { %v6358_v47 = vmul.f32 0.2, %v6260_v59  ;;  %vm6326_vm12 = vcmp.gt.f32.partialorder %v6260_v59, 0.0  ;;  %v6271_v58 = vadd.f32 %v13533_v51, %v6110_v2  ;;  %v6392_v31 = vsel %vm6328_vm13, %v6268_v54, %v6360_v23  ;;  %v13989_v23 = vld [vmem:[#allocation6 + $0x7d8] sm:$0xff]   ;;  %v14007_v42 = vld [vmem:[#allocation6 + $0x850] sm:$0xff]  }
 0x6d0   : > { %v6262_v44 = vpop.f32.mrf.mxu0  ;;  %v6142_v10 = vadd.f32 %v12429_v36, %v16577_v13  ;;  %v6134_v51 = vadd.f32 %v12423_v57, %v16557_v35  ;;  %12687 = vmatpush3.bf16.msra.mxu1 %v13989_v23  ;;  %v13999_v57 = vld [vmem:[#allocation6 + $0x8a8] sm:$0xff]   ;;  %v14005_v23 = vld [vmem:[#allocation6 + $0x858] sm:$0xff]  }
 0x6d1   : > { %v6263_v56 = vadd.f32 %v6262_v44, %v6102_v41  ;;  %v6390_v40 = vsel %vm6326_vm12, %v6260_v59, %v6358_v47  ;;  %v6361_v15 = vmul.f32 0.2, %v6271_v58  ;;  %vm6329_vm15 = vcmp.gt.f32.partialorder %v6271_v58, 0.0 }
 0x6d2   : > { %v13536_v6 = vpop.f32.mrf.mxu0  ;;  %6472 = vrot.lane.b32.xlu1 %v6389_v52, %s14262_s25  ;;  %6474 = vrot.lane.b32.xlu0 %v6390_v40, %s14262_s25  ;;  %v13992_v40 = vld [vmem:[#allocation6 + $0x808] sm:$0xff]  }
 0x6d3   : > { %vm6327_vm14 = vcmp.gt.f32.partialorder %v6263_v56, 0.0  ;;  %v6359_v11 = vmul.f32 0.2, %v6263_v56  ;;  %v6284_v7 = vadd.f32 %v13536_v6, %v6123_v21  ;;  %v6393_v34 = vsel %vm6329_vm15, %v6271_v58, %v6361_v15  ;;  %v13990_v58 = vld [vmem:[#allocation6 + $0x810] sm:$0xff]   ;;  %v14000_v21 = vld [vmem:[#allocation6 + $0x7c0] sm:$0xff]  }
 0x6d4   : > { %v6275_v20 = vpop.f32.mrf.mxu0  ;;  %12688 = vmatprep.subr.bf16.mxu1 %v13990_v58 }
 0x6d5   : > { %v6276_v26 = vadd.f32 %v6275_v20, %v6115_v12  ;;  %v6391_v8 = vsel %vm6327_vm14, %v6263_v56, %v6359_v11  ;;  %v6364_v38 = vmul.f32 0.2, %v6284_v7  ;;  %vm6332_vm2 = vcmp.gt.f32.partialorder %v6284_v7, 0.0  ;;  %v13991_v56 = vld [vmem:[#allocation6 + $0x7d0] sm:$0xff]   ;;  %v16719_v20 = vld [vmem:[#allocation6 + $0x8f8] sm:$0xff]  }
 0x6d6   : > { %v13537_v14 = vpop.f32.mrf.mxu0  ;;  %6476 = vrot.lane.b32.xlu1 %v6391_v8, %s14262_s25  ;;  %6478 = vrot.lane.b32.xlu0 %v6392_v31, %s14262_s25 }
 0x6d7   : > { %v6362_v24 = vmul.f32 0.2, %v6276_v26  ;;  %vm6330_vm1 = vcmp.gt.f32.partialorder %v6276_v26, 0.0  ;;  %v6287_v53 = vadd.f32 %v13537_v14, %v6126_v50  ;;  %v6396_v54 = vsel %vm6332_vm2, %v6284_v7, %v6364_v38  ;;  %12689 = vmatpush3.bf16.msra.mxu1 %v13991_v56  ;;  %v6660_v7 = vld [vmem:[#allocation2 + $0xa] sm:$0xff]  ;;  %v14006_v56 = vld [vmem:[#allocation6 + $0x890] sm:$0xff]  }
 0x6d8   : > { %v6278_v61 = vpop.f32.mrf.mxu0  ;;  %12690 = vmatprep.subr.bf16.mxu1 %v13992_v40  ;;  %v6691_v17 = vpack.c.bf16 %v6660_v7, %v6659_v62 }
 0x6d9   : > { %v6279_v22 = vadd.f32 %v6278_v61, %v6118_v49  ;;  %v6394_v43 = vsel %vm6330_vm1, %v6276_v26, %v6362_v24  ;;  %v6365_v29 = vmul.f32 0.2, %v6287_v53  ;;  %vm6333_vm4 = vcmp.gt.f32.partialorder %v6287_v53, 0.0  ;;  %v13996_v24 = vld [vmem:[#allocation6 + $0x8b0] sm:$0xff]  }
 0x6da   : > { %v13540_v33 = vpop.f32.mrf.mxu0  ;;  %6480 = vrot.lane.b32.xlu1 %v6393_v34, %s14262_s25  ;;  %6482 = vrot.lane.b32.xlu0 %v6394_v43, %s14262_s25  ;;  %v13997_v43 = vld [vmem:[#allocation6 + $0x870] sm:$0xff]  }
 0x6db   : > { %vm6331_vm3 = vcmp.gt.f32.partialorder %v6279_v22, 0.0  ;;  %v6363_v30 = vmul.f32 0.2, %v6279_v22  ;;  %v6300_v59 = vadd.f32 %v13540_v33, %v6139_v60  ;;  %v6397_v46 = vsel %vm6333_vm4, %v6287_v53, %v6365_v29  ;;  %12691 = vmatpush3.bf16.msra.mxu1 %v13993_v55 }
 0x6dc   : > { %v6291_v16 = vpop.f32.mrf.mxu0  ;;  %12692 = vmatprep.subr.bf16.mxu1 %v13998_v28 }
 0x6dd   : > { %v6292_v39 = vadd.f32 %v6291_v16, %v6131_v37  ;;  %v6395_v25 = vsel %vm6331_vm3, %v6279_v22, %v6363_v30  ;;  %v6368_v41 = vmul.f32 0.2, %v6300_v59  ;;  %vm6336_vm6 = vcmp.gt.f32.partialorder %v6300_v59, 0.0 }
 0x6de   : > { %v13541_v48 = vpop.f32.mrf.mxu0  ;;  %6484 = vrot.lane.b32.xlu1 %v6395_v25, %s14262_s25  ;;  %6486 = vrot.lane.b32.xlu0 %v6396_v54, %s14262_s25 }
 0x6df   : > { %v6366_v1 = vmul.f32 0.2, %v6292_v39  ;;  %vm6334_vm5 = vcmp.gt.f32.partialorder %v6292_v39, 0.0  ;;  %v6303_v45 = vadd.f32 %v13541_v48, %v6142_v10  ;;  %v6400_v13 = vsel %vm6336_vm6, %v6300_v59, %v6368_v41  ;;  %12693 = vmatpush3.bf16.msra.mxu1 %v14000_v21 }
 0x6e0   : > { %v6294_v5 = vpop.f32.mrf.mxu0  ;;  %13542 = vmatprep.subr.bf16.mxu1 %v16719_v20 }
 0x6e1   : > { %v6295_v47 = vadd.f32 %v6294_v5, %v6134_v51  ;;  %v6398_v4 = vsel %vm6334_vm5, %v6292_v39, %v6366_v1  ;;  %v6369_v44 = vmul.f32 0.2, %v6303_v45  ;;  %vm6337_vm8 = vcmp.gt.f32.partialorder %v6303_v45, 0.0  ;;  %v14001_v39 = vld [vmem:[#allocation6 + $0x868] sm:$0xff]   ;;  %v14002_v1 = vld [vmem:[#allocation6 + $0x8a0] sm:$0xff]  }
 0x6e2   : > { %6488 = vrot.lane.b32.xlu1 %v6397_v46, %s14262_s25  ;;  %6490 = vrot.lane.b32.xlu0 %v6398_v4, %s14262_s25  ;;  %v14003_v5 = vld [vmem:[#allocation6 + $0x860] sm:$0xff]  }
 0x6e3   : > { %vm6335_vm7 = vcmp.gt.f32.partialorder %v6295_v47, 0.0  ;;  %v6367_v2 = vmul.f32 0.2, %v6295_v47  ;;  %v6401_v35 = vsel %vm6337_vm8, %v6303_v45, %v6369_v44  ;;  %v14004_v45 = vld [vmem:[#allocation6 + $0x898] sm:$0xff]  }
 0x6e5   : > { %v6399_v52 = vsel %vm6335_vm7, %v6295_v47, %v6367_v2 }
 0x6e6   : > { %6492 = vrot.lane.b32.xlu1 %v6399_v52, %s14262_s25  ;;  %6494 = vrot.lane.b32.xlu0 %v6400_v13, %s14262_s25 }
 0x6ea   : > { %6496 = vrot.lane.b32.xlu1 %v6401_v35, %s14262_s25 }
 0x71c   : > { %v6435_v6 = vpop.permute.xlu0 %6434 }
 0x71d   : > { %6531 = vst.msk [vmem:[#allocation2 + $0x19] sm:$0xff] %vm6530_vm9, %v6435_v6  ;;  %v14008_v6 = vld [vmem:[#allocation6 + $0x888] sm:$0xff]  }
 0x720   : > { %v6437_v27 = vpop.permute.xlu1 %6436  ;;  %v6439_v3 = vpop.permute.xlu0 %6438 }
 0x721   : > { %6532 = vst.msk [vmem:[#allocation2 + $0x21] sm:$0xff] %vm6530_vm9, %v6437_v27  ;;  %6533 = vst.msk [vmem:[#allocation2 + $0x31] sm:$0xff] %vm6530_vm9, %v6439_v3 }
 0x724   : > { %v6441_v12 = vpop.permute.xlu1 %6440  ;;  %v6443_v11 = vpop.permute.xlu0 %6442  ;;  %v6613_v15 = vld [vmem:[#allocation2 + $0x19] sm:$0xff] }
 0x725   : > { %6534 = vst.msk [vmem:[#allocation2 + $0x39] sm:$0xff] %vm6530_vm9, %v6441_v12  ;;  %6535 = vst.msk [vmem:[#allocation2 + $0x49] sm:$0xff] %vm6530_vm9, %v6443_v11  ;;  %v6707_v63 = vld [vmem:[#allocation2 + $0x18] sm:$0xff] }
 0x728   : > { %v6445_v26 = vpop.permute.xlu1 %6444  ;;  %v6447_v8 = vpop.permute.xlu0 %6446  ;;  %v6614_v31 = vld [vmem:[#allocation2 + $0x21] sm:$0xff]  ;;  %v6615_v32 = vld [vmem:[#allocation2 + $0x31] sm:$0xff] }
 0x729   : > { %v6708_v9 = vld [vmem:[#allocation2 + $0x20] sm:$0xff]  ;;  %v16722_v50 = vpack.c.bf16 %v6614_v31, %v6613_v15  ;;  %6536 = vst.msk [vmem:[#allocation2 + $0x51] sm:$0xff] %vm6530_vm9, %v6445_v26  ;;  %6537 = vst.msk [vmem:[#allocation2 + $0x61] sm:$0xff] %vm6530_vm9, %v6447_v8  ;;  %v6709_v53 = vld [vmem:[#allocation2 + $0x30] sm:$0xff] }
 0x72a   : > { %v6739_v14 = vpack.c.bf16 %v6708_v9, %v6707_v63  ;;  %v6661_v33 = vld [vmem:[#allocation2 + $0x1a] sm:$0xff]  ;;  %v6662_v37 = vld [vmem:[#allocation2 + $0x22] sm:$0xff]  ;;  %v14011_v63 = vld [vmem:[#allocation6 + $0x880] sm:$0xff]  }
 0x72b   : > { %7616 = vmatprep.mubr.bf16.mxu1 %v16722_v50  ;;  %v16737_v16 = vpack.c.bf16 %v6662_v37, %v6661_v33  ;;  %v14010_v26 = vld [vmem:[#allocation6 + $0x848] sm:$0xff]  }
 0x72c   : > { %7769 = vmatprep.mubr.bf16.mxu0 %v6739_v14  ;;  %v6449_v49 = vpop.permute.xlu1 %6448  ;;  %7617 = vmatmul.mubr.bf16.gmra.mxu1 %v6739_v14  ;;  %v6451_v19 = vpop.permute.xlu0 %6450  ;;  %v6616_v38 = vld [vmem:[#allocation2 + $0x39] sm:$0xff]  ;;  %v6617_v54 = vld [vmem:[#allocation2 + $0x49] sm:$0xff] }
 0x72d   : > { %7770 = vmatmul.mubr.bf16.vlgmr.msra.gmra.mxu0 %v6691_v17  ;;  %v6710_v61 = vld [vmem:[#allocation2 + $0x38] sm:$0xff]  ;;  %6538 = vst.msk [vmem:[#allocation2 + $0x69] sm:$0xff] %vm6530_vm9, %v6449_v49  ;;  %6539 = vst.msk [vmem:[#allocation2 + $0x79] sm:$0xff] %vm6530_vm9, %v6451_v19  ;;  %v16729_v22 = vpack.c.bf16 %v6616_v38, %v6615_v32  ;;  %v6711_v59 = vld [vmem:[#allocation2 + $0x48] sm:$0xff] }
 0x72e   : > { %v16731_v34 = vpack.c.bf16 %v6710_v61, %v6709_v53  ;;  %12791 = vmatpush3.bf16.msra.mxu0 %v13995_v0  ;;  %v6663_v46 = vld [vmem:[#allocation2 + $0x32] sm:$0xff]  ;;  %v6664_v41 = vld [vmem:[#allocation2 + $0x3a] sm:$0xff] }
 0x72f   : > { %12792 = vmatprep.subr.bf16.mxu0 %v13996_v24  ;;  %7624 = vmatprep.mubr.bf16.mxu1 %v16729_v22  ;;  %v16751_v44 = vpack.c.bf16 %v6664_v41, %v6663_v46  ;;  %v14012_v14 = vld [vmem:[#allocation6 + $0x840] sm:$0xff]  }
 0x730   : > { %7777 = vmatprep.mubr.bf16.mxu0 %v16731_v34  ;;  %v6453_v36 = vpop.permute.xlu1 %6452  ;;  %v6455_v60 = vpop.permute.xlu0 %6454  ;;  %v6618_v30 = vld [vmem:[#allocation2 + $0x51] sm:$0xff]  ;;  %v6619_v52 = vld [vmem:[#allocation2 + $0x61] sm:$0xff] }
 0x731   : > { %v6712_v29 = vld [vmem:[#allocation2 + $0x50] sm:$0xff]  ;;  %6540 = vst.msk [vmem:[#allocation2 + $0x81] sm:$0xff] %vm6530_vm9, %v6453_v36  ;;  %6541 = vst.msk [vmem:[#allocation2 + $0x91] sm:$0xff] %vm6530_vm9, %v6455_v60  ;;  %v16739_v25 = vpack.c.bf16 %v6618_v30, %v6617_v54  ;;  %v6713_v13 = vld [vmem:[#allocation2 + $0x60] sm:$0xff] }
 0x732   : > { %12793 = vmatpush3.bf16.msra.mxu0 %v13997_v43  ;;  %v16741_v48 = vpack.c.bf16 %v6712_v29, %v6711_v59  ;;  %v6665_v28 = vld [vmem:[#allocation2 + $0x4a] sm:$0xff]  ;;  %v6666_v21 = vld [vmem:[#allocation2 + $0x52] sm:$0xff] }
 0x733   : > { %12794 = vmatprep.subr.bf16.mxu0 %v13999_v57  ;;  %v16765_v62 = vpack.c.bf16 %v6666_v21, %v6665_v28 }
 0x734   : > { %v6457_v10 = vpop.permute.xlu1 %6456  ;;  %7625 = vmatmul.mubr.bf16.gmra.mxu1 %v16731_v34  ;;  %v6459_v51 = vpop.permute.xlu0 %6458  ;;  %v6620_v2 = vld [vmem:[#allocation2 + $0x69] sm:$0xff]  ;;  %v6621_v7 = vld [vmem:[#allocation2 + $0x79] sm:$0xff] }
 0x735   : > { %7778 = vmatmul.mubr.bf16.gmra.mxu0 %v16737_v16  ;;  %6542 = vst.msk [vmem:[#allocation2 + $0x99] sm:$0xff] %vm6530_vm9, %v6457_v10  ;;  %6543 = vst.msk [vmem:[#allocation2 + $0xa9] sm:$0xff] %vm6530_vm9, %v6459_v51  ;;  %7632 = vmatprep.mubr.bf16.mxu1 %v16739_v25  ;;  %v6714_v18 = vld [vmem:[#allocation2 + $0x68] sm:$0xff]  ;;  %v16753_v35 = vpack.c.bf16 %v6620_v2, %v6619_v52  ;;  %v6715_v15 = vld [vmem:[#allocation2 + $0x78] sm:$0xff] }
 0x736   : > { %7785 = vmatprep.mubr.bf16.mxu0 %v16741_v48  ;;  %12795 = vmatpush3.bf16.msra.mxu0 %v14001_v39  ;;  %v16755_v58 = vpack.c.bf16 %v6714_v18, %v6713_v13  ;;  %v6667_v0 = vld [vmem:[#allocation2 + $0x62] sm:$0xff]  ;;  %v6668_v24 = vld [vmem:[#allocation2 + $0x6a] sm:$0xff] }
 0x737   : > { %12796 = vmatprep.subr.bf16.mxu0 %v14002_v1  ;;  %v16779_v53 = vpack.c.bf16 %v6668_v24, %v6667_v0 }
 0x738   : > { %v6461_v47 = vpop.permute.xlu1 %6460  ;;  %v6463_v4 = vpop.permute.xlu0 %6462  ;;  %v6622_v12 = vld [vmem:[#allocation2 + $0x81] sm:$0xff]  ;;  %v6623_v61 = vld [vmem:[#allocation2 + $0x91] sm:$0xff] }
 0x739   : > { %6544 = vst.msk [vmem:[#allocation2 + $0xb1] sm:$0xff] %vm6530_vm9, %v6461_v47  ;;  %6545 = vst.msk [vmem:[#allocation2 + $0xc1] sm:$0xff] %vm6530_vm9, %v6463_v4  ;;  %v6716_v11 = vld [vmem:[#allocation2 + $0x80] sm:$0xff]  ;;  %v16767_v8 = vpack.c.bf16 %v6622_v12, %v6621_v7  ;;  %v6717_v43 = vld [vmem:[#allocation2 + $0x90] sm:$0xff] }
 0x73a   : > { %12797 = vmatpush3.bf16.msra.mxu0 %v14003_v5  ;;  %v16769_v31 = vpack.c.bf16 %v6716_v11, %v6715_v15  ;;  %v6669_v60 = vld [vmem:[#allocation2 + $0x7a] sm:$0xff]  ;;  %v6670_v30 = vld [vmem:[#allocation2 + $0x82] sm:$0xff] }
 0x73b   : > { %12798 = vmatprep.subr.bf16.mxu0 %v14004_v45  ;;  %v16793_v1 = vpack.c.bf16 %v6670_v30, %v6669_v60 }
 0x73c   : > { %v6465_v40 = vpop.permute.xlu1 %6464  ;;  %7633 = vmatmul.mubr.bf16.gmra.mxu1 %v16741_v48  ;;  %v6467_v55 = vpop.permute.xlu0 %6466  ;;  %v6624_v19 = vld [vmem:[#allocation2 + $0x99] sm:$0xff]  ;;  %v6625_v10 = vld [vmem:[#allocation2 + $0xa9] sm:$0xff] }
 0x73d   : > { %7786 = vmatmul.mubr.bf16.gmra.mxu0 %v16751_v44  ;;  %6546 = vst.msk [vmem:[#allocation2 + $0xc9] sm:$0xff] %vm6530_vm9, %v6465_v40  ;;  %6547 = vst.msk [vmem:[#allocation2 + $0xd9] sm:$0xff] %vm6530_vm9, %v6467_v55  ;;  %7640 = vmatprep.mubr.bf16.mxu1 %v16753_v35  ;;  %v6718_v38 = vld [vmem:[#allocation2 + $0x98] sm:$0xff]  ;;  %v16781_v57 = vpack.c.bf16 %v6624_v19, %v6623_v61  ;;  %v6719_v51 = vld [vmem:[#allocation2 + $0xa8] sm:$0xff] }
 0x73e   : > { %7793 = vmatprep.mubr.bf16.mxu0 %v16755_v58  ;;  %12799 = vmatpush3.bf16.msra.mxu0 %v14005_v23  ;;  %v16783_v33 = vpack.c.bf16 %v6718_v38, %v6717_v43  ;;  %v6671_v47 = vld [vmem:[#allocation2 + $0x92] sm:$0xff]  ;;  %v6672_v4 = vld [vmem:[#allocation2 + $0x9a] sm:$0xff] }
 0x73f   : > { %12800 = vmatprep.subr.bf16.mxu0 %v14006_v56  ;;  %v16807_v23 = vpack.c.bf16 %v6672_v4, %v6671_v47 }
 0x740   : > { %v6469_v27 = vpop.permute.xlu1 %6468  ;;  %v6471_v3 = vpop.permute.xlu0 %6470  ;;  %v6626_v59 = vld [vmem:[#allocation2 + $0xb1] sm:$0xff]  ;;  %v6627_v56 = vld [vmem:[#allocation2 + $0xc1] sm:$0xff] }
 0x741   : > { %6548 = vst.msk [vmem:[#allocation2 + $0xe1] sm:$0xff] %vm6530_vm9, %v6469_v27  ;;  %6549 = vst.msk [vmem:[#allocation2 + $0xf1] sm:$0xff] %vm6530_vm9, %v6471_v3  ;;  %v6720_v39 = vld [vmem:[#allocation2 + $0xb0] sm:$0xff]  ;;  %v16795_v5 = vpack.c.bf16 %v6626_v59, %v6625_v10  ;;  %v6721_v40 = vld [vmem:[#allocation2 + $0xc0] sm:$0xff] }
 0x742   : > { %12801 = vmatpush3.bf16.msra.mxu0 %v14007_v42  ;;  %v16797_v46 = vpack.c.bf16 %v6720_v39, %v6719_v51  ;;  %v6673_v21 = vld [vmem:[#allocation2 + $0xaa] sm:$0xff] }
 0x743   : > { %12802 = vmatprep.subr.bf16.mxu0 %v14008_v6  ;;  %v6674_v6 = vld [vmem:[#allocation2 + $0xb2] sm:$0xff] }
 0x744   : > { %v6473_v9 = vpop.permute.xlu1 %6472  ;;  %7641 = vmatmul.mubr.bf16.gmra.mxu1 %v16755_v58  ;;  %v6475_v17 = vpop.permute.xlu0 %6474  ;;  %v6628_v52 = vld [vmem:[#allocation2 + $0xc9] sm:$0xff]  ;;  %v16818_v11 = vpack.c.bf16 %v6674_v6, %v6673_v21  ;;  %v6629_v7 = vld [vmem:[#allocation2 + $0xd9] sm:$0xff] }
 0x745   : > { %7794 = vmatmul.mubr.bf16.gmra.mxu0 %v16765_v62  ;;  %6550 = vst.msk [vmem:[#allocation2 + $0xf9] sm:$0xff] %vm6530_vm9, %v6473_v9  ;;  %6551 = vst.msk [vmem:[#allocation2 + $0x109] sm:$0xff] %vm6530_vm9, %v6475_v17  ;;  %7648 = vmatprep.mubr.bf16.mxu1 %v16767_v8  ;;  %v6722_v13 = vld [vmem:[#allocation2 + $0xc8] sm:$0xff]  ;;  %v16809_v55 = vpack.c.bf16 %v6628_v52, %v6627_v56  ;;  %v6723_v15 = vld [vmem:[#allocation2 + $0xd8] sm:$0xff] }
 0x746   : > { %7801 = vmatprep.mubr.bf16.mxu0 %v16769_v31  ;;  %12803 = vmatpush3.bf16.msra.mxu0 %v14010_v26  ;;  %v16811_v42 = vpack.c.bf16 %v6722_v13, %v6721_v40  ;;  %v6676_v0 = vld [vmem:[#allocation2 + $0xca] sm:$0xff] }
 0x747   : > { %12804 = vmatprep.subr.bf16.mxu0 %v14011_v63 }
 0x748   : > { %v6477_v32 = vpop.permute.xlu1 %6476  ;;  %v6479_v49 = vpop.permute.xlu0 %6478  ;;  %v6630_v27 = vld [vmem:[#allocation2 + $0xe1] sm:$0xff]  ;;  %v6631_v19 = vld [vmem:[#allocation2 + $0xf1] sm:$0xff] }
 0x749   : > { %6552 = vst.msk [vmem:[#allocation2 + $0x111] sm:$0xff] %vm6530_vm9, %v6477_v32  ;;  %6553 = vst.msk [vmem:[#allocation2 + $0x121] sm:$0xff] %vm6530_vm9, %v6479_v49  ;;  %v6724_v3 = vld [vmem:[#allocation2 + $0xe0] sm:$0xff]  ;;  %v16820_v63 = vpack.c.bf16 %v6630_v27, %v6629_v7  ;;  %v6725_v38 = vld [vmem:[#allocation2 + $0xf0] sm:$0xff] }
 0x74a   : > { %12805 = vmatpush3.bf16.msra.mxu0 %v14012_v14  ;;  %v16822_v9 = vpack.c.bf16 %v6724_v3, %v6723_v15  ;;  %v6675_v14 = vld [vmem:[#allocation2 + $0xc2] sm:$0xff] }
 0x74b   : > { %v16830_v49 = vpack.c.bf16 %v6676_v0, %v6675_v14 }
 0x74c   : > { %v6481_v37 = vpop.permute.xlu1 %6480  ;;  %7649 = vmatmul.mubr.bf16.gmra.mxu1 %v16769_v31  ;;  %v6483_v36 = vpop.permute.xlu0 %6482  ;;  %v6632_v24 = vld [vmem:[#allocation2 + $0xf9] sm:$0xff]  ;;  %v6727_v59 = vld [vmem:[#allocation2 + $0x108] sm:$0xff] }
 0x74d   : > { %7802 = vmatmul.mubr.bf16.gmra.mxu0 %v16779_v53  ;;  %6554 = vst.msk [vmem:[#allocation2 + $0x129] sm:$0xff] %vm6530_vm9, %v6481_v37  ;;  %6555 = vst.msk [vmem:[#allocation2 + $0x139] sm:$0xff] %vm6530_vm9, %v6483_v36  ;;  %7656 = vmatprep.mubr.bf16.mxu1 %v16781_v57  ;;  %v6726_v32 = vld [vmem:[#allocation2 + $0xf8] sm:$0xff]  ;;  %v16832_v61 = vpack.c.bf16 %v6632_v24, %v6631_v19  ;;  %v6678_v36 = vld [vmem:[#allocation2 + $0xe2] sm:$0xff] }
 0x74e   : > { %7809 = vmatprep.mubr.bf16.mxu0 %v16783_v33  ;;  %v16834_v43 = vpack.c.bf16 %v6726_v32, %v6725_v38  ;;  %v6677_v37 = vld [vmem:[#allocation2 + $0xda] sm:$0xff]  ;;  %v6679_v51 = vld [vmem:[#allocation2 + $0xf2] sm:$0xff] }
 0x750   : > { %v6485_v29 = vpop.permute.xlu1 %6484  ;;  %v6487_v54 = vpop.permute.xlu0 %6486  ;;  %v6634_v60 = vld [vmem:[#allocation2 + $0x111] sm:$0xff] }
 0x751   : > { %6556 = vst.msk [vmem:[#allocation2 + $0x141] sm:$0xff] %vm6530_vm9, %v6485_v29  ;;  %6557 = vst.msk [vmem:[#allocation2 + $0x151] sm:$0xff] %vm6530_vm9, %v6487_v54  ;;  %v6728_v30 = vld [vmem:[#allocation2 + $0x110] sm:$0xff]  ;;  %v16840_v29 = vpack.c.bf16 %v6678_v36, %v6677_v37 }
 0x752   : > { %v6633_v54 = vld [vmem:[#allocation2 + $0x109] sm:$0xff]  ;;  %v16844_v10 = vpack.c.bf16 %v6728_v30, %v6727_v59  ;;  %v6682_v40 = vld [vmem:[#allocation2 + $0x112] sm:$0xff] }
 0x753   : > { %v16842_v39 = vpack.c.bf16 %v6634_v60, %v6633_v54  ;;  %v6681_v56 = vld [vmem:[#allocation2 + $0x10a] sm:$0xff] }
 0x754   : > { %v6489_v41 = vpop.permute.xlu1 %6488  ;;  %7657 = vmatmul.mubr.bf16.gmra.mxu1 %v16783_v33  ;;  %v6491_v45 = vpop.permute.xlu0 %6490  ;;  %v6730_v47 = vld [vmem:[#allocation2 + $0x128] sm:$0xff]  ;;  %v16860_v6 = vpack.c.bf16 %v6682_v40, %v6681_v56  ;;  %v6637_v27 = vld [vmem:[#allocation2 + $0x139] sm:$0xff] }
 0x755   : > { %7810 = vmatmul.mubr.bf16.gmra.mxu0 %v16793_v1  ;;  %6558 = vst.msk [vmem:[#allocation2 + $0x159] sm:$0xff] %vm6530_vm9, %v6489_v41  ;;  %6559 = vst.msk [vmem:[#allocation2 + $0x169] sm:$0xff] %vm6530_vm9, %v6491_v45  ;;  %7664 = vmatprep.mubr.bf16.mxu1 %v16795_v5  ;;  %v6680_v41 = vld [vmem:[#allocation2 + $0xfa] sm:$0xff]  ;;  %v6636_v45 = vld [vmem:[#allocation2 + $0x129] sm:$0xff] }
 0x756   : > { %7817 = vmatprep.mubr.bf16.mxu0 %v16797_v46  ;;  %v16850_v4 = vpack.c.bf16 %v6680_v41, %v6679_v51  ;;  %v6731_v3 = vld [vmem:[#allocation2 + $0x138] sm:$0xff]  ;;  %v6683_v15 = vld [vmem:[#allocation2 + $0x122] sm:$0xff] }
 0x758   : > { %v6493_v2 = vpop.permute.xlu1 %6492  ;;  %v6495_v18 = vpop.permute.xlu0 %6494  ;;  %v6732_v21 = vld [vmem:[#allocation2 + $0x140] sm:$0xff]  ;;  %v6639_v32 = vld [vmem:[#allocation2 + $0x151] sm:$0xff] }
 0x759   : > { %6560 = vst.msk [vmem:[#allocation2 + $0x171] sm:$0xff] %vm6530_vm9, %v6493_v2  ;;  %6561 = vst.msk [vmem:[#allocation2 + $0x181] sm:$0xff] %vm6530_vm9, %v6495_v18  ;;  %v12470_v12 = vpop.f32.mrf.mxu1  ;;  %v6635_v2 = vld [vmem:[#allocation2 + $0x121] sm:$0xff]  ;;  %v16864_v7 = vpack.c.bf16 %v6732_v21, %v6731_v3  ;;  %v6733_v19 = vld [vmem:[#allocation2 + $0x150] sm:$0xff] }
 0x75a   : > { %v6729_v18 = vld [vmem:[#allocation2 + $0x120] sm:$0xff]  ;;  %v16852_v52 = vpack.c.bf16 %v6636_v45, %v6635_v2 }
 0x75b   : > { %v12471_v26 = vpop.f32.mrf.mxu1  ;;  %v16854_v13 = vpack.c.bf16 %v6730_v47, %v6729_v18  ;;  %v6685_v36 = vld [vmem:[#allocation2 + $0x13a] sm:$0xff]  ;;  %v6686_v60 = vld [vmem:[#allocation2 + $0x142] sm:$0xff] }
 0x75c   : > { %7665 = vmatmul.mubr.bf16.gmra.mxu1 %v16797_v46  ;;  %v6497_v28 = vpop.permute.xlu1 %6496  ;;  %v16824_v17 = vadd.f32 %v12471_v26, %v12470_v12  ;;  %v6684_v26 = vld [vmem:[#allocation2 + $0x12a] sm:$0xff]  ;;  %v6640_v14 = vld [vmem:[#allocation2 + $0x159] sm:$0xff]  ;;  %v16880_v59 = vpack.c.bf16 %v6686_v60, %v6685_v36 }
 0x75d   : > { %7818 = vmatmul.mubr.bf16.gmra.mxu0 %v16807_v23  ;;  %6562 = vst.msk [vmem:[#allocation2 + $0x189] sm:$0xff] %vm6530_vm9, %v6497_v28  ;;  %7672 = vmatprep.mubr.bf16.mxu1 %v16809_v55  ;;  %v6638_v28 = vld [vmem:[#allocation2 + $0x141] sm:$0xff]  ;;  %v6734_v0 = vld [vmem:[#allocation2 + $0x158] sm:$0xff]  ;;  %v16870_v24 = vpack.c.bf16 %v6684_v26, %v6683_v15  ;;  %v16872_v38 = vpack.c.bf16 %v6640_v14, %v6639_v32  ;;  %v6641_v51 = vld [vmem:[#allocation2 + $0x169] sm:$0xff] }
 0x75e   : > { %7825 = vmatprep.mubr.bf16.mxu0 %v16811_v42  ;;  %v16862_v12 = vpack.c.bf16 %v6638_v28, %v6637_v27  ;;  %v16874_v37 = vpack.c.bf16 %v6734_v0, %v6733_v19  ;;  %v6735_v41 = vld [vmem:[#allocation2 + $0x168] sm:$0xff]  ;;  %v6687_v2 = vld [vmem:[#allocation2 + $0x152] sm:$0xff]  ;;  %v6688_v18 = vld [vmem:[#allocation2 + $0x15a] sm:$0xff] }
 0x75f   : > { %v16890_v40 = vpack.c.bf16 %v6688_v18, %v6687_v2  ;;  %v14013_v26 = vld [vmem:[#allocation6 + $0x8f0] sm:$0xff]   ;;  %v14014_v14 = vld [vmem:[#allocation6 + $0x8e8] sm:$0xff]  }
 0x760   : > { %v6642_v30 = vld [vmem:[#allocation2 + $0x171] sm:$0xff]  ;;  %v6737_v28 = vld [vmem:[#allocation2 + $0x180] sm:$0xff] }
 0x761   : > { %v6736_v54 = vld [vmem:[#allocation2 + $0x170] sm:$0xff]  ;;  %v16882_v45 = vpack.c.bf16 %v6642_v30, %v6641_v51 }
 0x762   : > { %v16884_v47 = vpack.c.bf16 %v6736_v54, %v6735_v41  ;;  %v6689_v27 = vld [vmem:[#allocation2 + $0x16a] sm:$0xff]  ;;  %v6690_v3 = vld [vmem:[#allocation2 + $0x172] sm:$0xff] }
 0x763   : > { %v16898_v15 = vpack.c.bf16 %v6690_v3, %v6689_v27 }
 0x764   : > { %7673 = vmatmul.mubr.bf16.gmra.mxu1 %v16811_v42  ;;  %v6738_v56 = vld [vmem:[#allocation2 + $0x188] sm:$0xff] }
 0x765   : > { %7826 = vmatmul.mubr.bf16.gmra.mxu0 %v16818_v11  ;;  %7680 = vmatprep.mubr.bf16.mxu1 %v16820_v63  ;;  %v16892_v21 = vpack.c.bf16 %v6738_v56, %v6737_v28 }
 0x766   : > { %7833 = vmatprep.mubr.bf16.mxu0 %v16822_v9 }
 0x76c   : > { %7681 = vmatmul.mubr.bf16.gmra.mxu1 %v16822_v9 }
 0x76d   : > { %7834 = vmatmul.mubr.bf16.gmra.mxu0 %v16830_v49  ;;  %7688 = vmatprep.mubr.bf16.mxu1 %v16832_v61 }
 0x76e   : > { %7841 = vmatprep.mubr.bf16.mxu0 %v16834_v43 }
 0x774   : > { %7689 = vmatmul.mubr.bf16.gmra.mxu1 %v16834_v43 }
 0x775   : > { %7842 = vmatmul.mubr.bf16.gmra.mxu0 %v16840_v29  ;;  %7696 = vmatprep.mubr.bf16.mxu1 %v16842_v39 }
 0x776   : > { %7849 = vmatprep.mubr.bf16.mxu0 %v16844_v10 }
 0x77c   : > { %7697 = vmatmul.mubr.bf16.gmra.mxu1 %v16844_v10 }
 0x77d   : > { %7850 = vmatmul.mubr.bf16.gmra.mxu0 %v16850_v4  ;;  %7704 = vmatprep.mubr.bf16.mxu1 %v16852_v52 }
 0x77e   : > { %7857 = vmatprep.mubr.bf16.mxu0 %v16854_v13 }
 0x784   : > { %7705 = vmatmul.mubr.bf16.gmra.mxu1 %v16854_v13 }
 0x785   : > { %7858 = vmatmul.mubr.bf16.gmra.mxu0 %v16860_v6  ;;  %7712 = vmatprep.mubr.bf16.mxu1 %v16862_v12 }
 0x786   : > { %7865 = vmatprep.mubr.bf16.mxu0 %v16864_v7 }
 0x78c   : > { %7713 = vmatmul.mubr.bf16.gmra.mxu1 %v16864_v7 }
 0x78d   : > { %7866 = vmatmul.mubr.bf16.gmra.mxu0 %v16870_v24  ;;  %7720 = vmatprep.mubr.bf16.mxu1 %v16872_v38 }
 0x78e   : > { %7873 = vmatprep.mubr.bf16.mxu0 %v16874_v37 }
 0x794   : > { %7721 = vmatmul.mubr.bf16.gmra.mxu1 %v16874_v37 }
 0x795   : > { %7874 = vmatmul.mubr.bf16.gmra.mxu0 %v16880_v59  ;;  %7728 = vmatprep.mubr.bf16.mxu1 %v16882_v45 }
 0x796   : > { %7881 = vmatprep.mubr.bf16.mxu0 %v16884_v47 }
 0x79c   : > { %7729 = vmatmul.mubr.bf16.gmra.mxu1 %v16884_v47 }
 0x79d   : > { %7882 = vmatmul.mubr.bf16.gmra.mxu0 %v16890_v40  ;;  %7930 = vmatprep.mubr.bf16.mxu1 %v16737_v16  ;;  %v14015_v16 = vld [vmem:[#allocation6 + $0x8e0] sm:$0xff]  }
 0x79e   : > { %7889 = vmatprep.mubr.bf16.mxu0 %v16892_v21 }
 0x7a4   : > { %7931 = vmatmul.mubr.bf16.vlgmr.msra.gmra.mxu1 %v16722_v50  ;;  %v14016_v50 = vld [vmem:[#allocation6 + $0x8d8] sm:$0xff]  }
 0x7a5   : > { %7890 = vmatmul.mubr.bf16.gmra.mxu0 %v16898_v15  ;;  %7938 = vmatprep.mubr.bf16.mxu1 %v16751_v44  ;;  %v14017_v44 = vld [vmem:[#allocation6 + $0x8d0] sm:$0xff]  }
 0x7a6   : > { %8091 = vmatprep.mubr.bf16.mxu0 %v16729_v22  ;;  %13543 = vmatpush3.bf16.msra.mxu1 %v16719_v20  ;;  %v14018_v20 = vld [vmem:[#allocation6 + $0x8c8] sm:$0xff]  }
 0x7a7   : > { %13544 = vmatprep.subr.bf16.mxu1 %v14013_v26 }
 0x7aa   : > { %13545 = vmatpush3.bf16.msra.mxu1 %v14013_v26 }
 0x7ab   : > { %13546 = vmatprep.subr.bf16.mxu1 %v14014_v14 }
 0x7ac   : > { %7939 = vmatmul.mubr.bf16.gmra.mxu1 %v16729_v22  ;;  %v14019_v22 = vld [vmem:[#allocation6 + $0x8c0] sm:$0xff]  }
 0x7ad   : > { %8092 = vmatmul.mubr.bf16.vlgmr.msra.gmra.mxu0 %v16731_v34  ;;  %7946 = vmatprep.mubr.bf16.mxu1 %v16765_v62  ;;  %v12473_v34 = vpop.f32.mrf.mxu1 }
 0x7ae   : > { %8099 = vmatprep.mubr.bf16.mxu0 %v16739_v25  ;;  %13547 = vmatpush3.bf16.msra.mxu1 %v14014_v14 }
 0x7af   : > { %13548 = vmatprep.subr.bf16.mxu1 %v14015_v16 }
 0x7b2   : > { %13549 = vmatpush3.bf16.msra.mxu1 %v14015_v16 }
 0x7b3   : > { %13550 = vmatprep.subr.bf16.mxu1 %v14016_v50 }
 0x7b4   : > { %7947 = vmatmul.mubr.bf16.gmra.mxu1 %v16739_v25  ;;  %v18460_v25 = vld [vmem:[#allocation45_spill] sm:$0xff] }
 0x7b5   : > { %8100 = vmatmul.mubr.bf16.gmra.mxu0 %v16741_v48  ;;  %7954 = vmatprep.mubr.bf16.mxu1 %v16779_v53  ;;  %v7142_v48 = vsub.s32 3, %v18460_v25 }
 0x7b6   : > { %8107 = vmatprep.mubr.bf16.mxu0 %v16753_v35  ;;  %13551 = vmatpush3.bf16.msra.mxu1 %v14016_v50 }
 0x7b7   : > { %13552 = vmatprep.subr.bf16.mxu1 %v14017_v44 }
 0x7ba   : > { %13553 = vmatpush3.bf16.msra.mxu1 %v14017_v44 }
 0x7bb   : > { %13554 = vmatprep.subr.bf16.mxu1 %v14018_v20 }
 0x7bc   : > { %7955 = vmatmul.mubr.bf16.gmra.mxu1 %v16753_v35  ;;  %v12474_v35 = vpop.f32.mrf.mxu1 }
 0x7bd   : > { %8108 = vmatmul.mubr.bf16.gmra.mxu0 %v16755_v58  ;;  %7962 = vmatprep.mubr.bf16.mxu1 %v16793_v1  ;;  %v14097_v58 = vld [vmem:[#allocation8] sm:$0x1f]  ;;  %v12475_v1 = vadd.f32 %v12474_v35, %v12473_v34 }
 0x7be   : > { %8115 = vmatprep.mubr.bf16.mxu0 %v16767_v8  ;;  %13555 = vmatpush3.bf16.msra.mxu1 %v14018_v20  ;;  %v16938_v62 = vrot.slane %v14097_v58, %v7142_v48 }
 0x7bf   : > { %13556 = vmatprep.subr.bf16.mxu1 %v14019_v22 }
 0x7c2   : > { %13557 = vmatpush3.bf16.msra.mxu1 %v14019_v22 }
 0x7c4   : > { %7963 = vmatmul.mubr.bf16.gmra.mxu1 %v16767_v8 }
 0x7c5   : > { %8116 = vmatmul.mubr.bf16.gmra.mxu0 %v16769_v31  ;;  %7970 = vmatprep.mubr.bf16.mxu1 %v16807_v23 }
 0x7c6   : > { %8123 = vmatprep.mubr.bf16.mxu0 %v16781_v57 }
 0x7cc   : > { %7971 = vmatmul.mubr.bf16.gmra.mxu1 %v16781_v57 }
 0x7cd   : > { %8124 = vmatmul.mubr.bf16.gmra.mxu0 %v16783_v33  ;;  %7978 = vmatprep.mubr.bf16.mxu1 %v16818_v11  ;;  %v7611_v33 = vadd.f32 %v16824_v17, %v16938_v62 }
 0x7ce   : > { %8131 = vmatprep.mubr.bf16.mxu0 %v16795_v5 }
 0x7d4   : > { %7979 = vmatmul.mubr.bf16.gmra.mxu1 %v16795_v5 }
 0x7d5   : > { %8132 = vmatmul.mubr.bf16.gmra.mxu0 %v16797_v46  ;;  %7986 = vmatprep.mubr.bf16.mxu1 %v16830_v49 }
 0x7d6   : > { %8139 = vmatprep.mubr.bf16.mxu0 %v16809_v55 }
 0x7dc   : > { %7987 = vmatmul.mubr.bf16.gmra.mxu1 %v16809_v55 }
 0x7dd   : > { %8140 = vmatmul.mubr.bf16.gmra.mxu0 %v16811_v42  ;;  %7994 = vmatprep.mubr.bf16.mxu1 %v16840_v29 }
 0x7de   : > { %8147 = vmatprep.mubr.bf16.mxu0 %v16820_v63 }
 0x7e4   : > { %7995 = vmatmul.mubr.bf16.gmra.mxu1 %v16820_v63 }
 0x7e5   : > { %8148 = vmatmul.mubr.bf16.gmra.mxu0 %v16822_v9  ;;  %8002 = vmatprep.mubr.bf16.mxu1 %v16850_v4  ;;  %v7614_v9 = vadd.f32 %v12475_v1, %v16938_v62 }
 0x7e6   : > { %8155 = vmatprep.mubr.bf16.mxu0 %v16832_v61 }
 0x7ec   : > { %v12476_v8 = vpop.f32.mrf.mxu1  ;;  %8003 = vmatmul.mubr.bf16.gmra.mxu1 %v16832_v61 }
 0x7ed   : > { %v12582_v31 = vpop.f32.mrf.mxu0  ;;  %8156 = vmatmul.mubr.bf16.gmra.mxu0 %v16834_v43  ;;  %8010 = vmatprep.mubr.bf16.mxu1 %v16860_v6 }
 0x7ee   : > { %8163 = vmatprep.mubr.bf16.mxu0 %v16842_v39  ;;  %v12477_v53 = vpop.f32.mrf.mxu1 }
 0x7ef   : > { %v12583_v57 = vpop.f32.mrf.mxu0  ;;  %v12478_v5 = vadd.f32 %v12477_v53, %v12476_v8 }
 0x7f0   : > { %v12584_v46 = vadd.f32 %v12583_v57, %v12582_v31  ;;  %v12479_v23 = vpop.f32.mrf.mxu1 }
 0x7f1   : > { %v12585_v55 = vpop.f32.mrf.mxu0  ;;  %v7619_v0 = vadd.f32 %v12478_v5, %v16938_v62 }
 0x7f2   : > { %v16946_v42 = vadd.f32 %v12584_v46, %v7611_v33  ;;  %v12480_v11 = vpop.f32.mrf.mxu1 }
 0x7f3   : > { %v12586_v63 = vpop.f32.mrf.mxu0  ;;  %v12481_v49 = vadd.f32 %v12480_v11, %v12479_v23 }
 0x7f4   : > { %v12587_v61 = vadd.f32 %v12586_v63, %v12585_v55  ;;  %v12482_v43 = vpop.f32.mrf.mxu1  ;;  %8011 = vmatmul.mubr.bf16.gmra.mxu1 %v16842_v39 }
 0x7f5   : > { %v12588_v29 = vpop.f32.mrf.mxu0  ;;  %8164 = vmatmul.mubr.bf16.gmra.mxu0 %v16844_v10  ;;  %8018 = vmatprep.mubr.bf16.mxu1 %v16870_v24  ;;  %v7622_v10 = vadd.f32 %v12481_v49, %v16938_v62 }
 0x7f6   : > { %v16951_v17 = vadd.f32 %v12587_v61, %v7614_v9  ;;  %8171 = vmatprep.mubr.bf16.mxu0 %v16852_v52  ;;  %v12483_v4 = vpop.f32.mrf.mxu1 }
 0x7f7   : > { %v12589_v6 = vpop.f32.mrf.mxu0  ;;  %v12484_v32 = vadd.f32 %v12483_v4, %v12482_v43  ;;  %v6834_v4 = vld [vmem:[#allocation2 + $0x18a] sm:$0xff] }
 0x7f8   : > { %v12590_v19 = vadd.f32 %v12589_v6, %v12588_v29  ;;  %v12485_v36 = vpop.f32.mrf.mxu1  ;;  %v6833_v29 = vld [vmem:[#allocation2 + $0x182] sm:$0xff] }
 0x7f9   : > { %v12591_v60 = vpop.f32.mrf.mxu0  ;;  %v7627_v27 = vadd.f32 %v12484_v32, %v16938_v62  ;;  %v6928_v32 = vld [vmem:[#allocation2 + $0x189] sm:$0xff] }
 0x7fa   : > { %v16956_v30 = vadd.f32 %v12590_v19, %v7619_v0  ;;  %v12486_v54 = vpop.f32.mrf.mxu1 }
 0x7fb   : > { %v12592_v39 = vpop.f32.mrf.mxu0  ;;  %v12487_v51 = vadd.f32 %v12486_v54, %v12485_v36  ;;  %v16988_v36 = vpack.c.bf16 %v6834_v4, %v6833_v29 }
 0x7fc   : > { %v12593_v41 = vadd.f32 %v12592_v39, %v12591_v60  ;;  %v12488_v2 = vpop.f32.mrf.mxu1  ;;  %8019 = vmatmul.mubr.bf16.gmra.mxu1 %v16852_v52 }
 0x7fd   : > { %v12594_v24 = vpop.f32.mrf.mxu0  ;;  %8172 = vmatmul.mubr.bf16.gmra.mxu0 %v16854_v13  ;;  %8026 = vmatprep.mubr.bf16.mxu1 %v16880_v59  ;;  %v7630_v13 = vadd.f32 %v12487_v51, %v16938_v62 }
 0x7fe   : > { %v16961_v18 = vadd.f32 %v12593_v41, %v7622_v10  ;;  %8179 = vmatprep.mubr.bf16.mxu0 %v16862_v12  ;;  %v12489_v56 = vpop.f32.mrf.mxu1 }
 0x7ff   : > { %v12595_v28 = vpop.f32.mrf.mxu0  ;;  %v12490_v3 = vadd.f32 %v12489_v56, %v12488_v2 }
 0x800   : > { %v12596_v26 = vadd.f32 %v12595_v28, %v12594_v24  ;;  %v12491_v14 = vpop.f32.mrf.mxu1  ;;  %v6929_v28 = vld [vmem:[#allocation2 + $0x199] sm:$0xff] }
 0x801   : > { %v12597_v16 = vpop.f32.mrf.mxu0  ;;  %v7635_v8 = vadd.f32 %v12490_v3, %v16938_v62 }
 0x802   : > { %v16966_v50 = vadd.f32 %v12596_v26, %v7627_v27  ;;  %v12492_v44 = vpop.f32.mrf.mxu1  ;;  %v6930_v27 = vld [vmem:[#allocation2 + $0x1a1] sm:$0xff] }
 0x803   : > { %v12598_v52 = vpop.f32.mrf.mxu0  ;;  %v12493_v20 = vadd.f32 %v12492_v44, %v12491_v14 }
 0x804   : > { %v12599_v22 = vadd.f32 %v12598_v52, %v12597_v16  ;;  %v12494_v34 = vpop.f32.mrf.mxu1  ;;  %8027 = vmatmul.mubr.bf16.gmra.mxu1 %v16862_v12  ;;  %v6947_v52 = vld [vmem:[#allocation2 + $0x32] sm:$0xff] }
 0x805   : > { %v12600_v59 = vpop.f32.mrf.mxu0  ;;  %8180 = vmatmul.mubr.bf16.gmra.mxu0 %v16864_v7  ;;  %8034 = vmatprep.mubr.bf16.mxu1 %v16890_v40  ;;  %v7638_v7 = vadd.f32 %v12493_v20, %v16938_v62 }
 0x806   : > { %v16971_v48 = vadd.f32 %v12599_v22, %v7630_v13  ;;  %8187 = vmatprep.mubr.bf16.mxu0 %v16872_v38  ;;  %v12495_v35 = vpop.f32.mrf.mxu1  ;;  %v6948_v13 = vld [vmem:[#allocation2 + $0x3a] sm:$0xff] }
 0x807   : > { %v12601_v58 = vpop.f32.mrf.mxu0  ;;  %v12496_v31 = vadd.f32 %v12495_v35, %v12494_v34 }
 0x808   : > { %v12602_v53 = vadd.f32 %v12601_v58, %v12600_v59  ;;  %v12497_v57 = vpop.f32.mrf.mxu1  ;;  %v6979_v58 = vpack.c.bf16 %v6948_v13, %v6947_v52 }
 0x809   : > { %v12603_v33 = vpop.f32.mrf.mxu0  ;;  %v7643_v49 = vadd.f32 %v12496_v31, %v16938_v62 }
 0x80a   : > { %v16976_v1 = vadd.f32 %v12602_v53, %v7635_v8  ;;  %v12498_v5 = vpop.f32.mrf.mxu1 }
 0x80b   : > { %v12604_v12 = vpop.f32.mrf.mxu0  ;;  %v12499_v46 = vadd.f32 %v12498_v5, %v12497_v57 }
 0x80c   : > { %v12605_v23 = vadd.f32 %v12604_v12, %v12603_v33  ;;  %v12500_v55 = vpop.f32.mrf.mxu1  ;;  %8035 = vmatmul.mubr.bf16.gmra.mxu1 %v16872_v38 }
 0x80d   : > { %v12606_v40 = vpop.f32.mrf.mxu0  ;;  %8188 = vmatmul.mubr.bf16.gmra.mxu0 %v16874_v37  ;;  %8042 = vmatprep.mubr.bf16.mxu1 %v16898_v15  ;;  %v6927_v15 = vld [vmem:[#allocation2 + $0x181] sm:$0xff]  ;;  %v7646_v60 = vadd.f32 %v12499_v46, %v16938_v62  ;;  %v6949_v46 = vld [vmem:[#allocation2 + $0x4a] sm:$0xff] }
 0x80e   : > { %v16981_v11 = vadd.f32 %v12605_v23, %v7638_v7  ;;  %8195 = vmatprep.mubr.bf16.mxu0 %v16882_v45  ;;  %v12501_v63 = vpop.f32.mrf.mxu1  ;;  %v6945_v10 = vpack.c.bf16 %v6928_v32, %v6927_v15  ;;  %v6950_v23 = vld [vmem:[#allocation2 + $0x52] sm:$0xff] }
 0x80f   : > { %v12607_v9 = vpop.f32.mrf.mxu0  ;;  %v12502_v61 = vadd.f32 %v12501_v63, %v12500_v55  ;;  %v14098_v63 = vld [vmem:[#allocation2] sm:$0xff]  ;;  %v6980_v4 = vpack.c.bf16 %v6950_v23, %v6949_v46 }
 0x810   : > { %v12608_v43 = vadd.f32 %v12607_v9, %v12606_v40  ;;  %v12503_v6 = vpop.f32.mrf.mxu1  ;;  %v17004_v9 = vpack.c.bf16 %v14098_v63, %v14098_v63  ;;  %v6959_v23 = vld [vmem:[#allocation2 + $0xc2] sm:$0xff] }
 0x811   : > { %v12609_v0 = vpop.f32.mrf.mxu0  ;;  %v7651_v3 = vadd.f32 %v12502_v61, %v16938_v62  ;;  %v6952_v61 = vld [vmem:[#allocation2 + $0x6a] sm:$0xff] }
 0x812   : > { %v16986_v38 = vadd.f32 %v12608_v43, %v7643_v49  ;;  %v12504_v37 = vpop.f32.mrf.mxu1  ;;  %v6951_v49 = vld [vmem:[#allocation2 + $0x62] sm:$0xff] }
 0x813   : > { %v12610_v19 = vpop.f32.mrf.mxu0  ;;  %v12505_v54 = vadd.f32 %v12504_v37, %v12503_v6  ;;  %v6981_v37 = vpack.c.bf16 %v6952_v61, %v6951_v49 }
 0x814   : > { %v12611_v39 = vadd.f32 %v12610_v19, %v12609_v0  ;;  %v12506_v51 = vpop.f32.mrf.mxu1  ;;  %8043 = vmatmul.mubr.bf16.gmra.mxu1 %v16882_v45 }
 0x815   : > { %v12612_v41 = vpop.f32.mrf.mxu0  ;;  %8196 = vmatmul.mubr.bf16.gmra.mxu0 %v16884_v47  ;;  %8050 = vmatprep.mubr.bf16.mxu1 %v16988_v36  ;;  %v6946_v47 = vpack.c.bf16 %v6930_v27, %v6929_v28  ;;  %v7654_v34 = vadd.f32 %v12505_v54, %v16938_v62 }
 0x816   : > { %v16993_v2 = vadd.f32 %v12611_v39, %v7646_v60  ;;  %8203 = vmatprep.mubr.bf16.mxu0 %v6945_v10  ;;  %v12507_v24 = vpop.f32.mrf.mxu1 }
 0x817   : > { %v12613_v56 = vpop.f32.mrf.mxu0  ;;  %v12508_v26 = vadd.f32 %v12507_v24, %v12506_v51  ;;  %v6953_v24 = vld [vmem:[#allocation2 + $0x7a] sm:$0xff] }
 0x818   : > { %v12614_v14 = vadd.f32 %v12613_v56, %v12612_v41  ;;  %v12509_v16 = vpop.f32.mrf.mxu1  ;;  %v6954_v56 = vld [vmem:[#allocation2 + $0x82] sm:$0xff] }
 0x819   : > { %v12615_v44 = vpop.f32.mrf.mxu0  ;;  %v7659_v5 = vadd.f32 %v12508_v26, %v16938_v62  ;;  %v6956_v26 = vld [vmem:[#allocation2 + $0x9a] sm:$0xff]  ;;  %v6982_v52 = vpack.c.bf16 %v6954_v56, %v6953_v24 }
 0x81a   : > { %v16997_v45 = vadd.f32 %v12614_v14, %v7651_v3  ;;  %v12510_v20 = vpop.f32.mrf.mxu1  ;;  %v6955_v3 = vld [vmem:[#allocation2 + $0x92] sm:$0xff] }
 0x81b   : > { %v12616_v22 = vpop.f32.mrf.mxu0  ;;  %v12511_v59 = vadd.f32 %v12510_v20, %v12509_v16 }
 0x81c   : > { %v12617_v35 = vadd.f32 %v12616_v22, %v12615_v44  ;;  %v12512_v8 = vpop.f32.mrf.mxu1  ;;  %8051 = vmatmul.mubr.bf16.gmra.mxu1 %v6945_v10  ;;  %v6983_v22 = vpack.c.bf16 %v6956_v26, %v6955_v3 }
 0x81d   : > { %v12618_v31 = vpop.f32.mrf.mxu0  ;;  %8204 = vmatmul.mubr.bf16.gmra.mxu0 %v16892_v21  ;;  %13558 = vmatprep.mubr.bf16.mxu1 %v6979_v58  ;;  %v7662_v6 = vadd.f32 %v12511_v59, %v16938_v62 }
 0x81e   : > { %v17001_v53 = vadd.f32 %v12617_v35, %v7654_v34  ;;  %8211 = vmatprep.mubr.bf16.mxu0 %v6946_v47  ;;  %v12513_v57 = vpop.f32.mrf.mxu1 }
 0x81f   : > { %v12619_v33 = vpop.f32.mrf.mxu0  ;;  %v12514_v12 = vadd.f32 %v12513_v57, %v12512_v8 }
 0x820   : > { %v12620_v7 = vadd.f32 %v12619_v33, %v12618_v31  ;;  %v12515_v55 = vpop.f32.mrf.mxu1 }
 0x821   : > { %v12621_v40 = vpop.f32.mrf.mxu0  ;;  %v7667_v10 = vadd.f32 %v12514_v12, %v16938_v62  ;;  %v6958_v12 = vld [vmem:[#allocation2 + $0xb2] sm:$0xff] }
 0x822   : > { %v17006_v21 = vadd.f32 %v12620_v7, %v7659_v5  ;;  %v12516_v43 = vpop.f32.mrf.mxu1  ;;  %v6957_v5 = vld [vmem:[#allocation2 + $0xaa] sm:$0xff] }
 0x823   : > { %v12622_v29 = vpop.f32.mrf.mxu0  ;;  %v12517_v0 = vadd.f32 %v12516_v43, %v12515_v55  ;;  %v6960_v55 = vld [vmem:[#allocation2 + $0xca] sm:$0xff]  ;;  %v6984_v61 = vpack.c.bf16 %v6958_v12, %v6957_v5  ;;  %v6966_v12 = vld [vmem:[#allocation2 + $0x112] sm:$0xff] }
 0x824   : > { %v12623_v32 = vadd.f32 %v12622_v29, %v12621_v40  ;;  %v12518_v19 = vpop.f32.mrf.mxu1  ;;  %13559 = vmatmul.mubr.bf16.vlgmr.msra.gmra.mxu1 %v6980_v4  ;;  %v6965_v5 = vld [vmem:[#allocation2 + $0x10a] sm:$0xff] }
 0x825   : > { %v12624_v15 = vpop.f32.mrf.mxu0  ;;  %8212 = vmatmul.mubr.bf16.gmra.mxu0 %v17004_v9  ;;  %13562 = vmatprep.mubr.bf16.mxu1 %v6981_v37  ;;  %v7670_v13 = vadd.f32 %v12517_v0, %v16938_v62 }
 0x826   : > { %v17010_v60 = vadd.f32 %v12623_v32, %v7662_v6  ;;  %v12519_v54 = vpop.f32.mrf.mxu1  ;;  %v6985_v6 = vpack.c.bf16 %v6960_v55, %v6959_v23  ;;  %v6967_v23 = vld [vmem:[#allocation2 + $0x122] sm:$0xff]  ;;  %v6968_v55 = vld [vmem:[#allocation2 + $0x12a] sm:$0xff] }
 0x827   : > { %v12625_v39 = vpop.f32.mrf.mxu0  ;;  %v12520_v51 = vadd.f32 %v12519_v54, %v12518_v19 }
 0x828   : > { %v12626_v41 = vadd.f32 %v12625_v39, %v12624_v15  ;;  %v12521_v28 = vpop.f32.mrf.mxu1 }
 0x829   : > { %v12627_v27 = vpop.f32.mrf.mxu0  ;;  %v7675_v31 = vadd.f32 %v12520_v51, %v16938_v62  ;;  %v6961_v51 = vld [vmem:[#allocation2 + $0xda] sm:$0xff] }
 0x82a   : > { %v17013_v14 = vadd.f32 %v12626_v41, %v7667_v10  ;;  %v12522_v16 = vpop.f32.mrf.mxu1  ;;  %v6962_v41 = vld [vmem:[#allocation2 + $0xe2] sm:$0xff] }
 0x82b   : > { %v12628_v44 = vpop.f32.mrf.mxu0  ;;  %v12523_v47 = vadd.f32 %v12522_v16, %v12521_v28  ;;  %v6963_v28 = vld [vmem:[#allocation2 + $0xf2] sm:$0xff] }
 0x82c   : > { %v12629_v20 = vadd.f32 %v12628_v44, %v12627_v27  ;;  %v12524_v34 = vpop.f32.mrf.mxu1  ;;  %13563 = vmatmul.mubr.bf16.gmra.mxu1 %v6982_v52  ;;  %v6964_v27 = vld [vmem:[#allocation2 + $0xfa] sm:$0xff]  ;;  %v6986_v44 = vpack.c.bf16 %v6962_v41, %v6961_v51 }
 0x82d   : > { %v12630_v59 = vpop.f32.mrf.mxu0  ;;  %13566 = vmatprep.mubr.bf16.mxu1 %v6983_v22  ;;  %v7678_v43 = vadd.f32 %v12523_v47, %v16938_v62 }
 0x82e   : > { %v17016_v35 = vadd.f32 %v12629_v20, %v7670_v13  ;;  %v12525_v58 = vpop.f32.mrf.mxu1  ;;  %v6987_v20 = vpack.c.bf16 %v6964_v27, %v6963_v28 }
 0x82f   : > { %v12631_v8 = vpop.f32.mrf.mxu0  ;;  %v12526_v57 = vadd.f32 %v12525_v58, %v12524_v34 }
 0x830   : > { %v12632_v33 = vadd.f32 %v12631_v8, %v12630_v59  ;;  %v12527_v7 = vpop.f32.mrf.mxu1 }
 0x831   : > { %v12633_v46 = vpop.f32.mrf.mxu0  ;;  %v7683_v54 = vadd.f32 %v12526_v57, %v16938_v62 }
 0x832   : > { %v17019_v40 = vadd.f32 %v12632_v33, %v7675_v31  ;;  %v12528_v63 = vpop.f32.mrf.mxu1 }
 0x833   : > { %v12634_v49 = vpop.f32.mrf.mxu0  ;;  %v12529_v29 = vadd.f32 %v12528_v63, %v12527_v7 }
 0x834   : > { %v12635_v4 = vadd.f32 %v12634_v49, %v12633_v46  ;;  %v12530_v0 = vpop.f32.mrf.mxu1  ;;  %13567 = vmatmul.mubr.bf16.gmra.mxu1 %v6984_v61 }
 0x835   : > { %v12636_v32 = vpop.f32.mrf.mxu0  ;;  %13570 = vmatprep.mubr.bf16.mxu1 %v6985_v6  ;;  %v7686_v52 = vadd.f32 %v12529_v29, %v16938_v62 }
 0x836   : > { %v17022_v37 = vadd.f32 %v12635_v4, %v7678_v43  ;;  %v12531_v19 = vpop.f32.mrf.mxu1  ;;  %v6988_v43 = vpack.c.bf16 %v6966_v12, %v6965_v5 }
 0x837   : > { %v12637_v15 = vpop.f32.mrf.mxu0  ;;  %v12532_v39 = vadd.f32 %v12531_v19, %v12530_v0  ;;  %v6989_v0 = vpack.c.bf16 %v6968_v55, %v6967_v23  ;;  %v6973_v23 = vld [vmem:[#allocation2 + $0x16a] sm:$0xff]  ;;  %v6974_v55 = vld [vmem:[#allocation2 + $0x172] sm:$0xff] }
 0x838   : > { %v12638_v10 = vadd.f32 %v12637_v15, %v12636_v32  ;;  %v12533_v24 = vpop.f32.mrf.mxu1 }
 0x839   : > { %v12639_v56 = vpop.f32.mrf.mxu0  ;;  %v7691_v31 = vadd.f32 %v12532_v39, %v16938_v62 }
 0x83a   : > { %v17025_v3 = vadd.f32 %v12638_v10, %v7683_v54  ;;  %v12534_v26 = vpop.f32.mrf.mxu1 }
 0x83b   : > { %v12640_v16 = vpop.f32.mrf.mxu0  ;;  %v12535_v13 = vadd.f32 %v12534_v26, %v12533_v24  ;;  %v6969_v24 = vld [vmem:[#allocation2 + $0x13a] sm:$0xff]  ;;  %v6971_v26 = vld [vmem:[#allocation2 + $0x152] sm:$0xff] }
 0x83c   : > { %v12641_v47 = vadd.f32 %v12640_v16, %v12639_v56  ;;  %v12536_v22 = vpop.f32.mrf.mxu1  ;;  %13571 = vmatmul.mubr.bf16.gmra.mxu1 %v6986_v44  ;;  %v6970_v56 = vld [vmem:[#allocation2 + $0x142] sm:$0xff]  ;;  %v6972_v16 = vld [vmem:[#allocation2 + $0x15a] sm:$0xff] }
 0x83d   : > { %v12642_v34 = vpop.f32.mrf.mxu0  ;;  %13574 = vmatprep.mubr.bf16.mxu1 %v6987_v20  ;;  %v7694_v29 = vadd.f32 %v12535_v13, %v16938_v62 }
 0x83e   : > { %v17028_v59 = vadd.f32 %v12641_v47, %v7686_v52  ;;  %v12537_v58 = vpop.f32.mrf.mxu1  ;;  %v6990_v47 = vpack.c.bf16 %v6970_v56, %v6969_v24 }
 0x83f   : > { %v12643_v8 = vpop.f32.mrf.mxu0  ;;  %v12538_v57 = vadd.f32 %v12537_v58, %v12536_v22 }
 0x840   : > { %v12644_v33 = vadd.f32 %v12643_v8, %v12642_v34  ;;  %v12539_v7 = vpop.f32.mrf.mxu1  ;;  %v6991_v34 = vpack.c.bf16 %v6972_v16, %v6971_v26 }
 0x841   : > { %v12645_v46 = vpop.f32.mrf.mxu0  ;;  %v7699_v10 = vadd.f32 %v12538_v57, %v16938_v62 }
 0x842   : > { %v17031_v63 = vadd.f32 %v12644_v33, %v7691_v31  ;;  %v12540_v49 = vpop.f32.mrf.mxu1 }
 0x843   : > { %v12646_v61 = vpop.f32.mrf.mxu0  ;;  %v12541_v4 = vadd.f32 %v12540_v49, %v12539_v7 }
 0x844   : > { %v12647_v6 = vadd.f32 %v12646_v61, %v12645_v46  ;;  %v12542_v32 = vpop.f32.mrf.mxu1  ;;  %13575 = vmatmul.mubr.bf16.gmra.mxu1 %v6988_v43 }
 0x845   : > { %v12648_v19 = vpop.f32.mrf.mxu0  ;;  %13578 = vmatprep.mubr.bf16.mxu1 %v6989_v0  ;;  %v7702_v20 = vadd.f32 %v12541_v4, %v16938_v62 }
 0x846   : > { %v17034_v15 = vadd.f32 %v12647_v6, %v7694_v29  ;;  %v12543_v54 = vpop.f32.mrf.mxu1  ;;  %v6992_v6 = vpack.c.bf16 %v6974_v55, %v6973_v23 }
 0x847   : > { %v12649_v39 = vpop.f32.mrf.mxu0  ;;  %v12544_v51 = vadd.f32 %v12543_v54, %v12542_v32 }
 0x848   : > { %v12650_v41 = vadd.f32 %v12649_v39, %v12648_v19  ;;  %v12545_v28 = vpop.f32.mrf.mxu1 }
 0x849   : > { %v12651_v27 = vpop.f32.mrf.mxu0  ;;  %v7707_v5 = vadd.f32 %v12544_v51, %v16938_v62  ;;  %v6978_v51 = vld [vmem:[#allocation2 + $0x1a2] sm:$0xff] }
 0x84a   : > { %v17037_v44 = vadd.f32 %v12650_v41, %v7699_v10  ;;  %v12546_v52 = vpop.f32.mrf.mxu1  ;;  %v6977_v10 = vld [vmem:[#allocation2 + $0x19a] sm:$0xff] }
 0x84b   : > { %v12652_v13 = vpop.f32.mrf.mxu0  ;;  %v12547_v12 = vadd.f32 %v12546_v52, %v12545_v28 }
 0x84c   : > { %v12653_v22 = vadd.f32 %v12652_v13, %v12651_v27  ;;  %v12548_v58 = vpop.f32.mrf.mxu1  ;;  %13579 = vmatmul.mubr.bf16.gmra.mxu1 %v6990_v47  ;;  %v6994_v13 = vpack.c.bf16 %v6978_v51, %v6977_v10 }
 0x84d   : > { %v12654_v8 = vpop.f32.mrf.mxu0  ;;  %13582 = vmatprep.mubr.bf16.mxu1 %v6991_v34  ;;  %v7710_v0 = vadd.f32 %v12547_v12, %v16938_v62 }
 0x84e   : > { %v17040_v31 = vadd.f32 %v12653_v22, %v7702_v20  ;;  %v12549_v57 = vpop.f32.mrf.mxu1 }
 0x84f   : > { %v12655_v33 = vpop.f32.mrf.mxu0  ;;  %v12550_v7 = vadd.f32 %v12549_v57, %v12548_v58 }
 0x850   : > { %v12656_v46 = vadd.f32 %v12655_v33, %v12654_v8  ;;  %v12551_v49 = vpop.f32.mrf.mxu1 }
 0x851   : > { %v12657_v61 = vpop.f32.mrf.mxu0  ;;  %v7715_v56 = vadd.f32 %v12550_v7, %v16938_v62 }
 0x852   : > { %v17043_v43 = vadd.f32 %v12656_v46, %v7707_v5  ;;  %v12552_v29 = vpop.f32.mrf.mxu1 }
 0x853   : > { %v12658_v4 = vpop.f32.mrf.mxu0  ;;  %v12553_v28 = vadd.f32 %v12552_v29, %v12551_v49 }
 0x854   : > { %v12659_v32 = vadd.f32 %v12658_v4, %v12657_v61  ;;  %v12554_v19 = vpop.f32.mrf.mxu1  ;;  %13583 = vmatmul.mubr.bf16.gmra.mxu1 %v6992_v6 }
 0x855   : > { %v12660_v54 = vpop.f32.mrf.mxu0  ;;  %13586 = vmatprep.mubr.bf16.mxu1 %v16988_v36  ;;  %v7718_v34 = vadd.f32 %v12553_v28, %v16938_v62 }
 0x856   : > { %v17046_v39 = vadd.f32 %v12659_v32, %v7710_v0  ;;  %v12555_v41 = vpop.f32.mrf.mxu1 }
 0x857   : > { %v12661_v24 = vpop.f32.mrf.mxu0  ;;  %v12556_v27 = vadd.f32 %v12555_v41, %v12554_v19 }
 0x858   : > { %v12662_v26 = vadd.f32 %v12661_v24, %v12660_v54  ;;  %v12557_v16 = vpop.f32.mrf.mxu1 }
 0x859   : > { %v12663_v52 = vpop.f32.mrf.mxu0  ;;  %v7723_v12 = vadd.f32 %v12556_v27, %v16938_v62 }
 0x85a   : > { %v17050_v47 = vadd.f32 %v12662_v26, %v7715_v56  ;;  %v12558_v20 = vpop.f32.mrf.mxu1 }
 0x85b   : > { %v12664_v22 = vpop.f32.mrf.mxu0  ;;  %v12559_v7 = vadd.f32 %v12558_v20, %v12557_v16  ;;  %v14020_v20 = vld [vmem:[#allocation6 + $0x978] sm:$0xff]  }
 0x85c   : > { %v12665_v58 = vadd.f32 %v12664_v22, %v12663_v52  ;;  %v12560_v36 = vpop.f32.mrf.mxu1  ;;  %13587 = vmatmul.mubr.bf16.gmra.mxu1 %v6994_v13  ;;  %v14021_v22 = vld [vmem:[#allocation6 + $0x938] sm:$0xff]   ;;  %12926 = vmatprep.subr.bf16.mxu0 %v14020_v20 }
 0x85d   : > { %v12666_v8 = vpop.f32.mrf.mxu0  ;;  %v7726_v6 = vadd.f32 %v12559_v7, %v16938_v62  ;;  %12927 = vmatpush3.bf16.msra.mxu0 %v14021_v22 }
 0x85e   : > { %v17053_v57 = vadd.f32 %v12665_v58, %v7718_v34  ;;  %v12561_v33 = vpop.f32.mrf.mxu1 }
 0x85f   : > { %v12667_v5 = vpop.f32.mrf.mxu0  ;;  %v12562_v46 = vadd.f32 %v12561_v33, %v12560_v36 }
 0x860   : > { %v12668_v23 = vadd.f32 %v12667_v5, %v12666_v8  ;;  %v12563_v55 = vpop.f32.mrf.mxu1 }
 0x861   : > { %v12669_v49 = vpop.f32.mrf.mxu0  ;;  %v7731_v56 = vadd.f32 %v12562_v46, %v16938_v62 }
 0x862   : > { %v17056_v61 = vadd.f32 %v12668_v23, %v7723_v12  ;;  %v12564_v29 = vpop.f32.mrf.mxu1 }
 0x863   : > { %v12670_v4 = vpop.f32.mrf.mxu0  ;;  %v12565_v0 = vadd.f32 %v12564_v29, %v12563_v55 }
 0x864   : > { %v12671_v32 = vadd.f32 %v12670_v4, %v12669_v49  ;;  %v12694_v54 = vpop.f32.mrf.mxu1 }
 0x865   : > { %v12672_v19 = vpop.f32.mrf.mxu0  ;;  %v7734_v10 = vadd.f32 %v12565_v0, %v16938_v62 }
 0x866   : > { %v17060_v51 = vadd.f32 %v12671_v32, %v7726_v6  ;;  %v12695_v24 = vpop.f32.mrf.mxu1 }
 0x867   : > { %v12673_v41 = vpop.f32.mrf.mxu0  ;;  %v12696_v27 = vadd.f32 %v12695_v24, %v12694_v54 }
 0x868   : > { %v12674_v28 = vadd.f32 %v12673_v41, %v12672_v19  ;;  %v12697_v16 = vpop.f32.mrf.mxu1 }
 0x869   : > { %v12675_v26 = vpop.f32.mrf.mxu0  ;;  %v17066_v13 = vadd.f32 %v12696_v27, %v16946_v42 }
 0x86a   : > { %v17063_v52 = vadd.f32 %v12674_v28, %v7731_v56  ;;  %v12698_v58 = vpop.f32.mrf.mxu1  ;;  %v14022_v56 = vld [vmem:[#allocation6 + $0x970] sm:$0xff]  }
 0x86b   : > { %v12676_v34 = vpop.f32.mrf.mxu0  ;;  %v12699_v8 = vadd.f32 %v12698_v58, %v12697_v16  ;;  %v14023_v28 = vld [vmem:[#allocation6 + $0x930] sm:$0xff]   ;;  %12928 = vmatprep.subr.bf16.mxu0 %v14022_v56 }
 0x86c   : > { %v12677_v36 = vadd.f32 %v12676_v34, %v12675_v26  ;;  %v12700_v33 = vpop.f32.mrf.mxu1  ;;  %12929 = vmatpush3.bf16.msra.mxu0 %v14023_v28  ;;  %v14024_v28 = vld [vmem:[#allocation6 + $0x968] sm:$0xff]  }
 0x86d   : > { %v17068_v5 = vpop.f32.mrf.mxu0  ;;  %v17073_v12 = vadd.f32 %v12699_v8, %v16951_v17  ;;  %12930 = vmatprep.subr.bf16.mxu0 %v14024_v28 }
 0x86e   : > { %v17070_v62 = vadd.f32 %v12677_v36, %v7734_v10  ;;  %v12701_v7 = vpop.f32.mrf.mxu1 }
 0x86f   : > { %v17075_v46 = vpop.f32.mrf.mxu0  ;;  %v12702_v42 = vadd.f32 %v12701_v7, %v12700_v33 }
 0x870   : > { %v12703_v23 = vpop.f32.mrf.mxu1 }
 0x871   : > { %v17077_v55 = vpop.f32.mrf.mxu0  ;;  %v17080_v49 = vadd.f32 %v12702_v42, %v16956_v30 }
 0x872   : > { %v12704_v29 = vpop.f32.mrf.mxu1 }
 0x873   : > { %v17082_v4 = vpop.f32.mrf.mxu0  ;;  %v12705_v6 = vadd.f32 %v12704_v29, %v12703_v23 }
 0x874   : > { %v12706_v0 = vpop.f32.mrf.mxu1 }
 0x875   : > { %v17084_v32 = vpop.f32.mrf.mxu0  ;;  %v17087_v17 = vadd.f32 %v12705_v6, %v16961_v18 }
 0x876   : > { %v12707_v19 = vpop.f32.mrf.mxu1 }
 0x877   : > { %v17089_v54 = vpop.f32.mrf.mxu0  ;;  %v12708_v10 = vadd.f32 %v12707_v19, %v12706_v0 }
 0x878   : > { %v12709_v41 = vpop.f32.mrf.mxu1 }
 0x879   : > { %v17091_v24 = vpop.f32.mrf.mxu0  ;;  %v17094_v30 = vadd.f32 %v12708_v10, %v16966_v50 }
 0x87a   : > { %v12710_v27 = vpop.f32.mrf.mxu1 }
 0x87b   : > { %v17096_v26 = vpop.f32.mrf.mxu0  ;;  %v12711_v16 = vadd.f32 %v12710_v27, %v12709_v41  ;;  %v14025_v27 = vld [vmem:[#allocation6 + $0x928] sm:$0xff]  }
 0x87c   : > { %v12712_v20 = vpop.f32.mrf.mxu1  ;;  %12931 = vmatpush3.bf16.msra.mxu0 %v14025_v27 }
 0x87d   : > { %v17098_v18 = vpop.f32.mrf.mxu0  ;;  %v17101_v22 = vadd.f32 %v12711_v16, %v16971_v48 }
 0x87e   : > { %v12713_v34 = vpop.f32.mrf.mxu1 }
 0x87f   : > { %v17103_v58 = vpop.f32.mrf.mxu0  ;;  %v12714_v36 = vadd.f32 %v12713_v34, %v12712_v20 }
 0x880   : > { %v12715_v50 = vpop.f32.mrf.mxu1 }
 0x881   : > { %v17105_v8 = vpop.f32.mrf.mxu0  ;;  %v17108_v33 = vadd.f32 %v12714_v36, %v16976_v1 }
 0x882   : > { %v12716_v7 = vpop.f32.mrf.mxu1 }
 0x883   : > { %v17110_v42 = vpop.f32.mrf.mxu0  ;;  %v12717_v23 = vadd.f32 %v12716_v7, %v12715_v50 }
 0x884   : > { %v12718_v29 = vpop.f32.mrf.mxu1 }
 0x885   : > { %v17112_v6 = vpop.f32.mrf.mxu0  ;;  %v17115_v48 = vadd.f32 %v12717_v23, %v16981_v11 }
 0x886   : > { %v12719_v0 = vpop.f32.mrf.mxu1 }
 0x887   : > { %v17117_v19 = vpop.f32.mrf.mxu0  ;;  %v12720_v10 = vadd.f32 %v12719_v0, %v12718_v29 }
 0x888   : > { %v12721_v41 = vpop.f32.mrf.mxu1 }
 0x889   : > { %v17119_v56 = vpop.f32.mrf.mxu0  ;;  %v17122_v1 = vadd.f32 %v12720_v10, %v16986_v38 }
 0x88a   : > { %v12722_v16 = vpop.f32.mrf.mxu1 }
 0x88b   : > { %18461 = vst [vmem:[#allocation59_spill] sm:$0xff] %v17122_v1  ;;  %v17124_v20 = vpop.f32.mrf.mxu0  ;;  %v12723_v34 = vadd.f32 %v12722_v16, %v12721_v41 }
 0x88c   : > { %v12724_v36 = vpop.f32.mrf.mxu1 }
 0x88d   : > { %v17126_v11 = vpop.f32.mrf.mxu0  ;;  %v17129_v50 = vadd.f32 %v12723_v34, %v16993_v2 }
 0x88e   : > { %v12725_v7 = vpop.f32.mrf.mxu1 }
 0x88f   : > { %18462 = vst [vmem:[#allocation51_spill] sm:$0xff] %v17129_v50  ;;  %v17131_v23 = vpop.f32.mrf.mxu0  ;;  %v12726_v29 = vadd.f32 %v12725_v7, %v12724_v36 }
 0x890   : > { %v12727_v38 = vpop.f32.mrf.mxu1 }
 0x891   : > { %v17133_v0 = vpop.f32.mrf.mxu0  ;;  %v17136_v10 = vadd.f32 %v12726_v29, %v16997_v45  ;;  %v14026_v29 = vld [vmem:[#allocation6 + $0x960] sm:$0xff]  }
 0x892   : > { %18463 = vst [vmem:[#allocation47_spill] sm:$0xff] %v17133_v0  ;;  %v12728_v25 = vpop.f32.mrf.mxu1  ;;  %12932 = vmatprep.subr.bf16.mxu0 %v14026_v29 }
 0x893   : > { %18464 = vst [vmem:[#allocation46_spill] sm:$0xff] %v17136_v10  ;;  %v17138_v41 = vpop.f32.mrf.mxu0  ;;  %v12729_v28 = vadd.f32 %v12728_v25, %v12727_v38  ;;  %v14027_v10 = vld [vmem:[#allocation6 + $0x920] sm:$0xff]  }
 0x894   : > { %18465 = vst [vmem:[#allocation55_spill] sm:$0xff] %v17138_v41  ;;  %v12730_v16 = vpop.f32.mrf.mxu1  ;;  %12933 = vmatpush3.bf16.msra.mxu0 %v14027_v10  ;;  %v14028_v10 = vld [vmem:[#allocation6 + $0x958] sm:$0xff]  }
 0x895   : > { %v17140_v1 = vpop.f32.mrf.mxu0  ;;  %v17143_v2 = vadd.f32 %v12729_v28, %v17001_v53  ;;  %12934 = vmatprep.subr.bf16.mxu0 %v14028_v10  ;;  %v14035_v10 = vld [vmem:[#allocation6 + $0x9b8] sm:$0xff]  }
 0x896   : > { %v12731_v27 = vpop.f32.mrf.mxu1 }
 0x897   : > { %18466 = vst [vmem:[#allocation48_spill] sm:$0xff] %v17143_v2  ;;  %v17145_v34 = vpop.f32.mrf.mxu0  ;;  %v12732_v36 = vadd.f32 %v12731_v27, %v12730_v16 }
 0x898   : > { %v12733_v7 = vpop.f32.mrf.mxu1 }
 0x899   : > { %v17147_v50 = vpop.f32.mrf.mxu0  ;;  %v17150_v45 = vadd.f32 %v12732_v36, %v17006_v21 }
 0x89a   : > { %v12734_v41 = vpop.f32.mrf.mxu1 }
 0x89b   : > { %18467 = vst [vmem:[#allocation53_spill] sm:$0xff] %v17150_v45  ;;  %v17152_v25 = vpop.f32.mrf.mxu0  ;;  %v12735_v38 = vadd.f32 %v12734_v41, %v12733_v7 }
 0x89c   : > { %18468 = vst [vmem:[#allocation63_spill] sm:$0xff] %v17152_v25  ;;  %v12736_v0 = vpop.f32.mrf.mxu1 }
 0x89d   : > { %v17154_v53 = vpop.f32.mrf.mxu0  ;;  %v17157_v28 = vadd.f32 %v12735_v38, %v17010_v60  ;;  %v14029_v38 = vld [vmem:[#allocation6 + $0x918] sm:$0xff]  }
 0x89e   : > { %18469 = vst [vmem:[#allocation49_spill] sm:$0xff] %v17154_v53  ;;  %v12737_v16 = vpop.f32.mrf.mxu1  ;;  %12935 = vmatpush3.bf16.msra.mxu0 %v14029_v38 }
 0x89f   : > { %18470 = vst [vmem:[#allocation58_spill] sm:$0xff] %v17157_v28  ;;  %v17159_v27 = vpop.f32.mrf.mxu0  ;;  %v12738_v2 = vadd.f32 %v12737_v16, %v12736_v0 }
 0x8a0   : > { %v12739_v21 = vpop.f32.mrf.mxu1 }
 0x8a1   : > { %v17161_v36 = vpop.f32.mrf.mxu0  ;;  %v17164_v45 = vadd.f32 %v12738_v2, %v17013_v14 }
 0x8a2   : > { %18471 = vst [vmem:[#allocation61_spill] sm:$0xff] %v17161_v36  ;;  %v12740_v25 = vpop.f32.mrf.mxu1 }
 0x8a3   : > { %18472 = vst [vmem:[#allocation50_spill] sm:$0xff] %v17164_v45  ;;  %v17166_v41 = vpop.f32.mrf.mxu0  ;;  %v12741_v7 = vadd.f32 %v12740_v25, %v12739_v21 }
 0x8a4   : > { %18473 = vst [vmem:[#allocation56_spill] sm:$0xff] %v17166_v41  ;;  %v12742_v29 = vpop.f32.mrf.mxu1  ;;  %v14031_v41 = vld [vmem:[#allocation6 + $0x910] sm:$0xff]  }
 0x8a5   : > { %v17168_v53 = vpop.f32.mrf.mxu0  ;;  %v17171_v60 = vadd.f32 %v12741_v7, %v17016_v35 }
 0x8a6   : > { %18474 = vst [vmem:[#allocation66_spill] sm:$0xff] %v17168_v53  ;;  %v12743_v28 = vpop.f32.mrf.mxu1  ;;  %v14032_v53 = vld [vmem:[#allocation6 + $0x948] sm:$0xff]  }
 0x8a7   : > { %18475 = vst [vmem:[#allocation52_spill] sm:$0xff] %v17171_v60  ;;  %v17173_v0 = vpop.f32.mrf.mxu0  ;;  %v12744_v16 = vadd.f32 %v12743_v28, %v12742_v29  ;;  %v14030_v60 = vld [vmem:[#allocation6 + $0x950] sm:$0xff]   ;;  %v14034_v29 = vld [vmem:[#allocation6 + $0x9f8] sm:$0xff]  }
 0x8a8   : > { %v12745_v36 = vpop.f32.mrf.mxu1  ;;  %12936 = vmatprep.subr.bf16.mxu0 %v14030_v60  ;;  %13038 = vmatprep.subr.bf16.mxu1 %v14034_v29 }
 0x8a9   : > { %v17175_v14 = vpop.f32.mrf.mxu0  ;;  %v17178_v2 = vadd.f32 %v12744_v16, %v17019_v40  ;;  %v14036_v40 = vld [vmem:[#allocation6 + $0x9f0] sm:$0xff]   ;;  %12937 = vmatpush3.bf16.msra.mxu0 %v14031_v41  ;;  %13039 = vmatpush3.bf16.msra.mxu1 %v14035_v10  ;;  %v14040_v41 = vld [vmem:[#allocation6 + $0x900] sm:$0xff]  }
 0x8aa   : > { %18476 = vst [vmem:[#allocation54_spill] sm:$0xff] %v17175_v14  ;;  %v12746_v25 = vpop.f32.mrf.mxu1  ;;  %12938 = vmatprep.subr.bf16.mxu0 %v14032_v53  ;;  %13040 = vmatprep.subr.bf16.mxu1 %v14036_v40  ;;  %v14041_v53 = vld [vmem:[#allocation6 + $0x9a8] sm:$0xff]  }
 0x8ab   : > { %18477 = vst [vmem:[#allocation60_spill] sm:$0xff] %v17178_v2  ;;  %v17180_v21 = vpop.f32.mrf.mxu0  ;;  %v12747_v45 = vadd.f32 %v12746_v25, %v12745_v36  ;;  %v14033_v2 = vld [vmem:[#allocation6 + $0x908] sm:$0xff]  }
 0x8ac   : > { %18478 = vst [vmem:[#allocation68_spill] sm:$0xff] %v17180_v21  ;;  %v12748_v35 = vpop.f32.mrf.mxu1  ;;  %v14038_v21 = vld [vmem:[#allocation6 + $0x940] sm:$0xff]  }
 0x8ad   : > { %v17182_v7 = vpop.f32.mrf.mxu0  ;;  %v17185_v28 = vadd.f32 %v12747_v45, %v17022_v37  ;;  %v14039_v45 = vld [vmem:[#allocation6 + $0x9e8] sm:$0xff]   ;;  %12939 = vmatpush3.bf16.msra.mxu0 %v14033_v2  ;;  %v14043_v2 = vld [vmem:[#allocation6 + $0x9a0] sm:$0xff]  }
 0x8ae   : > { %18479 = vst [vmem:[#allocation57_spill] sm:$0xff] %v17182_v7  ;;  %v12749_v14 = vpop.f32.mrf.mxu1  ;;  %v14037_v7 = vld [vmem:[#allocation6 + $0x9b0] sm:$0xff]   ;;  %12940 = vmatprep.subr.bf16.mxu0 %v14038_v21  ;;  %v14044_v21 = vld [vmem:[#allocation6 + $0x9d8] sm:$0xff]  }
 0x8af   : > { %18480 = vst [vmem:[#allocation62_spill] sm:$0xff] %v17185_v28  ;;  %v17187_v38 = vpop.f32.mrf.mxu0  ;;  %v12750_v16 = vadd.f32 %v12749_v14, %v12748_v35  ;;  %13041 = vmatpush3.bf16.msra.mxu1 %v14037_v7 }
 0x8b0   : > { %18481 = vst [vmem:[#allocation69_spill] sm:$0xff] %v17187_v38  ;;  %v12751_v36 = vpop.f32.mrf.mxu1  ;;  %13042 = vmatprep.subr.bf16.mxu1 %v14039_v45 }
 0x8b1   : > { %v17189_v25 = vpop.f32.mrf.mxu0  ;;  %v17192_v37 = vadd.f32 %v12750_v16, %v17025_v3  ;;  %v14042_v3 = vld [vmem:[#allocation6 + $0x9e0] sm:$0xff]   ;;  %12941 = vmatpush3.bf16.msra.mxu0 %v14040_v41 }
 0x8b2   : > { %v12752_v28 = vpop.f32.mrf.mxu1 }
 0x8b3   : > { %18482 = vst [vmem:[#allocation64_spill] sm:$0xff] %v17192_v37  ;;  %v17194_v38 = vpop.f32.mrf.mxu0  ;;  %v12753_v60 = vadd.f32 %v12752_v28, %v12751_v36  ;;  %13043 = vmatpush3.bf16.msra.mxu1 %v14041_v53 }
 0x8b4   : > { %v12754_v14 = vpop.f32.mrf.mxu1  ;;  %13044 = vmatprep.subr.bf16.mxu1 %v14042_v3 }
 0x8b5   : > { %v17196_v35 = vpop.f32.mrf.mxu0  ;;  %v17199_v29 = vadd.f32 %v12753_v60, %v17028_v59 }
 0x8b6   : > { %v12755_v10 = vpop.f32.mrf.mxu1 }
 0x8b7   : > { %18483 = vst [vmem:[#allocation65_spill] sm:$0xff] %v17199_v29  ;;  %v17201_v40 = vpop.f32.mrf.mxu0  ;;  %v12756_v16 = vadd.f32 %v12755_v10, %v12754_v14  ;;  %13045 = vmatpush3.bf16.msra.mxu1 %v14043_v2 }
 0x8b8   : > { %v12757_v37 = vpop.f32.mrf.mxu1  ;;  %13046 = vmatprep.subr.bf16.mxu1 %v14044_v21 }
 0x8b9   : > { %v17203_v28 = vpop.f32.mrf.mxu0  ;;  %v17206_v36 = vadd.f32 %v12756_v16, %v17031_v63 }
 0x8ba   : > { %v12758_v7 = vpop.f32.mrf.mxu1 }
 0x8bb   : > { %18484 = vst [vmem:[#allocation67_spill] sm:$0xff] %v17206_v36  ;;  %v17208_v59 = vpop.f32.mrf.mxu0  ;;  %v12759_v45 = vadd.f32 %v12758_v7, %v12757_v37 }
 0x8bc   : > { %18485 = vst [vmem:[#allocation70_spill] sm:$0xff] %v17208_v59  ;;  %v12760_v60 = vpop.f32.mrf.mxu1 }
 0x8bd   : > { %v17211_v29 = vadd.f32 %v12759_v45, %v17034_v15  ;;  %v17213_v41 = vpop.f32.mrf.mxu0 }
 0x8be   : > { %v12761_v14 = vpop.f32.mrf.mxu1 }
 0x8bf   : > { %18486 = vst [vmem:[#allocation71_spill] sm:$0xff] %v17211_v29  ;;  %v12762_v53 = vadd.f32 %v12761_v14, %v12760_v60  ;;  %v17218_v3 = vpop.f32.mrf.mxu0 }
 0x8c0   : > { %v12763_v10 = vpop.f32.mrf.mxu1 }
 0x8c1   : > { %v17216_v63 = vadd.f32 %v12762_v53, %v17037_v44  ;;  %v17223_v2 = vpop.f32.mrf.mxu0 }
 0x8c2   : > { %v12764_v16 = vpop.f32.mrf.mxu1 }
 0x8c3   : > { %18487 = vst [vmem:[#allocation72_spill] sm:$0xff] %v17216_v63  ;;  %v12765_v36 = vadd.f32 %v12764_v16, %v12763_v10  ;;  %v17228_v60 = vpop.f32.mrf.mxu0  ;;  %v8687_v63 = vld [vmem:[#allocation2 + $0x9] sm:$0xff] }
 0x8c4   : > { %v12766_v59 = vpop.f32.mrf.mxu1 }
 0x8c5   : > { %v17221_v37 = vadd.f32 %v12765_v36, %v17040_v31  ;;  %v17233_v10 = vpop.f32.mrf.mxu0 }
 0x8c6   : > { %v12767_v15 = vpop.f32.mrf.mxu1 }
 0x8c7   : > { %18488 = vst [vmem:[#allocation73_spill] sm:$0xff] %v17221_v37  ;;  %v12768_v21 = vadd.f32 %v12767_v15, %v12766_v59  ;;  %v17238_v59 = vpop.f32.mrf.mxu0 }
 0x8c8   : > { %v12769_v7 = vpop.f32.mrf.mxu1 }
 0x8c9   : > { %v17226_v45 = vadd.f32 %v12768_v21, %v17043_v43 }
 0x8ca   : > { %v12770_v44 = vpop.f32.mrf.mxu1 }
 0x8cb   : > { %18489 = vst [vmem:[#allocation77_spill] sm:$0xff] %v17226_v45  ;;  %v12771_v14 = vadd.f32 %v12770_v44, %v12769_v7  ;;  %v17243_v7 = vpop.f32.mrf.mxu0 }
 0x8cc   : > { %v12772_v53 = vpop.f32.mrf.mxu1 }
 0x8cd   : > { %v17231_v29 = vadd.f32 %v12771_v14, %v17046_v39 }
 0x8ce   : > { %v12773_v31 = vpop.f32.mrf.mxu1 }
 0x8cf   : > { %18490 = vst [vmem:[#allocation76_spill] sm:$0xff] %v17231_v29  ;;  %v12774_v36 = vadd.f32 %v12773_v31, %v12772_v53  ;;  %v17248_v53 = vpop.f32.mrf.mxu0 }
 0x8d0   : > { %v12775_v16 = vpop.f32.mrf.mxu1 }
 0x8d1   : > { %v17236_v37 = vadd.f32 %v12774_v36, %v17050_v47 }
 0x8d2   : > { %v12776_v43 = vpop.f32.mrf.mxu1 }
 0x8d3   : > { %18491 = vst [vmem:[#allocation75_spill] sm:$0xff] %v17236_v37  ;;  %v12777_v15 = vadd.f32 %v12776_v43, %v12775_v16  ;;  %v17253_v16 = vpop.f32.mrf.mxu0 }
 0x8d4   : > { %v12778_v21 = vpop.f32.mrf.mxu1 }
 0x8d5   : > { %v17241_v45 = vadd.f32 %v12777_v15, %v17053_v57  ;;  %v14045_v15 = vld [vmem:[#allocation6 + $0x998] sm:$0xff]  }
 0x8d6   : > { %v12779_v39 = vpop.f32.mrf.mxu1  ;;  %13047 = vmatpush3.bf16.msra.mxu1 %v14045_v15 }
 0x8d7   : > { %18492 = vst [vmem:[#allocation74_spill] sm:$0xff] %v17241_v45  ;;  %v12780_v44 = vadd.f32 %v12779_v39, %v12778_v21  ;;  %v8686_v45 = vld [vmem:[#allocation2 + $0x1] sm:$0xff]  ;;  %v12808_v21 = vadd.f32 %v17075_v46, %v17068_v5  ;;  %v14048_v5 = vld [vmem:[#allocation6 + $0x9c8] sm:$0xff]  }
 0x8d8   : > { %v12781_v14 = vpop.f32.mrf.mxu1  ;;  %v8718_v39 = vpack.c.bf16 %v8687_v63, %v8686_v45  ;;  %v14049_v46 = vld [vmem:[#allocation6 + $0xa78] sm:$0xff]  }
 0x8d9   : > { %v17246_v29 = vadd.f32 %v12780_v44, %v17056_v61  ;;  %v14046_v44 = vld [vmem:[#allocation6 + $0x9d0] sm:$0xff]   ;;  %v8094_v45 = vadd.f32 %v12808_v21, %v17066_v13  ;;  %13150 = vmatprep.subr.bf16.mxu0 %v14049_v46  ;;  %v14051_v13 = vld [vmem:[#allocation6 + $0xa38] sm:$0xff]   ;;  %v14052_v21 = vld [vmem:[#allocation6 + $0x9c0] sm:$0xff]   ;;  %v12829_v46 = vadd.f32 %v17124_v20, %v17119_v56 }
 0x8da   : > { %v12782_v47 = vpop.f32.mrf.mxu1  ;;  %9683 = vmatprep.mubr.bf16.mxu0 %v8718_v39  ;;  %13048 = vmatprep.subr.bf16.mxu1 %v14046_v44 }
 0x8db   : > { %18493 = vst [vmem:[#allocation78_spill] sm:$0xff] %v17246_v29  ;;  %v12783_v31 = vadd.f32 %v12782_v47, %v12781_v14  ;;  %v17262_v14 = vpop.f32.mrf.mxu0  ;;  %9684 = vmatmul.mubr.bf16.vlgmr.msra.gmra.mxu0 %v17004_v9 }
 0x8dc   : > { %v12784_v36 = vpop.f32.mrf.mxu1  ;;  %13151 = vmatpush3.bf16.msra.mxu0 %v14051_v13 }
 0x8dd   : > { %v17251_v37 = vadd.f32 %v12783_v31, %v17060_v51  ;;  %v12814_v51 = vadd.f32 %v17089_v54, %v17084_v32  ;;  %v12817_v32 = vadd.f32 %v17096_v26, %v17091_v24 }
 0x8de   : > { %v12785_v57 = vpop.f32.mrf.mxu1 }
 0x8df   : > { %v12786_v43 = vadd.f32 %v12785_v57, %v12784_v36  ;;  %v14047_v36 = vld [vmem:[#allocation6 + $0x990] sm:$0xff]   ;;  %v17273_v57 = vpop.f32.mrf.mxu0  ;;  %v8102_v9 = vadd.f32 %v12814_v51, %v17080_v49  ;;  %v12826_v49 = vadd.f32 %v17117_v19, %v17112_v6 }
 0x8e0   : > { %v12787_v61 = vpop.f32.mrf.mxu1  ;;  %13049 = vmatpush3.bf16.msra.mxu1 %v14047_v36 }
 0x8e1   : > { %v17258_v29 = vadd.f32 %v12786_v43, %v17063_v52  ;;  %v12811_v52 = vadd.f32 %v17082_v4, %v17077_v55  ;;  %13050 = vmatprep.subr.bf16.mxu1 %v14048_v5  ;;  %v12820_v55 = vadd.f32 %v17103_v58, %v17098_v18  ;;  %v17282_v44 = vpop.f32.mrf.mxu0  ;;  %v14053_v18 = vld [vmem:[#allocation6 + $0x980] sm:$0xff]   ;;  %v12823_v58 = vadd.f32 %v17110_v42, %v17105_v8 }
 0x8e2   : > { %v12788_v47 = vpop.f32.mrf.mxu1 }
 0x8e3   : > { %v12789_v31 = vadd.f32 %v12788_v47, %v12787_v61  ;;  %v14050_v61 = vld [vmem:[#allocation6 + $0x988] sm:$0xff]   ;;  %v8097_v39 = vadd.f32 %v12811_v52, %v17073_v12  ;;  %v8110_v12 = vadd.f32 %v12820_v55, %v17094_v30  ;;  %v17290_v19 = vpop.f32.mrf.mxu0  ;;  %v12832_v30 = vadd.f32 %v17131_v23, %v17126_v11 }
 0x8e4   : > { %v13560_v63 = vpop.f32.mrf.mxu1  ;;  %13051 = vmatpush3.bf16.msra.mxu1 %v14050_v61 }
 0x8e5   : > { %v17271_v54 = vadd.f32 %v12789_v31, %v17070_v62  ;;  %v8263_v4 = vadd.f32 %v13560_v63, %v8102_v9  ;;  %v8105_v62 = vadd.f32 %v12817_v32, %v17087_v17  ;;  %13052 = vmatprep.subr.bf16.mxu1 %v14052_v21  ;;  %v8118_v63 = vadd.f32 %v12826_v49, %v17108_v33  ;;  %v17302_v61 = vpop.f32.mrf.mxu0 }
 0x8e6   : > { %v8254_v43 = vpop.f32.mrf.mxu1  ;;  %v8113_v33 = vadd.f32 %v12823_v58, %v17101_v22  ;;  %v14054_v22 = vld [vmem:[#allocation6 + $0xa70] sm:$0xff]  }
 0x8e7   : > { %v8255_v15 = vadd.f32 %v8254_v43, %v8094_v45  ;;  %v8415_v36 = vmul.f32 0.2, %v8263_v4  ;;  %vm8383_vm11 = vcmp.gt.f32.partialorder %v8263_v4, 0.0  ;;  %v8121_v43 = vadd.f32 %v12829_v46, %v17115_v48  ;;  %v18496_v48 = vld [vmem:[#allocation59_spill] sm:$0xff]  ;;  %13152 = vmatprep.subr.bf16.mxu0 %v14054_v22 }
 0x8e8   : > { %v13561_v24 = vpop.f32.mrf.mxu1  ;;  %13053 = vmatpush3.bf16.msra.mxu1 %v14053_v18  ;;  %v8126_v49 = vadd.f32 %v12832_v30, %v18496_v48  ;;  %v18501_v30 = vld [vmem:[#allocation51_spill] sm:$0xff] }
 0x8e9   : > { %v8413_v26 = vmul.f32 0.2, %v8255_v15  ;;  %vm8381_vm10 = vcmp.gt.f32.partialorder %v8255_v15, 0.0  ;;  %v8266_v47 = vadd.f32 %v13561_v24, %v8105_v62  ;;  %v8447_v32 = vsel %vm8383_vm11, %v8263_v4, %v8415_v36  ;;  %v18494_v24 = vld [vmem:[#allocation47_spill] sm:$0xff] }
 0x8ea   : > { %v8257_v51 = vpop.f32.mrf.mxu1  ;;  %v18495_v4 = vld [vmem:[#allocation55_spill] sm:$0xff] }
 0x8eb   : > { %v8258_v31 = vadd.f32 %v8257_v51, %v8097_v39  ;;  %v8445_v5 = vsel %vm8381_vm10, %v8255_v15, %v8413_v26  ;;  %v8416_v42 = vmul.f32 0.2, %v8266_v47  ;;  %vm8384_vm13 = vcmp.gt.f32.partialorder %v8266_v47, 0.0  ;;  %v18497_v51 = vld [vmem:[#allocation63_spill] sm:$0xff] }
 0x8ec   : > { %v13564_v17 = vpop.f32.mrf.mxu1  ;;  %8509 = vrot.lane.b32.xlu0 %v8445_v5, %s14263_s27  ;;  %v12838_v15 = vadd.f32 %v17145_v34, %v17140_v1  ;;  %v12835_v26 = vadd.f32 %v18495_v4, %v18494_v24  ;;  %v12841_v1 = vadd.f32 %v18497_v51, %v17147_v50 }
 0x8ed   : > { %vm8382_vm12 = vcmp.gt.f32.partialorder %v8258_v31, 0.0  ;;  %v8414_v6 = vmul.f32 0.2, %v8258_v31  ;;  %v8279_v56 = vadd.f32 %v13564_v17, %v8118_v63  ;;  %v8448_v21 = vsel %vm8384_vm13, %v8266_v47, %v8416_v42  ;;  %v17311_v47 = vpop.f32.mrf.mxu0 }
 0x8ee   : > { %v8270_v8 = vpop.f32.mrf.mxu1 }
 0x8ef   : > { %v8271_v45 = vadd.f32 %v8270_v8, %v8110_v12  ;;  %v8446_v52 = vsel %vm8382_vm12, %v8258_v31, %v8414_v6  ;;  %v8419_v62 = vmul.f32 0.2, %v8279_v56  ;;  %vm8387_vm15 = vcmp.gt.f32.partialorder %v8279_v56, 0.0  ;;  %v18498_v31 = vld [vmem:[#allocation46_spill] sm:$0xff]  ;;  %v18499_v12 = vld [vmem:[#allocation49_spill] sm:$0xff] }
 0x8f0   : > { %v13565_v20 = vpop.f32.mrf.mxu1  ;;  %8511 = vrot.lane.b32.xlu1 %v8446_v52, %s14263_s27  ;;  %8513 = vrot.lane.b32.xlu0 %v8447_v32, %s14263_s27  ;;  %v8134_v18 = vadd.f32 %v12838_v15, %v18498_v31  ;;  %v12844_v46 = vadd.f32 %v17159_v27, %v18499_v12  ;;  %v14055_v8 = vld [vmem:[#allocation6 + $0xa30] sm:$0xff]   ;;  %v17323_v27 = vpop.f32.mrf.mxu0 }
 0x8f1   : > { %vm8385_vm14 = vcmp.gt.f32.partialorder %v8271_v45, 0.0  ;;  %v8417_v9 = vmul.f32 0.2, %v8271_v45  ;;  %v8282_v23 = vadd.f32 %v13565_v20, %v8121_v43  ;;  %v8451_v63 = vsel %vm8387_vm15, %v8279_v56, %v8419_v62  ;;  %v18502_v32 = vld [vmem:[#allocation66_spill] sm:$0xff]  ;;  %13153 = vmatpush3.bf16.msra.mxu0 %v14055_v8 }
 0x8f2   : > { %v8273_v11 = vpop.f32.mrf.mxu1  ;;  %v8129_v20 = vadd.f32 %v12835_v26, %v18501_v30  ;;  %v18505_v26 = vld [vmem:[#allocation53_spill] sm:$0xff]  ;;  %v17333_v22 = vpop.f32.mrf.mxu0 }
 0x8f3   : > { %v8274_v13 = vadd.f32 %v8273_v11, %v8113_v33  ;;  %v8449_v55 = vsel %vm8385_vm14, %v8271_v45, %v8417_v9  ;;  %v8420_v36 = vmul.f32 0.2, %v8282_v23  ;;  %vm8388_vm2 = vcmp.gt.f32.partialorder %v8282_v23, 0.0  ;;  %v18500_v45 = vld [vmem:[#allocation48_spill] sm:$0xff] }
 0x8f4   : > { %v13568_v39 = vpop.f32.mrf.mxu1  ;;  %8515 = vrot.lane.b32.xlu1 %v8448_v21, %s14263_s27  ;;  %8517 = vrot.lane.b32.xlu0 %v8449_v55, %s14263_s27  ;;  %v8137_v52 = vadd.f32 %v12841_v1, %v18500_v45  ;;  %v12850_v9 = vadd.f32 %v17173_v0, %v18502_v32  ;;  %v18504_v21 = vld [vmem:[#allocation56_spill] sm:$0xff]  ;;  %v8142_v62 = vadd.f32 %v12844_v46, %v18505_v26  ;;  %v17344_v30 = vpop.f32.mrf.mxu0 }
 0x8f5   : > { %v8418_v34 = vmul.f32 0.2, %v8274_v13  ;;  %vm8386_vm1 = vcmp.gt.f32.partialorder %v8274_v13, 0.0  ;;  %v8295_v6 = vadd.f32 %v13568_v39, %v8134_v18  ;;  %v8452_v56 = vsel %vm8388_vm2, %v8282_v23, %v8420_v36  ;;  %v18506_v39 = vld [vmem:[#allocation54_spill] sm:$0xff]  ;;  %v18507_v0 = vld [vmem:[#allocation68_spill] sm:$0xff]  ;;  %v18510_v36 = vld [vmem:[#allocation69_spill] sm:$0xff] }
 0x8f6   : > { %v8286_v58 = vpop.f32.mrf.mxu1  ;;  %v12853_v48 = vadd.f32 %v18507_v0, %v18506_v39  ;;  %v18508_v23 = vld [vmem:[#allocation50_spill] sm:$0xff]  ;;  %v12868_v0 = vadd.f32 %v17218_v3, %v17213_v41 }
 0x8f7   : > { %v8287_v17 = vadd.f32 %v8286_v58, %v8126_v49  ;;  %v8450_v5 = vsel %vm8386_vm1, %v8274_v13, %v8418_v34  ;;  %v18503_v13 = vld [vmem:[#allocation61_spill] sm:$0xff]  ;;  %v8423_v24 = vmul.f32 0.2, %v8295_v6  ;;  %vm8391_vm4 = vcmp.gt.f32.partialorder %v8295_v6, 0.0 }
 0x8f8   : > { %v13569_v50 = vpop.f32.mrf.mxu1  ;;  %8519 = vrot.lane.b32.xlu1 %v8450_v5, %s14263_s27  ;;  %8521 = vrot.lane.b32.xlu0 %v8451_v63, %s14263_s27  ;;  %v12847_v55 = vadd.f32 %v18504_v21, %v18503_v13  ;;  %v8150_v51 = vadd.f32 %v12850_v9, %v18508_v23  ;;  %v18509_v58 = vld [vmem:[#allocation57_spill] sm:$0xff]  ;;  %v18511_v63 = vld [vmem:[#allocation52_spill] sm:$0xff] }
 0x8f9   : > { %vm8389_vm3 = vcmp.gt.f32.partialorder %v8287_v17, 0.0  ;;  %v8421_v42 = vmul.f32 0.2, %v8287_v17  ;;  %v8298_v33 = vadd.f32 %v13569_v50, %v8137_v52  ;;  %v8455_v46 = vsel %vm8391_vm4, %v8295_v6, %v8423_v24  ;;  %v18513_v13 = vld [vmem:[#allocation60_spill] sm:$0xff]  ;;  %v18514_v24 = vld [vmem:[#allocation70_spill] sm:$0xff]  ;;  %v14057_v23 = vld [vmem:[#allocation6 + $0xa28] sm:$0xff]  }
 0x8fa   : > { %v8289_v43 = vpop.f32.mrf.mxu1  ;;  %v8153_v8 = vadd.f32 %v12853_v48, %v18511_v63  ;;  %v12862_v52 = vadd.f32 %v17201_v40, %v17196_v35  ;;  %v12859_v6 = vadd.f32 %v17194_v38, %v17189_v25  ;;  %v12865_v35 = vadd.f32 %v18514_v24, %v17203_v28 }
 0x8fb   : > { %v8290_v15 = vadd.f32 %v8289_v43, %v8129_v20  ;;  %v8453_v11 = vsel %vm8389_vm3, %v8287_v17, %v8421_v42  ;;  %v8424_v34 = vmul.f32 0.2, %v8298_v33  ;;  %v12856_v17 = vadd.f32 %v18510_v36, %v18509_v58  ;;  %v18512_v42 = vld [vmem:[#allocation58_spill] sm:$0xff] }
 0x8fc   : > { %v13572_v4 = vpop.f32.mrf.mxu1  ;;  %8523 = vrot.lane.b32.xlu1 %v8452_v56, %s14263_s27  ;;  %8525 = vrot.lane.b32.xlu0 %v8453_v11, %s14263_s27  ;;  %vm8392_vm6 = vcmp.gt.f32.partialorder %v8298_v33, 0.0  ;;  %v8145_v45 = vadd.f32 %v12847_v55, %v18512_v42  ;;  %v14056_v55 = vld [vmem:[#allocation6 + $0xa68] sm:$0xff]   ;;  %v12874_v58 = vadd.f32 %v17238_v59, %v17233_v10  ;;  %v12877_v10 = vadd.f32 %v17248_v53, %v17243_v7 }
 0x8fd   : > { %v8422_v49 = vmul.f32 0.2, %v8290_v15  ;;  %vm8390_vm5 = vcmp.gt.f32.partialorder %v8290_v15, 0.0  ;;  %v8311_v5 = vadd.f32 %v13572_v4, %v8150_v51  ;;  %v8456_v43 = vsel %vm8392_vm6, %v8298_v33, %v8424_v34  ;;  %v17353_v33 = vpop.f32.mrf.mxu0  ;;  %v18515_v4 = vld [vmem:[#allocation64_spill] sm:$0xff]  ;;  %13154 = vmatprep.subr.bf16.mxu0 %v14056_v55 }
 0x8fe   : > { %v8302_v1 = vpop.f32.mrf.mxu1  ;;  %v8158_v21 = vadd.f32 %v12856_v17, %v18513_v13  ;;  %v8166_v26 = vadd.f32 %v12862_v52, %v18515_v4  ;;  %13155 = vmatpush3.bf16.msra.mxu0 %v14057_v23  ;;  %v18519_v52 = vld [vmem:[#allocation72_spill] sm:$0xff]  ;;  %v18521_v13 = vld [vmem:[#allocation71_spill] sm:$0xff]  ;;  %v12886_v55 = vadd.f32 %v17302_v61, %v17290_v19 }
 0x8ff   : > { %v8303_v31 = vadd.f32 %v8302_v1, %v8142_v62  ;;  %v8454_v18 = vsel %vm8390_vm5, %v8290_v15, %v8422_v49  ;;  %v8427_v56 = vmul.f32 0.2, %v8311_v5  ;;  %vm8395_vm8 = vcmp.gt.f32.partialorder %v8311_v5, 0.0  ;;  %v18516_v1 = vld [vmem:[#allocation65_spill] sm:$0xff]  ;;  %v17365_v41 = vpop.f32.mrf.mxu0 }
 0x900   : > { %v13573_v12 = vpop.f32.mrf.mxu1  ;;  %8527 = vrot.lane.b32.xlu1 %v8454_v18, %s14263_s27  ;;  %8529 = vrot.lane.b32.xlu0 %v8455_v46, %s14263_s27  ;;  %v8169_v34 = vadd.f32 %v12865_v35, %v18516_v1  ;;  %v12871_v46 = vadd.f32 %v17228_v60, %v17223_v2  ;;  %v12892_v1 = vadd.f32 %v17344_v30, %v17333_v22 }
 0x901   : > { %vm8393_vm7 = vcmp.gt.f32.partialorder %v8303_v31, 0.0  ;;  %v8425_v50 = vmul.f32 0.2, %v8303_v31  ;;  %v8314_v32 = vadd.f32 %v13573_v12, %v8153_v8  ;;  %v8459_v49 = vsel %vm8395_vm8, %v8311_v5, %v8427_v56  ;;  %v18518_v8 = vld [vmem:[#allocation67_spill] sm:$0xff]  ;;  %v18520_v56 = vld [vmem:[#allocation73_spill] sm:$0xff] }
 0x902   : > { %v8305_v20 = vpop.f32.mrf.mxu1  ;;  %v8174_v42 = vadd.f32 %v12868_v0, %v18518_v8  ;;  %v14058_v0 = vld [vmem:[#allocation6 + $0xa60] sm:$0xff]   ;;  %v12895_v8 = vadd.f32 %v17365_v41, %v17353_v33 }
 0x903   : > { %v8306_v9 = vadd.f32 %v8305_v20, %v8145_v45  ;;  %v8457_v15 = vsel %vm8393_vm7, %v8303_v31, %v8425_v50  ;;  %v8428_v25 = vmul.f32 0.2, %v8314_v32  ;;  %vm8396_vm10 = vcmp.gt.f32.partialorder %v8314_v32, 0.0  ;;  %v18517_v31 = vld [vmem:[#allocation62_spill] sm:$0xff]  ;;  %v12896_v45 = vpop.f32.mrf.mxu0  ;;  %13156 = vmatprep.subr.bf16.mxu0 %v14058_v0  ;;  %v14075_v0 = vld [vmem:[#allocation6 + $0xa00] sm:$0xff]  }
 0x904   : > { %v13576_v11 = vpop.f32.mrf.mxu1  ;;  %8531 = vrot.lane.b32.xlu1 %v8456_v43, %s14263_s27  ;;  %8533 = vrot.lane.b32.xlu0 %v8457_v15, %s14263_s27  ;;  %v8161_v18 = vadd.f32 %v12859_v6, %v18517_v31  ;;  %v8182_v20 = vadd.f32 %v12874_v58, %v18519_v52  ;;  %v12880_v43 = vadd.f32 %v17262_v14, %v17253_v16  ;;  %v18524_v58 = vld [vmem:[#allocation74_spill] sm:$0xff] }
 0x905   : > { %v8426_v40 = vmul.f32 0.2, %v8306_v9  ;;  %vm8394_vm9 = vcmp.gt.f32.partialorder %v8306_v9, 0.0  ;;  %v8327_v48 = vadd.f32 %v13576_v11, %v8166_v26  ;;  %v8460_v5 = vsel %vm8396_vm10, %v8314_v32, %v8428_v25  ;;  %v12897_v24 = vpop.f32.mrf.mxu0 }
 0x906   : > { %v8318_v38 = vpop.f32.mrf.mxu1  ;;  %v8185_v11 = vadd.f32 %v12877_v10, %v18520_v56  ;;  %v12883_v26 = vadd.f32 %v17282_v44, %v17273_v57  ;;  %v8209_v56 = vadd.f32 %v12895_v8, %v17251_v37 }
 0x907   : > { %v8319_v62 = vadd.f32 %v8318_v38, %v8158_v21  ;;  %v8458_v39 = vsel %vm8394_vm9, %v8306_v9, %v8426_v40  ;;  %v8431_v50 = vmul.f32 0.2, %v8327_v48  ;;  %vm8399_vm12 = vcmp.gt.f32.partialorder %v8327_v48, 0.0  ;;  %v12899_v61 = vpop.f32.mrf.mxu0 }
 0x908   : > { %v13577_v28 = vpop.f32.mrf.mxu1  ;;  %8535 = vrot.lane.b32.xlu1 %v8458_v39, %s14263_s27  ;;  %8537 = vrot.lane.b32.xlu0 %v8459_v49, %s14263_s27  ;;  %v8177_v21 = vadd.f32 %v12871_v46, %v18521_v13 }
 0x909   : > { %vm8397_vm11 = vcmp.gt.f32.partialorder %v8319_v62, 0.0  ;;  %v8429_v51 = vmul.f32 0.2, %v8319_v62  ;;  %v8330_v36 = vadd.f32 %v13577_v28, %v8169_v34  ;;  %v8463_v7 = vsel %vm8399_vm12, %v8327_v48, %v8431_v50  ;;  %v18523_v28 = vld [vmem:[#allocation75_spill] sm:$0xff] }
 0x90a   : > { %v8321_v3 = vpop.f32.mrf.mxu1  ;;  %v12889_v48 = vadd.f32 %v17323_v27, %v17311_v47  ;;  %v8198_v49 = vadd.f32 %v12886_v55, %v18523_v28  ;;  %v14059_v27 = vld [vmem:[#allocation6 + $0xa20] sm:$0xff]   ;;  %vm8605_vm12 = vcmask 786048  }
 0x90b   : > { %v8322_v17 = vadd.f32 %v8321_v3, %v8161_v18  ;;  %v8461_v12 = vsel %vm8397_vm11, %v8319_v62, %v8429_v51  ;;  %v8432_v9 = vmul.f32 0.2, %v8330_v36  ;;  %vm8400_vm14 = vcmp.gt.f32.partialorder %v8330_v36, 0.0  ;;  %v18522_v62 = vld [vmem:[#allocation77_spill] sm:$0xff]  ;;  %13157 = vmatpush3.bf16.msra.mxu0 %v14059_v27 }
 0x90c   : > { %v13580_v63 = vpop.f32.mrf.mxu1  ;;  %8539 = vrot.lane.b32.xlu1 %v8460_v5, %s14263_s27  ;;  %8541 = vrot.lane.b32.xlu0 %v8461_v12, %s14263_s27  ;;  %v8190_v39 = vadd.f32 %v12880_v43, %v18522_v62  ;;  %v8201_v3 = vadd.f32 %v12889_v48, %v18524_v58  ;;  %v12898_v5 = vadd.f32 %v12897_v24, %v12896_v45  ;;  %v12900_v12 = vpop.f32.mrf.mxu0  ;;  %v14071_v62 = vld [vmem:[#allocation6 + $0xa08] sm:$0xff]  }
 0x90d   : > { %v8430_v59 = vmul.f32 0.2, %v8322_v17  ;;  %vm8398_vm13 = vcmp.gt.f32.partialorder %v8322_v17, 0.0  ;;  %v8343_v15 = vadd.f32 %v13580_v63, %v8182_v20  ;;  %v8464_v40 = vsel %vm8400_vm14, %v8330_v36, %v8432_v9  ;;  %v18525_v36 = vld [vmem:[#allocation76_spill] sm:$0xff] }
 0x90e   : > { %v8334_v32 = vpop.f32.mrf.mxu1  ;;  %v12901_v20 = vadd.f32 %v12900_v12, %v12899_v61 }
 0x90f   : > { %v8335_v2 = vadd.f32 %v8334_v32, %v8174_v42  ;;  %v8462_v60 = vsel %vm8398_vm13, %v8322_v17, %v8430_v59  ;;  %v8435_v38 = vmul.f32 0.2, %v8343_v15  ;;  %vm8403_vm1 = vcmp.gt.f32.partialorder %v8343_v15, 0.0  ;;  %v18526_v59 = vld [vmem:[#allocation78_spill] sm:$0xff] }
 0x910   : > { %v13581_v6 = vpop.f32.mrf.mxu1  ;;  %8543 = vrot.lane.b32.xlu1 %v8462_v60, %s14263_s27  ;;  %8545 = vrot.lane.b32.xlu0 %v8463_v7, %s14263_s27  ;;  %v8193_v17 = vadd.f32 %v12883_v26, %v18525_v36  ;;  %v8206_v52 = vadd.f32 %v12892_v1, %v18526_v59  ;;  %v8214_v32 = vadd.f32 %v12898_v5, %v17258_v29  ;;  %v14066_v26 = vld [vmem:[#allocation6 + $0xa50] sm:$0xff]   ;;  %v14061_v36 = vld [vmem:[#allocation6 + $0xab8] sm:$0xff]  }
 0x911   : > { %vm8401_vm15 = vcmp.gt.f32.partialorder %v8335_v2, 0.0  ;;  %v8433_v53 = vmul.f32 0.2, %v8335_v2  ;;  %v8346_v16 = vadd.f32 %v13581_v6, %v8185_v11  ;;  %v8467_v47 = vsel %vm8403_vm1, %v8343_v15, %v8435_v38  ;;  %v14060_v15 = vld [vmem:[#allocation6 + $0xaf8] sm:$0xff]   ;;  %v14067_v38 = vld [vmem:[#allocation6 + $0xa10] sm:$0xff]  }
 0x912   : > { %v8337_v35 = vpop.f32.mrf.mxu1  ;;  %13262 = vmatprep.subr.bf16.mxu1 %v14060_v15  ;;  %v14069_v15 = vld [vmem:[#allocation6 + $0xaa8] sm:$0xff]  }
 0x913   : > { %v8338_v14 = vadd.f32 %v8337_v35, %v8177_v21  ;;  %v8465_v4 = vsel %vm8401_vm15, %v8335_v2, %v8433_v53  ;;  %v8436_v57 = vmul.f32 0.2, %v8346_v16  ;;  %vm8404_vm3 = vcmp.gt.f32.partialorder %v8346_v16, 0.0 }
 0x914   : > { %v13584_v25 = vpop.f32.mrf.mxu1  ;;  %8547 = vrot.lane.b32.xlu1 %v8464_v40, %s14263_s27  ;;  %8549 = vrot.lane.b32.xlu0 %v8465_v4, %s14263_s27  ;;  %v8217_v53 = vadd.f32 %v12901_v20, %v17271_v54  ;;  %v14063_v40 = vld [vmem:[#allocation6 + $0xa18] sm:$0xff]  }
 0x915   : > { %v8434_v19 = vmul.f32 0.2, %v8338_v14  ;;  %vm8402_vm2 = vcmp.gt.f32.partialorder %v8338_v14, 0.0  ;;  %v8359_v34 = vadd.f32 %v13584_v25, %v8198_v49  ;;  %v8468_v50 = vsel %vm8404_vm3, %v8346_v16, %v8436_v57  ;;  %v14062_v16 = vld [vmem:[#allocation6 + $0xa58] sm:$0xff]   ;;  %v14070_v25 = vld [vmem:[#allocation6 + $0xa48] sm:$0xff]  }
 0x916   : > { %v8350_v23 = vpop.f32.mrf.mxu1  ;;  %13158 = vmatprep.subr.bf16.mxu0 %v14062_v16  ;;  %v17418_v49 = vld [vmem:[#allocation6 + $0xb38] sm:$0xff]  }
 0x917   : > { %v8351_v44 = vadd.f32 %v8350_v23, %v8190_v39  ;;  %v8466_v51 = vsel %vm8402_vm2, %v8338_v14, %v8434_v19  ;;  %v8439_v42 = vmul.f32 0.2, %v8359_v34  ;;  %vm8407_vm5 = vcmp.gt.f32.partialorder %v8359_v34, 0.0  ;;  %13159 = vmatpush3.bf16.msra.mxu0 %v14063_v40  ;;  %v14074_v39 = vld [vmem:[#allocation6 + $0xa40] sm:$0xff]   ;;  %v8734_v57 = vld [vmem:[#allocation2 + $0x2] sm:$0xff] }
 0x918   : > { %v13585_v31 = vpop.f32.mrf.mxu1  ;;  %8551 = vrot.lane.b32.xlu1 %v8466_v51, %s14263_s27  ;;  %8553 = vrot.lane.b32.xlu0 %v8467_v47, %s14263_s27  ;;  %v14077_v40 = vld [vmem:[#allocation6 + $0xa98] sm:$0xff]  }
 0x919   : > { %vm8405_vm4 = vcmp.gt.f32.partialorder %v8351_v44, 0.0  ;;  %v8437_v18 = vmul.f32 0.2, %v8351_v44  ;;  %v8362_v22 = vadd.f32 %v13585_v31, %v8201_v3  ;;  %v8471_v6 = vsel %vm8407_vm5, %v8359_v34, %v8439_v42  ;;  %13160 = vmatprep.subr.bf16.mxu0 %v14066_v26  ;;  %v14065_v42 = vld [vmem:[#allocation6 + $0xab0] sm:$0xff]  }
 0x91a   : > { %v8353_v46 = vpop.f32.mrf.mxu1  ;;  %v14078_v26 = vld [vmem:[#allocation6 + $0xad0] sm:$0xff]  }
 0x91b   : > { %v8354_v30 = vadd.f32 %v8353_v46, %v8193_v17  ;;  %v8469_v63 = vsel %vm8405_vm4, %v8351_v44, %v8437_v18  ;;  %v8440_v2 = vmul.f32 0.2, %v8362_v22  ;;  %vm8408_vm7 = vcmp.gt.f32.partialorder %v8362_v22, 0.0  ;;  %13161 = vmatpush3.bf16.msra.mxu0 %v14067_v38  ;;  %v8735_v44 = vld [vmem:[#allocation2 + $0xa] sm:$0xff]  ;;  %v14064_v17 = vld [vmem:[#allocation6 + $0xaf0] sm:$0xff]  }
 0x91c   : > { %v13588_v10 = vpop.f32.mrf.mxu1  ;;  %8555 = vrot.lane.b32.xlu1 %v8468_v50, %s14263_s27  ;;  %8557 = vrot.lane.b32.xlu0 %v8469_v63, %s14263_s27  ;;  %v8766_v27 = vpack.c.bf16 %v8735_v44, %v8734_v57 }
 0x91d   : > { %v8438_v45 = vmul.f32 0.2, %v8354_v30  ;;  %vm8406_vm6 = vcmp.gt.f32.partialorder %v8354_v30, 0.0  ;;  %v8375_v33 = vadd.f32 %v13588_v10, %v8214_v32  ;;  %v8472_v21 = vsel %vm8408_vm7, %v8362_v22, %v8440_v2  ;;  %13162 = vmatprep.subr.bf16.mxu0 %v14070_v25  ;;  %v14068_v10 = vld [vmem:[#allocation6 + $0xae8] sm:$0xff]  }
 0x91e   : > { %v8366_v9 = vpop.f32.mrf.mxu1 }
 0x91f   : > { %v8367_v60 = vadd.f32 %v8366_v9, %v8206_v52  ;;  %v8470_v43 = vsel %vm8406_vm6, %v8354_v30, %v8438_v45  ;;  %v8443_v24 = vmul.f32 0.2, %v8375_v33  ;;  %vm8411_vm9 = vcmp.gt.f32.partialorder %v8375_v33, 0.0  ;;  %13163 = vmatpush3.bf16.msra.mxu0 %v14071_v62  ;;  %v14079_v62 = vld [vmem:[#allocation6 + $0xa90] sm:$0xff]  }
 0x920   : > { %v13589_v41 = vpop.f32.mrf.mxu1  ;;  %8559 = vrot.lane.b32.xlu1 %v8470_v43, %s14263_s27  ;;  %8561 = vrot.lane.b32.xlu0 %v8471_v6, %s14263_s27  ;;  %v14072_v6 = vld [vmem:[#allocation6 + $0xae0] sm:$0xff]  }
 0x921   : > { %vm8409_vm8 = vcmp.gt.f32.partialorder %v8367_v60, 0.0  ;;  %v8441_v7 = vmul.f32 0.2, %v8367_v60  ;;  %v8378_v11 = vadd.f32 %v13589_v41, %v8217_v53  ;;  %v8475_v37 = vsel %vm8411_vm9, %v8375_v33, %v8443_v24  ;;  %13164 = vmatprep.subr.bf16.mxu0 %v14074_v39 }
 0x922   : > { %v8369_v29 = vpop.f32.mrf.mxu1 }
 0x923   : > { %v8370_v13 = vadd.f32 %v8369_v29, %v8209_v56  ;;  %v8473_v55 = vsel %vm8409_vm8, %v8367_v60, %v8441_v7  ;;  %v8444_v54 = vmul.f32 0.2, %v8378_v11  ;;  %vm8412_vm11 = vcmp.gt.f32.partialorder %v8378_v11, 0.0  ;;  %13165 = vmatpush3.bf16.msra.mxu0 %v14075_v0  ;;  %v14073_v56 = vld [vmem:[#allocation6 + $0xaa0] sm:$0xff]  }
 0x924   : > { %8563 = vrot.lane.b32.xlu1 %v8472_v21, %s14263_s27  ;;  %8565 = vrot.lane.b32.xlu0 %v8473_v55, %s14263_s27 }
 0x925   : > { %v8442_v35 = vmul.f32 0.2, %v8370_v13  ;;  %vm8410_vm10 = vcmp.gt.f32.partialorder %v8370_v13, 0.0  ;;  %v8476_v4 = vsel %vm8412_vm11, %v8378_v11, %v8444_v54  ;;  %13590 = vmatprep.subr.bf16.mxu0 %v17418_v49 }
 0x927   : > { %v8474_v14 = vsel %vm8410_vm10, %v8370_v13, %v8442_v35  ;;  %v14076_v13 = vld [vmem:[#allocation6 + $0xad8] sm:$0xff]  }
 0x928   : > { %8567 = vrot.lane.b32.xlu1 %v8474_v14, %s14263_s27  ;;  %8569 = vrot.lane.b32.xlu0 %v8475_v37, %s14263_s27 }
 0x92c   : > { %8571 = vrot.lane.b32.xlu1 %v8476_v4, %s14263_s27 }
 0x95e   : > { %v8510_v48 = vpop.permute.xlu0 %8509 }
 0x95f   : > { %8606 = vst.msk [vmem:[#allocation2 + $0x19] sm:$0xff] %vm8605_vm12, %v8510_v48  ;;  %v14080_v48 = vld [vmem:[#allocation6 + $0xac8] sm:$0xff]  }
 0x962   : > { %v8512_v19 = vpop.permute.xlu1 %8511  ;;  %v8514_v61 = vpop.permute.xlu0 %8513 }
 0x963   : > { %8607 = vst.msk [vmem:[#allocation2 + $0x21] sm:$0xff] %vm8605_vm12, %v8512_v19  ;;  %8608 = vst.msk [vmem:[#allocation2 + $0x31] sm:$0xff] %vm8605_vm12, %v8514_v61 }
 0x966   : > { %v8516_v28 = vpop.permute.xlu1 %8515  ;;  %v8518_v23 = vpop.permute.xlu0 %8517  ;;  %v8688_v51 = vld [vmem:[#allocation2 + $0x19] sm:$0xff] }
 0x967   : > { %8609 = vst.msk [vmem:[#allocation2 + $0x39] sm:$0xff] %vm8605_vm12, %v8516_v28  ;;  %8610 = vst.msk [vmem:[#allocation2 + $0x49] sm:$0xff] %vm8605_vm12, %v8518_v23  ;;  %v8782_v31 = vld [vmem:[#allocation2 + $0x18] sm:$0xff] }
 0x96a   : > { %v8520_v1 = vpop.permute.xlu1 %8519  ;;  %v8689_v34 = vld [vmem:[#allocation2 + $0x21] sm:$0xff]  ;;  %v8522_v18 = vpop.permute.xlu0 %8521  ;;  %v8690_v5 = vld [vmem:[#allocation2 + $0x31] sm:$0xff] }
 0x96b   : > { %v8783_v47 = vld [vmem:[#allocation2 + $0x20] sm:$0xff]  ;;  %v17423_v58 = vpack.c.bf16 %v8689_v34, %v8688_v51  ;;  %8611 = vst.msk [vmem:[#allocation2 + $0x51] sm:$0xff] %vm8605_vm12, %v8520_v1  ;;  %8612 = vst.msk [vmem:[#allocation2 + $0x61] sm:$0xff] %vm8605_vm12, %v8522_v18  ;;  %v8784_v22 = vld [vmem:[#allocation2 + $0x30] sm:$0xff] }
 0x96c   : > { %v8814_v3 = vpack.c.bf16 %v8783_v47, %v8782_v31  ;;  %v8736_v59 = vld [vmem:[#allocation2 + $0x1a] sm:$0xff]  ;;  %v8737_v52 = vld [vmem:[#allocation2 + $0x22] sm:$0xff]  ;;  %v14083_v47 = vld [vmem:[#allocation6 + $0xac0] sm:$0xff]  }
 0x96d   : > { %9691 = vmatprep.mubr.bf16.mxu0 %v17423_v58  ;;  %v17438_v2 = vpack.c.bf16 %v8737_v52, %v8736_v59  ;;  %v14082_v1 = vld [vmem:[#allocation6 + $0xa88] sm:$0xff]  }
 0x96e   : > { %9844 = vmatprep.mubr.bf16.mxu1 %v8814_v3  ;;  %v8524_v12 = vpop.permute.xlu1 %8523  ;;  %9692 = vmatmul.mubr.bf16.gmra.mxu0 %v8814_v3  ;;  %v8691_v46 = vld [vmem:[#allocation2 + $0x39] sm:$0xff]  ;;  %v8526_v50 = vpop.permute.xlu0 %8525  ;;  %v8692_v60 = vld [vmem:[#allocation2 + $0x49] sm:$0xff] }
 0x96f   : > { %9845 = vmatmul.mubr.bf16.vlgmr.msra.gmra.mxu1 %v8766_v27  ;;  %v8785_v30 = vld [vmem:[#allocation2 + $0x38] sm:$0xff]  ;;  %8613 = vst.msk [vmem:[#allocation2 + $0x69] sm:$0xff] %vm8605_vm12, %v8524_v12  ;;  %v17429_v63 = vpack.c.bf16 %v8691_v46, %v8690_v5  ;;  %8614 = vst.msk [vmem:[#allocation2 + $0x79] sm:$0xff] %vm8605_vm12, %v8526_v50  ;;  %v8786_v43 = vld [vmem:[#allocation2 + $0x48] sm:$0xff] }
 0x970   : > { %v17431_v8 = vpack.c.bf16 %v8785_v30, %v8784_v22  ;;  %13263 = vmatpush3.bf16.msra.mxu1 %v14061_v36  ;;  %v8738_v29 = vld [vmem:[#allocation2 + $0x32] sm:$0xff]  ;;  %v8739_v11 = vld [vmem:[#allocation2 + $0x3a] sm:$0xff] }
 0x971   : > { %13264 = vmatprep.subr.bf16.mxu1 %v14064_v17  ;;  %9699 = vmatprep.mubr.bf16.mxu0 %v17429_v63  ;;  %v17452_v16 = vpack.c.bf16 %v8739_v11, %v8738_v29  ;;  %v14084_v3 = vld [vmem:[#allocation6 + $0xa80] sm:$0xff]  }
 0x972   : > { %9852 = vmatprep.mubr.bf16.mxu1 %v17431_v8  ;;  %v8528_v20 = vpop.permute.xlu1 %8527  ;;  %v8693_v45 = vld [vmem:[#allocation2 + $0x51] sm:$0xff]  ;;  %v8530_v9 = vpop.permute.xlu0 %8529  ;;  %v8694_v54 = vld [vmem:[#allocation2 + $0x61] sm:$0xff] }
 0x973   : > { %v8787_v32 = vld [vmem:[#allocation2 + $0x50] sm:$0xff]  ;;  %8615 = vst.msk [vmem:[#allocation2 + $0x81] sm:$0xff] %vm8605_vm12, %v8528_v20  ;;  %8616 = vst.msk [vmem:[#allocation2 + $0x91] sm:$0xff] %vm8605_vm12, %v8530_v9  ;;  %v17440_v33 = vpack.c.bf16 %v8693_v45, %v8692_v60  ;;  %v8788_v14 = vld [vmem:[#allocation2 + $0x60] sm:$0xff] }
 0x974   : > { %13265 = vmatpush3.bf16.msra.mxu1 %v14065_v42  ;;  %v17442_v41 = vpack.c.bf16 %v8787_v32, %v8786_v43  ;;  %v8740_v39 = vld [vmem:[#allocation2 + $0x4a] sm:$0xff]  ;;  %v8741_v0 = vld [vmem:[#allocation2 + $0x52] sm:$0xff] }
 0x975   : > { %13266 = vmatprep.subr.bf16.mxu1 %v14068_v10  ;;  %v17466_v57 = vpack.c.bf16 %v8741_v0, %v8740_v39 }
 0x976   : > { %v8532_v7 = vpop.permute.xlu1 %8531  ;;  %9700 = vmatmul.mubr.bf16.gmra.mxu0 %v17431_v8  ;;  %v8534_v53 = vpop.permute.xlu0 %8533  ;;  %v8695_v55 = vld [vmem:[#allocation2 + $0x69] sm:$0xff]  ;;  %v8696_v44 = vld [vmem:[#allocation2 + $0x79] sm:$0xff] }
 0x977   : > { %9853 = vmatmul.mubr.bf16.gmra.mxu1 %v17438_v2  ;;  %8617 = vst.msk [vmem:[#allocation2 + $0x99] sm:$0xff] %vm8605_vm12, %v8532_v7  ;;  %9707 = vmatprep.mubr.bf16.mxu0 %v17440_v33  ;;  %8618 = vst.msk [vmem:[#allocation2 + $0xa9] sm:$0xff] %vm8605_vm12, %v8534_v53  ;;  %v8789_v24 = vld [vmem:[#allocation2 + $0x68] sm:$0xff]  ;;  %v17454_v37 = vpack.c.bf16 %v8695_v55, %v8694_v54  ;;  %v8790_v51 = vld [vmem:[#allocation2 + $0x78] sm:$0xff] }
 0x978   : > { %9860 = vmatprep.mubr.bf16.mxu1 %v17442_v41  ;;  %13267 = vmatpush3.bf16.msra.mxu1 %v14069_v15  ;;  %v17456_v4 = vpack.c.bf16 %v8789_v24, %v8788_v14  ;;  %v8742_v36 = vld [vmem:[#allocation2 + $0x62] sm:$0xff]  ;;  %v8743_v17 = vld [vmem:[#allocation2 + $0x6a] sm:$0xff] }
 0x979   : > { %13268 = vmatprep.subr.bf16.mxu1 %v14072_v6  ;;  %v17480_v30 = vpack.c.bf16 %v8743_v17, %v8742_v36 }
 0x97a   : > { %v8536_v21 = vpop.permute.xlu1 %8535  ;;  %v8538_v35 = vpop.permute.xlu0 %8537  ;;  %v8697_v61 = vld [vmem:[#allocation2 + $0x81] sm:$0xff]  ;;  %v8698_v50 = vld [vmem:[#allocation2 + $0x91] sm:$0xff] }
 0x97b   : > { %8619 = vst.msk [vmem:[#allocation2 + $0xb1] sm:$0xff] %vm8605_vm12, %v8536_v21  ;;  %8620 = vst.msk [vmem:[#allocation2 + $0xc1] sm:$0xff] %vm8605_vm12, %v8538_v35  ;;  %v8791_v28 = vld [vmem:[#allocation2 + $0x80] sm:$0xff]  ;;  %v17468_v34 = vpack.c.bf16 %v8697_v61, %v8696_v44  ;;  %v8792_v42 = vld [vmem:[#allocation2 + $0x90] sm:$0xff] }
 0x97c   : > { %13269 = vmatpush3.bf16.msra.mxu1 %v14073_v56  ;;  %v17470_v31 = vpack.c.bf16 %v8791_v28, %v8790_v51  ;;  %v8744_v45 = vld [vmem:[#allocation2 + $0x7a] sm:$0xff]  ;;  %v8745_v32 = vld [vmem:[#allocation2 + $0x82] sm:$0xff] }
 0x97d   : > { %13270 = vmatprep.subr.bf16.mxu1 %v14076_v13  ;;  %v17494_v6 = vpack.c.bf16 %v8745_v32, %v8744_v45 }
 0x97e   : > { %v8540_v38 = vpop.permute.xlu1 %8539  ;;  %9708 = vmatmul.mubr.bf16.gmra.mxu0 %v17442_v41  ;;  %v8542_v25 = vpop.permute.xlu0 %8541  ;;  %v8699_v12 = vld [vmem:[#allocation2 + $0x99] sm:$0xff]  ;;  %v8700_v7 = vld [vmem:[#allocation2 + $0xa9] sm:$0xff] }
 0x97f   : > { %9861 = vmatmul.mubr.bf16.gmra.mxu1 %v17452_v16  ;;  %8621 = vst.msk [vmem:[#allocation2 + $0xc9] sm:$0xff] %vm8605_vm12, %v8540_v38  ;;  %9715 = vmatprep.mubr.bf16.mxu0 %v17454_v37  ;;  %8622 = vst.msk [vmem:[#allocation2 + $0xd9] sm:$0xff] %vm8605_vm12, %v8542_v25  ;;  %v8793_v46 = vld [vmem:[#allocation2 + $0x98] sm:$0xff]  ;;  %v17482_v10 = vpack.c.bf16 %v8699_v12, %v8698_v50  ;;  %v8794_v53 = vld [vmem:[#allocation2 + $0xa8] sm:$0xff] }
 0x980   : > { %9868 = vmatprep.mubr.bf16.mxu1 %v17456_v4  ;;  %13271 = vmatpush3.bf16.msra.mxu1 %v14077_v40  ;;  %v17484_v59 = vpack.c.bf16 %v8793_v46, %v8792_v42  ;;  %v8746_v21 = vld [vmem:[#allocation2 + $0x92] sm:$0xff]  ;;  %v8747_v55 = vld [vmem:[#allocation2 + $0x9a] sm:$0xff] }
 0x981   : > { %13272 = vmatprep.subr.bf16.mxu1 %v14078_v26  ;;  %v17508_v40 = vpack.c.bf16 %v8747_v55, %v8746_v21 }
 0x982   : > { %v8544_v19 = vpop.permute.xlu1 %8543  ;;  %v8546_v23 = vpop.permute.xlu0 %8545  ;;  %v8701_v60 = vld [vmem:[#allocation2 + $0xb1] sm:$0xff]  ;;  %v8702_v26 = vld [vmem:[#allocation2 + $0xc1] sm:$0xff] }
 0x983   : > { %8623 = vst.msk [vmem:[#allocation2 + $0xe1] sm:$0xff] %vm8605_vm12, %v8544_v19  ;;  %8624 = vst.msk [vmem:[#allocation2 + $0xf1] sm:$0xff] %vm8605_vm12, %v8546_v23  ;;  %v8795_v43 = vld [vmem:[#allocation2 + $0xb0] sm:$0xff]  ;;  %v17496_v56 = vpack.c.bf16 %v8701_v60, %v8700_v7  ;;  %v8796_v38 = vld [vmem:[#allocation2 + $0xc0] sm:$0xff] }
 0x984   : > { %13273 = vmatpush3.bf16.msra.mxu1 %v14079_v62  ;;  %v17498_v29 = vpack.c.bf16 %v8795_v43, %v8794_v53  ;;  %v8748_v0 = vld [vmem:[#allocation2 + $0xaa] sm:$0xff] }
 0x985   : > { %13274 = vmatprep.subr.bf16.mxu1 %v14080_v48  ;;  %v8749_v48 = vld [vmem:[#allocation2 + $0xb2] sm:$0xff] }
 0x986   : > { %v8548_v27 = vpop.permute.xlu1 %8547  ;;  %9716 = vmatmul.mubr.bf16.gmra.mxu0 %v17456_v4  ;;  %v8550_v18 = vpop.permute.xlu0 %8549  ;;  %v8703_v35 = vld [vmem:[#allocation2 + $0xc9] sm:$0xff]  ;;  %v17519_v23 = vpack.c.bf16 %v8749_v48, %v8748_v0  ;;  %v8704_v44 = vld [vmem:[#allocation2 + $0xd9] sm:$0xff] }
 0x987   : > { %9869 = vmatmul.mubr.bf16.gmra.mxu1 %v17466_v57  ;;  %8625 = vst.msk [vmem:[#allocation2 + $0xf9] sm:$0xff] %vm8605_vm12, %v8548_v27  ;;  %9723 = vmatprep.mubr.bf16.mxu0 %v17468_v34  ;;  %8626 = vst.msk [vmem:[#allocation2 + $0x109] sm:$0xff] %vm8605_vm12, %v8550_v18  ;;  %v8797_v54 = vld [vmem:[#allocation2 + $0xc8] sm:$0xff]  ;;  %v17510_v25 = vpack.c.bf16 %v8703_v35, %v8702_v26  ;;  %v8798_v51 = vld [vmem:[#allocation2 + $0xd8] sm:$0xff] }
 0x988   : > { %9876 = vmatprep.mubr.bf16.mxu1 %v17470_v31  ;;  %13275 = vmatpush3.bf16.msra.mxu1 %v14082_v1  ;;  %v17512_v62 = vpack.c.bf16 %v8797_v54, %v8796_v38  ;;  %v8751_v36 = vld [vmem:[#allocation2 + $0xca] sm:$0xff] }
 0x989   : > { %13276 = vmatprep.subr.bf16.mxu1 %v14083_v47 }
 0x98a   : > { %v8552_v5 = vpop.permute.xlu1 %8551  ;;  %v8554_v22 = vpop.permute.xlu0 %8553  ;;  %v8705_v19 = vld [vmem:[#allocation2 + $0xe1] sm:$0xff]  ;;  %v8706_v46 = vld [vmem:[#allocation2 + $0xf1] sm:$0xff] }
 0x98b   : > { %8627 = vst.msk [vmem:[#allocation2 + $0x111] sm:$0xff] %vm8605_vm12, %v8552_v5  ;;  %8628 = vst.msk [vmem:[#allocation2 + $0x121] sm:$0xff] %vm8605_vm12, %v8554_v22  ;;  %v8799_v61 = vld [vmem:[#allocation2 + $0xe0] sm:$0xff]  ;;  %v17521_v1 = vpack.c.bf16 %v8705_v19, %v8704_v44  ;;  %v8800_v22 = vld [vmem:[#allocation2 + $0xf0] sm:$0xff] }
 0x98c   : > { %13277 = vmatpush3.bf16.msra.mxu1 %v14084_v3  ;;  %v17523_v47 = vpack.c.bf16 %v8799_v61, %v8798_v51  ;;  %v8750_v3 = vld [vmem:[#allocation2 + $0xc2] sm:$0xff] }
 0x98d   : > { %v17531_v12 = vpack.c.bf16 %v8751_v36, %v8750_v3 }
 0x98e   : > { %v8556_v52 = vpop.permute.xlu1 %8555  ;;  %9724 = vmatmul.mubr.bf16.gmra.mxu0 %v17470_v31  ;;  %v8558_v20 = vpop.permute.xlu0 %8557  ;;  %v8707_v17 = vld [vmem:[#allocation2 + $0xf9] sm:$0xff]  ;;  %v8708_v60 = vld [vmem:[#allocation2 + $0x109] sm:$0xff] }
 0x98f   : > { %9877 = vmatmul.mubr.bf16.gmra.mxu1 %v17480_v30  ;;  %8629 = vst.msk [vmem:[#allocation2 + $0x129] sm:$0xff] %vm8605_vm12, %v8556_v52  ;;  %9731 = vmatprep.mubr.bf16.mxu0 %v17482_v10  ;;  %8630 = vst.msk [vmem:[#allocation2 + $0x139] sm:$0xff] %vm8605_vm12, %v8558_v20  ;;  %v8801_v5 = vld [vmem:[#allocation2 + $0xf8] sm:$0xff]  ;;  %v17533_v50 = vpack.c.bf16 %v8707_v17, %v8706_v46  ;;  %v8753_v20 = vld [vmem:[#allocation2 + $0xe2] sm:$0xff] }
 0x990   : > { %9884 = vmatprep.mubr.bf16.mxu1 %v17484_v59  ;;  %v17535_v42 = vpack.c.bf16 %v8801_v5, %v8800_v22  ;;  %v8752_v52 = vld [vmem:[#allocation2 + $0xda] sm:$0xff]  ;;  %v8802_v43 = vld [vmem:[#allocation2 + $0x108] sm:$0xff]  ;;  %v8754_v53 = vld [vmem:[#allocation2 + $0xf2] sm:$0xff] }
 0x992   : > { %v8560_v9 = vpop.permute.xlu1 %8559  ;;  %v8562_v15 = vpop.permute.xlu0 %8561  ;;  %v8709_v45 = vld [vmem:[#allocation2 + $0x111] sm:$0xff]  ;;  %v8804_v35 = vld [vmem:[#allocation2 + $0x120] sm:$0xff] }
 0x993   : > { %8631 = vst.msk [vmem:[#allocation2 + $0x141] sm:$0xff] %vm8605_vm12, %v8560_v9  ;;  %8632 = vst.msk [vmem:[#allocation2 + $0x151] sm:$0xff] %vm8605_vm12, %v8562_v15  ;;  %v8803_v32 = vld [vmem:[#allocation2 + $0x110] sm:$0xff]  ;;  %v17541_v9 = vpack.c.bf16 %v8753_v20, %v8752_v52  ;;  %v17543_v15 = vpack.c.bf16 %v8709_v45, %v8708_v60 }
 0x994   : > { %v17545_v7 = vpack.c.bf16 %v8803_v32, %v8802_v43  ;;  %v8756_v26 = vld [vmem:[#allocation2 + $0x10a] sm:$0xff]  ;;  %v8757_v38 = vld [vmem:[#allocation2 + $0x112] sm:$0xff] }
 0x995   : > { %v17561_v48 = vpack.c.bf16 %v8757_v38, %v8756_v26 }
 0x996   : > { %v8564_v11 = vpop.permute.xlu1 %8563  ;;  %9732 = vmatmul.mubr.bf16.gmra.mxu0 %v17484_v59  ;;  %v8566_v13 = vpop.permute.xlu0 %8565  ;;  %v8805_v21 = vld [vmem:[#allocation2 + $0x128] sm:$0xff]  ;;  %v8712_v19 = vld [vmem:[#allocation2 + $0x139] sm:$0xff] }
 0x997   : > { %9885 = vmatmul.mubr.bf16.gmra.mxu1 %v17494_v6  ;;  %8633 = vst.msk [vmem:[#allocation2 + $0x159] sm:$0xff] %vm8605_vm12, %v8564_v11  ;;  %9739 = vmatprep.mubr.bf16.mxu0 %v17496_v56  ;;  %8634 = vst.msk [vmem:[#allocation2 + $0x169] sm:$0xff] %vm8605_vm12, %v8566_v13  ;;  %v8755_v11 = vld [vmem:[#allocation2 + $0xfa] sm:$0xff]  ;;  %v8711_v13 = vld [vmem:[#allocation2 + $0x129] sm:$0xff] }
 0x998   : > { %9892 = vmatprep.mubr.bf16.mxu1 %v17498_v29  ;;  %v17551_v55 = vpack.c.bf16 %v8755_v11, %v8754_v53  ;;  %v8806_v61 = vld [vmem:[#allocation2 + $0x138] sm:$0xff]  ;;  %v8758_v51 = vld [vmem:[#allocation2 + $0x122] sm:$0xff] }
 0x99a   : > { %v8568_v24 = vpop.permute.xlu1 %8567  ;;  %v8570_v14 = vpop.permute.xlu0 %8569  ;;  %v8807_v0 = vld [vmem:[#allocation2 + $0x140] sm:$0xff]  ;;  %v8714_v5 = vld [vmem:[#allocation2 + $0x151] sm:$0xff] }
 0x99b   : > { %8635 = vst.msk [vmem:[#allocation2 + $0x171] sm:$0xff] %vm8605_vm12, %v8568_v24  ;;  %8636 = vst.msk [vmem:[#allocation2 + $0x181] sm:$0xff] %vm8605_vm12, %v8570_v14  ;;  %v12942_v28 = vpop.f32.mrf.mxu0  ;;  %v8710_v24 = vld [vmem:[#allocation2 + $0x121] sm:$0xff]  ;;  %v17555_v14 = vpack.c.bf16 %v8805_v21, %v8804_v35  ;;  %v17565_v44 = vpack.c.bf16 %v8807_v0, %v8806_v61  ;;  %v8808_v46 = vld [vmem:[#allocation2 + $0x150] sm:$0xff] }
 0x99c   : > { %v17553_v54 = vpack.c.bf16 %v8711_v13, %v8710_v24  ;;  %v8760_v20 = vld [vmem:[#allocation2 + $0x13a] sm:$0xff]  ;;  %v8761_v45 = vld [vmem:[#allocation2 + $0x142] sm:$0xff] }
 0x99d   : > { %v12943_v27 = vpop.f32.mrf.mxu0  ;;  %v17581_v43 = vpack.c.bf16 %v8761_v45, %v8760_v20 }
 0x99e   : > { %9740 = vmatmul.mubr.bf16.gmra.mxu0 %v17498_v29  ;;  %v8572_v39 = vpop.permute.xlu1 %8571  ;;  %v17527_v18 = vadd.f32 %v12943_v27, %v12942_v28  ;;  %v8759_v27 = vld [vmem:[#allocation2 + $0x12a] sm:$0xff]  ;;  %v8715_v3 = vld [vmem:[#allocation2 + $0x159] sm:$0xff] }
 0x99f   : > { %9893 = vmatmul.mubr.bf16.gmra.mxu1 %v17508_v40  ;;  %8637 = vst.msk [vmem:[#allocation2 + $0x189] sm:$0xff] %vm8605_vm12, %v8572_v39  ;;  %9747 = vmatprep.mubr.bf16.mxu0 %v17510_v25  ;;  %v8713_v39 = vld [vmem:[#allocation2 + $0x141] sm:$0xff]  ;;  %v8809_v36 = vld [vmem:[#allocation2 + $0x158] sm:$0xff]  ;;  %v17571_v17 = vpack.c.bf16 %v8759_v27, %v8758_v51  ;;  %v17573_v22 = vpack.c.bf16 %v8715_v3, %v8714_v5  ;;  %v8716_v53 = vld [vmem:[#allocation2 + $0x169] sm:$0xff] }
 0x9a0   : > { %9900 = vmatprep.mubr.bf16.mxu1 %v17512_v62  ;;  %v17563_v28 = vpack.c.bf16 %v8713_v39, %v8712_v19  ;;  %v17575_v52 = vpack.c.bf16 %v8809_v36, %v8808_v46  ;;  %v8810_v11 = vld [vmem:[#allocation2 + $0x168] sm:$0xff]  ;;  %v8762_v24 = vld [vmem:[#allocation2 + $0x152] sm:$0xff]  ;;  %v8763_v35 = vld [vmem:[#allocation2 + $0x15a] sm:$0xff] }
 0x9a1   : > { %v17591_v38 = vpack.c.bf16 %v8763_v35, %v8762_v24  ;;  %v14085_v27 = vld [vmem:[#allocation6 + $0xb30] sm:$0xff]   ;;  %v14086_v3 = vld [vmem:[#allocation6 + $0xb28] sm:$0xff]  }
 0x9a2   : > { %v8717_v32 = vld [vmem:[#allocation2 + $0x171] sm:$0xff]  ;;  %v8812_v39 = vld [vmem:[#allocation2 + $0x180] sm:$0xff] }
 0x9a3   : > { %v8811_v60 = vld [vmem:[#allocation2 + $0x170] sm:$0xff]  ;;  %v17583_v13 = vpack.c.bf16 %v8717_v32, %v8716_v53 }
 0x9a4   : > { %v17585_v21 = vpack.c.bf16 %v8811_v60, %v8810_v11  ;;  %v8764_v19 = vld [vmem:[#allocation2 + $0x16a] sm:$0xff]  ;;  %v8765_v61 = vld [vmem:[#allocation2 + $0x172] sm:$0xff] }
 0x9a5   : > { %v17599_v51 = vpack.c.bf16 %v8765_v61, %v8764_v19 }
 0x9a6   : > { %9748 = vmatmul.mubr.bf16.gmra.mxu0 %v17512_v62  ;;  %v8813_v26 = vld [vmem:[#allocation2 + $0x188] sm:$0xff] }
 0x9a7   : > { %9901 = vmatmul.mubr.bf16.gmra.mxu1 %v17519_v23  ;;  %9755 = vmatprep.mubr.bf16.mxu0 %v17521_v1  ;;  %v17593_v0 = vpack.c.bf16 %v8813_v26, %v8812_v39 }
 0x9a8   : > { %9908 = vmatprep.mubr.bf16.mxu1 %v17523_v47 }
 0x9ae   : > { %9756 = vmatmul.mubr.bf16.gmra.mxu0 %v17523_v47 }
 0x9af   : > { %9909 = vmatmul.mubr.bf16.gmra.mxu1 %v17531_v12  ;;  %9763 = vmatprep.mubr.bf16.mxu0 %v17533_v50 }
 0x9b0   : > { %9916 = vmatprep.mubr.bf16.mxu1 %v17535_v42 }
 0x9b6   : > { %9764 = vmatmul.mubr.bf16.gmra.mxu0 %v17535_v42 }
 0x9b7   : > { %9917 = vmatmul.mubr.bf16.gmra.mxu1 %v17541_v9  ;;  %9771 = vmatprep.mubr.bf16.mxu0 %v17543_v15 }
 0x9b8   : > { %9924 = vmatprep.mubr.bf16.mxu1 %v17545_v7 }
 0x9be   : > { %9772 = vmatmul.mubr.bf16.gmra.mxu0 %v17545_v7 }
 0x9bf   : > { %9925 = vmatmul.mubr.bf16.gmra.mxu1 %v17551_v55  ;;  %9779 = vmatprep.mubr.bf16.mxu0 %v17553_v54 }
 0x9c0   : > { %9932 = vmatprep.mubr.bf16.mxu1 %v17555_v14 }
 0x9c6   : > { %9780 = vmatmul.mubr.bf16.gmra.mxu0 %v17555_v14 }
 0x9c7   : > { %9933 = vmatmul.mubr.bf16.gmra.mxu1 %v17561_v48  ;;  %9787 = vmatprep.mubr.bf16.mxu0 %v17563_v28 }
 0x9c8   : > { %9940 = vmatprep.mubr.bf16.mxu1 %v17565_v44 }
 0x9ce   : > { %9788 = vmatmul.mubr.bf16.gmra.mxu0 %v17565_v44 }
 0x9cf   : > { %9941 = vmatmul.mubr.bf16.gmra.mxu1 %v17571_v17  ;;  %9795 = vmatprep.mubr.bf16.mxu0 %v17573_v22 }
 0x9d0   : > { %9948 = vmatprep.mubr.bf16.mxu1 %v17575_v52 }
 0x9d6   : > { %9796 = vmatmul.mubr.bf16.gmra.mxu0 %v17575_v52 }
 0x9d7   : > { %9949 = vmatmul.mubr.bf16.gmra.mxu1 %v17581_v43  ;;  %9803 = vmatprep.mubr.bf16.mxu0 %v17583_v13 }
 0x9d8   : > { %9956 = vmatprep.mubr.bf16.mxu1 %v17585_v21 }
 0x9de   : > { %9804 = vmatmul.mubr.bf16.gmra.mxu0 %v17585_v21 }
 0x9df   : > { %9957 = vmatmul.mubr.bf16.gmra.mxu1 %v17591_v38  ;;  %10005 = vmatprep.mubr.bf16.mxu0 %v17438_v2  ;;  %v14087_v2 = vld [vmem:[#allocation6 + $0xb20] sm:$0xff]  }
 0x9e0   : > { %9964 = vmatprep.mubr.bf16.mxu1 %v17593_v0 }
 0x9e6   : > { %10006 = vmatmul.mubr.bf16.vlgmr.msra.gmra.mxu0 %v17423_v58  ;;  %v14088_v58 = vld [vmem:[#allocation6 + $0xb18] sm:$0xff]  }
 0x9e7   : > { %9965 = vmatmul.mubr.bf16.gmra.mxu1 %v17599_v51  ;;  %10013 = vmatprep.mubr.bf16.mxu0 %v17452_v16  ;;  %v14089_v16 = vld [vmem:[#allocation6 + $0xb10] sm:$0xff]  }
 0x9e8   : > { %10166 = vmatprep.mubr.bf16.mxu1 %v17429_v63  ;;  %13591 = vmatpush3.bf16.msra.mxu0 %v17418_v49  ;;  %v14090_v49 = vld [vmem:[#allocation6 + $0xb08] sm:$0xff]  }
 0x9e9   : > { %13592 = vmatprep.subr.bf16.mxu0 %v14085_v27 }
 0x9ec   : > { %13593 = vmatpush3.bf16.msra.mxu0 %v14085_v27 }
 0x9ed   : > { %13594 = vmatprep.subr.bf16.mxu0 %v14086_v3 }
 0x9ee   : > { %10014 = vmatmul.mubr.bf16.gmra.mxu0 %v17429_v63  ;;  %v14091_v63 = vld [vmem:[#allocation6 + $0xb00] sm:$0xff]  }
 0x9ef   : > { %10167 = vmatmul.mubr.bf16.vlgmr.msra.gmra.mxu1 %v17431_v8  ;;  %10021 = vmatprep.mubr.bf16.mxu0 %v17466_v57  ;;  %v12945_v8 = vpop.f32.mrf.mxu0 }
 0x9f0   : > { %10174 = vmatprep.mubr.bf16.mxu1 %v17440_v33  ;;  %13595 = vmatpush3.bf16.msra.mxu0 %v14086_v3 }
 0x9f1   : > { %13596 = vmatprep.subr.bf16.mxu0 %v14087_v2 }
 0x9f4   : > { %13597 = vmatpush3.bf16.msra.mxu0 %v14087_v2 }
 0x9f5   : > { %13598 = vmatprep.subr.bf16.mxu0 %v14088_v58 }
 0x9f6   : > { %10022 = vmatmul.mubr.bf16.gmra.mxu0 %v17440_v33  ;;  %v18527_v33 = vld [vmem:[#allocation45_spill] sm:$0xff] }
 0x9f7   : > { %10175 = vmatmul.mubr.bf16.gmra.mxu1 %v17442_v41  ;;  %10029 = vmatprep.mubr.bf16.mxu0 %v17480_v30  ;;  %v9217_v41 = vsub.s32 4, %v18527_v33 }
 0x9f8   : > { %10182 = vmatprep.mubr.bf16.mxu1 %v17454_v37  ;;  %13599 = vmatpush3.bf16.msra.mxu0 %v14088_v58 }
 0x9f9   : > { %13600 = vmatprep.subr.bf16.mxu0 %v14089_v16 }
 0x9fc   : > { %13601 = vmatpush3.bf16.msra.mxu0 %v14089_v16 }
 0x9fd   : > { %13602 = vmatprep.subr.bf16.mxu0 %v14090_v49 }
 0x9fe   : > { %10030 = vmatmul.mubr.bf16.gmra.mxu0 %v17454_v37  ;;  %v12946_v37 = vpop.f32.mrf.mxu0 }
 0x9ff   : > { %10183 = vmatmul.mubr.bf16.gmra.mxu1 %v17456_v4  ;;  %10037 = vmatprep.mubr.bf16.mxu0 %v17494_v6  ;;  %v14099_v4 = vld [vmem:[#allocation8] sm:$0x1f]  ;;  %v12947_v6 = vadd.f32 %v12946_v37, %v12945_v8 }
 0xa00   : > { %10190 = vmatprep.mubr.bf16.mxu1 %v17468_v34  ;;  %13603 = vmatpush3.bf16.msra.mxu0 %v14090_v49  ;;  %v17639_v57 = vrot.slane %v14099_v4, %v9217_v41 }
 0xa01   : > { %13604 = vmatprep.subr.bf16.mxu0 %v14091_v63 }
 0xa04   : > { %13605 = vmatpush3.bf16.msra.mxu0 %v14091_v63 }
 0xa06   : > { %10038 = vmatmul.mubr.bf16.gmra.mxu0 %v17468_v34 }
 0xa07   : > { %10191 = vmatmul.mubr.bf16.gmra.mxu1 %v17470_v31  ;;  %10045 = vmatprep.mubr.bf16.mxu0 %v17508_v40 }
 0xa08   : > { %10198 = vmatprep.mubr.bf16.mxu1 %v17482_v10 }
 0xa0e   : > { %10046 = vmatmul.mubr.bf16.gmra.mxu0 %v17482_v10 }
 0xa0f   : > { %10199 = vmatmul.mubr.bf16.gmra.mxu1 %v17484_v59  ;;  %10053 = vmatprep.mubr.bf16.mxu0 %v17519_v23  ;;  %v9686_v59 = vadd.f32 %v17527_v18, %v17639_v57 }
 0xa10   : > { %10206 = vmatprep.mubr.bf16.mxu1 %v17496_v56 }
 0xa16   : > { %10054 = vmatmul.mubr.bf16.gmra.mxu0 %v17496_v56 }
 0xa17   : > { %10207 = vmatmul.mubr.bf16.gmra.mxu1 %v17498_v29  ;;  %10061 = vmatprep.mubr.bf16.mxu0 %v17531_v12 }
 0xa18   : > { %10214 = vmatprep.mubr.bf16.mxu1 %v17510_v25 }
 0xa1e   : > { %10062 = vmatmul.mubr.bf16.gmra.mxu0 %v17510_v25 }
 0xa1f   : > { %10215 = vmatmul.mubr.bf16.gmra.mxu1 %v17512_v62  ;;  %10069 = vmatprep.mubr.bf16.mxu0 %v17541_v9 }
 0xa20   : > { %10222 = vmatprep.mubr.bf16.mxu1 %v17521_v1 }
 0xa26   : > { %10070 = vmatmul.mubr.bf16.gmra.mxu0 %v17521_v1 }
 0xa27   : > { %10223 = vmatmul.mubr.bf16.gmra.mxu1 %v17523_v47  ;;  %10077 = vmatprep.mubr.bf16.mxu0 %v17551_v55  ;;  %v9689_v47 = vadd.f32 %v12947_v6, %v17639_v57 }
 0xa28   : > { %10230 = vmatprep.mubr.bf16.mxu1 %v17533_v50 }
 0xa2e   : > { %v12948_v34 = vpop.f32.mrf.mxu0  ;;  %10078 = vmatmul.mubr.bf16.gmra.mxu0 %v17533_v50 }
 0xa2f   : > { %v13054_v31 = vpop.f32.mrf.mxu1  ;;  %10231 = vmatmul.mubr.bf16.gmra.mxu1 %v17535_v42  ;;  %10085 = vmatprep.mubr.bf16.mxu0 %v17561_v48 }
 0xa30   : > { %10238 = vmatprep.mubr.bf16.mxu1 %v17543_v15  ;;  %v12949_v30 = vpop.f32.mrf.mxu0 }
 0xa31   : > { %v13055_v10 = vpop.f32.mrf.mxu1  ;;  %v12950_v56 = vadd.f32 %v12949_v30, %v12948_v34 }
 0xa32   : > { %v13056_v29 = vadd.f32 %v13055_v10, %v13054_v31  ;;  %v12951_v40 = vpop.f32.mrf.mxu0 }
 0xa33   : > { %v13057_v25 = vpop.f32.mrf.mxu1  ;;  %v9694_v36 = vadd.f32 %v12950_v56, %v17639_v57 }
 0xa34   : > { %v17647_v62 = vadd.f32 %v13056_v29, %v9686_v59  ;;  %v12952_v23 = vpop.f32.mrf.mxu0 }
 0xa35   : > { %v13058_v1 = vpop.f32.mrf.mxu1  ;;  %v12953_v12 = vadd.f32 %v12952_v23, %v12951_v40 }
 0xa36   : > { %v13059_v50 = vadd.f32 %v13058_v1, %v13057_v25  ;;  %v12954_v42 = vpop.f32.mrf.mxu0  ;;  %10086 = vmatmul.mubr.bf16.gmra.mxu0 %v17543_v15 }
 0xa37   : > { %v13060_v9 = vpop.f32.mrf.mxu1  ;;  %10239 = vmatmul.mubr.bf16.gmra.mxu1 %v17545_v7  ;;  %10093 = vmatprep.mubr.bf16.mxu0 %v17571_v17  ;;  %v9697_v7 = vadd.f32 %v12953_v12, %v17639_v57 }
 0xa38   : > { %v17652_v18 = vadd.f32 %v13059_v50, %v9689_v47  ;;  %10246 = vmatprep.mubr.bf16.mxu1 %v17553_v54  ;;  %v12955_v55 = vpop.f32.mrf.mxu0 }
 0xa39   : > { %v13061_v48 = vpop.f32.mrf.mxu1  ;;  %v12956_v5 = vadd.f32 %v12955_v55, %v12954_v42  ;;  %v8908_v42 = vld [vmem:[#allocation2 + $0x182] sm:$0xff] }
 0xa3a   : > { %v13062_v46 = vadd.f32 %v13061_v48, %v13060_v9  ;;  %v12957_v20 = vpop.f32.mrf.mxu0  ;;  %v8909_v9 = vld [vmem:[#allocation2 + $0x18a] sm:$0xff] }
 0xa3b   : > { %v13063_v45 = vpop.f32.mrf.mxu1  ;;  %v9702_v19 = vadd.f32 %v12956_v5, %v17639_v57 }
 0xa3c   : > { %v17657_v32 = vadd.f32 %v13062_v46, %v9694_v36  ;;  %v12958_v60 = vpop.f32.mrf.mxu0  ;;  %v9003_v36 = vld [vmem:[#allocation2 + $0x189] sm:$0xff]  ;;  %v17689_v46 = vpack.c.bf16 %v8909_v9, %v8908_v42 }
 0xa3d   : > { %v13064_v15 = vpop.f32.mrf.mxu1  ;;  %v12959_v53 = vadd.f32 %v12958_v60, %v12957_v20 }
 0xa3e   : > { %v13065_v11 = vadd.f32 %v13064_v15, %v13063_v45  ;;  %v12960_v24 = vpop.f32.mrf.mxu0  ;;  %10094 = vmatmul.mubr.bf16.gmra.mxu0 %v17553_v54 }
 0xa3f   : > { %v13066_v17 = vpop.f32.mrf.mxu1  ;;  %10247 = vmatmul.mubr.bf16.gmra.mxu1 %v17555_v14  ;;  %10101 = vmatprep.mubr.bf16.mxu0 %v17581_v43  ;;  %v9705_v14 = vadd.f32 %v12959_v53, %v17639_v57 }
 0xa40   : > { %v17662_v35 = vadd.f32 %v13065_v11, %v9697_v7  ;;  %10254 = vmatprep.mubr.bf16.mxu1 %v17563_v28  ;;  %v12961_v26 = vpop.f32.mrf.mxu0 }
 0xa41   : > { %v13067_v39 = vpop.f32.mrf.mxu1  ;;  %v12962_v61 = vadd.f32 %v12961_v26, %v12960_v24  ;;  %v9004_v26 = vld [vmem:[#allocation2 + $0x199] sm:$0xff] }
 0xa42   : > { %v13068_v27 = vadd.f32 %v13067_v39, %v13066_v17  ;;  %v12963_v3 = vpop.f32.mrf.mxu0  ;;  %v9005_v39 = vld [vmem:[#allocation2 + $0x1a1] sm:$0xff] }
 0xa43   : > { %v13069_v2 = vpop.f32.mrf.mxu1  ;;  %v9710_v4 = vadd.f32 %v12962_v61, %v17639_v57 }
 0xa44   : > { %v17667_v58 = vadd.f32 %v13068_v27, %v9702_v19  ;;  %v12964_v16 = vpop.f32.mrf.mxu0 }
 0xa45   : > { %v13070_v54 = vpop.f32.mrf.mxu1  ;;  %v12965_v49 = vadd.f32 %v12964_v16, %v12963_v3  ;;  %v9022_v16 = vld [vmem:[#allocation2 + $0x32] sm:$0xff] }
 0xa46   : > { %v13071_v63 = vadd.f32 %v13070_v54, %v13069_v2  ;;  %v12966_v8 = vpop.f32.mrf.mxu0  ;;  %10102 = vmatmul.mubr.bf16.gmra.mxu0 %v17563_v28  ;;  %v9023_v54 = vld [vmem:[#allocation2 + $0x3a] sm:$0xff] }
 0xa47   : > { %v13072_v43 = vpop.f32.mrf.mxu1  ;;  %10255 = vmatmul.mubr.bf16.gmra.mxu1 %v17565_v44  ;;  %10109 = vmatprep.mubr.bf16.mxu0 %v17591_v38  ;;  %v9713_v44 = vadd.f32 %v12965_v49, %v17639_v57 }
 0xa48   : > { %v17672_v33 = vadd.f32 %v13071_v63, %v9705_v14  ;;  %10262 = vmatprep.mubr.bf16.mxu1 %v17573_v22  ;;  %v12967_v41 = vpop.f32.mrf.mxu0 }
 0xa49   : > { %v13073_v37 = vpop.f32.mrf.mxu1  ;;  %v12968_v34 = vadd.f32 %v12967_v41, %v12966_v8  ;;  %v9054_v41 = vpack.c.bf16 %v9023_v54, %v9022_v16 }
 0xa4a   : > { %v13074_v31 = vadd.f32 %v13073_v37, %v13072_v43  ;;  %v12969_v30 = vpop.f32.mrf.mxu0 }
 0xa4b   : > { %v13075_v10 = vpop.f32.mrf.mxu1  ;;  %v9718_v47 = vadd.f32 %v12968_v34, %v17639_v57 }
 0xa4c   : > { %v17677_v59 = vadd.f32 %v13074_v31, %v9710_v4  ;;  %v12970_v6 = vpop.f32.mrf.mxu0 }
 0xa4d   : > { %v13076_v28 = vpop.f32.mrf.mxu1  ;;  %v12971_v56 = vadd.f32 %v12970_v6, %v12969_v30 }
 0xa4e   : > { %v13077_v29 = vadd.f32 %v13076_v28, %v13075_v10  ;;  %v12972_v40 = vpop.f32.mrf.mxu0  ;;  %10110 = vmatmul.mubr.bf16.gmra.mxu0 %v17573_v22 }
 0xa4f   : > { %v13078_v38 = vpop.f32.mrf.mxu1  ;;  %10263 = vmatmul.mubr.bf16.gmra.mxu1 %v17575_v52  ;;  %10117 = vmatprep.mubr.bf16.mxu0 %v17599_v51  ;;  %v9002_v51 = vld [vmem:[#allocation2 + $0x181] sm:$0xff]  ;;  %v9721_v20 = vadd.f32 %v12971_v56, %v17639_v57  ;;  %v9025_v56 = vld [vmem:[#allocation2 + $0x52] sm:$0xff] }
 0xa50   : > { %v17682_v25 = vadd.f32 %v13077_v29, %v9713_v44  ;;  %10270 = vmatprep.mubr.bf16.mxu1 %v17583_v13  ;;  %v12973_v23 = vpop.f32.mrf.mxu0  ;;  %v9020_v15 = vpack.c.bf16 %v9003_v36, %v9002_v51  ;;  %v9024_v44 = vld [vmem:[#allocation2 + $0x4a] sm:$0xff] }
 0xa51   : > { %v13079_v1 = vpop.f32.mrf.mxu1  ;;  %v12974_v12 = vadd.f32 %v12973_v23, %v12972_v40  ;;  %v9055_v42 = vpack.c.bf16 %v9025_v56, %v9024_v44  ;;  %v9034_v44 = vld [vmem:[#allocation2 + $0xc2] sm:$0xff]  ;;  %v9035_v56 = vld [vmem:[#allocation2 + $0xca] sm:$0xff] }
 0xa52   : > { %v13080_v50 = vadd.f32 %v13079_v1, %v13078_v38  ;;  %v12975_v55 = vpop.f32.mrf.mxu0  ;;  %v14100_v38 = vld [vmem:[#allocation2] sm:$0xff] }
 0xa53   : > { %v13081_v48 = vpop.f32.mrf.mxu1  ;;  %v9726_v19 = vadd.f32 %v12974_v12, %v17639_v57  ;;  %v8973_v23 = vpack.c.bf16 %v14100_v38, %v14100_v38  ;;  %v9026_v1 = vld [vmem:[#allocation2 + $0x62] sm:$0xff] }
 0xa54   : > { %v17687_v22 = vadd.f32 %v13080_v50, %v9718_v47  ;;  %v12976_v52 = vpop.f32.mrf.mxu0  ;;  %v9027_v47 = vld [vmem:[#allocation2 + $0x6a] sm:$0xff] }
 0xa55   : > { %v13082_v5 = vpop.f32.mrf.mxu1  ;;  %v12977_v45 = vadd.f32 %v12976_v52, %v12975_v55  ;;  %v9056_v36 = vpack.c.bf16 %v9027_v47, %v9026_v1 }
 0xa56   : > { %v13083_v60 = vadd.f32 %v13082_v5, %v13081_v48  ;;  %v12978_v7 = vpop.f32.mrf.mxu0  ;;  %10118 = vmatmul.mubr.bf16.gmra.mxu0 %v17583_v13 }
 0xa57   : > { %v13084_v53 = vpop.f32.mrf.mxu1  ;;  %10271 = vmatmul.mubr.bf16.gmra.mxu1 %v17585_v21  ;;  %10125 = vmatprep.mubr.bf16.mxu0 %v17689_v46  ;;  %v9021_v21 = vpack.c.bf16 %v9005_v39, %v9004_v26  ;;  %v9729_v63 = vadd.f32 %v12977_v45, %v17639_v57  ;;  %v9030_v39 = vld [vmem:[#allocation2 + $0x92] sm:$0xff] }
 0xa58   : > { %v17694_v11 = vadd.f32 %v13083_v60, %v9721_v20  ;;  %10278 = vmatprep.mubr.bf16.mxu1 %v9020_v15  ;;  %v12979_v24 = vpop.f32.mrf.mxu0 }
 0xa59   : > { %v13085_v17 = vpop.f32.mrf.mxu1  ;;  %v12980_v61 = vadd.f32 %v12979_v24, %v12978_v7  ;;  %v9029_v24 = vld [vmem:[#allocation2 + $0x82] sm:$0xff] }
 0xa5a   : > { %v13086_v27 = vadd.f32 %v13085_v17, %v13084_v53  ;;  %v12981_v3 = vpop.f32.mrf.mxu0  ;;  %v9028_v53 = vld [vmem:[#allocation2 + $0x7a] sm:$0xff] }
 0xa5b   : > { %v13087_v2 = vpop.f32.mrf.mxu1  ;;  %v9734_v10 = vadd.f32 %v12980_v61, %v17639_v57 }
 0xa5c   : > { %v17698_v13 = vadd.f32 %v13086_v27, %v9726_v19  ;;  %v12982_v14 = vpop.f32.mrf.mxu0  ;;  %v9031_v19 = vld [vmem:[#allocation2 + $0x9a] sm:$0xff] }
 0xa5d   : > { %v13088_v49 = vpop.f32.mrf.mxu1  ;;  %v12983_v8 = vadd.f32 %v12982_v14, %v12981_v3  ;;  %v9058_v14 = vpack.c.bf16 %v9031_v19, %v9030_v39 }
 0xa5e   : > { %v13089_v43 = vadd.f32 %v13088_v49, %v13087_v2  ;;  %v12984_v37 = vpop.f32.mrf.mxu0  ;;  %10126 = vmatmul.mubr.bf16.gmra.mxu0 %v9020_v15  ;;  %v9057_v2 = vpack.c.bf16 %v9029_v24, %v9028_v53  ;;  %v9038_v53 = vld [vmem:[#allocation2 + $0xf2] sm:$0xff]  ;;  %v9039_v24 = vld [vmem:[#allocation2 + $0xfa] sm:$0xff] }
 0xa5f   : > { %v13090_v4 = vpop.f32.mrf.mxu1  ;;  %10279 = vmatmul.mubr.bf16.gmra.mxu1 %v17593_v0  ;;  %13606 = vmatprep.mubr.bf16.mxu0 %v9054_v41  ;;  %v9737_v9 = vadd.f32 %v12983_v8, %v17639_v57 }
 0xa60   : > { %v17702_v34 = vadd.f32 %v13089_v43, %v9729_v63  ;;  %10286 = vmatprep.mubr.bf16.mxu1 %v9021_v21  ;;  %v12985_v31 = vpop.f32.mrf.mxu0 }
 0xa61   : > { %v13091_v30 = vpop.f32.mrf.mxu1  ;;  %v12986_v6 = vadd.f32 %v12985_v31, %v12984_v37 }
 0xa62   : > { %v13092_v28 = vadd.f32 %v13091_v30, %v13090_v4  ;;  %v12987_v29 = vpop.f32.mrf.mxu0  ;;  %v9032_v30 = vld [vmem:[#allocation2 + $0xaa] sm:$0xff] }
 0xa63   : > { %v13093_v40 = vpop.f32.mrf.mxu1  ;;  %v9742_v60 = vadd.f32 %v12986_v6, %v17639_v57 }
 0xa64   : > { %v17705_v12 = vadd.f32 %v13092_v28, %v9734_v10  ;;  %v12988_v0 = vpop.f32.mrf.mxu0  ;;  %v9033_v10 = vld [vmem:[#allocation2 + $0xb2] sm:$0xff] }
 0xa65   : > { %v13094_v50 = vpop.f32.mrf.mxu1  ;;  %v12989_v55 = vadd.f32 %v12988_v0, %v12987_v29 }
 0xa66   : > { %v13095_v48 = vadd.f32 %v13094_v50, %v13093_v40  ;;  %v12990_v52 = vpop.f32.mrf.mxu0  ;;  %13607 = vmatmul.mubr.bf16.vlgmr.msra.gmra.mxu0 %v9055_v42  ;;  %v9060_v50 = vpack.c.bf16 %v9035_v56, %v9034_v44 }
 0xa67   : > { %v13096_v5 = vpop.f32.mrf.mxu1  ;;  %10287 = vmatmul.mubr.bf16.gmra.mxu1 %v8973_v23  ;;  %13610 = vmatprep.mubr.bf16.mxu0 %v9056_v36  ;;  %v9745_v16 = vadd.f32 %v12989_v55, %v17639_v57  ;;  %v9059_v23 = vpack.c.bf16 %v9033_v10, %v9032_v30 }
 0xa68   : > { %v17708_v51 = vadd.f32 %v13095_v48, %v9737_v9  ;;  %v12991_v20 = vpop.f32.mrf.mxu0 }
 0xa69   : > { %v13097_v45 = vpop.f32.mrf.mxu1  ;;  %v12992_v15 = vadd.f32 %v12991_v20, %v12990_v52 }
 0xa6a   : > { %v13098_v7 = vadd.f32 %v13097_v45, %v13096_v5  ;;  %v12993_v17 = vpop.f32.mrf.mxu0  ;;  %v9036_v45 = vld [vmem:[#allocation2 + $0xda] sm:$0xff] }
 0xa6b   : > { %v13099_v26 = vpop.f32.mrf.mxu1  ;;  %v9750_v37 = vadd.f32 %v12992_v15, %v17639_v57 }
 0xa6c   : > { %v17711_v61 = vadd.f32 %v13098_v7, %v9742_v60  ;;  %v12994_v27 = vpop.f32.mrf.mxu0  ;;  %v9037_v60 = vld [vmem:[#allocation2 + $0xe2] sm:$0xff] }
 0xa6d   : > { %v13100_v3 = vpop.f32.mrf.mxu1  ;;  %v12995_v54 = vadd.f32 %v12994_v27, %v12993_v17  ;;  %v9061_v19 = vpack.c.bf16 %v9037_v60, %v9036_v45  ;;  %v9044_v45 = vld [vmem:[#allocation2 + $0x13a] sm:$0xff]  ;;  %v9045_v60 = vld [vmem:[#allocation2 + $0x142] sm:$0xff] }
 0xa6e   : > { %v13101_v21 = vadd.f32 %v13100_v3, %v13099_v26  ;;  %v12996_v49 = vpop.f32.mrf.mxu0  ;;  %13611 = vmatmul.mubr.bf16.gmra.mxu0 %v9057_v2 }
 0xa6f   : > { %v13102_v63 = vpop.f32.mrf.mxu1  ;;  %13614 = vmatprep.mubr.bf16.mxu0 %v9058_v14  ;;  %v9753_v1 = vadd.f32 %v12995_v54, %v17639_v57 }
 0xa70   : > { %v17714_v8 = vadd.f32 %v13101_v21, %v9745_v16  ;;  %v12997_v43 = vpop.f32.mrf.mxu0  ;;  %v9062_v16 = vpack.c.bf16 %v9039_v24, %v9038_v53  ;;  %v9046_v53 = vld [vmem:[#allocation2 + $0x152] sm:$0xff]  ;;  %v9047_v24 = vld [vmem:[#allocation2 + $0x15a] sm:$0xff] }
 0xa71   : > { %v13103_v41 = vpop.f32.mrf.mxu1  ;;  %v12998_v4 = vadd.f32 %v12997_v43, %v12996_v49 }
 0xa72   : > { %v13104_v31 = vadd.f32 %v13103_v41, %v13102_v63  ;;  %v12999_v6 = vpop.f32.mrf.mxu0 }
 0xa73   : > { %v13105_v28 = vpop.f32.mrf.mxu1  ;;  %v9758_v52 = vadd.f32 %v12998_v4, %v17639_v57  ;;  %v9040_v4 = vld [vmem:[#allocation2 + $0x10a] sm:$0xff] }
 0xa74   : > { %v17717_v29 = vadd.f32 %v13104_v31, %v9750_v37  ;;  %v13000_v40 = vpop.f32.mrf.mxu0  ;;  %v9041_v31 = vld [vmem:[#allocation2 + $0x112] sm:$0xff] }
 0xa75   : > { %v13106_v38 = vpop.f32.mrf.mxu1  ;;  %v13001_v47 = vadd.f32 %v13000_v40, %v12999_v6  ;;  %v9042_v6 = vld [vmem:[#allocation2 + $0x122] sm:$0xff] }
 0xa76   : > { %v13107_v0 = vadd.f32 %v13106_v38, %v13105_v28  ;;  %v13002_v42 = vpop.f32.mrf.mxu0  ;;  %13615 = vmatmul.mubr.bf16.gmra.mxu0 %v9059_v23  ;;  %v9043_v28 = vld [vmem:[#allocation2 + $0x12a] sm:$0xff]  ;;  %v9063_v38 = vpack.c.bf16 %v9041_v31, %v9040_v4 }
 0xa77   : > { %v13108_v9 = vpop.f32.mrf.mxu1  ;;  %13618 = vmatprep.mubr.bf16.mxu0 %v9060_v50  ;;  %v9761_v27 = vadd.f32 %v13001_v47, %v17639_v57 }
 0xa78   : > { %v17720_v55 = vadd.f32 %v13107_v0, %v9753_v1  ;;  %v13003_v48 = vpop.f32.mrf.mxu0  ;;  %v9064_v0 = vpack.c.bf16 %v9043_v28, %v9042_v6 }
 0xa79   : > { %v13109_v36 = vpop.f32.mrf.mxu1  ;;  %v13004_v5 = vadd.f32 %v13003_v48, %v13002_v42 }
 0xa7a   : > { %v13110_v20 = vadd.f32 %v13109_v36, %v13108_v9  ;;  %v13005_v15 = vpop.f32.mrf.mxu0 }
 0xa7b   : > { %v13111_v7 = vpop.f32.mrf.mxu1  ;;  %v9766_v43 = vadd.f32 %v13004_v5, %v17639_v57 }
 0xa7c   : > { %v17723_v17 = vadd.f32 %v13110_v20, %v9758_v52  ;;  %v13006_v26 = vpop.f32.mrf.mxu0 }
 0xa7d   : > { %v13112_v39 = vpop.f32.mrf.mxu1  ;;  %v13007_v3 = vadd.f32 %v13006_v26, %v13005_v15 }
 0xa7e   : > { %v13113_v2 = vadd.f32 %v13112_v39, %v13111_v7  ;;  %v13008_v54 = vpop.f32.mrf.mxu0  ;;  %13619 = vmatmul.mubr.bf16.gmra.mxu0 %v9061_v19 }
 0xa7f   : > { %v13114_v21 = vpop.f32.mrf.mxu1  ;;  %13622 = vmatprep.mubr.bf16.mxu0 %v9062_v16  ;;  %v9769_v23 = vadd.f32 %v13007_v3, %v17639_v57 }
 0xa80   : > { %v17726_v14 = vadd.f32 %v13113_v2, %v9761_v27  ;;  %v13009_v49 = vpop.f32.mrf.mxu0  ;;  %v9065_v27 = vpack.c.bf16 %v9045_v60, %v9044_v45 }
 0xa81   : > { %v13115_v63 = vpop.f32.mrf.mxu1  ;;  %v13010_v41 = vadd.f32 %v13009_v49, %v13008_v54  ;;  %v9066_v54 = vpack.c.bf16 %v9047_v24, %v9046_v53 }
 0xa82   : > { %v13116_v37 = vadd.f32 %v13115_v63, %v13114_v21  ;;  %v13011_v30 = vpop.f32.mrf.mxu0 }
 0xa83   : > { %v13117_v10 = vpop.f32.mrf.mxu1  ;;  %v9774_v52 = vadd.f32 %v13010_v41, %v17639_v57 }
 0xa84   : > { %v17729_v44 = vadd.f32 %v13116_v37, %v9766_v43  ;;  %v13012_v56 = vpop.f32.mrf.mxu0 }
 0xa85   : > { %v13118_v40 = vpop.f32.mrf.mxu1  ;;  %v13013_v1 = vadd.f32 %v13012_v56, %v13011_v30  ;;  %v9048_v30 = vld [vmem:[#allocation2 + $0x16a] sm:$0xff] }
 0xa86   : > { %v13119_v47 = vadd.f32 %v13118_v40, %v13117_v10  ;;  %v13014_v50 = vpop.f32.mrf.mxu0  ;;  %13623 = vmatmul.mubr.bf16.gmra.mxu0 %v9063_v38  ;;  %v9049_v10 = vld [vmem:[#allocation2 + $0x172] sm:$0xff] }
 0xa87   : > { %v13120_v42 = vpop.f32.mrf.mxu1  ;;  %13626 = vmatprep.mubr.bf16.mxu0 %v9064_v0  ;;  %v9777_v3 = vadd.f32 %v13013_v1, %v17639_v57 }
 0xa88   : > { %v17732_v9 = vadd.f32 %v13119_v47, %v9769_v23  ;;  %v13015_v48 = vpop.f32.mrf.mxu0  ;;  %v9067_v23 = vpack.c.bf16 %v9049_v10, %v9048_v30 }
 0xa89   : > { %v13121_v36 = vpop.f32.mrf.mxu1  ;;  %v13016_v5 = vadd.f32 %v13015_v48, %v13014_v50 }
 0xa8a   : > { %v13122_v20 = vadd.f32 %v13121_v36, %v13120_v42  ;;  %v13017_v15 = vpop.f32.mrf.mxu0  ;;  %v9052_v36 = vld [vmem:[#allocation2 + $0x19a] sm:$0xff] }
 0xa8b   : > { %v13123_v7 = vpop.f32.mrf.mxu1  ;;  %v9782_v37 = vadd.f32 %v13016_v5, %v17639_v57 }
 0xa8c   : > { %v17735_v26 = vadd.f32 %v13122_v20, %v9774_v52  ;;  %v13018_v39 = vpop.f32.mrf.mxu0  ;;  %v9053_v52 = vld [vmem:[#allocation2 + $0x1a2] sm:$0xff] }
 0xa8d   : > { %v13124_v19 = vpop.f32.mrf.mxu1  ;;  %v13019_v2 = vadd.f32 %v13018_v39, %v13017_v15  ;;  %v9069_v24 = vpack.c.bf16 %v9053_v52, %v9052_v36 }
 0xa8e   : > { %v13125_v16 = vadd.f32 %v13124_v19, %v13123_v7  ;;  %v13020_v21 = vpop.f32.mrf.mxu0  ;;  %13627 = vmatmul.mubr.bf16.gmra.mxu0 %v9065_v27 }
 0xa8f   : > { %v13126_v49 = vpop.f32.mrf.mxu1  ;;  %13630 = vmatprep.mubr.bf16.mxu0 %v9066_v54  ;;  %v9785_v1 = vadd.f32 %v13019_v2, %v17639_v57 }
 0xa90   : > { %v17738_v63 = vadd.f32 %v13125_v16, %v9777_v3  ;;  %v13021_v43 = vpop.f32.mrf.mxu0 }
 0xa91   : > { %v13127_v41 = vpop.f32.mrf.mxu1  ;;  %v13022_v4 = vadd.f32 %v13021_v43, %v13020_v21 }
 0xa92   : > { %v13128_v31 = vadd.f32 %v13127_v41, %v13126_v49  ;;  %v13023_v6 = vpop.f32.mrf.mxu0 }
 0xa93   : > { %v13129_v28 = vpop.f32.mrf.mxu1  ;;  %v9790_v45 = vadd.f32 %v13022_v4, %v17639_v57 }
 0xa94   : > { %v17741_v56 = vadd.f32 %v13128_v31, %v9782_v37  ;;  %v13024_v40 = vpop.f32.mrf.mxu0 }
 0xa95   : > { %v13130_v38 = vpop.f32.mrf.mxu1  ;;  %v13025_v47 = vadd.f32 %v13024_v40, %v13023_v6 }
 0xa96   : > { %v13131_v0 = vadd.f32 %v13130_v38, %v13129_v28  ;;  %v13026_v50 = vpop.f32.mrf.mxu0  ;;  %13631 = vmatmul.mubr.bf16.gmra.mxu0 %v9067_v23 }
 0xa97   : > { %v13132_v42 = vpop.f32.mrf.mxu1  ;;  %13634 = vmatprep.mubr.bf16.mxu0 %v17689_v46  ;;  %v9793_v3 = vadd.f32 %v13025_v47, %v17639_v57 }
 0xa98   : > { %v17744_v48 = vadd.f32 %v13131_v0, %v9785_v1  ;;  %v13027_v5 = vpop.f32.mrf.mxu0 }
 0xa99   : > { %v13133_v20 = vpop.f32.mrf.mxu1  ;;  %v13028_v60 = vadd.f32 %v13027_v5, %v13026_v50 }
 0xa9a   : > { %v13134_v15 = vadd.f32 %v13133_v20, %v13132_v42  ;;  %v13029_v7 = vpop.f32.mrf.mxu0 }
 0xa9b   : > { %v13135_v53 = vpop.f32.mrf.mxu1  ;;  %v9798_v41 = vadd.f32 %v13028_v60, %v17639_v57 }
 0xa9c   : > { %v17748_v39 = vadd.f32 %v13134_v15, %v9790_v45  ;;  %v13030_v19 = vpop.f32.mrf.mxu0 }
 0xa9d   : > { %v13136_v27 = vpop.f32.mrf.mxu1  ;;  %v13031_v2 = vadd.f32 %v13030_v19, %v13029_v7 }
 0xa9e   : > { %v13137_v16 = vadd.f32 %v13136_v27, %v13135_v53  ;;  %v13032_v46 = vpop.f32.mrf.mxu0  ;;  %13635 = vmatmul.mubr.bf16.gmra.mxu0 %v9069_v24 }
 0xa9f   : > { %v13138_v54 = vpop.f32.mrf.mxu1  ;;  %v9801_v40 = vadd.f32 %v13031_v2, %v17639_v57 }
 0xaa0   : > { %v17751_v21 = vadd.f32 %v13137_v16, %v9793_v3  ;;  %v13033_v49 = vpop.f32.mrf.mxu0 }
 0xaa1   : > { %v13139_v43 = vpop.f32.mrf.mxu1  ;;  %v13034_v37 = vadd.f32 %v13033_v49, %v13032_v46 }
 0xaa2   : > { %v13140_v4 = vadd.f32 %v13139_v43, %v13138_v54  ;;  %v13035_v31 = vpop.f32.mrf.mxu0 }
 0xaa3   : > { %v13141_v30 = vpop.f32.mrf.mxu1  ;;  %v9806_v36 = vadd.f32 %v13034_v37, %v17639_v57 }
 0xaa4   : > { %v17754_v10 = vadd.f32 %v13140_v4, %v9798_v41  ;;  %v13036_v6 = vpop.f32.mrf.mxu0 }
 0xaa5   : > { %v13142_v28 = vpop.f32.mrf.mxu1  ;;  %v13037_v38 = vadd.f32 %v13036_v6, %v13035_v31 }
 0xaa6   : > { %v13143_v23 = vadd.f32 %v13142_v28, %v13141_v30  ;;  %v13166_v47 = vpop.f32.mrf.mxu0 }
 0xaa7   : > { %v13144_v1 = vpop.f32.mrf.mxu1  ;;  %v9809_v24 = vadd.f32 %v13037_v38, %v17639_v57 }
 0xaa8   : > { %v17757_v0 = vadd.f32 %v13143_v23, %v9801_v40  ;;  %v13167_v42 = vpop.f32.mrf.mxu0 }
 0xaa9   : > { %v13145_v50 = vpop.f32.mrf.mxu1  ;;  %v13168_v5 = vadd.f32 %v13167_v42, %v13166_v47 }
 0xaaa   : > { %v13146_v52 = vadd.f32 %v13145_v50, %v13144_v1  ;;  %v13169_v45 = vpop.f32.mrf.mxu0 }
 0xaab   : > { %v13147_v20 = vpop.f32.mrf.mxu1  ;;  %v10008_v15 = vadd.f32 %v13168_v5, %v17647_v62 }
 0xaac   : > { %v17760_v60 = vadd.f32 %v13146_v52, %v9806_v36  ;;  %v13170_v53 = vpop.f32.mrf.mxu0 }
 0xaad   : > { %v13148_v7 = vpop.f32.mrf.mxu1  ;;  %v13171_v27 = vadd.f32 %v13170_v53, %v13169_v45 }
 0xaae   : > { %18528 = vst [vmem:[#allocation47_spill] sm:$0xff] %v17760_v60  ;;  %v13149_v19 = vadd.f32 %v13148_v7, %v13147_v20  ;;  %v13172_v3 = vpop.f32.mrf.mxu0 }
 0xaaf   : > { %v13278_v2 = vpop.f32.mrf.mxu1  ;;  %v10011_v46 = vadd.f32 %v13171_v27, %v17652_v18 }
 0xab0   : > { %v17764_v16 = vadd.f32 %v13149_v19, %v9809_v24  ;;  %v13173_v54 = vpop.f32.mrf.mxu0 }
 0xab1   : > { %v13279_v49 = vpop.f32.mrf.mxu1  ;;  %v13174_v43 = vadd.f32 %v13173_v54, %v13172_v3 }
 0xab2   : > { %18529 = vst [vmem:[#allocation55_spill] sm:$0xff] %v17764_v16  ;;  %v13280_v41 = vadd.f32 %v13279_v49, %v13278_v2  ;;  %v13175_v37 = vpop.f32.mrf.mxu0 }
 0xab3   : > { %v13281_v4 = vpop.f32.mrf.mxu1  ;;  %v17768_v62 = vadd.f32 %v13174_v43, %v17657_v32 }
 0xab4   : > { %v17770_v31 = vadd.f32 %v13280_v41, %v10008_v15  ;;  %v13176_v57 = vpop.f32.mrf.mxu0 }
 0xab5   : > { %v13282_v30 = vpop.f32.mrf.mxu1  ;;  %v13177_v6 = vadd.f32 %v13176_v57, %v13175_v37 }
 0xab6   : > { %v13283_v28 = vadd.f32 %v13282_v30, %v13281_v4  ;;  %v13178_v40 = vpop.f32.mrf.mxu0 }
 0xab7   : > { %v17772_v38 = vpop.f32.mrf.mxu1  ;;  %v17775_v18 = vadd.f32 %v13177_v6, %v17662_v35 }
 0xab8   : > { %v17777_v23 = vadd.f32 %v13283_v28, %v10011_v46  ;;  %v13179_v1 = vpop.f32.mrf.mxu0 }
 0xab9   : > { %v17779_v47 = vpop.f32.mrf.mxu1  ;;  %v13180_v50 = vadd.f32 %v13179_v1, %v13178_v40 }
 0xaba   : > { %v13181_v32 = vpop.f32.mrf.mxu0 }
 0xabb   : > { %v17781_v42 = vpop.f32.mrf.mxu1  ;;  %v17784_v36 = vadd.f32 %v13180_v50, %v17667_v58 }
 0xabc   : > { %v13182_v52 = vpop.f32.mrf.mxu0 }
 0xabd   : > { %v17786_v5 = vpop.f32.mrf.mxu1  ;;  %v13183_v20 = vadd.f32 %v13182_v52, %v13181_v32 }
 0xabe   : > { %v13184_v45 = vpop.f32.mrf.mxu0 }
 0xabf   : > { %v17788_v15 = vpop.f32.mrf.mxu1  ;;  %v17791_v35 = vadd.f32 %v13183_v20, %v17672_v33 }
 0xac0   : > { %v13185_v7 = vpop.f32.mrf.mxu0 }
 0xac1   : > { %v17793_v53 = vpop.f32.mrf.mxu1  ;;  %v13186_v24 = vadd.f32 %v13185_v7, %v13184_v45 }
 0xac2   : > { %v13187_v19 = vpop.f32.mrf.mxu0 }
 0xac3   : > { %v17795_v27 = vpop.f32.mrf.mxu1  ;;  %v17798_v58 = vadd.f32 %v13186_v24, %v17677_v59 }
 0xac4   : > { %v13188_v3 = vpop.f32.mrf.mxu0 }
 0xac5   : > { %v17800_v2 = vpop.f32.mrf.mxu1  ;;  %v13189_v46 = vadd.f32 %v13188_v3, %v13187_v19 }
 0xac6   : > { %v13190_v54 = vpop.f32.mrf.mxu0 }
 0xac7   : > { %v17802_v49 = vpop.f32.mrf.mxu1  ;;  %v17805_v33 = vadd.f32 %v13189_v46, %v17682_v25 }
 0xac8   : > { %v13191_v43 = vpop.f32.mrf.mxu0 }
 0xac9   : > { %v17807_v41 = vpop.f32.mrf.mxu1  ;;  %v13192_v37 = vadd.f32 %v13191_v43, %v13190_v54 }
 0xaca   : > { %v13193_v4 = vpop.f32.mrf.mxu0 }
 0xacb   : > { %v17809_v57 = vpop.f32.mrf.mxu1  ;;  %v17812_v59 = vadd.f32 %v13192_v37, %v17687_v22 }
 0xacc   : > { %v13194_v30 = vpop.f32.mrf.mxu0 }
 0xacd   : > { %v17814_v6 = vpop.f32.mrf.mxu1  ;;  %v13195_v28 = vadd.f32 %v13194_v30, %v13193_v4 }
 0xace   : > { %v13196_v40 = vpop.f32.mrf.mxu0 }
 0xacf   : > { %v17816_v1 = vpop.f32.mrf.mxu1  ;;  %v17819_v25 = vadd.f32 %v13195_v28, %v17694_v11 }
 0xad0   : > { %v13197_v50 = vpop.f32.mrf.mxu0 }
 0xad1   : > { %v17821_v32 = vpop.f32.mrf.mxu1  ;;  %v13198_v52 = vadd.f32 %v13197_v50, %v13196_v40 }
 0xad2   : > { %v13199_v20 = vpop.f32.mrf.mxu0 }
 0xad3   : > { %v17823_v45 = vpop.f32.mrf.mxu1  ;;  %v17826_v22 = vadd.f32 %v13198_v52, %v17698_v13 }
 0xad4   : > { %v13200_v7 = vpop.f32.mrf.mxu0 }
 0xad5   : > { %v17828_v24 = vpop.f32.mrf.mxu1  ;;  %v13201_v19 = vadd.f32 %v13200_v7, %v13199_v20 }
 0xad6   : > { %v13202_v3 = vpop.f32.mrf.mxu0 }
 0xad7   : > { %v17830_v46 = vpop.f32.mrf.mxu1  ;;  %v17833_v11 = vadd.f32 %v13201_v19, %v17702_v34 }
 0xad8   : > { %v13203_v54 = vpop.f32.mrf.mxu0 }
 0xad9   : > { %v17835_v43 = vpop.f32.mrf.mxu1  ;;  %v13204_v37 = vadd.f32 %v13203_v54, %v13202_v3 }
 0xada   : > { %v13205_v4 = vpop.f32.mrf.mxu0 }
 0xadb   : > { %v17837_v30 = vpop.f32.mrf.mxu1  ;;  %v17840_v13 = vadd.f32 %v13204_v37, %v17705_v12 }
 0xadc   : > { %v13206_v28 = vpop.f32.mrf.mxu0 }
 0xadd   : > { %18530 = vst [vmem:[#allocation59_spill] sm:$0xff] %v17840_v13  ;;  %v17842_v40 = vpop.f32.mrf.mxu1  ;;  %v13207_v50 = vadd.f32 %v13206_v28, %v13205_v4 }
 0xade   : > { %v13208_v52 = vpop.f32.mrf.mxu0 }
 0xadf   : > { %v17844_v20 = vpop.f32.mrf.mxu1  ;;  %v17847_v34 = vadd.f32 %v13207_v50, %v17708_v51 }
 0xae0   : > { %v13209_v7 = vpop.f32.mrf.mxu0 }
 0xae1   : > { %18531 = vst [vmem:[#allocation63_spill] sm:$0xff] %v17847_v34  ;;  %v17849_v19 = vpop.f32.mrf.mxu1  ;;  %v13210_v3 = vadd.f32 %v13209_v7, %v13208_v52 }
 0xae2   : > { %18532 = vst [vmem:[#allocation46_spill] sm:$0xff] %v17849_v19  ;;  %v13211_v54 = vpop.f32.mrf.mxu0 }
 0xae3   : > { %v17851_v16 = vpop.f32.mrf.mxu1  ;;  %v17854_v12 = vadd.f32 %v13210_v3, %v17711_v61 }
 0xae4   : > { %18533 = vst [vmem:[#allocation49_spill] sm:$0xff] %v17851_v16  ;;  %v13212_v37 = vpop.f32.mrf.mxu0 }
 0xae5   : > { %18534 = vst [vmem:[#allocation48_spill] sm:$0xff] %v17854_v12  ;;  %v17856_v60 = vpop.f32.mrf.mxu1  ;;  %v13213_v4 = vadd.f32 %v13212_v37, %v13211_v54 }
 0xae6   : > { %18535 = vst [vmem:[#allocation51_spill] sm:$0xff] %v17856_v60  ;;  %v13214_v28 = vpop.f32.mrf.mxu0 }
 0xae7   : > { %v17858_v13 = vpop.f32.mrf.mxu1  ;;  %v17861_v51 = vadd.f32 %v13213_v4, %v17714_v8 }
 0xae8   : > { %v13215_v50 = vpop.f32.mrf.mxu0 }
 0xae9   : > { %18536 = vst [vmem:[#allocation66_spill] sm:$0xff] %v17861_v51  ;;  %v17863_v34 = vpop.f32.mrf.mxu1  ;;  %v13216_v52 = vadd.f32 %v13215_v50, %v13214_v28 }
 0xaea   : > { %v13217_v7 = vpop.f32.mrf.mxu0 }
 0xaeb   : > { %v17865_v19 = vpop.f32.mrf.mxu1  ;;  %v17868_v61 = vadd.f32 %v13216_v52, %v17717_v29 }
 0xaec   : > { %v13218_v3 = vpop.f32.mrf.mxu0 }
 0xaed   : > { %18537 = vst [vmem:[#allocation61_spill] sm:$0xff] %v17868_v61  ;;  %v17870_v16 = vpop.f32.mrf.mxu1  ;;  %v13219_v54 = vadd.f32 %v13218_v3, %v13217_v7 }
 0xaee   : > { %18538 = vst [vmem:[#allocation56_spill] sm:$0xff] %v17870_v16  ;;  %v13220_v37 = vpop.f32.mrf.mxu0 }
 0xaef   : > { %v17872_v60 = vpop.f32.mrf.mxu1  ;;  %v17875_v8 = vadd.f32 %v13219_v54, %v17720_v55 }
 0xaf0   : > { %v13221_v4 = vpop.f32.mrf.mxu0 }
 0xaf1   : > { %18539 = vst [vmem:[#allocation53_spill] sm:$0xff] %v17875_v8  ;;  %v17877_v51 = vpop.f32.mrf.mxu1  ;;  %v13222_v28 = vadd.f32 %v13221_v4, %v13220_v37 }
 0xaf2   : > { %18540 = vst [vmem:[#allocation54_spill] sm:$0xff] %v17877_v51  ;;  %v13223_v50 = vpop.f32.mrf.mxu0 }
 0xaf3   : > { %v17879_v12 = vpop.f32.mrf.mxu1  ;;  %v17882_v29 = vadd.f32 %v13222_v28, %v17723_v17 }
 0xaf4   : > { %18541 = vst [vmem:[#allocation68_spill] sm:$0xff] %v17879_v12  ;;  %v13224_v52 = vpop.f32.mrf.mxu0 }
 0xaf5   : > { %18542 = vst [vmem:[#allocation50_spill] sm:$0xff] %v17882_v29  ;;  %v17884_v61 = vpop.f32.mrf.mxu1  ;;  %v13225_v7 = vadd.f32 %v13224_v52, %v13223_v50 }
 0xaf6   : > { %18543 = vst [vmem:[#allocation57_spill] sm:$0xff] %v17884_v61  ;;  %v13226_v3 = vpop.f32.mrf.mxu0 }
 0xaf7   : > { %v17886_v16 = vpop.f32.mrf.mxu1  ;;  %v17889_v55 = vadd.f32 %v13225_v7, %v17726_v14 }
 0xaf8   : > { %v13227_v54 = vpop.f32.mrf.mxu0 }
 0xaf9   : > { %18544 = vst [vmem:[#allocation69_spill] sm:$0xff] %v17889_v55  ;;  %v17891_v8 = vpop.f32.mrf.mxu1  ;;  %v13228_v37 = vadd.f32 %v13227_v54, %v13226_v3 }
 0xafa   : > { %v13229_v4 = vpop.f32.mrf.mxu0 }
 0xafb   : > { %v17893_v51 = vpop.f32.mrf.mxu1  ;;  %v17896_v17 = vadd.f32 %v13228_v37, %v17729_v44 }
 0xafc   : > { %v13230_v28 = vpop.f32.mrf.mxu0 }
 0xafd   : > { %18545 = vst [vmem:[#allocation52_spill] sm:$0xff] %v17896_v17  ;;  %v17898_v12 = vpop.f32.mrf.mxu1  ;;  %v13231_v50 = vadd.f32 %v13230_v28, %v13229_v4 }
 0xafe   : > { %18546 = vst [vmem:[#allocation58_spill] sm:$0xff] %v17898_v12  ;;  %v13232_v52 = vpop.f32.mrf.mxu0 }
 0xaff   : > { %v17900_v61 = vpop.f32.mrf.mxu1  ;;  %v17903_v14 = vadd.f32 %v13231_v50, %v17732_v9 }
 0xb00   : > { %18547 = vst [vmem:[#allocation60_spill] sm:$0xff] %v17900_v61  ;;  %v13233_v7 = vpop.f32.mrf.mxu0 }
 0xb01   : > { %18548 = vst [vmem:[#allocation70_spill] sm:$0xff] %v17903_v14  ;;  %v13234_v55 = vadd.f32 %v13233_v7, %v13232_v52  ;;  %v17905_v29 = vpop.f32.mrf.mxu1 }
 0xb02   : > { %v13235_v3 = vpop.f32.mrf.mxu0 }
 0xb03   : > { %v17908_v54 = vadd.f32 %v13234_v55, %v17735_v26  ;;  %v17910_v17 = vpop.f32.mrf.mxu1 }
 0xb04   : > { %v13236_v44 = vpop.f32.mrf.mxu0  ;;  %18549 = vst [vmem:[#allocation64_spill] sm:$0xff] %v17910_v17 }
 0xb05   : > { %v13237_v37 = vadd.f32 %v13236_v44, %v13235_v3  ;;  %v17915_v9 = vpop.f32.mrf.mxu1 }
 0xb06   : > { %v13238_v12 = vpop.f32.mrf.mxu0 }
 0xb07   : > { %v17913_v4 = vadd.f32 %v13237_v37, %v17738_v63  ;;  %v17920_v26 = vpop.f32.mrf.mxu1 }
 0xb08   : > { %v13239_v28 = vpop.f32.mrf.mxu0 }
 0xb09   : > { %18550 = vst [vmem:[#allocation65_spill] sm:$0xff] %v17913_v4  ;;  %v13240_v61 = vadd.f32 %v13239_v28, %v13238_v12  ;;  %v17925_v63 = vpop.f32.mrf.mxu1 }
 0xb0a   : > { %v13241_v50 = vpop.f32.mrf.mxu0 }
 0xb0b   : > { %v17918_v52 = vadd.f32 %v13240_v61, %v17741_v56  ;;  %v17930_v56 = vpop.f32.mrf.mxu1 }
 0xb0c   : > { %v13242_v7 = vpop.f32.mrf.mxu0 }
 0xb0d   : > { %18551 = vst [vmem:[#allocation62_spill] sm:$0xff] %v17918_v52  ;;  %v13243_v14 = vadd.f32 %v13242_v7, %v13241_v50 }
 0xb0e   : > { %v13244_v55 = vpop.f32.mrf.mxu0 }
 0xb0f   : > { %v17923_v3 = vadd.f32 %v13243_v14, %v17744_v48  ;;  %v17935_v48 = vpop.f32.mrf.mxu1 }
 0xb10   : > { %v13245_v44 = vpop.f32.mrf.mxu0 }
 0xb11   : > { %18552 = vst [vmem:[#allocation67_spill] sm:$0xff] %v17923_v3  ;;  %v13246_v17 = vadd.f32 %v13245_v44, %v13244_v55 }
 0xb12   : > { %v13247_v37 = vpop.f32.mrf.mxu0 }
 0xb13   : > { %v17928_v12 = vadd.f32 %v13246_v17, %v17748_v39  ;;  %v17940_v39 = vpop.f32.mrf.mxu1 }
 0xb14   : > { %v13248_v28 = vpop.f32.mrf.mxu0 }
 0xb15   : > { %v13249_v4 = vadd.f32 %v13248_v28, %v13247_v37 }
 0xb16   : > { %v13250_v61 = vpop.f32.mrf.mxu0 }
 0xb17   : > { %v17933_v50 = vadd.f32 %v13249_v4, %v17751_v21  ;;  %v13286_v21 = vadd.f32 %v17779_v47, %v17772_v38  ;;  %v17951_v4 = vpop.f32.mrf.mxu1 }
 0xb18   : > { %v13251_v7 = vpop.f32.mrf.mxu0 }
 0xb19   : > { %18553 = vst [vmem:[#allocation72_spill] sm:$0xff] %v17933_v50  ;;  %v13252_v52 = vadd.f32 %v13251_v7, %v13250_v61  ;;  %v10177_v7 = vadd.f32 %v13286_v21, %v17768_v62  ;;  %v13292_v62 = vadd.f32 %v17793_v53, %v17788_v15 }
 0xb1a   : > { %v13253_v14 = vpop.f32.mrf.mxu0 }
 0xb1b   : > { %v17938_v55 = vadd.f32 %v13252_v52, %v17754_v10  ;;  %v13289_v52 = vadd.f32 %v17786_v5, %v17781_v42  ;;  %v18558_v42 = vld [vmem:[#allocation19_spill] sm:$0xff] }
 0xb1c   : > { %v13254_v44 = vpop.f32.mrf.mxu0 }
 0xb1d   : > { %18554 = vst [vmem:[#allocation73_spill] sm:$0xff] %v17938_v55  ;;  %v13255_v3 = vadd.f32 %v13254_v44, %v13253_v14  ;;  %v17960_v14 = vpop.f32.mrf.mxu1  ;;  %v13298_v44 = vadd.f32 %v17807_v41, %v17802_v49  ;;  %v10180_v55 = vadd.f32 %v13289_v52, %v17775_v18  ;;  %v13301_v49 = vadd.f32 %v17814_v6, %v17809_v57  ;;  %v18560_v57 = vld [vmem:[#allocation20_spill] sm:$0xff] }
 0xb1e   : > { %v17942_v17 = vpop.f32.mrf.mxu0  ;;  %v13295_v41 = vadd.f32 %v17800_v2, %v17795_v27  ;;  %v10185_v52 = vadd.f32 %v13292_v62, %v17784_v36  ;;  %v13304_v36 = vadd.f32 %v17821_v32, %v17816_v1  ;;  %v13307_v1 = vadd.f32 %v17828_v24, %v17823_v45 }
 0xb1f   : > { %v17945_v37 = vadd.f32 %v13255_v3, %v17757_v0 }
 0xb20   : > { %v17947_v28 = vpop.f32.mrf.mxu0 }
 0xb21   : > { %18555 = vst [vmem:[#allocation71_spill] sm:$0xff] %v17945_v37 }
 0xb22   : > { %v17953_v61 = vpop.f32.mrf.mxu0 }
 0xb23   : > { %18556 = vst [vmem:[#allocation77_spill] sm:$0xff] %v17953_v61 }
 0xb24   : > { %v17955_v10 = vpop.f32.mrf.mxu0 }
 0xb25   : > { %18557 = vst [vmem:[#allocation75_spill] sm:$0xff] %v17955_v10  ;;  %v17966_v10 = vpop.f32.mrf.mxu1 }
 0xb26   : > { %v13608_v0 = vpop.f32.mrf.mxu0 }
 0xb27   : > { %v10338_v3 = vadd.f32 %v13608_v0, %v10177_v7  ;;  %v10193_v0 = vadd.f32 %v13298_v44, %v17798_v58  ;;  %v17984_v58 = vpop.f32.mrf.mxu1 }
 0xb28   : > { %v10329_v38 = vpop.f32.mrf.mxu0 }
 0xb29   : > { %v10458_v47 = vmul.f32 0.2, %v10338_v3  ;;  %v10330_v37 = vadd.f32 %v10329_v38, %v17770_v31  ;;  %v18559_v31 = vld [vmem:[#allocation15_spill] sm:$0xff]  ;;  %v10196_v38 = vadd.f32 %v13301_v49, %v17805_v33  ;;  %v13313_v33 = vadd.f32 %v17842_v40, %v17837_v30 }
 0xb2a   : > { %v13609_v61 = vpop.f32.mrf.mxu0  ;;  %v10201_v30 = vadd.f32 %v13304_v36, %v17812_v59  ;;  %v13322_v40 = vadd.f32 %v17863_v34, %v17858_v13  ;;  %v18566_v59 = vld [vmem:[#allocation46_spill] sm:$0xff]  ;;  %v18567_v13 = vld [vmem:[#allocation31_spill] sm:$0xff] }
 0xb2b   : > { %v10490_v5 = vadd.f32 %v10458_v47, %v18558_v42  ;;  %v10456_v21 = vmul.f32 0.2, %v10330_v37  ;;  %v10341_v50 = vadd.f32 %v13609_v61, %v10180_v55  ;;  %v17996_v47 = vpop.f32.mrf.mxu1 }
 0xb2c   : > { %v10332_v7 = vpop.f32.mrf.mxu0 }
 0xb2d   : > { %10522 = vst.msk [vmem:[%s17976_s28 + $0x10] sm:$0xff] %vm304_vm0, %v10490_v5  ;;  %v10488_v18 = vadd.f32 %v10456_v21, %v18559_v31  ;;  %v10459_v15 = vmul.f32 0.2, %v10341_v50  ;;  %v10333_v53 = vadd.f32 %v10332_v7, %v17777_v23  ;;  %v13310_v50 = vadd.f32 %v17835_v43, %v17830_v46  ;;  %v18561_v23 = vld [vmem:[#allocation16_spill] sm:$0xff]  ;;  %v18562_v46 = vld [vmem:[#allocation27_spill] sm:$0xff]  ;;  %v18012_v32 = vpop.f32.mrf.mxu1 }
 0xb2e   : > { %v13612_v55 = vpop.f32.mrf.mxu0  ;;  %v10188_v5 = vadd.f32 %v13295_v41, %v17791_v35  ;;  %v18563_v35 = vld [vmem:[#allocation23_spill] sm:$0xff] }
 0xb2f   : > { %10520 = vst.msk [vmem:[%s17976_s28] sm:$0xff] %vm304_vm0, %v10488_v18  ;;  %v10491_v6 = vadd.f32 %v10459_v15, %v18560_v57  ;;  %v10457_v37 = vmul.f32 0.2, %v10333_v53  ;;  %v10354_v61 = vadd.f32 %v13612_v55, %v10193_v0  ;;  %v10209_v0 = vadd.f32 %v13310_v50, %v17826_v22  ;;  %v18564_v53 = vld [vmem:[#allocation28_spill] sm:$0xff] }
 0xb30   : > { %v10345_v3 = vpop.f32.mrf.mxu0 }
 0xb31   : > { %10523 = vst.msk [vmem:[%s17976_s28 + $0x18] sm:$0xff] %vm304_vm0, %v10491_v6  ;;  %v10489_v27 = vadd.f32 %v10457_v37, %v18561_v23  ;;  %v10462_v2 = vmul.f32 0.2, %v10354_v61  ;;  %v10346_v44 = vadd.f32 %v10345_v3, %v10185_v52  ;;  %v18565_v6 = vld [vmem:[#allocation24_spill] sm:$0xff]  ;;  %v10212_v61 = vadd.f32 %v13313_v33, %v17833_v11  ;;  %v18024_v52 = vpop.f32.mrf.mxu1 }
 0xb32   : > { %v13613_v42 = vpop.f32.mrf.mxu0  ;;  %v10204_v3 = vadd.f32 %v13307_v1, %v17819_v25  ;;  %v13316_v23 = vadd.f32 %v18566_v59, %v17844_v20  ;;  %v18569_v11 = vld [vmem:[#allocation56_spill] sm:$0xff]  ;;  %v18570_v25 = vld [vmem:[#allocation29_spill] sm:$0xff]  ;;  %v13334_v1 = vadd.f32 %v17891_v8, %v17886_v16  ;;  %v18579_v16 = vld [vmem:[#allocation35_spill] sm:$0xff] }
 0xb33   : > { %10521 = vst.msk [vmem:[%s17976_s28 + $0x8] sm:$0xff] %vm304_vm0, %v10489_v27  ;;  %v10494_v43 = vadd.f32 %v10462_v2, %v18562_v46  ;;  %v10460_v62 = vmul.f32 0.2, %v10346_v44  ;;  %v10357_v21 = vadd.f32 %v13613_v42, %v10196_v38  ;;  %v18568_v38 = vld [vmem:[#allocation48_spill] sm:$0xff]  ;;  %v18571_v20 = vld [vmem:[#allocation49_spill] sm:$0xff] }
 0xb34   : > { %v10348_v7 = vpop.f32.mrf.mxu0  ;;  %v10225_v42 = vadd.f32 %v13322_v40, %v18568_v38  ;;  %v18573_v33 = vld [vmem:[#allocation32_spill] sm:$0xff] }
 0xb35   : > { %10526 = vst.msk [vmem:[%s17976_s28 + $0x30] sm:$0xff] %vm304_vm0, %v10494_v43  ;;  %v10492_v49 = vadd.f32 %v10460_v62, %v18563_v35  ;;  %v10463_v31 = vmul.f32 0.2, %v10357_v21  ;;  %v10349_v18 = vadd.f32 %v10348_v7, %v10188_v5  ;;  %v13325_v5 = vadd.f32 %v18569_v11, %v17865_v19  ;;  %v18572_v62 = vld [vmem:[#allocation51_spill] sm:$0xff]  ;;  %v18040_v7 = vpop.f32.mrf.mxu1  ;;  %v18584_v11 = vld [vmem:[#allocation57_spill] sm:$0xff] }
 0xb36   : > { %v13616_v15 = vpop.f32.mrf.mxu0  ;;  %v13319_v21 = vadd.f32 %v18572_v62, %v18571_v20  ;;  %v18574_v19 = vld [vmem:[#allocation59_spill] sm:$0xff] }
 0xb37   : > { %10524 = vst.msk [vmem:[%s17976_s28 + $0x20] sm:$0xff] %vm304_vm0, %v10492_v49  ;;  %v10495_v22 = vadd.f32 %v10463_v31, %v18564_v53  ;;  %v10461_v41 = vmul.f32 0.2, %v10349_v18  ;;  %v10370_v55 = vadd.f32 %v13616_v15, %v10209_v0  ;;  %v10217_v18 = vadd.f32 %v13316_v23, %v18574_v19  ;;  %v18575_v53 = vld [vmem:[#allocation30_spill] sm:$0xff] }
 0xb38   : > { %v10361_v57 = vpop.f32.mrf.mxu0  ;;  %v18580_v23 = vld [vmem:[#allocation50_spill] sm:$0xff] }
 0xb39   : > { %10527 = vst.msk [vmem:[%s17976_s28 + $0x38] sm:$0xff] %vm304_vm0, %v10495_v22  ;;  %v10493_v45 = vadd.f32 %v10461_v41, %v18565_v6  ;;  %v10466_v24 = vmul.f32 0.2, %v10370_v55  ;;  %v10362_v37 = vadd.f32 %v10361_v57, %v10201_v30  ;;  %v18576_v30 = vld [vmem:[#allocation66_spill] sm:$0xff]  ;;  %v18052_v57 = vpop.f32.mrf.mxu1 }
 0xb3a   : > { %v13617_v50 = vpop.f32.mrf.mxu0  ;;  %v10228_v40 = vadd.f32 %v13325_v5, %v18576_v30 }
 0xb3b   : > { %10525 = vst.msk [vmem:[%s17976_s28 + $0x28] sm:$0xff] %vm304_vm0, %v10493_v45  ;;  %v10498_v34 = vadd.f32 %v10466_v24, %v18567_v13  ;;  %v10464_v27 = vmul.f32 0.2, %v10362_v37  ;;  %v10373_v2 = vadd.f32 %v13617_v50, %v10212_v61  ;;  %v18577_v45 = vld [vmem:[#allocation63_spill] sm:$0xff]  ;;  %v18578_v37 = vld [vmem:[#allocation54_spill] sm:$0xff]  ;;  %v10241_v13 = vadd.f32 %v13334_v1, %v18580_v23 }
 0xb3c   : > { %v10364_v44 = vpop.f32.mrf.mxu0  ;;  %v10220_v24 = vadd.f32 %v13319_v21, %v18577_v45  ;;  %v13328_v61 = vadd.f32 %v18578_v37, %v17872_v60  ;;  %v18583_v60 = vld [vmem:[#allocation68_spill] sm:$0xff]  ;;  %v13349_v37 = vadd.f32 %v17935_v48, %v17930_v56  ;;  %v13358_v48 = vadd.f32 %v17996_v47, %v17984_v58  ;;  %v18599_v58 = vld [vmem:[#allocation13_spill] sm:$0xff] }
 0xb3d   : > { %10530 = vst.msk [vmem:[%s17976_s28 + $0x50] sm:$0xff] %vm304_vm0, %v10498_v34  ;;  %v10496_v36 = vadd.f32 %v10464_v27, %v18570_v25  ;;  %v10467_v46 = vmul.f32 0.2, %v10373_v2  ;;  %v10365_v43 = vadd.f32 %v10364_v44, %v10204_v3  ;;  %v18581_v34 = vld [vmem:[#allocation58_spill] sm:$0xff]  ;;  %v18582_v2 = vld [vmem:[#allocation33_spill] sm:$0xff]  ;;  %v13331_v5 = vadd.f32 %v18584_v11, %v18583_v60  ;;  %v18068_v25 = vpop.f32.mrf.mxu1 }
 0xb3e   : > { %v13620_v0 = vpop.f32.mrf.mxu0  ;;  %v13337_v27 = vadd.f32 %v18581_v34, %v17893_v51  ;;  %v18586_v51 = vld [vmem:[#allocation61_spill] sm:$0xff] }
 0xb3f   : > { %10528 = vst.msk [vmem:[%s17976_s28 + $0x40] sm:$0xff] %vm304_vm0, %v10496_v36  ;;  %v10499_v35 = vadd.f32 %v10467_v46, %v18573_v33  ;;  %v10465_v49 = vmul.f32 0.2, %v10365_v43  ;;  %v10386_v31 = vadd.f32 %v13620_v0, %v10225_v42  ;;  %v18585_v46 = vld [vmem:[#allocation36_spill] sm:$0xff]  ;;  %v10233_v21 = vadd.f32 %v13328_v61, %v18586_v51  ;;  %v18592_v61 = vld [vmem:[#allocation37_spill] sm:$0xff] }
 0xb40   : > { %v10377_v15 = vpop.f32.mrf.mxu0  ;;  %v13346_v0 = vadd.f32 %v17925_v63, %v17920_v26  ;;  %v18591_v26 = vld [vmem:[#allocation39_spill] sm:$0xff]  ;;  %v18597_v11 = vld [vmem:[#allocation65_spill] sm:$0xff] }
 0xb41   : > { %10531 = vst.msk [vmem:[%s17976_s28 + $0x58] sm:$0xff] %vm304_vm0, %v10499_v35  ;;  %v10497_v22 = vadd.f32 %v10465_v49, %v18575_v53  ;;  %v10470_v41 = vmul.f32 0.2, %v10386_v31  ;;  %v10378_v55 = vadd.f32 %v10377_v15, %v10217_v18  ;;  %v18587_v35 = vld [vmem:[#allocation34_spill] sm:$0xff]  ;;  %v18588_v18 = vld [vmem:[#allocation69_spill] sm:$0xff]  ;;  %v18080_v15 = vpop.f32.mrf.mxu1 }
 0xb42   : > { %v13621_v6 = vpop.f32.mrf.mxu0  ;;  %v10244_v1 = vadd.f32 %v13337_v27, %v18588_v18  ;;  %v13258_v18 = vadd.f32 %v17947_v28, %v17942_v17  ;;  %v18604_v28 = vld [vmem:[#allocation72_spill] sm:$0xff] }
 0xb43   : > { %10529 = vst.msk [vmem:[%s17976_s28 + $0x48] sm:$0xff] %vm304_vm0, %v10497_v22  ;;  %v10502_v8 = vadd.f32 %v10470_v41, %v18579_v16  ;;  %v10468_v50 = vmul.f32 0.2, %v10378_v55  ;;  %v10389_v3 = vadd.f32 %v13621_v6, %v10228_v40  ;;  %v18589_v22 = vld [vmem:[#allocation53_spill] sm:$0xff]  ;;  %v18590_v55 = vld [vmem:[#allocation60_spill] sm:$0xff] }
 0xb44   : > { %v10380_v59 = vpop.f32.mrf.mxu0  ;;  %v10236_v41 = vadd.f32 %v13331_v5, %v18589_v22  ;;  %v13340_v30 = vadd.f32 %v17905_v29, %v18590_v55  ;;  %v18593_v29 = vld [vmem:[#allocation64_spill] sm:$0xff]  ;;  %v10260_v5 = vadd.f32 %v13349_v37, %v18597_v11 }
 0xb45   : > { %10534 = vst.msk [vmem:[%s17976_s28 + $0x70] sm:$0xff] %vm304_vm0, %v10502_v8  ;;  %v10500_v44 = vadd.f32 %v10468_v50, %v18582_v2  ;;  %v10471_v38 = vmul.f32 0.2, %v10389_v3  ;;  %v10381_v42 = vadd.f32 %v10380_v59, %v10220_v24  ;;  %v10257_v24 = vadd.f32 %v13346_v0, %v17908_v54  ;;  %v13368_v59 = vpop.f32.mrf.mxu1  ;;  %v18595_v2 = vld [vmem:[#allocation52_spill] sm:$0xff] }
 0xb46   : > { %v13624_v36 = vpop.f32.mrf.mxu0  ;;  %v13343_v3 = vadd.f32 %v17915_v9, %v18593_v29  ;;  %v10249_v56 = vadd.f32 %v13340_v30, %v18595_v2  ;;  %v18608_v29 = vld [vmem:[#allocation75_spill] sm:$0xff] }
 0xb47   : > { %10532 = vst.msk [vmem:[%s17976_s28 + $0x60] sm:$0xff] %vm304_vm0, %v10500_v44  ;;  %v10503_v43 = vadd.f32 %v10471_v38, %v18585_v46  ;;  %v10469_v20 = vmul.f32 0.2, %v10381_v42  ;;  %v10402_v62 = vadd.f32 %v13624_v36, %v10241_v13  ;;  %v18594_v13 = vld [vmem:[#allocation40_spill] sm:$0xff]  ;;  %v18596_v38 = vld [vmem:[#allocation38_spill] sm:$0xff]  ;;  %v13369_v36 = vpop.f32.mrf.mxu1 }
 0xb48   : > { %v10393_v33 = vpop.f32.mrf.mxu0  ;;  %v13370_v30 = vadd.f32 %v13369_v36, %v13368_v59  ;;  %v18609_v59 = vld [vmem:[#allocation21_spill] sm:$0xff] }
 0xb49   : > { %10535 = vst.msk [vmem:[%s17976_s28 + $0x78] sm:$0xff] %vm304_vm0, %v10503_v43  ;;  %v10501_v49 = vadd.f32 %v10469_v20, %v18587_v35  ;;  %v10474_v31 = vmul.f32 0.2, %v10402_v62  ;;  %v10394_v19 = vadd.f32 %v10393_v33, %v10233_v21  ;;  %v18598_v43 = vld [vmem:[#allocation70_spill] sm:$0xff]  ;;  %v13352_v62 = vadd.f32 %v17951_v4, %v17940_v39 }
 0xb4a   : > { %v13625_v53 = vpop.f32.mrf.mxu0  ;;  %v10252_v20 = vadd.f32 %v13343_v3, %v18598_v43  ;;  %v10273_v33 = vadd.f32 %v13358_v48, %v17928_v12  ;;  %v13361_v35 = vadd.f32 %v18024_v52, %v18012_v32  ;;  %v13355_v4 = vadd.f32 %v17966_v10, %v17960_v14  ;;  %v18601_v12 = vld [vmem:[#allocation14_spill] sm:$0xff] }
 0xb4b   : > { %10533 = vst.msk [vmem:[%s17976_s28 + $0x68] sm:$0xff] %vm304_vm0, %v10501_v49  ;;  %v10506_v63 = vadd.f32 %v10474_v31, %v18591_v26  ;;  %v10472_v40 = vmul.f32 0.2, %v10394_v19  ;;  %v10405_v6 = vadd.f32 %v13625_v53, %v10244_v1  ;;  %v18600_v49 = vld [vmem:[#allocation41_spill] sm:$0xff]  ;;  %v13371_v1 = vpop.f32.mrf.mxu1 }
 0xb4c   : > { %v10396_v45 = vpop.f32.mrf.mxu0 }
 0xb4d   : > { %10538 = vst.msk [vmem:[%s17976_s28 + $0x90] sm:$0xff] %vm304_vm0, %v10506_v63  ;;  %v10504_v16 = vadd.f32 %v10472_v40, %v18592_v61  ;;  %v10475_v8 = vmul.f32 0.2, %v10405_v6  ;;  %v10397_v50 = vadd.f32 %v10396_v45, %v10236_v41  ;;  %v18602_v41 = vld [vmem:[#allocation62_spill] sm:$0xff]  ;;  %v10276_v40 = vadd.f32 %v13361_v35, %v18604_v28  ;;  %v18605_v6 = vld [vmem:[#allocation47_spill] sm:$0xff]  ;;  %v13372_v37 = vpop.f32.mrf.mxu1 }
 0xb4e   : > { %v13628_v23 = vpop.f32.mrf.mxu0  ;;  %v10265_v55 = vadd.f32 %v13352_v62, %v18602_v41  ;;  %v18603_v63 = vld [vmem:[#allocation42_spill] sm:$0xff]  ;;  %v10128_v45 = vadd.f32 %v13258_v18, %v18605_v6  ;;  %v13373_v2 = vadd.f32 %v13372_v37, %v13371_v1 }
 0xb4f   : > { %10536 = vst.msk [vmem:[%s17976_s28 + $0x80] sm:$0xff] %vm304_vm0, %v10504_v16  ;;  %v10507_v54 = vadd.f32 %v10475_v8, %v18594_v13  ;;  %v10473_v34 = vmul.f32 0.2, %v10397_v50  ;;  %v10418_v27 = vadd.f32 %v13628_v23, %v10257_v24  ;;  %v13364_v24 = vadd.f32 %v18052_v57, %v18040_v7  ;;  %v18606_v16 = vld [vmem:[#allocation67_spill] sm:$0xff]  ;;  %v18607_v50 = vld [vmem:[#allocation77_spill] sm:$0xff]  ;;  %v18614_v62 = vld [vmem:[#allocation18_spill] sm:$0xff] }
 0xb50   : > { %v10409_v44 = vpop.f32.mrf.mxu0  ;;  %v10268_v8 = vadd.f32 %v13355_v4, %v18606_v16  ;;  %v13261_v3 = vadd.f32 %v18608_v29, %v18607_v50  ;;  %v18610_v7 = vld [vmem:[#allocation17_spill] sm:$0xff] }
 0xb51   : > { %10539 = vst.msk [vmem:[%s17976_s28 + $0x98] sm:$0xff] %vm304_vm0, %v10507_v54  ;;  %v10505_v9 = vadd.f32 %v10473_v34, %v18596_v38  ;;  %v10478_v42 = vmul.f32 0.2, %v10418_v27  ;;  %v10410_v60 = vadd.f32 %v10409_v44, %v10249_v56  ;;  %v10289_v27 = vadd.f32 %v13370_v30, %v10128_v45 }
 0xb52   : > { %v13629_v46 = vpop.f32.mrf.mxu0  ;;  %v13367_v44 = vadd.f32 %v18080_v15, %v18068_v25 }
 0xb53   : > { %10537 = vst.msk [vmem:[%s17976_s28 + $0x88] sm:$0xff] %vm304_vm0, %v10505_v9  ;;  %v10510_v47 = vadd.f32 %v10478_v42, %v18599_v58  ;;  %v10476_v51 = vmul.f32 0.2, %v10410_v60  ;;  %v10421_v21 = vadd.f32 %v13629_v46, %v10260_v5  ;;  %v18611_v9 = vld [vmem:[#allocation73_spill] sm:$0xff]  ;;  %v18612_v60 = vld [vmem:[#allocation55_spill] sm:$0xff]  ;;  %v18613_v5 = vld [vmem:[#allocation22_spill] sm:$0xff] }
 0xb54   : > { %v10412_v0 = vpop.f32.mrf.mxu0  ;;  %v10281_v42 = vadd.f32 %v13364_v24, %v18611_v9  ;;  %v10131_v11 = vadd.f32 %v13261_v3, %v18612_v60 }
 0xb55   : > { %10542 = vst.msk [vmem:[%s17976_s28 + $0xb0] sm:$0xff] %vm304_vm0, %v10510_v47  ;;  %v10508_v31 = vadd.f32 %v10476_v51, %v18600_v49  ;;  %v10479_v19 = vmul.f32 0.2, %v10421_v21  ;;  %v10413_v39 = vadd.f32 %v10412_v0, %v10252_v20  ;;  %v18615_v21 = vld [vmem:[#allocation43_spill] sm:$0xff] }
 0xb56   : > { %v13632_v53 = vpop.f32.mrf.mxu0  ;;  %v10292_v47 = vadd.f32 %v13373_v2, %v10131_v11  ;;  %v18616_v49 = vld [vmem:[#allocation71_spill] sm:$0xff] }
 0xb57   : > { %10540 = vst.msk [vmem:[%s17976_s28 + $0xa0] sm:$0xff] %vm304_vm0, %v10508_v31  ;;  %v10511_v22 = vadd.f32 %v10479_v19, %v18601_v12  ;;  %v10477_v32 = vmul.f32 0.2, %v10413_v39  ;;  %v10434_v52 = vadd.f32 %v13632_v53, %v10273_v33  ;;  %v10284_v31 = vadd.f32 %v13367_v44, %v18616_v49  ;;  %v18617_v39 = vld [vmem:[#allocation25_spill] sm:$0xff]  ;;  %v18618_v53 = vld [vmem:[#allocation44_spill] sm:$0xff] }
 0xb58   : > { %v10425_v26 = vpop.f32.mrf.mxu0 }
 0xb59   : > { %10543 = vst.msk [vmem:[%s17976_s28 + $0xb8] sm:$0xff] %vm304_vm0, %v10511_v22  ;;  %v10509_v10 = vadd.f32 %v10477_v32, %v18603_v63  ;;  %v10482_v14 = vmul.f32 0.2, %v10434_v52  ;;  %v10426_v17 = vadd.f32 %v10425_v26, %v10265_v55  ;;  %v18619_v32 = vld [vmem:[#allocation26_spill] sm:$0xff] }
 0xb5a   : > { %v13633_v61 = vpop.f32.mrf.mxu0 }
 0xb5b   : > { %10541 = vst.msk [vmem:[%s17976_s28 + $0xa8] sm:$0xff] %vm304_vm0, %v10509_v10  ;;  %v10514_v23 = vadd.f32 %v10482_v14, %v18609_v59  ;;  %v10480_v13 = vmul.f32 0.2, %v10426_v17  ;;  %v10437_v54 = vadd.f32 %v13633_v61, %v10276_v40 }
 0xb5c   : > { %v10428_v34 = vpop.f32.mrf.mxu0 }
 0xb5d   : > { %10546 = vst.msk [vmem:[%s17976_s28 + $0xd0] sm:$0xff] %vm304_vm0, %v10514_v23  ;;  %v10512_v57 = vadd.f32 %v10480_v13, %v18610_v7  ;;  %v10483_v56 = vmul.f32 0.2, %v10437_v54  ;;  %v10429_v48 = vadd.f32 %v10428_v34, %v10268_v8 }
 0xb5e   : > { %v13636_v38 = vpop.f32.mrf.mxu0 }
 0xb5f   : > { %10544 = vst.msk [vmem:[%s17976_s28 + $0xc0] sm:$0xff] %vm304_vm0, %v10512_v57  ;;  %v10515_v36 = vadd.f32 %v10483_v56, %v18613_v5  ;;  %v10481_v46 = vmul.f32 0.2, %v10429_v48  ;;  %v10450_v43 = vadd.f32 %v13636_v38, %v10289_v27 }
 0xb60   : > { %v10441_v20 = vpop.f32.mrf.mxu0 }
 0xb61   : > { %10547 = vst.msk [vmem:[%s17976_s28 + $0xd8] sm:$0xff] %vm304_vm0, %v10515_v36  ;;  %v10513_v58 = vadd.f32 %v10481_v46, %v18614_v62  ;;  %v10486_v25 = vmul.f32 0.2, %v10450_v43  ;;  %v10442_v15 = vadd.f32 %v10441_v20, %v10281_v42 }
 0xb62   : > { %v13637_v51 = vpop.f32.mrf.mxu0 }
 0xb63   : > { %10545 = vst.msk [vmem:[%s17976_s28 + $0xc8] sm:$0xff] %vm304_vm0, %v10513_v58  ;;  %v10518_v0 = vadd.f32 %v10486_v25, %v18615_v21  ;;  %v10484_v33 = vmul.f32 0.2, %v10442_v15  ;;  %v10453_v35 = vadd.f32 %v13637_v51, %v10292_v47 }
 0xb64   : > { %v10444_v19 = vpop.f32.mrf.mxu0 }
 0xb65   : > { %10550 = vst.msk [vmem:[%s17976_s28 + $0xf0] sm:$0xff] %vm304_vm0, %v10518_v0  ;;  %v10516_v4 = vadd.f32 %v10484_v33, %v18617_v39  ;;  %v10487_v18 = vmul.f32 0.2, %v10453_v35  ;;  %v10445_v1 = vadd.f32 %v10444_v19, %v10284_v31 }
 0xb67   : > { %10548 = vst.msk [vmem:[%s17976_s28 + $0xe0] sm:$0xff] %vm304_vm0, %v10516_v4  ;;  %v10519_v12 = vadd.f32 %v10487_v18, %v18618_v53  ;;  %v10485_v22 = vmul.f32 0.2, %v10445_v1 }
 0xb69   : > { %10551 = vst.msk [vmem:[%s17976_s28 + $0xf8] sm:$0xff] %vm304_vm0, %v10519_v12  ;;  %v10517_v52 = vadd.f32 %v10485_v22, %v18619_v32 }
 0xb6b   : > { %10549 = vst.msk [vmem:[%s17976_s28 + $0xe8] sm:$0xff] %vm304_vm0, %v10517_v52 }
 0xb6c   : > { %14194 = shalt.err (!%p14191_p9)
}
 0xb6d   : > { %s14195_s4 = scalar_lea.hbm %s18167_s21, 4096  ;;  %s14199_s18 = scalar_lea.hbm %s18220_s3, 8192 }
 0xb6e   : > { %p14196_p13 = scmp.ne.s32.totalorder %s18167_s21, %s14195_s4  ;;  %p14200_p4 = scmp.lt.s32.totalorder %s18167_s21, %s18220_s3 }
 0xb6f   : > { %p14201_p8 = scmp.lt.s32.totalorder %s14199_s18, %s14195_s4 }
 0xb70   : > { %p14197_p5 = pnand %p14196_p13, %p18620_p10 }
 0xb71   : > { %p14202_p3 = por %p14201_p8, %p14200_p4 }
 0xb72   : > { %p14198_p0 = pneg %p14197_p5 }
 0xb74   : > { %p14203_p11 = pnand %p14202_p3, %p14198_p0 }
 0xb76   : > { %14206 = shalt.err (!%p14203_p11)
}
 0xb77   : > { %s14265_s27 = smov 128   ;;  %s14266_s28 = smov 8  }
 0xb78   : > { %13664 = dma.vmem_to_hbm [thread:$0]  (%p18620_p10), %s18169_s8, 4096, %s18167_s21, %s10553_s16, %s14265_s27, %s14265_s27, %s14266_s28  }
 0xb79 PF: > { %s10581_s29 = sand.u32 1, %s14237_s12   ;;  %p18621_p1 = scmp.ne.s32.totalorder %s18260_s19, 0 }
 0xb7a   : > { %p18622_p2 = scmp.ge.s32.totalorder %s14249_s15, 2  ;;  %s10582_s9 = scalar_lea.sflag [#allocation5], %s10581_s29 }
 0xb7c   : > { %p13678_p6 = pnand %p18622_p2, %p18621_p1 }
 0xb7e   : > { %p13679_p12 = pneg %p13678_p6 }
 0xb80   : > { %14232 = dma.done.wait (%p13679_p12), %s10582_s9, 4096  }
 0xb81   : > { %14234 = vsyncadd (%p13679_p12), %s10582_s9, 4294963200  ;;  %p17_p7 = scmp.ge.s32.totalorder %s14359_s7, 4   ;;  %s18623_s12 = smov %s14241_s13 }
 0xb82   : > { %s18624_s13 = smov %s14245_s14  ;;  %s18625_s14 = smov %s14375_s11 }
 0xb83   : > { %s18626_s15 = smov %s14359_s7  ;;  %19 = sbr.rel (!%p17_p7) target bundleno = 6 (0x6), region = 91 }
 0xb88   :  { %10587 = vsyncpa [#allocation4], 1 }
 0xb89   :  { %10589 = vsyncpa [#allocation4 + $0x1], 1 }
 0xb8a   :  { %10590 = vsyncpa [#allocation7], 1 }
 0xb8b   :  { %10591 = vsyncpa [#allocation5], 1 }
 0xb8c   :  { %10593 = vsyncpa [#allocation5 + $0x1], 1 }

</bundles_post_ra>
